<compile_context>
chip_gen: v6e
topology: v6e:2x2x1
jax: 0.10.0
libtpu: 0.0.40
codegen_flags: <defaults>
</compile_context>

<pallas_src>
import functools

import jax
import jax.numpy as jnp
from jax.experimental import pallas as pl
from jax.experimental.pallas import tpu as pltpu


VMEM_LIMIT_BYTES = 32 * 1024 * 1024   # explicit scoped-VMEM limit (v5e default is 16 MiB)


# ----------------------------------------------------------------------------
# In-kernel helpers (implicit GEMM: 9 shifted-slice matmuls, f32 accumulate)
# ----------------------------------------------------------------------------
def _phase_conv3x3(xph, wt_ref, ho, wo, cin, cout):
    """Stride-2 / pad-1 3x3 conv from a stride-phase-split input.

    xph    : [4, ho+1, wo+1, cin] bf16 register value (phase p = 2*(row%2)+col%2)
    wt_ref : [9, cin, cout] bf16 ref (tap-major)
    returns [ho*wo, cout] f32
    """
    acc = jnp.zeros((ho * wo, cout), jnp.float32)
    for ky in range(3):
        for kx in range(3):
            p = (ky % 2) * 2 + (kx % 2)
            r0, c0 = ky // 2, kx // 2
            tap = xph[p, r0:r0 + ho, c0:c0 + wo, :].reshape(ho * wo, cin)
            acc = acc + jnp.dot(tap, wt_ref[ky * 3 + kx],
                                preferred_element_type=jnp.float32)
    return acc


def _dilated_conv3x3(pad_ref, wg_ref, widx, h, w, c, d, dmax):
    """3x3 dilated (rate d) conv over the zero-padded activation staged in
    pad_ref (interior at offset dmax, border permanently zero)."""
    a = pad_ref[...]                              # [h+2*dmax, w+2*dmax, c] bf16
    base = dmax - d
    acc = jnp.zeros((h * w, c), jnp.float32)
    for ky in range(3):
        for kx in range(3):
            tap = a[base + ky * d: base + ky * d + h,
                    base + kx * d: base + kx * d + w, :].reshape(h * w, c)
            acc = acc + jnp.dot(tap, wg_ref[widx, ky * 3 + kx],
                                preferred_element_type=jnp.float32)
    return acc


def _residual_group(cur, wg_ref, pad_ref, h, w, c, dils, dmax):
    """Pre-activation residual blocks, all intermediates VMEM/vreg resident.

    cur : [h, w, c] f32 running activation (also the aligned residual operand).
    """
    for b, d in enumerate(dils):
        # conv1 input = relu(cur), zero-padded via the persistent scratch.
        pad_ref[dmax:dmax + h, dmax:dmax + w, :] = (
            jnp.maximum(cur, 0.0).astype(jnp.bfloat16))
        h1 = _dilated_conv3x3(pad_ref, wg_ref, 2 * b, h, w, c, d, dmax)
        # conv2 input = relu(h1), reuse the same scratch interior.
        pad_ref[dmax:dmax + h, dmax:dmax + w, :] = (
            jnp.maximum(h1, 0.0).astype(jnp.bfloat16).reshape(h, w, c))
        h2 = _dilated_conv3x3(pad_ref, wg_ref, 2 * b + 1, h, w, c, d, dmax)
        cur = cur + h2.reshape(h, w, c)           # aligned residual add (f32)
    return cur


# ----------------------------------------------------------------------------
# Pallas kernels
# ----------------------------------------------------------------------------
def _transition_kernel(xph_ref, wt_ref, o_ref, *, ho, wo, cin, cout):
    """Fused Conv3x3(stride=2, pad=1) + ReLU for one sample (transition1)."""
    acc = _phase_conv3x3(xph_ref[...], wt_ref, ho, wo, cin, cout)
    o_ref[...] = (jnp.maximum(acc, 0.0)
                  .astype(jnp.bfloat16).reshape(ho, wo, cout))


def _trans_group_kernel(xph_ref, wt_ref, wg_ref, o_ref, pad_ref, *,
                        ho, wo, cin, cout, dils, dmax):
    """One fused call: TransitionBlock (stride-2 conv + ReLU) followed by a
    whole pre-activation residual group, intermediates never touch HBM."""
    # One cheap full-scratch zero per grid step (megacore-safe; interior is
    # overwritten below, the border must be zero for implicit conv padding).
    pad_ref[...] = jnp.zeros((ho + 2 * dmax, wo + 2 * dmax, cout), jnp.bfloat16)

    acc = _phase_conv3x3(xph_ref[...], wt_ref, ho, wo, cin, cout)
    cur = jnp.maximum(acc, 0.0).reshape(ho, wo, cout)     # transition ReLU, f32
    cur = _residual_group(cur, wg_ref, pad_ref, ho, wo, cout, dils, dmax)
    o_ref[...] = cur.astype(jnp.bfloat16)


# ----------------------------------------------------------------------------
# Glue (layout plumbing only; all conv math happens inside the kernels)
# ----------------------------------------------------------------------------
def _tap_weights(w_hwio):
    """[3,3,cin,cout] f32 -> [9,cin,cout] bf16 (tap-major MXU operand)."""
    kh, kw, cin, cout = w_hwio.shape
    return w_hwio.reshape(kh * kw, cin, cout).astype(jnp.bfloat16)


def _stack_group_weights(block_params):
    """[(w1,w2), ...] -> [2B, 9, c, c] bf16 (block-major, conv1/conv2 pairs)."""
    mats = []
    for w1, w2 in block_params:
        mats.append(_tap_weights(w1))
        mats.append(_tap_weights(w2))
    return jnp.stack(mats, axis=0)


def _phase_split(x):
    """pad-1 + stride-2 space-to-depth split: [N,H,W,C] -> [N,4,ho+1,wo+1,C] bf16.

    Every in-kernel tap read becomes a contiguous static slice of one phase.
    """
    n, h, w, c = x.shape
    ho, wo = (h + 1) // 2, (w + 1) // 2
    pad_b = 1 + ((h + 2) % 2)          # pad to even extents; extras never read
    pad_r = 1 + ((w + 2) % 2)
    xp = jnp.pad(x.astype(jnp.bfloat16),
                 ((0, 0), (1, pad_b), (1, pad_r), (0, 0)))
    phases = jnp.stack([xp[:, py::2, px::2, :]
                        for py in (0, 1) for px in (0, 1)], axis=1)
    hp2, wp2 = phases.shape[2], phases.shape[3]
    # Static safety check (review): tap windows with (r0, c0) in {0,1} must fit.
    assert 1 + ho <= hp2 and 1 + wo <= wp2, (h, w, ho, wo, hp2, wp2)
    return phases, ho, wo


def transition_block(x, wt_hwio):
    """Conv3x3(stride=2, pad=1, no bias) + ReLU.  x: [N,H,W,Cin]."""
    n = x.shape[0]
    cin, cout = wt_hwio.shape[2], wt_hwio.shape[3]
    phases, ho, wo = _phase_split(x)
    hp2, wp2 = phases.shape[2], phases.shape[3]
    kernel = functools.partial(_transition_kernel, ho=ho, wo=wo,
                               cin=cin, cout=cout)
    return pl.pallas_call(
        kernel,
        out_shape=jax.ShapeDtypeStruct((n, ho, wo, cout), jnp.bfloat16),
        grid=(n,),
        in_specs=[
            pl.BlockSpec((None, 4, hp2, wp2, cin), lambda i: (i, 0, 0, 0, 0)),
            pl.BlockSpec((9, cin, cout), lambda i: (0, 0, 0)),
        ],
        out_specs=pl.BlockSpec((None, ho, wo, cout), lambda i: (i, 0, 0, 0)),
        compiler_params=pltpu.CompilerParams(
            dimension_semantics=("parallel",),
            vmem_limit_bytes=VMEM_LIMIT_BYTES),
    )(phases, _tap_weights(wt_hwio))


def transition_then_group(x, wt_hwio, block_params, dilations):
    """One pallas_call = TransitionBlock + full residual group."""
    n = x.shape[0]
    cin, cout = wt_hwio.shape[2], wt_hwio.shape[3]
    dils = tuple(int(d) for d in dilations)
    dmax = max(dils)
    phases, ho, wo = _phase_split(x)
    hp2, wp2 = phases.shape[2], phases.shape[3]
    wg = _stack_group_weights(block_params)                 # [2B, 9, cout, cout]
    nb2 = wg.shape[0]
    kernel = functools.partial(_trans_group_kernel, ho=ho, wo=wo, cin=cin,
                               cout=cout, dils=dils, dmax=dmax)
    return pl.pallas_call(
        kernel,
        out_shape=jax.ShapeDtypeStruct((n, ho, wo, cout), jnp.bfloat16),
        grid=(n,),
        in_specs=[
            pl.BlockSpec((None, 4, hp2, wp2, cin), lambda i: (i, 0, 0, 0, 0)),
            pl.BlockSpec((9, cin, cout), lambda i: (0, 0, 0)),
            pl.BlockSpec((nb2, 9, cout, cout), lambda i: (0, 0, 0, 0)),
        ],
        out_specs=pl.BlockSpec((None, ho, wo, cout), lambda i: (i, 0, 0, 0)),
        scratch_shapes=[
            pltpu.VMEM((ho + 2 * dmax, wo + 2 * dmax, cout), jnp.bfloat16)],
        compiler_params=pltpu.CompilerParams(
            dimension_semantics=("parallel",),
            vmem_limit_bytes=VMEM_LIMIT_BYTES),
    )(phases, _tap_weights(wt_hwio), wg)


# ----------------------------------------------------------------------------
# Parameter init (deterministic, synthetic)
# ----------------------------------------------------------------------------
def _conv_w(key, cin, cout):
    std = (2.0 / (9.0 * cin)) ** 0.5
    return std * jax.random.normal(key, (3, 3, cin, cout), jnp.float32)


def init_params(key, num_blocks, num_channels):
    c0, c1, c2 = num_channels
    keys = iter(jax.random.split(key, 64))
    p = {}
    p["t1"] = _conv_w(next(keys), 1, c0)
    p["t2"] = _conv_w(next(keys), c0, c0)
    p["g1"] = [(_conv_w(next(keys), c0, c0), _conv_w(next(keys), c0, c0))
               for _ in range(num_blocks[0])]
    p["t3"] = _conv_w(next(keys), c0, c1)
    p["g2"] = [(_conv_w(next(keys), c1, c1), _conv_w(next(keys), c1, c1))
               for _ in range(num_blocks[1])]
    p["t4"] = _conv_w(next(keys), c1, c2)
    p["g3"] = [(_conv_w(next(keys), c2, c2), _conv_w(next(keys), c2, c2))
               for _ in range(num_blocks[2])]
    return p


# ----------------------------------------------------------------------------
# Forward pass (matches HybridDilatedResNetAlpha.forward)
# ----------------------------------------------------------------------------
def make_forward(num_blocks, dilation_rates):
    """Dilation rates control padding/slice shapes, so they are baked in as
    static Python ints (never traced jit arguments)."""
    g1_dil = (1,) * num_blocks[0]
    g2_dil = (1,) * num_blocks[1]
    g3_dil = tuple(int(dilation_rates[i % len(dilation_rates)])
                   for i in range(num_blocks[2]))

    def forward(params, x_nchw):
        n, cin, h, w = x_nchw.shape
        if cin == 1:                        # NCHW->NHWC is a free reshape here
            x = x_nchw.reshape(n, h, w, 1)
        else:
            x = jnp.transpose(x_nchw, (0, 2, 3, 1))
        x = transition_block(x, params["t1"])                             # /2
        g1 = transition_then_group(x, params["t2"], params["g1"], g1_dil)   # /4
        g2 = transition_then_group(g1, params["t3"], params["g2"], g2_dil)  # /8
        g3 = transition_then_group(g2, params["t4"], params["g3"], g3_dil)  # /16
        # PyTorch layout + dtype for the returned feature maps.
        to_nchw = lambda t: jnp.transpose(t, (0, 3, 1, 2)).astype(jnp.float32)
        return to_nchw(g1), to_nchw(g2), to_nchw(g3)

    return forward


# ----------------------------------------------------------------------------
if __name__ == "__main__":
    num_blocks = (1, 1, 2)
    num_channels = (8, 16, 32)
    dilation_rates = (1, 2)

    key = jax.random.PRNGKey(0)
    pkey, xkey = jax.random.split(key)
    params = init_params(pkey, num_blocks, num_channels)

    # single-channel stereo image input (TransitionBlock(1, ...) => Cin = 1)
    x = jax.random.normal(xkey, (2, 1, 32, 32), jnp.float32)

    fwd = jax.jit(make_forward(num_blocks, dilation_rates))
    g1, g2, g3 = fwd(params, x)
    jax.block_until_ready((g1, g2, g3))

    assert g1.shape == (2, num_channels[0], 8, 8)
    assert g2.shape == (2, num_channels[1], 4, 4)
    assert g3.shape == (2, num_channels[2], 2, 2)
    print("KERNEL_OK")
</pallas_src>

<mosaic_0001>
module attributes {stable_mosaic.version = 11 : i64} {
  func.func @_transition_kernel(%arg0: i32, %arg1: memref<1x4x17x17x1xbf16, #tpu.memory_space<vmem>>, %arg2: memref<9x1x8xbf16, #tpu.memory_space<vmem>>, %arg3: memref<1x16x16x8xbf16, #tpu.memory_space<vmem>>) attributes {dimension_semantics = [#tpu.dimension_semantics<parallel>], iteration_bounds = array<i64: 2>, scalar_prefetch = 0 : i64, scratch_operands = 0 : i64, tpu.core_type = #tpu.core_type<tc>, window_params = [{transform_indices = @transform_0, window_bounds = array<i64: 1, 4, 17, 17, 1>}, {pipeline_mode = #tpu.pipeline_mode<synchronous>, transform_indices = @transform_1, window_bounds = array<i64: 9, 1, 8>}, {transform_indices = @transform_2, window_bounds = array<i64: 1, 16, 16, 8>}]} {
    %c0 = arith.constant 0 : index
    %c0_0 = arith.constant 0 : index
    %c0_1 = arith.constant 0 : index
    %c0_2 = arith.constant 0 : index
    %c0_3 = arith.constant 0 : index
    %0 = vector.load %arg1[%c0, %c0_0, %c0_1, %c0_2, %c0_3] : memref<1x4x17x17x1xbf16, #tpu.memory_space<vmem>>, vector<1x4x17x17x1xbf16>
    %1 = vector.shape_cast %0 : vector<1x4x17x17x1xbf16> to vector<4x17x17x1xbf16>
    %cst = arith.constant 0.000000e+00 : f32
    %2 = vector.broadcast %cst : f32 to vector<256x8xf32>
    %3 = vector.extract_strided_slice %1 {offsets = [0, 0, 0, 0], sizes = [1, 16, 16, 1], strides = [1, 1, 1, 1]} : vector<4x17x17x1xbf16> to vector<1x16x16x1xbf16>
    %4 = vector.shape_cast %3 : vector<1x16x16x1xbf16> to vector<16x16x1xbf16>
    %5 = vector.shape_cast %4 : vector<16x16x1xbf16> to vector<256x1xbf16>
    %c0_4 = arith.constant 0 : index
    %c0_5 = arith.constant 0 : index
    %c0_6 = arith.constant 0 : index
    %6 = vector.load %arg2[%c0_4, %c0_5, %c0_6] : memref<9x1x8xbf16, #tpu.memory_space<vmem>>, vector<1x1x8xbf16>
    %7 = vector.shape_cast %6 : vector<1x1x8xbf16> to vector<1x8xbf16>
    %cst_7 = arith.constant dense<0.000000e+00> : vector<256x8xf32>
    %8 = tpu.matmul %5, %7, %cst_7 {dimension_numbers = #tpu.dot_dimension_numbers<[1], [0], [0], [1], [0, 0, 1, 1], [], []>} : vector<256x1xbf16>, vector<1x8xbf16>, vector<256x8xf32> -> vector<256x8xf32>
    %9 = arith.addf %2, %8 : vector<256x8xf32>
    %10 = vector.extract_strided_slice %1 {offsets = [1, 0, 0, 0], sizes = [1, 16, 16, 1], strides = [1, 1, 1, 1]} : vector<4x17x17x1xbf16> to vector<1x16x16x1xbf16>
    %11 = vector.shape_cast %10 : vector<1x16x16x1xbf16> to vector<16x16x1xbf16>
    %12 = vector.shape_cast %11 : vector<16x16x1xbf16> to vector<256x1xbf16>
    %c1 = arith.constant 1 : index
    %c0_8 = arith.constant 0 : index
    %c0_9 = arith.constant 0 : index
    %13 = vector.load %arg2[%c1, %c0_8, %c0_9] : memref<9x1x8xbf16, #tpu.memory_space<vmem>>, vector<1x1x8xbf16>
    %14 = vector.shape_cast %13 : vector<1x1x8xbf16> to vector<1x8xbf16>
    %cst_10 = arith.constant dense<0.000000e+00> : vector<256x8xf32>
    %15 = tpu.matmul %12, %14, %cst_10 {dimension_numbers = #tpu.dot_dimension_numbers<[1], [0], [0], [1], [0, 0, 1, 1], [], []>} : vector<256x1xbf16>, vector<1x8xbf16>, vector<256x8xf32> -> vector<256x8xf32>
    %16 = arith.addf %9, %15 : vector<256x8xf32>
    %17 = vector.extract_strided_slice %1 {offsets = [0, 0, 1, 0], sizes = [1, 16, 16, 1], strides = [1, 1, 1, 1]} : vector<4x17x17x1xbf16> to vector<1x16x16x1xbf16>
    %18 = vector.shape_cast %17 : vector<1x16x16x1xbf16> to vector<16x16x1xbf16>
    %19 = vector.shape_cast %18 : vector<16x16x1xbf16> to vector<256x1xbf16>
    %c2 = arith.constant 2 : index
    %c0_11 = arith.constant 0 : index
    %c0_12 = arith.constant 0 : index
    %20 = vector.load %arg2[%c2, %c0_11, %c0_12] : memref<9x1x8xbf16, #tpu.memory_space<vmem>>, vector<1x1x8xbf16>
    %21 = vector.shape_cast %20 : vector<1x1x8xbf16> to vector<1x8xbf16>
    %cst_13 = arith.constant dense<0.000000e+00> : vector<256x8xf32>
    %22 = tpu.matmul %19, %21, %cst_13 {dimension_numbers = #tpu.dot_dimension_numbers<[1], [0], [0], [1], [0, 0, 1, 1], [], []>} : vector<256x1xbf16>, vector<1x8xbf16>, vector<256x8xf32> -> vector<256x8xf32>
    %23 = arith.addf %16, %22 : vector<256x8xf32>
    %24 = vector.extract_strided_slice %1 {offsets = [2, 0, 0, 0], sizes = [1, 16, 16, 1], strides = [1, 1, 1, 1]} : vector<4x17x17x1xbf16> to vector<1x16x16x1xbf16>
    %25 = vector.shape_cast %24 : vector<1x16x16x1xbf16> to vector<16x16x1xbf16>
    %26 = vector.shape_cast %25 : vector<16x16x1xbf16> to vector<256x1xbf16>
    %c3 = arith.constant 3 : index
    %c0_14 = arith.constant 0 : index
    %c0_15 = arith.constant 0 : index
    %27 = vector.load %arg2[%c3, %c0_14, %c0_15] : memref<9x1x8xbf16, #tpu.memory_space<vmem>>, vector<1x1x8xbf16>
    %28 = vector.shape_cast %27 : vector<1x1x8xbf16> to vector<1x8xbf16>
    %cst_16 = arith.constant dense<0.000000e+00> : vector<256x8xf32>
    %29 = tpu.matmul %26, %28, %cst_16 {dimension_numbers = #tpu.dot_dimension_numbers<[1], [0], [0], [1], [0, 0, 1, 1], [], []>} : vector<256x1xbf16>, vector<1x8xbf16>, vector<256x8xf32> -> vector<256x8xf32>
    %30 = arith.addf %23, %29 : vector<256x8xf32>
    %31 = vector.extract_strided_slice %1 {offsets = [3, 0, 0, 0], sizes = [1, 16, 16, 1], strides = [1, 1, 1, 1]} : vector<4x17x17x1xbf16> to vector<1x16x16x1xbf16>
    %32 = vector.shape_cast %31 : vector<1x16x16x1xbf16> to vector<16x16x1xbf16>
    %33 = vector.shape_cast %32 : vector<16x16x1xbf16> to vector<256x1xbf16>
    %c4 = arith.constant 4 : index
    %c0_17 = arith.constant 0 : index
    %c0_18 = arith.constant 0 : index
    %34 = vector.load %arg2[%c4, %c0_17, %c0_18] : memref<9x1x8xbf16, #tpu.memory_space<vmem>>, vector<1x1x8xbf16>
    %35 = vector.shape_cast %34 : vector<1x1x8xbf16> to vector<1x8xbf16>
    %cst_19 = arith.constant dense<0.000000e+00> : vector<256x8xf32>
    %36 = tpu.matmul %33, %35, %cst_19 {dimension_numbers = #tpu.dot_dimension_numbers<[1], [0], [0], [1], [0, 0, 1, 1], [], []>} : vector<256x1xbf16>, vector<1x8xbf16>, vector<256x8xf32> -> vector<256x8xf32>
    %37 = arith.addf %30, %36 : vector<256x8xf32>
    %38 = vector.extract_strided_slice %1 {offsets = [2, 0, 1, 0], sizes = [1, 16, 16, 1], strides = [1, 1, 1, 1]} : vector<4x17x17x1xbf16> to vector<1x16x16x1xbf16>
    %39 = vector.shape_cast %38 : vector<1x16x16x1xbf16> to vector<16x16x1xbf16>
    %40 = vector.shape_cast %39 : vector<16x16x1xbf16> to vector<256x1xbf16>
    %c5 = arith.constant 5 : index
    %c0_20 = arith.constant 0 : index
    %c0_21 = arith.constant 0 : index
    %41 = vector.load %arg2[%c5, %c0_20, %c0_21] : memref<9x1x8xbf16, #tpu.memory_space<vmem>>, vector<1x1x8xbf16>
    %42 = vector.shape_cast %41 : vector<1x1x8xbf16> to vector<1x8xbf16>
    %cst_22 = arith.constant dense<0.000000e+00> : vector<256x8xf32>
    %43 = tpu.matmul %40, %42, %cst_22 {dimension_numbers = #tpu.dot_dimension_numbers<[1], [0], [0], [1], [0, 0, 1, 1], [], []>} : vector<256x1xbf16>, vector<1x8xbf16>, vector<256x8xf32> -> vector<256x8xf32>
    %44 = arith.addf %37, %43 : vector<256x8xf32>
    %45 = vector.extract_strided_slice %1 {offsets = [0, 1, 0, 0], sizes = [1, 16, 16, 1], strides = [1, 1, 1, 1]} : vector<4x17x17x1xbf16> to vector<1x16x16x1xbf16>
    %46 = vector.shape_cast %45 : vector<1x16x16x1xbf16> to vector<16x16x1xbf16>
    %47 = vector.shape_cast %46 : vector<16x16x1xbf16> to vector<256x1xbf16>
    %c6 = arith.constant 6 : index
    %c0_23 = arith.constant 0 : index
    %c0_24 = arith.constant 0 : index
    %48 = vector.load %arg2[%c6, %c0_23, %c0_24] : memref<9x1x8xbf16, #tpu.memory_space<vmem>>, vector<1x1x8xbf16>
    %49 = vector.shape_cast %48 : vector<1x1x8xbf16> to vector<1x8xbf16>
    %cst_25 = arith.constant dense<0.000000e+00> : vector<256x8xf32>
    %50 = tpu.matmul %47, %49, %cst_25 {dimension_numbers = #tpu.dot_dimension_numbers<[1], [0], [0], [1], [0, 0, 1, 1], [], []>} : vector<256x1xbf16>, vector<1x8xbf16>, vector<256x8xf32> -> vector<256x8xf32>
    %51 = arith.addf %44, %50 : vector<256x8xf32>
    %52 = vector.extract_strided_slice %1 {offsets = [1, 1, 0, 0], sizes = [1, 16, 16, 1], strides = [1, 1, 1, 1]} : vector<4x17x17x1xbf16> to vector<1x16x16x1xbf16>
    %53 = vector.shape_cast %52 : vector<1x16x16x1xbf16> to vector<16x16x1xbf16>
    %54 = vector.shape_cast %53 : vector<16x16x1xbf16> to vector<256x1xbf16>
    %c7 = arith.constant 7 : index
    %c0_26 = arith.constant 0 : index
    %c0_27 = arith.constant 0 : index
    %55 = vector.load %arg2[%c7, %c0_26, %c0_27] : memref<9x1x8xbf16, #tpu.memory_space<vmem>>, vector<1x1x8xbf16>
    %56 = vector.shape_cast %55 : vector<1x1x8xbf16> to vector<1x8xbf16>
    %cst_28 = arith.constant dense<0.000000e+00> : vector<256x8xf32>
    %57 = tpu.matmul %54, %56, %cst_28 {dimension_numbers = #tpu.dot_dimension_numbers<[1], [0], [0], [1], [0, 0, 1, 1], [], []>} : vector<256x1xbf16>, vector<1x8xbf16>, vector<256x8xf32> -> vector<256x8xf32>
    %58 = arith.addf %51, %57 : vector<256x8xf32>
    %59 = vector.extract_strided_slice %1 {offsets = [0, 1, 1, 0], sizes = [1, 16, 16, 1], strides = [1, 1, 1, 1]} : vector<4x17x17x1xbf16> to vector<1x16x16x1xbf16>
    %60 = vector.shape_cast %59 : vector<1x16x16x1xbf16> to vector<16x16x1xbf16>
    %61 = vector.shape_cast %60 : vector<16x16x1xbf16> to vector<256x1xbf16>
    %c8 = arith.constant 8 : index
    %c0_29 = arith.constant 0 : index
    %c0_30 = arith.constant 0 : index
    %62 = vector.load %arg2[%c8, %c0_29, %c0_30] : memref<9x1x8xbf16, #tpu.memory_space<vmem>>, vector<1x1x8xbf16>
    %63 = vector.shape_cast %62 : vector<1x1x8xbf16> to vector<1x8xbf16>
    %cst_31 = arith.constant dense<0.000000e+00> : vector<256x8xf32>
    %64 = tpu.matmul %61, %63, %cst_31 {dimension_numbers = #tpu.dot_dimension_numbers<[1], [0], [0], [1], [0, 0, 1, 1], [], []>} : vector<256x1xbf16>, vector<1x8xbf16>, vector<256x8xf32> -> vector<256x8xf32>
    %65 = arith.addf %58, %64 : vector<256x8xf32>
    %cst_32 = arith.constant 0.000000e+00 : f32
    %66 = vector.broadcast %cst_32 : f32 to vector<256x8xf32>
    %67 = arith.maximumf %65, %66 : vector<256x8xf32>
    %68 = arith.truncf %67 : vector<256x8xf32> to vector<256x8xbf16>
    %69 = vector.shape_cast %68 : vector<256x8xbf16> to vector<16x16x8xbf16>
    %c0_33 = arith.constant 0 : index
    %c0_34 = arith.constant 0 : index
    %c0_35 = arith.constant 0 : index
    %c0_36 = arith.constant 0 : index
    %70 = vector.load %arg3[%c0_33, %c0_34, %c0_35, %c0_36] : memref<1x16x16x8xbf16, #tpu.memory_space<vmem>>, vector<1x16x16x8xbf16>
    %71 = vector.shape_cast %70 : vector<1x16x16x8xbf16> to vector<16x16x8xbf16>
    %72 = vector.shape_cast %69 : vector<16x16x8xbf16> to vector<1x16x16x8xbf16>
    tpu.vector_store %arg3[%c0_33, %c0_34, %c0_35, %c0_36], %72 {strides = array<i32>} : memref<1x16x16x8xbf16, #tpu.memory_space<vmem>>, vector<1x16x16x8xbf16>,
    return
  }
  func.func @transform_0(%arg0: i32) -> (i32, i32, i32, i32, i32) {
    %c0_i32 = arith.constant 0 : i32
    %c0_i32_0 = arith.constant 0 : i32
    %c0_i32_1 = arith.constant 0 : i32
    %c0_i32_2 = arith.constant 0 : i32
    %c0_i32_3 = arith.constant 0 : i32
    return %arg0, %c0_i32, %c0_i32_0, %c0_i32_1, %c0_i32_2 : i32, i32, i32, i32, i32
  }
  func.func @transform_1(%arg0: i32) -> (i32, i32, i32) {
    %c0_i32 = arith.constant 0 : i32
    %c0_i32_0 = arith.constant 0 : i32
    %c0_i32_1 = arith.constant 0 : i32
    %c0_i32_2 = arith.constant 0 : i32
    return %c0_i32, %c0_i32_0, %c0_i32_1 : i32, i32, i32
  }
  func.func @transform_2(%arg0: i32) -> (i32, i32, i32, i32) {
    %c0_i32 = arith.constant 0 : i32
    %c0_i32_0 = arith.constant 0 : i32
    %c0_i32_1 = arith.constant 0 : i32
    %c0_i32_2 = arith.constant 0 : i32
    return %arg0, %c0_i32, %c0_i32_0, %c0_i32_1 : i32, i32, i32, i32
  }
}

module attributes {stable_mosaic.version = 11 : i64} {
  func.func @_trans_group_kernel(%arg0: i32, %arg1: memref<1x4x9x9x8xbf16, #tpu.memory_space<vmem>>, %arg2: memref<9x8x8xbf16, #tpu.memory_space<vmem>>, %arg3: memref<2x9x8x8xbf16, #tpu.memory_space<vmem>>, %arg4: memref<1x8x8x8xbf16, #tpu.memory_space<vmem>>, %arg5: memref<10x10x8xbf16, #tpu.memory_space<vmem>>) attributes {dimension_semantics = [#tpu.dimension_semantics<parallel>], iteration_bounds = array<i64: 2>, scalar_prefetch = 0 : i64, scratch_operands = 1 : i64, tpu.core_type = #tpu.core_type<tc>, window_params = [{transform_indices = @transform_0, window_bounds = array<i64: 1, 4, 9, 9, 8>}, {pipeline_mode = #tpu.pipeline_mode<synchronous>, transform_indices = @transform_1, window_bounds = array<i64: 9, 8, 8>}, {pipeline_mode = #tpu.pipeline_mode<synchronous>, transform_indices = @transform_2, window_bounds = array<i64: 2, 9, 8, 8>}, {transform_indices = @transform_3, window_bounds = array<i64: 1, 8, 8, 8>}]} {
    %cst = arith.constant 0.000000e+00 : bf16
    %0 = vector.broadcast %cst : bf16 to vector<10x10x8xbf16>
    %c0 = arith.constant 0 : index
    %c0_0 = arith.constant 0 : index
    %c0_1 = arith.constant 0 : index
    %1 = vector.load %arg5[%c0, %c0_0, %c0_1] : memref<10x10x8xbf16, #tpu.memory_space<vmem>>, vector<10x10x8xbf16>
    tpu.vector_store %arg5[%c0, %c0_0, %c0_1], %0 {strides = array<i32>} : memref<10x10x8xbf16, #tpu.memory_space<vmem>>, vector<10x10x8xbf16>,
    %c0_2 = arith.constant 0 : index
    %c0_3 = arith.constant 0 : index
    %c0_4 = arith.constant 0 : index
    %c0_5 = arith.constant 0 : index
    %c0_6 = arith.constant 0 : index
    %2 = vector.load %arg1[%c0_2, %c0_3, %c0_4, %c0_5, %c0_6] : memref<1x4x9x9x8xbf16, #tpu.memory_space<vmem>>, vector<1x4x9x9x8xbf16>
    %3 = vector.shape_cast %2 : vector<1x4x9x9x8xbf16> to vector<4x9x9x8xbf16>
    %cst_7 = arith.constant 0.000000e+00 : f32
    %4 = vector.broadcast %cst_7 : f32 to vector<64x8xf32>
    %5 = vector.extract_strided_slice %3 {offsets = [0, 0, 0, 0], sizes = [1, 8, 8, 8], strides = [1, 1, 1, 1]} : vector<4x9x9x8xbf16> to vector<1x8x8x8xbf16>
    %6 = vector.shape_cast %5 : vector<1x8x8x8xbf16> to vector<8x8x8xbf16>
    %7 = vector.shape_cast %6 : vector<8x8x8xbf16> to vector<64x8xbf16>
    %c0_8 = arith.constant 0 : index
    %c0_9 = arith.constant 0 : index
    %c0_10 = arith.constant 0 : index
    %8 = vector.load %arg2[%c0_8, %c0_9, %c0_10] : memref<9x8x8xbf16, #tpu.memory_space<vmem>>, vector<1x8x8xbf16>
    %9 = vector.shape_cast %8 : vector<1x8x8xbf16> to vector<8x8xbf16>
    %cst_11 = arith.constant dense<0.000000e+00> : vector<64x8xf32>
    %10 = tpu.matmul %7, %9, %cst_11 {dimension_numbers = #tpu.dot_dimension_numbers<[1], [0], [0], [1], [0, 0, 1, 1], [], []>} : vector<64x8xbf16>, vector<8x8xbf16>, vector<64x8xf32> -> vector<64x8xf32>
    %11 = arith.addf %4, %10 : vector<64x8xf32>
    %12 = vector.extract_strided_slice %3 {offsets = [1, 0, 0, 0], sizes = [1, 8, 8, 8], strides = [1, 1, 1, 1]} : vector<4x9x9x8xbf16> to vector<1x8x8x8xbf16>
    %13 = vector.shape_cast %12 : vector<1x8x8x8xbf16> to vector<8x8x8xbf16>
    %14 = vector.shape_cast %13 : vector<8x8x8xbf16> to vector<64x8xbf16>
    %c1 = arith.constant 1 : index
    %c0_12 = arith.constant 0 : index
    %c0_13 = arith.constant 0 : index
    %15 = vector.load %arg2[%c1, %c0_12, %c0_13] : memref<9x8x8xbf16, #tpu.memory_space<vmem>>, vector<1x8x8xbf16>
    %16 = vector.shape_cast %15 : vector<1x8x8xbf16> to vector<8x8xbf16>
    %cst_14 = arith.constant dense<0.000000e+00> : vector<64x8xf32>
    %17 = tpu.matmul %14, %16, %cst_14 {dimension_numbers = #tpu.dot_dimension_numbers<[1], [0], [0], [1], [0, 0, 1, 1], [], []>} : vector<64x8xbf16>, vector<8x8xbf16>, vector<64x8xf32> -> vector<64x8xf32>
    %18 = arith.addf %11, %17 : vector<64x8xf32>
    %19 = vector.extract_strided_slice %3 {offsets = [0, 0, 1, 0], sizes = [1, 8, 8, 8], strides = [1, 1, 1, 1]} : vector<4x9x9x8xbf16> to vector<1x8x8x8xbf16>
    %20 = vector.shape_cast %19 : vector<1x8x8x8xbf16> to vector<8x8x8xbf16>
    %21 = vector.shape_cast %20 : vector<8x8x8xbf16> to vector<64x8xbf16>
    %c2 = arith.constant 2 : index
    %c0_15 = arith.constant 0 : index
    %c0_16 = arith.constant 0 : index
    %22 = vector.load %arg2[%c2, %c0_15, %c0_16] : memref<9x8x8xbf16, #tpu.memory_space<vmem>>, vector<1x8x8xbf16>
    %23 = vector.shape_cast %22 : vector<1x8x8xbf16> to vector<8x8xbf16>
    %cst_17 = arith.constant dense<0.000000e+00> : vector<64x8xf32>
    %24 = tpu.matmul %21, %23, %cst_17 {dimension_numbers = #tpu.dot_dimension_numbers<[1], [0], [0], [1], [0, 0, 1, 1], [], []>} : vector<64x8xbf16>, vector<8x8xbf16>, vector<64x8xf32> -> vector<64x8xf32>
    %25 = arith.addf %18, %24 : vector<64x8xf32>
    %26 = vector.extract_strided_slice %3 {offsets = [2, 0, 0, 0], sizes = [1, 8, 8, 8], strides = [1, 1, 1, 1]} : vector<4x9x9x8xbf16> to vector<1x8x8x8xbf16>
    %27 = vector.shape_cast %26 : vector<1x8x8x8xbf16> to vector<8x8x8xbf16>
    %28 = vector.shape_cast %27 : vector<8x8x8xbf16> to vector<64x8xbf16>
    %c3 = arith.constant 3 : index
    %c0_18 = arith.constant 0 : index
    %c0_19 = arith.constant 0 : index
    %29 = vector.load %arg2[%c3, %c0_18, %c0_19] : memref<9x8x8xbf16, #tpu.memory_space<vmem>>, vector<1x8x8xbf16>
    %30 = vector.shape_cast %29 : vector<1x8x8xbf16> to vector<8x8xbf16>
    %cst_20 = arith.constant dense<0.000000e+00> : vector<64x8xf32>
    %31 = tpu.matmul %28, %30, %cst_20 {dimension_numbers = #tpu.dot_dimension_numbers<[1], [0], [0], [1], [0, 0, 1, 1], [], []>} : vector<64x8xbf16>, vector<8x8xbf16>, vector<64x8xf32> -> vector<64x8xf32>
    %32 = arith.addf %25, %31 : vector<64x8xf32>
    %33 = vector.extract_strided_slice %3 {offsets = [3, 0, 0, 0], sizes = [1, 8, 8, 8], strides = [1, 1, 1, 1]} : vector<4x9x9x8xbf16> to vector<1x8x8x8xbf16>
    %34 = vector.shape_cast %33 : vector<1x8x8x8xbf16> to vector<8x8x8xbf16>
    %35 = vector.shape_cast %34 : vector<8x8x8xbf16> to vector<64x8xbf16>
    %c4 = arith.constant 4 : index
    %c0_21 = arith.constant 0 : index
    %c0_22 = arith.constant 0 : index
    %36 = vector.load %arg2[%c4, %c0_21, %c0_22] : memref<9x8x8xbf16, #tpu.memory_space<vmem>>, vector<1x8x8xbf16>
    %37 = vector.shape_cast %36 : vector<1x8x8xbf16> to vector<8x8xbf16>
    %cst_23 = arith.constant dense<0.000000e+00> : vector<64x8xf32>
    %38 = tpu.matmul %35, %37, %cst_23 {dimension_numbers = #tpu.dot_dimension_numbers<[1], [0], [0], [1], [0, 0, 1, 1], [], []>} : vector<64x8xbf16>, vector<8x8xbf16>, vector<64x8xf32> -> vector<64x8xf32>
    %39 = arith.addf %32, %38 : vector<64x8xf32>
    %40 = vector.extract_strided_slice %3 {offsets = [2, 0, 1, 0], sizes = [1, 8, 8, 8], strides = [1, 1, 1, 1]} : vector<4x9x9x8xbf16> to vector<1x8x8x8xbf16>
    %41 = vector.shape_cast %40 : vector<1x8x8x8xbf16> to vector<8x8x8xbf16>
    %42 = vector.shape_cast %41 : vector<8x8x8xbf16> to vector<64x8xbf16>
    %c5 = arith.constant 5 : index
    %c0_24 = arith.constant 0 : index
    %c0_25 = arith.constant 0 : index
    %43 = vector.load %arg2[%c5, %c0_24, %c0_25] : memref<9x8x8xbf16, #tpu.memory_space<vmem>>, vector<1x8x8xbf16>
    %44 = vector.shape_cast %43 : vector<1x8x8xbf16> to vector<8x8xbf16>
    %cst_26 = arith.constant dense<0.000000e+00> : vector<64x8xf32>
    %45 = tpu.matmul %42, %44, %cst_26 {dimension_numbers = #tpu.dot_dimension_numbers<[1], [0], [0], [1], [0, 0, 1, 1], [], []>} : vector<64x8xbf16>, vector<8x8xbf16>, vector<64x8xf32> -> vector<64x8xf32>
    %46 = arith.addf %39, %45 : vector<64x8xf32>
    %47 = vector.extract_strided_slice %3 {offsets = [0, 1, 0, 0], sizes = [1, 8, 8, 8], strides = [1, 1, 1, 1]} : vector<4x9x9x8xbf16> to vector<1x8x8x8xbf16>
    %48 = vector.shape_cast %47 : vector<1x8x8x8xbf16> to vector<8x8x8xbf16>
    %49 = vector.shape_cast %48 : vector<8x8x8xbf16> to vector<64x8xbf16>
    %c6 = arith.constant 6 : index
    %c0_27 = arith.constant 0 : index
    %c0_28 = arith.constant 0 : index
    %50 = vector.load %arg2[%c6, %c0_27, %c0_28] : memref<9x8x8xbf16, #tpu.memory_space<vmem>>, vector<1x8x8xbf16>
    %51 = vector.shape_cast %50 : vector<1x8x8xbf16> to vector<8x8xbf16>
    %cst_29 = arith.constant dense<0.000000e+00> : vector<64x8xf32>
    %52 = tpu.matmul %49, %51, %cst_29 {dimension_numbers = #tpu.dot_dimension_numbers<[1], [0], [0], [1], [0, 0, 1, 1], [], []>} : vector<64x8xbf16>, vector<8x8xbf16>, vector<64x8xf32> -> vector<64x8xf32>
    %53 = arith.addf %46, %52 : vector<64x8xf32>
    %54 = vector.extract_strided_slice %3 {offsets = [1, 1, 0, 0], sizes = [1, 8, 8, 8], strides = [1, 1, 1, 1]} : vector<4x9x9x8xbf16> to vector<1x8x8x8xbf16>
    %55 = vector.shape_cast %54 : vector<1x8x8x8xbf16> to vector<8x8x8xbf16>
    %56 = vector.shape_cast %55 : vector<8x8x8xbf16> to vector<64x8xbf16>
    %c7 = arith.constant 7 : index
    %c0_30 = arith.constant 0 : index
    %c0_31 = arith.constant 0 : index
    %57 = vector.load %arg2[%c7, %c0_30, %c0_31] : memref<9x8x8xbf16, #tpu.memory_space<vmem>>, vector<1x8x8xbf16>
    %58 = vector.shape_cast %57 : vector<1x8x8xbf16> to vector<8x8xbf16>
    %cst_32 = arith.constant dense<0.000000e+00> : vector<64x8xf32>
    %59 = tpu.matmul %56, %58, %cst_32 {dimension_numbers = #tpu.dot_dimension_numbers<[1], [0], [0], [1], [0, 0, 1, 1], [], []>} : vector<64x8xbf16>, vector<8x8xbf16>, vector<64x8xf32> -> vector<64x8xf32>
    %60 = arith.addf %53, %59 : vector<64x8xf32>
    %61 = vector.extract_strided_slice %3 {offsets = [0, 1, 1, 0], sizes = [1, 8, 8, 8], strides = [1, 1, 1, 1]} : vector<4x9x9x8xbf16> to vector<1x8x8x8xbf16>
    %62 = vector.shape_cast %61 : vector<1x8x8x8xbf16> to vector<8x8x8xbf16>
    %63 = vector.shape_cast %62 : vector<8x8x8xbf16> to vector<64x8xbf16>
    %c8 = arith.constant 8 : index
    %c0_33 = arith.constant 0 : index
    %c0_34 = arith.constant 0 : index
    %64 = vector.load %arg2[%c8, %c0_33, %c0_34] : memref<9x8x8xbf16, #tpu.memory_space<vmem>>, vector<1x8x8xbf16>
    %65 = vector.shape_cast %64 : vector<1x8x8xbf16> to vector<8x8xbf16>
    %cst_35 = arith.constant dense<0.000000e+00> : vector<64x8xf32>
    %66 = tpu.matmul %63, %65, %cst_35 {dimension_numbers = #tpu.dot_dimension_numbers<[1], [0], [0], [1], [0, 0, 1, 1], [], []>} : vector<64x8xbf16>, vector<8x8xbf16>, vector<64x8xf32> -> vector<64x8xf32>
    %67 = arith.addf %60, %66 : vector<64x8xf32>
    %cst_36 = arith.constant 0.000000e+00 : f32
    %68 = vector.broadcast %cst_36 : f32 to vector<64x8xf32>
    %69 = arith.maximumf %67, %68 : vector<64x8xf32>
    %70 = vector.shape_cast %69 : vector<64x8xf32> to vector<8x8x8xf32>
    %cst_37 = arith.constant 0.000000e+00 : f32
    %71 = vector.broadcast %cst_37 : f32 to vector<8x8x8xf32>
    %72 = arith.maximumf %70, %71 : vector<8x8x8xf32>
    %73 = arith.truncf %72 : vector<8x8x8xf32> to vector<8x8x8xbf16>
    %c1_38 = arith.constant 1 : index
    %c1_39 = arith.constant 1 : index
    %c0_40 = arith.constant 0 : index
    %74 = vector.load %arg5[%c1_38, %c1_39, %c0_40] : memref<10x10x8xbf16, #tpu.memory_space<vmem>>, vector<8x8x8xbf16>
    tpu.vector_store %arg5[%c1_38, %c1_39, %c0_40], %73 {strides = array<i32>} : memref<10x10x8xbf16, #tpu.memory_space<vmem>>, vector<8x8x8xbf16>,
    %c0_41 = arith.constant 0 : index
    %c0_42 = arith.constant 0 : index
    %c0_43 = arith.constant 0 : index
    %75 = vector.load %arg5[%c0_41, %c0_42, %c0_43] : memref<10x10x8xbf16, #tpu.memory_space<vmem>>, vector<10x10x8xbf16>
    %cst_44 = arith.constant 0.000000e+00 : f32
    %76 = vector.broadcast %cst_44 : f32 to vector<64x8xf32>
    %77 = vector.extract_strided_slice %75 {offsets = [0, 0, 0], sizes = [8, 8, 8], strides = [1, 1, 1]} : vector<10x10x8xbf16> to vector<8x8x8xbf16>
    %78 = vector.shape_cast %77 : vector<8x8x8xbf16> to vector<64x8xbf16>
    %c0_45 = arith.constant 0 : index
    %c0_46 = arith.constant 0 : index
    %c0_47 = arith.constant 0 : index
    %c0_48 = arith.constant 0 : index
    %79 = vector.load %arg3[%c0_45, %c0_46, %c0_47, %c0_48] : memref<2x9x8x8xbf16, #tpu.memory_space<vmem>>, vector<1x1x8x8xbf16>
    %80 = vector.shape_cast %79 : vector<1x1x8x8xbf16> to vector<8x8xbf16>
    %cst_49 = arith.constant dense<0.000000e+00> : vector<64x8xf32>
    %81 = tpu.matmul %78, %80, %cst_49 {dimension_numbers = #tpu.dot_dimension_numbers<[1], [0], [0], [1], [0, 0, 1, 1], [], []>} : vector<64x8xbf16>, vector<8x8xbf16>, vector<64x8xf32> -> vector<64x8xf32>
    %82 = arith.addf %76, %81 : vector<64x8xf32>
    %83 = vector.extract_strided_slice %75 {offsets = [0, 1, 0], sizes = [8, 8, 8], strides = [1, 1, 1]} : vector<10x10x8xbf16> to vector<8x8x8xbf16>
    %84 = vector.shape_cast %83 : vector<8x8x8xbf16> to vector<64x8xbf16>
    %c0_50 = arith.constant 0 : index
    %c1_51 = arith.constant 1 : index
    %c0_52 = arith.constant 0 : index
    %c0_53 = arith.constant 0 : index
    %85 = vector.load %arg3[%c0_50, %c1_51, %c0_52, %c0_53] : memref<2x9x8x8xbf16, #tpu.memory_space<vmem>>, vector<1x1x8x8xbf16>
    %86 = vector.shape_cast %85 : vector<1x1x8x8xbf16> to vector<8x8xbf16>
    %cst_54 = arith.constant dense<0.000000e+00> : vector<64x8xf32>
    %87 = tpu.matmul %84, %86, %cst_54 {dimension_numbers = #tpu.dot_dimension_numbers<[1], [0], [0], [1], [0, 0, 1, 1], [], []>} : vector<64x8xbf16>, vector<8x8xbf16>, vector<64x8xf32> -> vector<64x8xf32>
    %88 = arith.addf %82, %87 : vector<64x8xf32>
    %89 = vector.extract_strided_slice %75 {offsets = [0, 2, 0], sizes = [8, 8, 8], strides = [1, 1, 1]} : vector<10x10x8xbf16> to vector<8x8x8xbf16>
    %90 = vector.shape_cast %89 : vector<8x8x8xbf16> to vector<64x8xbf16>
    %c0_55 = arith.constant 0 : index
    %c2_56 = arith.constant 2 : index
    %c0_57 = arith.constant 0 : index
    %c0_58 = arith.constant 0 : index
    %91 = vector.load %arg3[%c0_55, %c2_56, %c0_57, %c0_58] : memref<2x9x8x8xbf16, #tpu.memory_space<vmem>>, vector<1x1x8x8xbf16>
    %92 = vector.shape_cast %91 : vector<1x1x8x8xbf16> to vector<8x8xbf16>
    %cst_59 = arith.constant dense<0.000000e+00> : vector<64x8xf32>
    %93 = tpu.matmul %90, %92, %cst_59 {dimension_numbers = #tpu.dot_dimension_numbers<[1], [0], [0], [1], [0, 0, 1, 1], [], []>} : vector<64x8xbf16>, vector<8x8xbf16>, vector<64x8xf32> -> vector<64x8xf32>
    %94 = arith.addf %88, %93 : vector<64x8xf32>
    %95 = vector.extract_strided_slice %75 {offsets = [1, 0, 0], sizes = [8, 8, 8], strides = [1, 1, 1]} : vector<10x10x8xbf16> to vector<8x8x8xbf16>
    %96 = vector.shape_cast %95 : vector<8x8x8xbf16> to vector<64x8xbf16>
    %c0_60 = arith.constant 0 : index
    %c3_61 = arith.constant 3 : index
    %c0_62 = arith.constant 0 : index
    %c0_63 = arith.constant 0 : index
    %97 = vector.load %arg3[%c0_60, %c3_61, %c0_62, %c0_63] : memref<2x9x8x8xbf16, #tpu.memory_space<vmem>>, vector<1x1x8x8xbf16>
    %98 = vector.shape_cast %97 : vector<1x1x8x8xbf16> to vector<8x8xbf16>
    %cst_64 = arith.constant dense<0.000000e+00> : vector<64x8xf32>
    %99 = tpu.matmul %96, %98, %cst_64 {dimension_numbers = #tpu.dot_dimension_numbers<[1], [0], [0], [1], [0, 0, 1, 1], [], []>} : vector<64x8xbf16>, vector<8x8xbf16>, vector<64x8xf32> -> vector<64x8xf32>
    %100 = arith.addf %94, %99 : vector<64x8xf32>
    %101 = vector.extract_strided_slice %75 {offsets = [1, 1, 0], sizes = [8, 8, 8], strides = [1, 1, 1]} : vector<10x10x8xbf16> to vector<8x8x8xbf16>
    %102 = vector.shape_cast %101 : vector<8x8x8xbf16> to vector<64x8xbf16>
    %c0_65 = arith.constant 0 : index
    %c4_66 = arith.constant 4 : index
    %c0_67 = arith.constant 0 : index
    %c0_68 = arith.constant 0 : index
    %103 = vector.load %arg3[%c0_65, %c4_66, %c0_67, %c0_68] : memref<2x9x8x8xbf16, #tpu.memory_space<vmem>>, vector<1x1x8x8xbf16>
    %104 = vector.shape_cast %103 : vector<1x1x8x8xbf16> to vector<8x8xbf16>
    %cst_69 = arith.constant dense<0.000000e+00> : vector<64x8xf32>
    %105 = tpu.matmul %102, %104, %cst_69 {dimension_numbers = #tpu.dot_dimension_numbers<[1], [0], [0], [1], [0, 0, 1, 1], [], []>} : vector<64x8xbf16>, vector<8x8xbf16>, vector<64x8xf32> -> vector<64x8xf32>
    %106 = arith.addf %100, %105 : vector<64x8xf32>
    %107 = vector.extract_strided_slice %75 {offsets = [1, 2, 0], sizes = [8, 8, 8], strides = [1, 1, 1]} : vector<10x10x8xbf16> to vector<8x8x8xbf16>
    %108 = vector.shape_cast %107 : vector<8x8x8xbf16> to vector<64x8xbf16>
    %c0_70 = arith.constant 0 : index
    %c5_71 = arith.constant 5 : index
    %c0_72 = arith.constant 0 : index
    %c0_73 = arith.constant 0 : index
    %109 = vector.load %arg3[%c0_70, %c5_71, %c0_72, %c0_73] : memref<2x9x8x8xbf16, #tpu.memory_space<vmem>>, vector<1x1x8x8xbf16>
    %110 = vector.shape_cast %109 : vector<1x1x8x8xbf16> to vector<8x8xbf16>
    %cst_74 = arith.constant dense<0.000000e+00> : vector<64x8xf32>
    %111 = tpu.matmul %108, %110, %cst_74 {dimension_numbers = #tpu.dot_dimension_numbers<[1], [0], [0], [1], [0, 0, 1, 1], [], []>} : vector<64x8xbf16>, vector<8x8xbf16>, vector<64x8xf32> -> vector<64x8xf32>
    %112 = arith.addf %106, %111 : vector<64x8xf32>
    %113 = vector.extract_strided_slice %75 {offsets = [2, 0, 0], sizes = [8, 8, 8], strides = [1, 1, 1]} : vector<10x10x8xbf16> to vector<8x8x8xbf16>
    %114 = vector.shape_cast %113 : vector<8x8x8xbf16> to vector<64x8xbf16>
    %c0_75 = arith.constant 0 : index
    %c6_76 = arith.constant 6 : index
    %c0_77 = arith.constant 0 : index
    %c0_78 = arith.constant 0 : index
    %115 = vector.load %arg3[%c0_75, %c6_76, %c0_77, %c0_78] : memref<2x9x8x8xbf16, #tpu.memory_space<vmem>>, vector<1x1x8x8xbf16>
    %116 = vector.shape_cast %115 : vector<1x1x8x8xbf16> to vector<8x8xbf16>
    %cst_79 = arith.constant dense<0.000000e+00> : vector<64x8xf32>
    %117 = tpu.matmul %114, %116, %cst_79 {dimension_numbers = #tpu.dot_dimension_numbers<[1], [0], [0], [1], [0, 0, 1, 1], [], []>} : vector<64x8xbf16>, vector<8x8xbf16>, vector<64x8xf32> -> vector<64x8xf32>
    %118 = arith.addf %112, %117 : vector<64x8xf32>
    %119 = vector.extract_strided_slice %75 {offsets = [2, 1, 0], sizes = [8, 8, 8], strides = [1, 1, 1]} : vector<10x10x8xbf16> to vector<8x8x8xbf16>
    %120 = vector.shape_cast %119 : vector<8x8x8xbf16> to vector<64x8xbf16>
    %c0_80 = arith.constant 0 : index
    %c7_81 = arith.constant 7 : index
    %c0_82 = arith.constant 0 : index
    %c0_83 = arith.constant 0 : index
    %121 = vector.load %arg3[%c0_80, %c7_81, %c0_82, %c0_83] : memref<2x9x8x8xbf16, #tpu.memory_space<vmem>>, vector<1x1x8x8xbf16>
    %122 = vector.shape_cast %121 : vector<1x1x8x8xbf16> to vector<8x8xbf16>
    %cst_84 = arith.constant dense<0.000000e+00> : vector<64x8xf32>
    %123 = tpu.matmul %120, %122, %cst_84 {dimension_numbers = #tpu.dot_dimension_numbers<[1], [0], [0], [1], [0, 0, 1, 1], [], []>} : vector<64x8xbf16>, vector<8x8xbf16>, vector<64x8xf32> -> vector<64x8xf32>
    %124 = arith.addf %118, %123 : vector<64x8xf32>
    %125 = vector.extract_strided_slice %75 {offsets = [2, 2, 0], sizes = [8, 8, 8], strides = [1, 1, 1]} : vector<10x10x8xbf16> to vector<8x8x8xbf16>
    %126 = vector.shape_cast %125 : vector<8x8x8xbf16> to vector<64x8xbf16>
    %c0_85 = arith.constant 0 : index
    %c8_86 = arith.constant 8 : index
    %c0_87 = arith.constant 0 : index
    %c0_88 = arith.constant 0 : index
    %127 = vector.load %arg3[%c0_85, %c8_86, %c0_87, %c0_88] : memref<2x9x8x8xbf16, #tpu.memory_space<vmem>>, vector<1x1x8x8xbf16>
    %128 = vector.shape_cast %127 : vector<1x1x8x8xbf16> to vector<8x8xbf16>
    %cst_89 = arith.constant dense<0.000000e+00> : vector<64x8xf32>
    %129 = tpu.matmul %126, %128, %cst_89 {dimension_numbers = #tpu.dot_dimension_numbers<[1], [0], [0], [1], [0, 0, 1, 1], [], []>} : vector<64x8xbf16>, vector<8x8xbf16>, vector<64x8xf32> -> vector<64x8xf32>
    %130 = arith.addf %124, %129 : vector<64x8xf32>
    %cst_90 = arith.constant 0.000000e+00 : f32
    %131 = vector.broadcast %cst_90 : f32 to vector<64x8xf32>
    %132 = arith.maximumf %130, %131 : vector<64x8xf32>
    %133 = arith.truncf %132 : vector<64x8xf32> to vector<64x8xbf16>
    %134 = vector.shape_cast %133 : vector<64x8xbf16> to vector<8x8x8xbf16>
    %c1_91 = arith.constant 1 : index
    %c1_92 = arith.constant 1 : index
    %c0_93 = arith.constant 0 : index
    %135 = vector.load %arg5[%c1_91, %c1_92, %c0_93] : memref<10x10x8xbf16, #tpu.memory_space<vmem>>, vector<8x8x8xbf16>
    tpu.vector_store %arg5[%c1_91, %c1_92, %c0_93], %134 {strides = array<i32>} : memref<10x10x8xbf16, #tpu.memory_space<vmem>>, vector<8x8x8xbf16>,
    %c0_94 = arith.constant 0 : index
    %c0_95 = arith.constant 0 : index
    %c0_96 = arith.constant 0 : index
    %136 = vector.load %arg5[%c0_94, %c0_95, %c0_96] : memref<10x10x8xbf16, #tpu.memory_space<vmem>>, vector<10x10x8xbf16>
    %cst_97 = arith.constant 0.000000e+00 : f32
    %137 = vector.broadcast %cst_97 : f32 to vector<64x8xf32>
    %138 = vector.extract_strided_slice %136 {offsets = [0, 0, 0], sizes = [8, 8, 8], strides = [1, 1, 1]} : vector<10x10x8xbf16> to vector<8x8x8xbf16>
    %139 = vector.shape_cast %138 : vector<8x8x8xbf16> to vector<64x8xbf16>
    %c1_98 = arith.constant 1 : index
    %c0_99 = arith.constant 0 : index
    %c0_100 = arith.constant 0 : index
    %c0_101 = arith.constant 0 : index
    %140 = vector.load %arg3[%c1_98, %c0_99, %c0_100, %c0_101] : memref<2x9x8x8xbf16, #tpu.memory_space<vmem>>, vector<1x1x8x8xbf16>
    %141 = vector.shape_cast %140 : vector<1x1x8x8xbf16> to vector<8x8xbf16>
    %cst_102 = arith.constant dense<0.000000e+00> : vector<64x8xf32>
    %142 = tpu.matmul %139, %141, %cst_102 {dimension_numbers = #tpu.dot_dimension_numbers<[1], [0], [0], [1], [0, 0, 1, 1], [], []>} : vector<64x8xbf16>, vector<8x8xbf16>, vector<64x8xf32> -> vector<64x8xf32>
    %143 = arith.addf %137, %142 : vector<64x8xf32>
    %144 = vector.extract_strided_slice %136 {offsets = [0, 1, 0], sizes = [8, 8, 8], strides = [1, 1, 1]} : vector<10x10x8xbf16> to vector<8x8x8xbf16>
    %145 = vector.shape_cast %144 : vector<8x8x8xbf16> to vector<64x8xbf16>
    %c1_103 = arith.constant 1 : index
    %c1_104 = arith.constant 1 : index
    %c0_105 = arith.constant 0 : index
    %c0_106 = arith.constant 0 : index
    %146 = vector.load %arg3[%c1_103, %c1_104, %c0_105, %c0_106] : memref<2x9x8x8xbf16, #tpu.memory_space<vmem>>, vector<1x1x8x8xbf16>
    %147 = vector.shape_cast %146 : vector<1x1x8x8xbf16> to vector<8x8xbf16>
    %cst_107 = arith.constant dense<0.000000e+00> : vector<64x8xf32>
    %148 = tpu.matmul %145, %147, %cst_107 {dimension_numbers = #tpu.dot_dimension_numbers<[1], [0], [0], [1], [0, 0, 1, 1], [], []>} : vector<64x8xbf16>, vector<8x8xbf16>, vector<64x8xf32> -> vector<64x8xf32>
    %149 = arith.addf %143, %148 : vector<64x8xf32>
    %150 = vector.extract_strided_slice %136 {offsets = [0, 2, 0], sizes = [8, 8, 8], strides = [1, 1, 1]} : vector<10x10x8xbf16> to vector<8x8x8xbf16>
    %151 = vector.shape_cast %150 : vector<8x8x8xbf16> to vector<64x8xbf16>
    %c1_108 = arith.constant 1 : index
    %c2_109 = arith.constant 2 : index
    %c0_110 = arith.constant 0 : index
    %c0_111 = arith.constant 0 : index
    %152 = vector.load %arg3[%c1_108, %c2_109, %c0_110, %c0_111] : memref<2x9x8x8xbf16, #tpu.memory_space<vmem>>, vector<1x1x8x8xbf16>
    %153 = vector.shape_cast %152 : vector<1x1x8x8xbf16> to vector<8x8xbf16>
    %cst_112 = arith.constant dense<0.000000e+00> : vector<64x8xf32>
    %154 = tpu.matmul %151, %153, %cst_112 {dimension_numbers = #tpu.dot_dimension_numbers<[1], [0], [0], [1], [0, 0, 1, 1], [], []>} : vector<64x8xbf16>, vector<8x8xbf16>, vector<64x8xf32> -> vector<64x8xf32>
    %155 = arith.addf %149, %154 : vector<64x8xf32>
    %156 = vector.extract_strided_slice %136 {offsets = [1, 0, 0], sizes = [8, 8, 8], strides = [1, 1, 1]} : vector<10x10x8xbf16> to vector<8x8x8xbf16>
    %157 = vector.shape_cast %156 : vector<8x8x8xbf16> to vector<64x8xbf16>
    %c1_113 = arith.constant 1 : index
    %c3_114 = arith.constant 3 : index
    %c0_115 = arith.constant 0 : index
    %c0_116 = arith.constant 0 : index
    %158 = vector.load %arg3[%c1_113, %c3_114, %c0_115, %c0_116] : memref<2x9x8x8xbf16, #tpu.memory_space<vmem>>, vector<1x1x8x8xbf16>
    %159 = vector.shape_cast %158 : vector<1x1x8x8xbf16> to vector<8x8xbf16>
    %cst_117 = arith.constant dense<0.000000e+00> : vector<64x8xf32>
    %160 = tpu.matmul %157, %159, %cst_117 {dimension_numbers = #tpu.dot_dimension_numbers<[1], [0], [0], [1], [0, 0, 1, 1], [], []>} : vector<64x8xbf16>, vector<8x8xbf16>, vector<64x8xf32> -> vector<64x8xf32>
    %161 = arith.addf %155, %160 : vector<64x8xf32>
    %162 = vector.extract_strided_slice %136 {offsets = [1, 1, 0], sizes = [8, 8, 8], strides = [1, 1, 1]} : vector<10x10x8xbf16> to vector<8x8x8xbf16>
    %163 = vector.shape_cast %162 : vector<8x8x8xbf16> to vector<64x8xbf16>
    %c1_118 = arith.constant 1 : index
    %c4_119 = arith.constant 4 : index
    %c0_120 = arith.constant 0 : index
    %c0_121 = arith.constant 0 : index
    %164 = vector.load %arg3[%c1_118, %c4_119, %c0_120, %c0_121] : memref<2x9x8x8xbf16, #tpu.memory_space<vmem>>, vector<1x1x8x8xbf16>
    %165 = vector.shape_cast %164 : vector<1x1x8x8xbf16> to vector<8x8xbf16>
    %cst_122 = arith.constant dense<0.000000e+00> : vector<64x8xf32>
    %166 = tpu.matmul %163, %165, %cst_122 {dimension_numbers = #tpu.dot_dimension_numbers<[1], [0], [0], [1], [0, 0, 1, 1], [], []>} : vector<64x8xbf16>, vector<8x8xbf16>, vector<64x8xf32> -> vector<64x8xf32>
    %167 = arith.addf %161, %166 : vector<64x8xf32>
    %168 = vector.extract_strided_slice %136 {offsets = [1, 2, 0], sizes = [8, 8, 8], strides = [1, 1, 1]} : vector<10x10x8xbf16> to vector<8x8x8xbf16>
    %169 = vector.shape_cast %168 : vector<8x8x8xbf16> to vector<64x8xbf16>
    %c1_123 = arith.constant 1 : index
    %c5_124 = arith.constant 5 : index
    %c0_125 = arith.constant 0 : index
    %c0_126 = arith.constant 0 : index
    %170 = vector.load %arg3[%c1_123, %c5_124, %c0_125, %c0_126] : memref<2x9x8x8xbf16, #tpu.memory_space<vmem>>, vector<1x1x8x8xbf16>
    %171 = vector.shape_cast %170 : vector<1x1x8x8xbf16> to vector<8x8xbf16>
    %cst_127 = arith.constant dense<0.000000e+00> : vector<64x8xf32>
    %172 = tpu.matmul %169, %171, %cst_127 {dimension_numbers = #tpu.dot_dimension_numbers<[1], [0], [0], [1], [0, 0, 1, 1], [], []>} : vector<64x8xbf16>, vector<8x8xbf16>, vector<64x8xf32> -> vector<64x8xf32>
    %173 = arith.addf %167, %172 : vector<64x8xf32>
    %174 = vector.extract_strided_slice %136 {offsets = [2, 0, 0], sizes = [8, 8, 8], strides = [1, 1, 1]} : vector<10x10x8xbf16> to vector<8x8x8xbf16>
    %175 = vector.shape_cast %174 : vector<8x8x8xbf16> to vector<64x8xbf16>
    %c1_128 = arith.constant 1 : index
    %c6_129 = arith.constant 6 : index
    %c0_130 = arith.constant 0 : index
    %c0_131 = arith.constant 0 : index
    %176 = vector.load %arg3[%c1_128, %c6_129, %c0_130, %c0_131] : memref<2x9x8x8xbf16, #tpu.memory_space<vmem>>, vector<1x1x8x8xbf16>
    %177 = vector.shape_cast %176 : vector<1x1x8x8xbf16> to vector<8x8xbf16>
    %cst_132 = arith.constant dense<0.000000e+00> : vector<64x8xf32>
    %178 = tpu.matmul %175, %177, %cst_132 {dimension_numbers = #tpu.dot_dimension_numbers<[1], [0], [0], [1], [0, 0, 1, 1], [], []>} : vector<64x8xbf16>, vector<8x8xbf16>, vector<64x8xf32> -> vector<64x8xf32>
    %179 = arith.addf %173, %178 : vector<64x8xf32>
    %180 = vector.extract_strided_slice %136 {offsets = [2, 1, 0], sizes = [8, 8, 8], strides = [1, 1, 1]} : vector<10x10x8xbf16> to vector<8x8x8xbf16>
    %181 = vector.shape_cast %180 : vector<8x8x8xbf16> to vector<64x8xbf16>
    %c1_133 = arith.constant 1 : index
    %c7_134 = arith.constant 7 : index
    %c0_135 = arith.constant 0 : index
    %c0_136 = arith.constant 0 : index
    %182 = vector.load %arg3[%c1_133, %c7_134, %c0_135, %c0_136] : memref<2x9x8x8xbf16, #tpu.memory_space<vmem>>, vector<1x1x8x8xbf16>
    %183 = vector.shape_cast %182 : vector<1x1x8x8xbf16> to vector<8x8xbf16>
    %cst_137 = arith.constant dense<0.000000e+00> : vector<64x8xf32>
    %184 = tpu.matmul %181, %183, %cst_137 {dimension_numbers = #tpu.dot_dimension_numbers<[1], [0], [0], [1], [0, 0, 1, 1], [], []>} : vector<64x8xbf16>, vector<8x8xbf16>, vector<64x8xf32> -> vector<64x8xf32>
    %185 = arith.addf %179, %184 : vector<64x8xf32>
    %186 = vector.extract_strided_slice %136 {offsets = [2, 2, 0], sizes = [8, 8, 8], strides = [1, 1, 1]} : vector<10x10x8xbf16> to vector<8x8x8xbf16>
    %187 = vector.shape_cast %186 : vector<8x8x8xbf16> to vector<64x8xbf16>
    %c1_138 = arith.constant 1 : index
    %c8_139 = arith.constant 8 : index
    %c0_140 = arith.constant 0 : index
    %c0_141 = arith.constant 0 : index
    %188 = vector.load %arg3[%c1_138, %c8_139, %c0_140, %c0_141] : memref<2x9x8x8xbf16, #tpu.memory_space<vmem>>, vector<1x1x8x8xbf16>
    %189 = vector.shape_cast %188 : vector<1x1x8x8xbf16> to vector<8x8xbf16>
    %cst_142 = arith.constant dense<0.000000e+00> : vector<64x8xf32>
    %190 = tpu.matmul %187, %189, %cst_142 {dimension_numbers = #tpu.dot_dimension_numbers<[1], [0], [0], [1], [0, 0, 1, 1], [], []>} : vector<64x8xbf16>, vector<8x8xbf16>, vector<64x8xf32> -> vector<64x8xf32>
    %191 = arith.addf %185, %190 : vector<64x8xf32>
    %192 = vector.shape_cast %191 : vector<64x8xf32> to vector<8x8x8xf32>
    %193 = arith.addf %70, %192 : vector<8x8x8xf32>
    %194 = arith.truncf %193 : vector<8x8x8xf32> to vector<8x8x8xbf16>
    %c0_143 = arith.constant 0 : index
    %c0_144 = arith.constant 0 : index
    %c0_145 = arith.constant 0 : index
    %c0_146 = arith.constant 0 : index
    %195 = vector.load %arg4[%c0_143, %c0_144, %c0_145, %c0_146] : memref<1x8x8x8xbf16, #tpu.memory_space<vmem>>, vector<1x8x8x8xbf16>
    %196 = vector.shape_cast %195 : vector<1x8x8x8xbf16> to vector<8x8x8xbf16>
    %197 = vector.shape_cast %194 : vector<8x8x8xbf16> to vector<1x8x8x8xbf16>
    tpu.vector_store %arg4[%c0_143, %c0_144, %c0_145, %c0_146], %197 {strides = array<i32>} : memref<1x8x8x8xbf16, #tpu.memory_space<vmem>>, vector<1x8x8x8xbf16>,
    return
  }
  func.func @transform_0(%arg0: i32) -> (i32, i32, i32, i32, i32) {
    %c0_i32 = arith.constant 0 : i32
    %c0_i32_0 = arith.constant 0 : i32
    %c0_i32_1 = arith.constant 0 : i32
    %c0_i32_2 = arith.constant 0 : i32
    %c0_i32_3 = arith.constant 0 : i32
    return %arg0, %c0_i32, %c0_i32_0, %c0_i32_1, %c0_i32_2 : i32, i32, i32, i32, i32
  }
  func.func @transform_1(%arg0: i32) -> (i32, i32, i32) {
    %c0_i32 = arith.constant 0 : i32
    %c0_i32_0 = arith.constant 0 : i32
    %c0_i32_1 = arith.constant 0 : i32
    %c0_i32_2 = arith.constant 0 : i32
    return %c0_i32, %c0_i32_0, %c0_i32_1 : i32, i32, i32
  }
  func.func @transform_2(%arg0: i32) -> (i32, i32, i32, i32) {
    %c0_i32 = arith.constant 0 : i32
    %c0_i32_0 = arith.constant 0 : i32
    %c0_i32_1 = arith.constant 0 : i32
    %c0_i32_2 = arith.constant 0 : i32
    %c0_i32_3 = arith.constant 0 : i32
    return %c0_i32, %c0_i32_0, %c0_i32_1, %c0_i32_2 : i32, i32, i32, i32
  }
  func.func @transform_3(%arg0: i32) -> (i32, i32, i32, i32) {
    %c0_i32 = arith.constant 0 : i32
    %c0_i32_0 = arith.constant 0 : i32
    %c0_i32_1 = arith.constant 0 : i32
    %c0_i32_2 = arith.constant 0 : i32
    return %arg0, %c0_i32, %c0_i32_0, %c0_i32_1 : i32, i32, i32, i32
  }
}

module attributes {stable_mosaic.version = 11 : i64} {
  func.func @_trans_group_kernel(%arg0: i32, %arg1: memref<1x4x5x5x8xbf16, #tpu.memory_space<vmem>>, %arg2: memref<9x8x16xbf16, #tpu.memory_space<vmem>>, %arg3: memref<2x9x16x16xbf16, #tpu.memory_space<vmem>>, %arg4: memref<1x4x4x16xbf16, #tpu.memory_space<vmem>>, %arg5: memref<6x6x16xbf16, #tpu.memory_space<vmem>>) attributes {dimension_semantics = [#tpu.dimension_semantics<parallel>], iteration_bounds = array<i64: 2>, scalar_prefetch = 0 : i64, scratch_operands = 1 : i64, tpu.core_type = #tpu.core_type<tc>, window_params = [{transform_indices = @transform_0, window_bounds = array<i64: 1, 4, 5, 5, 8>}, {pipeline_mode = #tpu.pipeline_mode<synchronous>, transform_indices = @transform_1, window_bounds = array<i64: 9, 8, 16>}, {pipeline_mode = #tpu.pipeline_mode<synchronous>, transform_indices = @transform_2, window_bounds = array<i64: 2, 9, 16, 16>}, {transform_indices = @transform_3, window_bounds = array<i64: 1, 4, 4, 16>}]} {
    %cst = arith.constant 0.000000e+00 : bf16
    %0 = vector.broadcast %cst : bf16 to vector<6x6x16xbf16>
    %c0 = arith.constant 0 : index
    %c0_0 = arith.constant 0 : index
    %c0_1 = arith.constant 0 : index
    %1 = vector.load %arg5[%c0, %c0_0, %c0_1] : memref<6x6x16xbf16, #tpu.memory_space<vmem>>, vector<6x6x16xbf16>
    tpu.vector_store %arg5[%c0, %c0_0, %c0_1], %0 {strides = array<i32>} : memref<6x6x16xbf16, #tpu.memory_space<vmem>>, vector<6x6x16xbf16>,
    %c0_2 = arith.constant 0 : index
    %c0_3 = arith.constant 0 : index
    %c0_4 = arith.constant 0 : index
    %c0_5 = arith.constant 0 : index
    %c0_6 = arith.constant 0 : index
    %2 = vector.load %arg1[%c0_2, %c0_3, %c0_4, %c0_5, %c0_6] : memref<1x4x5x5x8xbf16, #tpu.memory_space<vmem>>, vector<1x4x5x5x8xbf16>
    %3 = vector.shape_cast %2 : vector<1x4x5x5x8xbf16> to vector<4x5x5x8xbf16>
    %cst_7 = arith.constant 0.000000e+00 : f32
    %4 = vector.broadcast %cst_7 : f32 to vector<16x16xf32>
    %5 = vector.extract_strided_slice %3 {offsets = [0, 0, 0, 0], sizes = [1, 4, 4, 8], strides = [1, 1, 1, 1]} : vector<4x5x5x8xbf16> to vector<1x4x4x8xbf16>
    %6 = vector.shape_cast %5 : vector<1x4x4x8xbf16> to vector<4x4x8xbf16>
    %7 = vector.shape_cast %6 : vector<4x4x8xbf16> to vector<16x8xbf16>
    %c0_8 = arith.constant 0 : index
    %c0_9 = arith.constant 0 : index
    %c0_10 = arith.constant 0 : index
    %8 = vector.load %arg2[%c0_8, %c0_9, %c0_10] : memref<9x8x16xbf16, #tpu.memory_space<vmem>>, vector<1x8x16xbf16>
    %9 = vector.shape_cast %8 : vector<1x8x16xbf16> to vector<8x16xbf16>
    %cst_11 = arith.constant dense<0.000000e+00> : vector<16x16xf32>
    %10 = tpu.matmul %7, %9, %cst_11 {dimension_numbers = #tpu.dot_dimension_numbers<[1], [0], [0], [1], [0, 0, 1, 1], [], []>} : vector<16x8xbf16>, vector<8x16xbf16>, vector<16x16xf32> -> vector<16x16xf32>
    %11 = arith.addf %4, %10 : vector<16x16xf32>
    %12 = vector.extract_strided_slice %3 {offsets = [1, 0, 0, 0], sizes = [1, 4, 4, 8], strides = [1, 1, 1, 1]} : vector<4x5x5x8xbf16> to vector<1x4x4x8xbf16>
    %13 = vector.shape_cast %12 : vector<1x4x4x8xbf16> to vector<4x4x8xbf16>
    %14 = vector.shape_cast %13 : vector<4x4x8xbf16> to vector<16x8xbf16>
    %c1 = arith.constant 1 : index
    %c0_12 = arith.constant 0 : index
    %c0_13 = arith.constant 0 : index
    %15 = vector.load %arg2[%c1, %c0_12, %c0_13] : memref<9x8x16xbf16, #tpu.memory_space<vmem>>, vector<1x8x16xbf16>
    %16 = vector.shape_cast %15 : vector<1x8x16xbf16> to vector<8x16xbf16>
    %cst_14 = arith.constant dense<0.000000e+00> : vector<16x16xf32>
    %17 = tpu.matmul %14, %16, %cst_14 {dimension_numbers = #tpu.dot_dimension_numbers<[1], [0], [0], [1], [0, 0, 1, 1], [], []>} : vector<16x8xbf16>, vector<8x16xbf16>, vector<16x16xf32> -> vector<16x16xf32>
    %18 = arith.addf %11, %17 : vector<16x16xf32>
    %19 = vector.extract_strided_slice %3 {offsets = [0, 0, 1, 0], sizes = [1, 4, 4, 8], strides = [1, 1, 1, 1]} : vector<4x5x5x8xbf16> to vector<1x4x4x8xbf16>
    %20 = vector.shape_cast %19 : vector<1x4x4x8xbf16> to vector<4x4x8xbf16>
    %21 = vector.shape_cast %20 : vector<4x4x8xbf16> to vector<16x8xbf16>
    %c2 = arith.constant 2 : index
    %c0_15 = arith.constant 0 : index
    %c0_16 = arith.constant 0 : index
    %22 = vector.load %arg2[%c2, %c0_15, %c0_16] : memref<9x8x16xbf16, #tpu.memory_space<vmem>>, vector<1x8x16xbf16>
    %23 = vector.shape_cast %22 : vector<1x8x16xbf16> to vector<8x16xbf16>
    %cst_17 = arith.constant dense<0.000000e+00> : vector<16x16xf32>
    %24 = tpu.matmul %21, %23, %cst_17 {dimension_numbers = #tpu.dot_dimension_numbers<[1], [0], [0], [1], [0, 0, 1, 1], [], []>} : vector<16x8xbf16>, vector<8x16xbf16>, vector<16x16xf32> -> vector<16x16xf32>
    %25 = arith.addf %18, %24 : vector<16x16xf32>
    %26 = vector.extract_strided_slice %3 {offsets = [2, 0, 0, 0], sizes = [1, 4, 4, 8], strides = [1, 1, 1, 1]} : vector<4x5x5x8xbf16> to vector<1x4x4x8xbf16>
    %27 = vector.shape_cast %26 : vector<1x4x4x8xbf16> to vector<4x4x8xbf16>
    %28 = vector.shape_cast %27 : vector<4x4x8xbf16> to vector<16x8xbf16>
    %c3 = arith.constant 3 : index
    %c0_18 = arith.constant 0 : index
    %c0_19 = arith.constant 0 : index
    %29 = vector.load %arg2[%c3, %c0_18, %c0_19] : memref<9x8x16xbf16, #tpu.memory_space<vmem>>, vector<1x8x16xbf16>
    %30 = vector.shape_cast %29 : vector<1x8x16xbf16> to vector<8x16xbf16>
    %cst_20 = arith.constant dense<0.000000e+00> : vector<16x16xf32>
    %31 = tpu.matmul %28, %30, %cst_20 {dimension_numbers = #tpu.dot_dimension_numbers<[1], [0], [0], [1], [0, 0, 1, 1], [], []>} : vector<16x8xbf16>, vector<8x16xbf16>, vector<16x16xf32> -> vector<16x16xf32>
    %32 = arith.addf %25, %31 : vector<16x16xf32>
    %33 = vector.extract_strided_slice %3 {offsets = [3, 0, 0, 0], sizes = [1, 4, 4, 8], strides = [1, 1, 1, 1]} : vector<4x5x5x8xbf16> to vector<1x4x4x8xbf16>
    %34 = vector.shape_cast %33 : vector<1x4x4x8xbf16> to vector<4x4x8xbf16>
    %35 = vector.shape_cast %34 : vector<4x4x8xbf16> to vector<16x8xbf16>
    %c4 = arith.constant 4 : index
    %c0_21 = arith.constant 0 : index
    %c0_22 = arith.constant 0 : index
    %36 = vector.load %arg2[%c4, %c0_21, %c0_22] : memref<9x8x16xbf16, #tpu.memory_space<vmem>>, vector<1x8x16xbf16>
    %37 = vector.shape_cast %36 : vector<1x8x16xbf16> to vector<8x16xbf16>
    %cst_23 = arith.constant dense<0.000000e+00> : vector<16x16xf32>
    %38 = tpu.matmul %35, %37, %cst_23 {dimension_numbers = #tpu.dot_dimension_numbers<[1], [0], [0], [1], [0, 0, 1, 1], [], []>} : vector<16x8xbf16>, vector<8x16xbf16>, vector<16x16xf32> -> vector<16x16xf32>
    %39 = arith.addf %32, %38 : vector<16x16xf32>
    %40 = vector.extract_strided_slice %3 {offsets = [2, 0, 1, 0], sizes = [1, 4, 4, 8], strides = [1, 1, 1, 1]} : vector<4x5x5x8xbf16> to vector<1x4x4x8xbf16>
    %41 = vector.shape_cast %40 : vector<1x4x4x8xbf16> to vector<4x4x8xbf16>
    %42 = vector.shape_cast %41 : vector<4x4x8xbf16> to vector<16x8xbf16>
    %c5 = arith.constant 5 : index
    %c0_24 = arith.constant 0 : index
    %c0_25 = arith.constant 0 : index
    %43 = vector.load %arg2[%c5, %c0_24, %c0_25] : memref<9x8x16xbf16, #tpu.memory_space<vmem>>, vector<1x8x16xbf16>
    %44 = vector.shape_cast %43 : vector<1x8x16xbf16> to vector<8x16xbf16>
    %cst_26 = arith.constant dense<0.000000e+00> : vector<16x16xf32>
    %45 = tpu.matmul %42, %44, %cst_26 {dimension_numbers = #tpu.dot_dimension_numbers<[1], [0], [0], [1], [0, 0, 1, 1], [], []>} : vector<16x8xbf16>, vector<8x16xbf16>, vector<16x16xf32> -> vector<16x16xf32>
    %46 = arith.addf %39, %45 : vector<16x16xf32>
    %47 = vector.extract_strided_slice %3 {offsets = [0, 1, 0, 0], sizes = [1, 4, 4, 8], strides = [1, 1, 1, 1]} : vector<4x5x5x8xbf16> to vector<1x4x4x8xbf16>
    %48 = vector.shape_cast %47 : vector<1x4x4x8xbf16> to vector<4x4x8xbf16>
    %49 = vector.shape_cast %48 : vector<4x4x8xbf16> to vector<16x8xbf16>
    %c6 = arith.constant 6 : index
    %c0_27 = arith.constant 0 : index
    %c0_28 = arith.constant 0 : index
    %50 = vector.load %arg2[%c6, %c0_27, %c0_28] : memref<9x8x16xbf16, #tpu.memory_space<vmem>>, vector<1x8x16xbf16>
    %51 = vector.shape_cast %50 : vector<1x8x16xbf16> to vector<8x16xbf16>
    %cst_29 = arith.constant dense<0.000000e+00> : vector<16x16xf32>
    %52 = tpu.matmul %49, %51, %cst_29 {dimension_numbers = #tpu.dot_dimension_numbers<[1], [0], [0], [1], [0, 0, 1, 1], [], []>} : vector<16x8xbf16>, vector<8x16xbf16>, vector<16x16xf32> -> vector<16x16xf32>
    %53 = arith.addf %46, %52 : vector<16x16xf32>
    %54 = vector.extract_strided_slice %3 {offsets = [1, 1, 0, 0], sizes = [1, 4, 4, 8], strides = [1, 1, 1, 1]} : vector<4x5x5x8xbf16> to vector<1x4x4x8xbf16>
    %55 = vector.shape_cast %54 : vector<1x4x4x8xbf16> to vector<4x4x8xbf16>
    %56 = vector.shape_cast %55 : vector<4x4x8xbf16> to vector<16x8xbf16>
    %c7 = arith.constant 7 : index
    %c0_30 = arith.constant 0 : index
    %c0_31 = arith.constant 0 : index
    %57 = vector.load %arg2[%c7, %c0_30, %c0_31] : memref<9x8x16xbf16, #tpu.memory_space<vmem>>, vector<1x8x16xbf16>
    %58 = vector.shape_cast %57 : vector<1x8x16xbf16> to vector<8x16xbf16>
    %cst_32 = arith.constant dense<0.000000e+00> : vector<16x16xf32>
    %59 = tpu.matmul %56, %58, %cst_32 {dimension_numbers = #tpu.dot_dimension_numbers<[1], [0], [0], [1], [0, 0, 1, 1], [], []>} : vector<16x8xbf16>, vector<8x16xbf16>, vector<16x16xf32> -> vector<16x16xf32>
    %60 = arith.addf %53, %59 : vector<16x16xf32>
    %61 = vector.extract_strided_slice %3 {offsets = [0, 1, 1, 0], sizes = [1, 4, 4, 8], strides = [1, 1, 1, 1]} : vector<4x5x5x8xbf16> to vector<1x4x4x8xbf16>
    %62 = vector.shape_cast %61 : vector<1x4x4x8xbf16> to vector<4x4x8xbf16>
    %63 = vector.shape_cast %62 : vector<4x4x8xbf16> to vector<16x8xbf16>
    %c8 = arith.constant 8 : index
    %c0_33 = arith.constant 0 : index
    %c0_34 = arith.constant 0 : index
    %64 = vector.load %arg2[%c8, %c0_33, %c0_34] : memref<9x8x16xbf16, #tpu.memory_space<vmem>>, vector<1x8x16xbf16>
    %65 = vector.shape_cast %64 : vector<1x8x16xbf16> to vector<8x16xbf16>
    %cst_35 = arith.constant dense<0.000000e+00> : vector<16x16xf32>
    %66 = tpu.matmul %63, %65, %cst_35 {dimension_numbers = #tpu.dot_dimension_numbers<[1], [0], [0], [1], [0, 0, 1, 1], [], []>} : vector<16x8xbf16>, vector<8x16xbf16>, vector<16x16xf32> -> vector<16x16xf32>
    %67 = arith.addf %60, %66 : vector<16x16xf32>
    %cst_36 = arith.constant 0.000000e+00 : f32
    %68 = vector.broadcast %cst_36 : f32 to vector<16x16xf32>
    %69 = arith.maximumf %67, %68 : vector<16x16xf32>
    %70 = vector.shape_cast %69 : vector<16x16xf32> to vector<4x4x16xf32>
    %cst_37 = arith.constant 0.000000e+00 : f32
    %71 = vector.broadcast %cst_37 : f32 to vector<4x4x16xf32>
    %72 = arith.maximumf %70, %71 : vector<4x4x16xf32>
    %73 = arith.truncf %72 : vector<4x4x16xf32> to vector<4x4x16xbf16>
    %c1_38 = arith.constant 1 : index
    %c1_39 = arith.constant 1 : index
    %c0_40 = arith.constant 0 : index
    %74 = vector.load %arg5[%c1_38, %c1_39, %c0_40] : memref<6x6x16xbf16, #tpu.memory_space<vmem>>, vector<4x4x16xbf16>
    tpu.vector_store %arg5[%c1_38, %c1_39, %c0_40], %73 {strides = array<i32>} : memref<6x6x16xbf16, #tpu.memory_space<vmem>>, vector<4x4x16xbf16>,
    %c0_41 = arith.constant 0 : index
    %c0_42 = arith.constant 0 : index
    %c0_43 = arith.constant 0 : index
    %75 = vector.load %arg5[%c0_41, %c0_42, %c0_43] : memref<6x6x16xbf16, #tpu.memory_space<vmem>>, vector<6x6x16xbf16>
    %cst_44 = arith.constant 0.000000e+00 : f32
    %76 = vector.broadcast %cst_44 : f32 to vector<16x16xf32>
    %77 = vector.extract_strided_slice %75 {offsets = [0, 0, 0], sizes = [4, 4, 16], strides = [1, 1, 1]} : vector<6x6x16xbf16> to vector<4x4x16xbf16>
    %78 = vector.shape_cast %77 : vector<4x4x16xbf16> to vector<16x16xbf16>
    %c0_45 = arith.constant 0 : index
    %c0_46 = arith.constant 0 : index
    %c0_47 = arith.constant 0 : index
    %c0_48 = arith.constant 0 : index
    %79 = vector.load %arg3[%c0_45, %c0_46, %c0_47, %c0_48] : memref<2x9x16x16xbf16, #tpu.memory_space<vmem>>, vector<1x1x16x16xbf16>
    %80 = vector.shape_cast %79 : vector<1x1x16x16xbf16> to vector<16x16xbf16>
    %cst_49 = arith.constant dense<0.000000e+00> : vector<16x16xf32>
    %81 = tpu.matmul %78, %80, %cst_49 {dimension_numbers = #tpu.dot_dimension_numbers<[1], [0], [0], [1], [0, 0, 1, 1], [], []>} : vector<16x16xbf16>, vector<16x16xbf16>, vector<16x16xf32> -> vector<16x16xf32>
    %82 = arith.addf %76, %81 : vector<16x16xf32>
    %83 = vector.extract_strided_slice %75 {offsets = [0, 1, 0], sizes = [4, 4, 16], strides = [1, 1, 1]} : vector<6x6x16xbf16> to vector<4x4x16xbf16>
    %84 = vector.shape_cast %83 : vector<4x4x16xbf16> to vector<16x16xbf16>
    %c0_50 = arith.constant 0 : index
    %c1_51 = arith.constant 1 : index
    %c0_52 = arith.constant 0 : index
    %c0_53 = arith.constant 0 : index
    %85 = vector.load %arg3[%c0_50, %c1_51, %c0_52, %c0_53] : memref<2x9x16x16xbf16, #tpu.memory_space<vmem>>, vector<1x1x16x16xbf16>
    %86 = vector.shape_cast %85 : vector<1x1x16x16xbf16> to vector<16x16xbf16>
    %cst_54 = arith.constant dense<0.000000e+00> : vector<16x16xf32>
    %87 = tpu.matmul %84, %86, %cst_54 {dimension_numbers = #tpu.dot_dimension_numbers<[1], [0], [0], [1], [0, 0, 1, 1], [], []>} : vector<16x16xbf16>, vector<16x16xbf16>, vector<16x16xf32> -> vector<16x16xf32>
    %88 = arith.addf %82, %87 : vector<16x16xf32>
    %89 = vector.extract_strided_slice %75 {offsets = [0, 2, 0], sizes = [4, 4, 16], strides = [1, 1, 1]} : vector<6x6x16xbf16> to vector<4x4x16xbf16>
    %90 = vector.shape_cast %89 : vector<4x4x16xbf16> to vector<16x16xbf16>
    %c0_55 = arith.constant 0 : index
    %c2_56 = arith.constant 2 : index
    %c0_57 = arith.constant 0 : index
    %c0_58 = arith.constant 0 : index
    %91 = vector.load %arg3[%c0_55, %c2_56, %c0_57, %c0_58] : memref<2x9x16x16xbf16, #tpu.memory_space<vmem>>, vector<1x1x16x16xbf16>
    %92 = vector.shape_cast %91 : vector<1x1x16x16xbf16> to vector<16x16xbf16>
    %cst_59 = arith.constant dense<0.000000e+00> : vector<16x16xf32>
    %93 = tpu.matmul %90, %92, %cst_59 {dimension_numbers = #tpu.dot_dimension_numbers<[1], [0], [0], [1], [0, 0, 1, 1], [], []>} : vector<16x16xbf16>, vector<16x16xbf16>, vector<16x16xf32> -> vector<16x16xf32>
    %94 = arith.addf %88, %93 : vector<16x16xf32>
    %95 = vector.extract_strided_slice %75 {offsets = [1, 0, 0], sizes = [4, 4, 16], strides = [1, 1, 1]} : vector<6x6x16xbf16> to vector<4x4x16xbf16>
    %96 = vector.shape_cast %95 : vector<4x4x16xbf16> to vector<16x16xbf16>
    %c0_60 = arith.constant 0 : index
    %c3_61 = arith.constant 3 : index
    %c0_62 = arith.constant 0 : index
    %c0_63 = arith.constant 0 : index
    %97 = vector.load %arg3[%c0_60, %c3_61, %c0_62, %c0_63] : memref<2x9x16x16xbf16, #tpu.memory_space<vmem>>, vector<1x1x16x16xbf16>
    %98 = vector.shape_cast %97 : vector<1x1x16x16xbf16> to vector<16x16xbf16>
    %cst_64 = arith.constant dense<0.000000e+00> : vector<16x16xf32>
    %99 = tpu.matmul %96, %98, %cst_64 {dimension_numbers = #tpu.dot_dimension_numbers<[1], [0], [0], [1], [0, 0, 1, 1], [], []>} : vector<16x16xbf16>, vector<16x16xbf16>, vector<16x16xf32> -> vector<16x16xf32>
    %100 = arith.addf %94, %99 : vector<16x16xf32>
    %101 = vector.extract_strided_slice %75 {offsets = [1, 1, 0], sizes = [4, 4, 16], strides = [1, 1, 1]} : vector<6x6x16xbf16> to vector<4x4x16xbf16>
    %102 = vector.shape_cast %101 : vector<4x4x16xbf16> to vector<16x16xbf16>
    %c0_65 = arith.constant 0 : index
    %c4_66 = arith.constant 4 : index
    %c0_67 = arith.constant 0 : index
    %c0_68 = arith.constant 0 : index
    %103 = vector.load %arg3[%c0_65, %c4_66, %c0_67, %c0_68] : memref<2x9x16x16xbf16, #tpu.memory_space<vmem>>, vector<1x1x16x16xbf16>
    %104 = vector.shape_cast %103 : vector<1x1x16x16xbf16> to vector<16x16xbf16>
    %cst_69 = arith.constant dense<0.000000e+00> : vector<16x16xf32>
    %105 = tpu.matmul %102, %104, %cst_69 {dimension_numbers = #tpu.dot_dimension_numbers<[1], [0], [0], [1], [0, 0, 1, 1], [], []>} : vector<16x16xbf16>, vector<16x16xbf16>, vector<16x16xf32> -> vector<16x16xf32>
    %106 = arith.addf %100, %105 : vector<16x16xf32>
    %107 = vector.extract_strided_slice %75 {offsets = [1, 2, 0], sizes = [4, 4, 16], strides = [1, 1, 1]} : vector<6x6x16xbf16> to vector<4x4x16xbf16>
    %108 = vector.shape_cast %107 : vector<4x4x16xbf16> to vector<16x16xbf16>
    %c0_70 = arith.constant 0 : index
    %c5_71 = arith.constant 5 : index
    %c0_72 = arith.constant 0 : index
    %c0_73 = arith.constant 0 : index
    %109 = vector.load %arg3[%c0_70, %c5_71, %c0_72, %c0_73] : memref<2x9x16x16xbf16, #tpu.memory_space<vmem>>, vector<1x1x16x16xbf16>
    %110 = vector.shape_cast %109 : vector<1x1x16x16xbf16> to vector<16x16xbf16>
    %cst_74 = arith.constant dense<0.000000e+00> : vector<16x16xf32>
    %111 = tpu.matmul %108, %110, %cst_74 {dimension_numbers = #tpu.dot_dimension_numbers<[1], [0], [0], [1], [0, 0, 1, 1], [], []>} : vector<16x16xbf16>, vector<16x16xbf16>, vector<16x16xf32> -> vector<16x16xf32>
    %112 = arith.addf %106, %111 : vector<16x16xf32>
    %113 = vector.extract_strided_slice %75 {offsets = [2, 0, 0], sizes = [4, 4, 16], strides = [1, 1, 1]} : vector<6x6x16xbf16> to vector<4x4x16xbf16>
    %114 = vector.shape_cast %113 : vector<4x4x16xbf16> to vector<16x16xbf16>
    %c0_75 = arith.constant 0 : index
    %c6_76 = arith.constant 6 : index
    %c0_77 = arith.constant 0 : index
    %c0_78 = arith.constant 0 : index
    %115 = vector.load %arg3[%c0_75, %c6_76, %c0_77, %c0_78] : memref<2x9x16x16xbf16, #tpu.memory_space<vmem>>, vector<1x1x16x16xbf16>
    %116 = vector.shape_cast %115 : vector<1x1x16x16xbf16> to vector<16x16xbf16>
    %cst_79 = arith.constant dense<0.000000e+00> : vector<16x16xf32>
    %117 = tpu.matmul %114, %116, %cst_79 {dimension_numbers = #tpu.dot_dimension_numbers<[1], [0], [0], [1], [0, 0, 1, 1], [], []>} : vector<16x16xbf16>, vector<16x16xbf16>, vector<16x16xf32> -> vector<16x16xf32>
    %118 = arith.addf %112, %117 : vector<16x16xf32>
    %119 = vector.extract_strided_slice %75 {offsets = [2, 1, 0], sizes = [4, 4, 16], strides = [1, 1, 1]} : vector<6x6x16xbf16> to vector<4x4x16xbf16>
    %120 = vector.shape_cast %119 : vector<4x4x16xbf16> to vector<16x16xbf16>
    %c0_80 = arith.constant 0 : index
    %c7_81 = arith.constant 7 : index
    %c0_82 = arith.constant 0 : index
    %c0_83 = arith.constant 0 : index
    %121 = vector.load %arg3[%c0_80, %c7_81, %c0_82, %c0_83] : memref<2x9x16x16xbf16, #tpu.memory_space<vmem>>, vector<1x1x16x16xbf16>
    %122 = vector.shape_cast %121 : vector<1x1x16x16xbf16> to vector<16x16xbf16>
    %cst_84 = arith.constant dense<0.000000e+00> : vector<16x16xf32>
    %123 = tpu.matmul %120, %122, %cst_84 {dimension_numbers = #tpu.dot_dimension_numbers<[1], [0], [0], [1], [0, 0, 1, 1], [], []>} : vector<16x16xbf16>, vector<16x16xbf16>, vector<16x16xf32> -> vector<16x16xf32>
    %124 = arith.addf %118, %123 : vector<16x16xf32>
    %125 = vector.extract_strided_slice %75 {offsets = [2, 2, 0], sizes = [4, 4, 16], strides = [1, 1, 1]} : vector<6x6x16xbf16> to vector<4x4x16xbf16>
    %126 = vector.shape_cast %125 : vector<4x4x16xbf16> to vector<16x16xbf16>
    %c0_85 = arith.constant 0 : index
    %c8_86 = arith.constant 8 : index
    %c0_87 = arith.constant 0 : index
    %c0_88 = arith.constant 0 : index
    %127 = vector.load %arg3[%c0_85, %c8_86, %c0_87, %c0_88] : memref<2x9x16x16xbf16, #tpu.memory_space<vmem>>, vector<1x1x16x16xbf16>
    %128 = vector.shape_cast %127 : vector<1x1x16x16xbf16> to vector<16x16xbf16>
    %cst_89 = arith.constant dense<0.000000e+00> : vector<16x16xf32>
    %129 = tpu.matmul %126, %128, %cst_89 {dimension_numbers = #tpu.dot_dimension_numbers<[1], [0], [0], [1], [0, 0, 1, 1], [], []>} : vector<16x16xbf16>, vector<16x16xbf16>, vector<16x16xf32> -> vector<16x16xf32>
    %130 = arith.addf %124, %129 : vector<16x16xf32>
    %cst_90 = arith.constant 0.000000e+00 : f32
    %131 = vector.broadcast %cst_90 : f32 to vector<16x16xf32>
    %132 = arith.maximumf %130, %131 : vector<16x16xf32>
    %133 = arith.truncf %132 : vector<16x16xf32> to vector<16x16xbf16>
    %134 = vector.shape_cast %133 : vector<16x16xbf16> to vector<4x4x16xbf16>
    %c1_91 = arith.constant 1 : index
    %c1_92 = arith.constant 1 : index
    %c0_93 = arith.constant 0 : index
    %135 = vector.load %arg5[%c1_91, %c1_92, %c0_93] : memref<6x6x16xbf16, #tpu.memory_space<vmem>>, vector<4x4x16xbf16>
    tpu.vector_store %arg5[%c1_91, %c1_92, %c0_93], %134 {strides = array<i32>} : memref<6x6x16xbf16, #tpu.memory_space<vmem>>, vector<4x4x16xbf16>,
    %c0_94 = arith.constant 0 : index
    %c0_95 = arith.constant 0 : index
    %c0_96 = arith.constant 0 : index
    %136 = vector.load %arg5[%c0_94, %c0_95, %c0_96] : memref<6x6x16xbf16, #tpu.memory_space<vmem>>, vector<6x6x16xbf16>
    %cst_97 = arith.constant 0.000000e+00 : f32
    %137 = vector.broadcast %cst_97 : f32 to vector<16x16xf32>
    %138 = vector.extract_strided_slice %136 {offsets = [0, 0, 0], sizes = [4, 4, 16], strides = [1, 1, 1]} : vector<6x6x16xbf16> to vector<4x4x16xbf16>
    %139 = vector.shape_cast %138 : vector<4x4x16xbf16> to vector<16x16xbf16>
    %c1_98 = arith.constant 1 : index
    %c0_99 = arith.constant 0 : index
    %c0_100 = arith.constant 0 : index
    %c0_101 = arith.constant 0 : index
    %140 = vector.load %arg3[%c1_98, %c0_99, %c0_100, %c0_101] : memref<2x9x16x16xbf16, #tpu.memory_space<vmem>>, vector<1x1x16x16xbf16>
    %141 = vector.shape_cast %140 : vector<1x1x16x16xbf16> to vector<16x16xbf16>
    %cst_102 = arith.constant dense<0.000000e+00> : vector<16x16xf32>
    %142 = tpu.matmul %139, %141, %cst_102 {dimension_numbers = #tpu.dot_dimension_numbers<[1], [0], [0], [1], [0, 0, 1, 1], [], []>} : vector<16x16xbf16>, vector<16x16xbf16>, vector<16x16xf32> -> vector<16x16xf32>
    %143 = arith.addf %137, %142 : vector<16x16xf32>
    %144 = vector.extract_strided_slice %136 {offsets = [0, 1, 0], sizes = [4, 4, 16], strides = [1, 1, 1]} : vector<6x6x16xbf16> to vector<4x4x16xbf16>
    %145 = vector.shape_cast %144 : vector<4x4x16xbf16> to vector<16x16xbf16>
    %c1_103 = arith.constant 1 : index
    %c1_104 = arith.constant 1 : index
    %c0_105 = arith.constant 0 : index
    %c0_106 = arith.constant 0 : index
    %146 = vector.load %arg3[%c1_103, %c1_104, %c0_105, %c0_106] : memref<2x9x16x16xbf16, #tpu.memory_space<vmem>>, vector<1x1x16x16xbf16>
    %147 = vector.shape_cast %146 : vector<1x1x16x16xbf16> to vector<16x16xbf16>
    %cst_107 = arith.constant dense<0.000000e+00> : vector<16x16xf32>
    %148 = tpu.matmul %145, %147, %cst_107 {dimension_numbers = #tpu.dot_dimension_numbers<[1], [0], [0], [1], [0, 0, 1, 1], [], []>} : vector<16x16xbf16>, vector<16x16xbf16>, vector<16x16xf32> -> vector<16x16xf32>
    %149 = arith.addf %143, %148 : vector<16x16xf32>
    %150 = vector.extract_strided_slice %136 {offsets = [0, 2, 0], sizes = [4, 4, 16], strides = [1, 1, 1]} : vector<6x6x16xbf16> to vector<4x4x16xbf16>
    %151 = vector.shape_cast %150 : vector<4x4x16xbf16> to vector<16x16xbf16>
    %c1_108 = arith.constant 1 : index
    %c2_109 = arith.constant 2 : index
    %c0_110 = arith.constant 0 : index
    %c0_111 = arith.constant 0 : index
    %152 = vector.load %arg3[%c1_108, %c2_109, %c0_110, %c0_111] : memref<2x9x16x16xbf16, #tpu.memory_space<vmem>>, vector<1x1x16x16xbf16>
    %153 = vector.shape_cast %152 : vector<1x1x16x16xbf16> to vector<16x16xbf16>
    %cst_112 = arith.constant dense<0.000000e+00> : vector<16x16xf32>
    %154 = tpu.matmul %151, %153, %cst_112 {dimension_numbers = #tpu.dot_dimension_numbers<[1], [0], [0], [1], [0, 0, 1, 1], [], []>} : vector<16x16xbf16>, vector<16x16xbf16>, vector<16x16xf32> -> vector<16x16xf32>
    %155 = arith.addf %149, %154 : vector<16x16xf32>
    %156 = vector.extract_strided_slice %136 {offsets = [1, 0, 0], sizes = [4, 4, 16], strides = [1, 1, 1]} : vector<6x6x16xbf16> to vector<4x4x16xbf16>
    %157 = vector.shape_cast %156 : vector<4x4x16xbf16> to vector<16x16xbf16>
    %c1_113 = arith.constant 1 : index
    %c3_114 = arith.constant 3 : index
    %c0_115 = arith.constant 0 : index
    %c0_116 = arith.constant 0 : index
    %158 = vector.load %arg3[%c1_113, %c3_114, %c0_115, %c0_116] : memref<2x9x16x16xbf16, #tpu.memory_space<vmem>>, vector<1x1x16x16xbf16>
    %159 = vector.shape_cast %158 : vector<1x1x16x16xbf16> to vector<16x16xbf16>
    %cst_117 = arith.constant dense<0.000000e+00> : vector<16x16xf32>
    %160 = tpu.matmul %157, %159, %cst_117 {dimension_numbers = #tpu.dot_dimension_numbers<[1], [0], [0], [1], [0, 0, 1, 1], [], []>} : vector<16x16xbf16>, vector<16x16xbf16>, vector<16x16xf32> -> vector<16x16xf32>
    %161 = arith.addf %155, %160 : vector<16x16xf32>
    %162 = vector.extract_strided_slice %136 {offsets = [1, 1, 0], sizes = [4, 4, 16], strides = [1, 1, 1]} : vector<6x6x16xbf16> to vector<4x4x16xbf16>
    %163 = vector.shape_cast %162 : vector<4x4x16xbf16> to vector<16x16xbf16>
    %c1_118 = arith.constant 1 : index
    %c4_119 = arith.constant 4 : index
    %c0_120 = arith.constant 0 : index
    %c0_121 = arith.constant 0 : index
    %164 = vector.load %arg3[%c1_118, %c4_119, %c0_120, %c0_121] : memref<2x9x16x16xbf16, #tpu.memory_space<vmem>>, vector<1x1x16x16xbf16>
    %165 = vector.shape_cast %164 : vector<1x1x16x16xbf16> to vector<16x16xbf16>
    %cst_122 = arith.constant dense<0.000000e+00> : vector<16x16xf32>
    %166 = tpu.matmul %163, %165, %cst_122 {dimension_numbers = #tpu.dot_dimension_numbers<[1], [0], [0], [1], [0, 0, 1, 1], [], []>} : vector<16x16xbf16>, vector<16x16xbf16>, vector<16x16xf32> -> vector<16x16xf32>
    %167 = arith.addf %161, %166 : vector<16x16xf32>
    %168 = vector.extract_strided_slice %136 {offsets = [1, 2, 0], sizes = [4, 4, 16], strides = [1, 1, 1]} : vector<6x6x16xbf16> to vector<4x4x16xbf16>
    %169 = vector.shape_cast %168 : vector<4x4x16xbf16> to vector<16x16xbf16>
    %c1_123 = arith.constant 1 : index
    %c5_124 = arith.constant 5 : index
    %c0_125 = arith.constant 0 : index
    %c0_126 = arith.constant 0 : index
    %170 = vector.load %arg3[%c1_123, %c5_124, %c0_125, %c0_126] : memref<2x9x16x16xbf16, #tpu.memory_space<vmem>>, vector<1x1x16x16xbf16>
    %171 = vector.shape_cast %170 : vector<1x1x16x16xbf16> to vector<16x16xbf16>
    %cst_127 = arith.constant dense<0.000000e+00> : vector<16x16xf32>
    %172 = tpu.matmul %169, %171, %cst_127 {dimension_numbers = #tpu.dot_dimension_numbers<[1], [0], [0], [1], [0, 0, 1, 1], [], []>} : vector<16x16xbf16>, vector<16x16xbf16>, vector<16x16xf32> -> vector<16x16xf32>
    %173 = arith.addf %167, %172 : vector<16x16xf32>
    %174 = vector.extract_strided_slice %136 {offsets = [2, 0, 0], sizes = [4, 4, 16], strides = [1, 1, 1]} : vector<6x6x16xbf16> to vector<4x4x16xbf16>
    %175 = vector.shape_cast %174 : vector<4x4x16xbf16> to vector<16x16xbf16>
    %c1_128 = arith.constant 1 : index
    %c6_129 = arith.constant 6 : index
    %c0_130 = arith.constant 0 : index
    %c0_131 = arith.constant 0 : index
    %176 = vector.load %arg3[%c1_128, %c6_129, %c0_130, %c0_131] : memref<2x9x16x16xbf16, #tpu.memory_space<vmem>>, vector<1x1x16x16xbf16>
    %177 = vector.shape_cast %176 : vector<1x1x16x16xbf16> to vector<16x16xbf16>
    %cst_132 = arith.constant dense<0.000000e+00> : vector<16x16xf32>
    %178 = tpu.matmul %175, %177, %cst_132 {dimension_numbers = #tpu.dot_dimension_numbers<[1], [0], [0], [1], [0, 0, 1, 1], [], []>} : vector<16x16xbf16>, vector<16x16xbf16>, vector<16x16xf32> -> vector<16x16xf32>
    %179 = arith.addf %173, %178 : vector<16x16xf32>
    %180 = vector.extract_strided_slice %136 {offsets = [2, 1, 0], sizes = [4, 4, 16], strides = [1, 1, 1]} : vector<6x6x16xbf16> to vector<4x4x16xbf16>
    %181 = vector.shape_cast %180 : vector<4x4x16xbf16> to vector<16x16xbf16>
    %c1_133 = arith.constant 1 : index
    %c7_134 = arith.constant 7 : index
    %c0_135 = arith.constant 0 : index
    %c0_136 = arith.constant 0 : index
    %182 = vector.load %arg3[%c1_133, %c7_134, %c0_135, %c0_136] : memref<2x9x16x16xbf16, #tpu.memory_space<vmem>>, vector<1x1x16x16xbf16>
    %183 = vector.shape_cast %182 : vector<1x1x16x16xbf16> to vector<16x16xbf16>
    %cst_137 = arith.constant dense<0.000000e+00> : vector<16x16xf32>
    %184 = tpu.matmul %181, %183, %cst_137 {dimension_numbers = #tpu.dot_dimension_numbers<[1], [0], [0], [1], [0, 0, 1, 1], [], []>} : vector<16x16xbf16>, vector<16x16xbf16>, vector<16x16xf32> -> vector<16x16xf32>
    %185 = arith.addf %179, %184 : vector<16x16xf32>
    %186 = vector.extract_strided_slice %136 {offsets = [2, 2, 0], sizes = [4, 4, 16], strides = [1, 1, 1]} : vector<6x6x16xbf16> to vector<4x4x16xbf16>
    %187 = vector.shape_cast %186 : vector<4x4x16xbf16> to vector<16x16xbf16>
    %c1_138 = arith.constant 1 : index
    %c8_139 = arith.constant 8 : index
    %c0_140 = arith.constant 0 : index
    %c0_141 = arith.constant 0 : index
    %188 = vector.load %arg3[%c1_138, %c8_139, %c0_140, %c0_141] : memref<2x9x16x16xbf16, #tpu.memory_space<vmem>>, vector<1x1x16x16xbf16>
    %189 = vector.shape_cast %188 : vector<1x1x16x16xbf16> to vector<16x16xbf16>
    %cst_142 = arith.constant dense<0.000000e+00> : vector<16x16xf32>
    %190 = tpu.matmul %187, %189, %cst_142 {dimension_numbers = #tpu.dot_dimension_numbers<[1], [0], [0], [1], [0, 0, 1, 1], [], []>} : vector<16x16xbf16>, vector<16x16xbf16>, vector<16x16xf32> -> vector<16x16xf32>
    %191 = arith.addf %185, %190 : vector<16x16xf32>
    %192 = vector.shape_cast %191 : vector<16x16xf32> to vector<4x4x16xf32>
    %193 = arith.addf %70, %192 : vector<4x4x16xf32>
    %194 = arith.truncf %193 : vector<4x4x16xf32> to vector<4x4x16xbf16>
    %c0_143 = arith.constant 0 : index
    %c0_144 = arith.constant 0 : index
    %c0_145 = arith.constant 0 : index
    %c0_146 = arith.constant 0 : index
    %195 = vector.load %arg4[%c0_143, %c0_144, %c0_145, %c0_146] : memref<1x4x4x16xbf16, #tpu.memory_space<vmem>>, vector<1x4x4x16xbf16>
    %196 = vector.shape_cast %195 : vector<1x4x4x16xbf16> to vector<4x4x16xbf16>
    %197 = vector.shape_cast %194 : vector<4x4x16xbf16> to vector<1x4x4x16xbf16>
    tpu.vector_store %arg4[%c0_143, %c0_144, %c0_145, %c0_146], %197 {strides = array<i32>} : memref<1x4x4x16xbf16, #tpu.memory_space<vmem>>, vector<1x4x4x16xbf16>,
    return
  }
  func.func @transform_0(%arg0: i32) -> (i32, i32, i32, i32, i32) {
    %c0_i32 = arith.constant 0 : i32
    %c0_i32_0 = arith.constant 0 : i32
    %c0_i32_1 = arith.constant 0 : i32
    %c0_i32_2 = arith.constant 0 : i32
    %c0_i32_3 = arith.constant 0 : i32
    return %arg0, %c0_i32, %c0_i32_0, %c0_i32_1, %c0_i32_2 : i32, i32, i32, i32, i32
  }
  func.func @transform_1(%arg0: i32) -> (i32, i32, i32) {
    %c0_i32 = arith.constant 0 : i32
    %c0_i32_0 = arith.constant 0 : i32
    %c0_i32_1 = arith.constant 0 : i32
    %c0_i32_2 = arith.constant 0 : i32
    return %c0_i32, %c0_i32_0, %c0_i32_1 : i32, i32, i32
  }
  func.func @transform_2(%arg0: i32) -> (i32, i32, i32, i32) {
    %c0_i32 = arith.constant 0 : i32
    %c0_i32_0 = arith.constant 0 : i32
    %c0_i32_1 = arith.constant 0 : i32
    %c0_i32_2 = arith.constant 0 : i32
    %c0_i32_3 = arith.constant 0 : i32
    return %c0_i32, %c0_i32_0, %c0_i32_1, %c0_i32_2 : i32, i32, i32, i32
  }
  func.func @transform_3(%arg0: i32) -> (i32, i32, i32, i32) {
    %c0_i32 = arith.constant 0 : i32
    %c0_i32_0 = arith.constant 0 : i32
    %c0_i32_1 = arith.constant 0 : i32
    %c0_i32_2 = arith.constant 0 : i32
    return %arg0, %c0_i32, %c0_i32_0, %c0_i32_1 : i32, i32, i32, i32
  }
}

module attributes {stable_mosaic.version = 11 : i64} {
  func.func @_trans_group_kernel(%arg0: i32, %arg1: memref<1x4x3x3x16xbf16, #tpu.memory_space<vmem>>, %arg2: memref<9x16x32xbf16, #tpu.memory_space<vmem>>, %arg3: memref<4x9x32x32xbf16, #tpu.memory_space<vmem>>, %arg4: memref<1x2x2x32xbf16, #tpu.memory_space<vmem>>, %arg5: memref<6x6x32xbf16, #tpu.memory_space<vmem>>) attributes {dimension_semantics = [#tpu.dimension_semantics<parallel>], iteration_bounds = array<i64: 2>, scalar_prefetch = 0 : i64, scratch_operands = 1 : i64, tpu.core_type = #tpu.core_type<tc>, window_params = [{transform_indices = @transform_0, window_bounds = array<i64: 1, 4, 3, 3, 16>}, {pipeline_mode = #tpu.pipeline_mode<synchronous>, transform_indices = @transform_1, window_bounds = array<i64: 9, 16, 32>}, {pipeline_mode = #tpu.pipeline_mode<synchronous>, transform_indices = @transform_2, window_bounds = array<i64: 4, 9, 32, 32>}, {transform_indices = @transform_3, window_bounds = array<i64: 1, 2, 2, 32>}]} {
    %cst = arith.constant 0.000000e+00 : bf16
    %0 = vector.broadcast %cst : bf16 to vector<6x6x32xbf16>
    %c0 = arith.constant 0 : index
    %c0_0 = arith.constant 0 : index
    %c0_1 = arith.constant 0 : index
    %1 = vector.load %arg5[%c0, %c0_0, %c0_1] : memref<6x6x32xbf16, #tpu.memory_space<vmem>>, vector<6x6x32xbf16>
    tpu.vector_store %arg5[%c0, %c0_0, %c0_1], %0 {strides = array<i32>} : memref<6x6x32xbf16, #tpu.memory_space<vmem>>, vector<6x6x32xbf16>,
    %c0_2 = arith.constant 0 : index
    %c0_3 = arith.constant 0 : index
    %c0_4 = arith.constant 0 : index
    %c0_5 = arith.constant 0 : index
    %c0_6 = arith.constant 0 : index
    %2 = vector.load %arg1[%c0_2, %c0_3, %c0_4, %c0_5, %c0_6] : memref<1x4x3x3x16xbf16, #tpu.memory_space<vmem>>, vector<1x4x3x3x16xbf16>
    %3 = vector.shape_cast %2 : vector<1x4x3x3x16xbf16> to vector<4x3x3x16xbf16>
    %cst_7 = arith.constant 0.000000e+00 : f32
    %4 = vector.broadcast %cst_7 : f32 to vector<4x32xf32>
    %5 = vector.extract_strided_slice %3 {offsets = [0, 0, 0, 0], sizes = [1, 2, 2, 16], strides = [1, 1, 1, 1]} : vector<4x3x3x16xbf16> to vector<1x2x2x16xbf16>
    %6 = vector.shape_cast %5 : vector<1x2x2x16xbf16> to vector<2x2x16xbf16>
    %7 = vector.shape_cast %6 : vector<2x2x16xbf16> to vector<4x16xbf16>
    %c0_8 = arith.constant 0 : index
    %c0_9 = arith.constant 0 : index
    %c0_10 = arith.constant 0 : index
    %8 = vector.load %arg2[%c0_8, %c0_9, %c0_10] : memref<9x16x32xbf16, #tpu.memory_space<vmem>>, vector<1x16x32xbf16>
    %9 = vector.shape_cast %8 : vector<1x16x32xbf16> to vector<16x32xbf16>
    %cst_11 = arith.constant dense<0.000000e+00> : vector<4x32xf32>
    %10 = tpu.matmul %7, %9, %cst_11 {dimension_numbers = #tpu.dot_dimension_numbers<[1], [0], [0], [1], [0, 0, 1, 1], [], []>} : vector<4x16xbf16>, vector<16x32xbf16>, vector<4x32xf32> -> vector<4x32xf32>
    %11 = arith.addf %4, %10 : vector<4x32xf32>
    %12 = vector.extract_strided_slice %3 {offsets = [1, 0, 0, 0], sizes = [1, 2, 2, 16], strides = [1, 1, 1, 1]} : vector<4x3x3x16xbf16> to vector<1x2x2x16xbf16>
    %13 = vector.shape_cast %12 : vector<1x2x2x16xbf16> to vector<2x2x16xbf16>
    %14 = vector.shape_cast %13 : vector<2x2x16xbf16> to vector<4x16xbf16>
    %c1 = arith.constant 1 : index
    %c0_12 = arith.constant 0 : index
    %c0_13 = arith.constant 0 : index
    %15 = vector.load %arg2[%c1, %c0_12, %c0_13] : memref<9x16x32xbf16, #tpu.memory_space<vmem>>, vector<1x16x32xbf16>
    %16 = vector.shape_cast %15 : vector<1x16x32xbf16> to vector<16x32xbf16>
    %cst_14 = arith.constant dense<0.000000e+00> : vector<4x32xf32>
    %17 = tpu.matmul %14, %16, %cst_14 {dimension_numbers = #tpu.dot_dimension_numbers<[1], [0], [0], [1], [0, 0, 1, 1], [], []>} : vector<4x16xbf16>, vector<16x32xbf16>, vector<4x32xf32> -> vector<4x32xf32>
    %18 = arith.addf %11, %17 : vector<4x32xf32>
    %19 = vector.extract_strided_slice %3 {offsets = [0, 0, 1, 0], sizes = [1, 2, 2, 16], strides = [1, 1, 1, 1]} : vector<4x3x3x16xbf16> to vector<1x2x2x16xbf16>
    %20 = vector.shape_cast %19 : vector<1x2x2x16xbf16> to vector<2x2x16xbf16>
    %21 = vector.shape_cast %20 : vector<2x2x16xbf16> to vector<4x16xbf16>
    %c2 = arith.constant 2 : index
    %c0_15 = arith.constant 0 : index
    %c0_16 = arith.constant 0 : index
    %22 = vector.load %arg2[%c2, %c0_15, %c0_16] : memref<9x16x32xbf16, #tpu.memory_space<vmem>>, vector<1x16x32xbf16>
    %23 = vector.shape_cast %22 : vector<1x16x32xbf16> to vector<16x32xbf16>
    %cst_17 = arith.constant dense<0.000000e+00> : vector<4x32xf32>
    %24 = tpu.matmul %21, %23, %cst_17 {dimension_numbers = #tpu.dot_dimension_numbers<[1], [0], [0], [1], [0, 0, 1, 1], [], []>} : vector<4x16xbf16>, vector<16x32xbf16>, vector<4x32xf32> -> vector<4x32xf32>
    %25 = arith.addf %18, %24 : vector<4x32xf32>
    %26 = vector.extract_strided_slice %3 {offsets = [2, 0, 0, 0], sizes = [1, 2, 2, 16], strides = [1, 1, 1, 1]} : vector<4x3x3x16xbf16> to vector<1x2x2x16xbf16>
    %27 = vector.shape_cast %26 : vector<1x2x2x16xbf16> to vector<2x2x16xbf16>
    %28 = vector.shape_cast %27 : vector<2x2x16xbf16> to vector<4x16xbf16>
    %c3 = arith.constant 3 : index
    %c0_18 = arith.constant 0 : index
    %c0_19 = arith.constant 0 : index
    %29 = vector.load %arg2[%c3, %c0_18, %c0_19] : memref<9x16x32xbf16, #tpu.memory_space<vmem>>, vector<1x16x32xbf16>
    %30 = vector.shape_cast %29 : vector<1x16x32xbf16> to vector<16x32xbf16>
    %cst_20 = arith.constant dense<0.000000e+00> : vector<4x32xf32>
    %31 = tpu.matmul %28, %30, %cst_20 {dimension_numbers = #tpu.dot_dimension_numbers<[1], [0], [0], [1], [0, 0, 1, 1], [], []>} : vector<4x16xbf16>, vector<16x32xbf16>, vector<4x32xf32> -> vector<4x32xf32>
    %32 = arith.addf %25, %31 : vector<4x32xf32>
    %33 = vector.extract_strided_slice %3 {offsets = [3, 0, 0, 0], sizes = [1, 2, 2, 16], strides = [1, 1, 1, 1]} : vector<4x3x3x16xbf16> to vector<1x2x2x16xbf16>
    %34 = vector.shape_cast %33 : vector<1x2x2x16xbf16> to vector<2x2x16xbf16>
    %35 = vector.shape_cast %34 : vector<2x2x16xbf16> to vector<4x16xbf16>
    %c4 = arith.constant 4 : index
    %c0_21 = arith.constant 0 : index
    %c0_22 = arith.constant 0 : index
    %36 = vector.load %arg2[%c4, %c0_21, %c0_22] : memref<9x16x32xbf16, #tpu.memory_space<vmem>>, vector<1x16x32xbf16>
    %37 = vector.shape_cast %36 : vector<1x16x32xbf16> to vector<16x32xbf16>
    %cst_23 = arith.constant dense<0.000000e+00> : vector<4x32xf32>
    %38 = tpu.matmul %35, %37, %cst_23 {dimension_numbers = #tpu.dot_dimension_numbers<[1], [0], [0], [1], [0, 0, 1, 1], [], []>} : vector<4x16xbf16>, vector<16x32xbf16>, vector<4x32xf32> -> vector<4x32xf32>
    %39 = arith.addf %32, %38 : vector<4x32xf32>
    %40 = vector.extract_strided_slice %3 {offsets = [2, 0, 1, 0], sizes = [1, 2, 2, 16], strides = [1, 1, 1, 1]} : vector<4x3x3x16xbf16> to vector<1x2x2x16xbf16>
    %41 = vector.shape_cast %40 : vector<1x2x2x16xbf16> to vector<2x2x16xbf16>
    %42 = vector.shape_cast %41 : vector<2x2x16xbf16> to vector<4x16xbf16>
    %c5 = arith.constant 5 : index
    %c0_24 = arith.constant 0 : index
    %c0_25 = arith.constant 0 : index
    %43 = vector.load %arg2[%c5, %c0_24, %c0_25] : memref<9x16x32xbf16, #tpu.memory_space<vmem>>, vector<1x16x32xbf16>
    %44 = vector.shape_cast %43 : vector<1x16x32xbf16> to vector<16x32xbf16>
    %cst_26 = arith.constant dense<0.000000e+00> : vector<4x32xf32>
    %45 = tpu.matmul %42, %44, %cst_26 {dimension_numbers = #tpu.dot_dimension_numbers<[1], [0], [0], [1], [0, 0, 1, 1], [], []>} : vector<4x16xbf16>, vector<16x32xbf16>, vector<4x32xf32> -> vector<4x32xf32>
    %46 = arith.addf %39, %45 : vector<4x32xf32>
    %47 = vector.extract_strided_slice %3 {offsets = [0, 1, 0, 0], sizes = [1, 2, 2, 16], strides = [1, 1, 1, 1]} : vector<4x3x3x16xbf16> to vector<1x2x2x16xbf16>
    %48 = vector.shape_cast %47 : vector<1x2x2x16xbf16> to vector<2x2x16xbf16>
    %49 = vector.shape_cast %48 : vector<2x2x16xbf16> to vector<4x16xbf16>
    %c6 = arith.constant 6 : index
    %c0_27 = arith.constant 0 : index
    %c0_28 = arith.constant 0 : index
    %50 = vector.load %arg2[%c6, %c0_27, %c0_28] : memref<9x16x32xbf16, #tpu.memory_space<vmem>>, vector<1x16x32xbf16>
    %51 = vector.shape_cast %50 : vector<1x16x32xbf16> to vector<16x32xbf16>
    %cst_29 = arith.constant dense<0.000000e+00> : vector<4x32xf32>
    %52 = tpu.matmul %49, %51, %cst_29 {dimension_numbers = #tpu.dot_dimension_numbers<[1], [0], [0], [1], [0, 0, 1, 1], [], []>} : vector<4x16xbf16>, vector<16x32xbf16>, vector<4x32xf32> -> vector<4x32xf32>
    %53 = arith.addf %46, %52 : vector<4x32xf32>
    %54 = vector.extract_strided_slice %3 {offsets = [1, 1, 0, 0], sizes = [1, 2, 2, 16], strides = [1, 1, 1, 1]} : vector<4x3x3x16xbf16> to vector<1x2x2x16xbf16>
    %55 = vector.shape_cast %54 : vector<1x2x2x16xbf16> to vector<2x2x16xbf16>
    %56 = vector.shape_cast %55 : vector<2x2x16xbf16> to vector<4x16xbf16>
    %c7 = arith.constant 7 : index
    %c0_30 = arith.constant 0 : index
    %c0_31 = arith.constant 0 : index
    %57 = vector.load %arg2[%c7, %c0_30, %c0_31] : memref<9x16x32xbf16, #tpu.memory_space<vmem>>, vector<1x16x32xbf16>
    %58 = vector.shape_cast %57 : vector<1x16x32xbf16> to vector<16x32xbf16>
    %cst_32 = arith.constant dense<0.000000e+00> : vector<4x32xf32>
    %59 = tpu.matmul %56, %58, %cst_32 {dimension_numbers = #tpu.dot_dimension_numbers<[1], [0], [0], [1], [0, 0, 1, 1], [], []>} : vector<4x16xbf16>, vector<16x32xbf16>, vector<4x32xf32> -> vector<4x32xf32>
    %60 = arith.addf %53, %59 : vector<4x32xf32>
    %61 = vector.extract_strided_slice %3 {offsets = [0, 1, 1, 0], sizes = [1, 2, 2, 16], strides = [1, 1, 1, 1]} : vector<4x3x3x16xbf16> to vector<1x2x2x16xbf16>
    %62 = vector.shape_cast %61 : vector<1x2x2x16xbf16> to vector<2x2x16xbf16>
    %63 = vector.shape_cast %62 : vector<2x2x16xbf16> to vector<4x16xbf16>
    %c8 = arith.constant 8 : index
    %c0_33 = arith.constant 0 : index
    %c0_34 = arith.constant 0 : index
    %64 = vector.load %arg2[%c8, %c0_33, %c0_34] : memref<9x16x32xbf16, #tpu.memory_space<vmem>>, vector<1x16x32xbf16>
    %65 = vector.shape_cast %64 : vector<1x16x32xbf16> to vector<16x32xbf16>
    %cst_35 = arith.constant dense<0.000000e+00> : vector<4x32xf32>
    %66 = tpu.matmul %63, %65, %cst_35 {dimension_numbers = #tpu.dot_dimension_numbers<[1], [0], [0], [1], [0, 0, 1, 1], [], []>} : vector<4x16xbf16>, vector<16x32xbf16>, vector<4x32xf32> -> vector<4x32xf32>
    %67 = arith.addf %60, %66 : vector<4x32xf32>
    %cst_36 = arith.constant 0.000000e+00 : f32
    %68 = vector.broadcast %cst_36 : f32 to vector<4x32xf32>
    %69 = arith.maximumf %67, %68 : vector<4x32xf32>
    %70 = vector.shape_cast %69 : vector<4x32xf32> to vector<2x2x32xf32>
    %cst_37 = arith.constant 0.000000e+00 : f32
    %71 = vector.broadcast %cst_37 : f32 to vector<2x2x32xf32>
    %72 = arith.maximumf %70, %71 : vector<2x2x32xf32>
    %73 = arith.truncf %72 : vector<2x2x32xf32> to vector<2x2x32xbf16>
    %c2_38 = arith.constant 2 : index
    %c2_39 = arith.constant 2 : index
    %c0_40 = arith.constant 0 : index
    %74 = vector.load %arg5[%c2_38, %c2_39, %c0_40] : memref<6x6x32xbf16, #tpu.memory_space<vmem>>, vector<2x2x32xbf16>
    tpu.vector_store %arg5[%c2_38, %c2_39, %c0_40], %73 {strides = array<i32>} : memref<6x6x32xbf16, #tpu.memory_space<vmem>>, vector<2x2x32xbf16>,
    %c0_41 = arith.constant 0 : index
    %c0_42 = arith.constant 0 : index
    %c0_43 = arith.constant 0 : index
    %75 = vector.load %arg5[%c0_41, %c0_42, %c0_43] : memref<6x6x32xbf16, #tpu.memory_space<vmem>>, vector<6x6x32xbf16>
    %cst_44 = arith.constant 0.000000e+00 : f32
    %76 = vector.broadcast %cst_44 : f32 to vector<4x32xf32>
    %77 = vector.extract_strided_slice %75 {offsets = [1, 1, 0], sizes = [2, 2, 32], strides = [1, 1, 1]} : vector<6x6x32xbf16> to vector<2x2x32xbf16>
    %78 = vector.shape_cast %77 : vector<2x2x32xbf16> to vector<4x32xbf16>
    %c0_45 = arith.constant 0 : index
    %c0_46 = arith.constant 0 : index
    %c0_47 = arith.constant 0 : index
    %c0_48 = arith.constant 0 : index
    %79 = vector.load %arg3[%c0_45, %c0_46, %c0_47, %c0_48] : memref<4x9x32x32xbf16, #tpu.memory_space<vmem>>, vector<1x1x32x32xbf16>
    %80 = vector.shape_cast %79 : vector<1x1x32x32xbf16> to vector<32x32xbf16>
    %cst_49 = arith.constant dense<0.000000e+00> : vector<4x32xf32>
    %81 = tpu.matmul %78, %80, %cst_49 {dimension_numbers = #tpu.dot_dimension_numbers<[1], [0], [0], [1], [0, 0, 1, 1], [], []>} : vector<4x32xbf16>, vector<32x32xbf16>, vector<4x32xf32> -> vector<4x32xf32>
    %82 = arith.addf %76, %81 : vector<4x32xf32>
    %83 = vector.extract_strided_slice %75 {offsets = [1, 2, 0], sizes = [2, 2, 32], strides = [1, 1, 1]} : vector<6x6x32xbf16> to vector<2x2x32xbf16>
    %84 = vector.shape_cast %83 : vector<2x2x32xbf16> to vector<4x32xbf16>
    %c0_50 = arith.constant 0 : index
    %c1_51 = arith.constant 1 : index
    %c0_52 = arith.constant 0 : index
    %c0_53 = arith.constant 0 : index
    %85 = vector.load %arg3[%c0_50, %c1_51, %c0_52, %c0_53] : memref<4x9x32x32xbf16, #tpu.memory_space<vmem>>, vector<1x1x32x32xbf16>
    %86 = vector.shape_cast %85 : vector<1x1x32x32xbf16> to vector<32x32xbf16>
    %cst_54 = arith.constant dense<0.000000e+00> : vector<4x32xf32>
    %87 = tpu.matmul %84, %86, %cst_54 {dimension_numbers = #tpu.dot_dimension_numbers<[1], [0], [0], [1], [0, 0, 1, 1], [], []>} : vector<4x32xbf16>, vector<32x32xbf16>, vector<4x32xf32> -> vector<4x32xf32>
    %88 = arith.addf %82, %87 : vector<4x32xf32>
    %89 = vector.extract_strided_slice %75 {offsets = [1, 3, 0], sizes = [2, 2, 32], strides = [1, 1, 1]} : vector<6x6x32xbf16> to vector<2x2x32xbf16>
    %90 = vector.shape_cast %89 : vector<2x2x32xbf16> to vector<4x32xbf16>
    %c0_55 = arith.constant 0 : index
    %c2_56 = arith.constant 2 : index
    %c0_57 = arith.constant 0 : index
    %c0_58 = arith.constant 0 : index
    %91 = vector.load %arg3[%c0_55, %c2_56, %c0_57, %c0_58] : memref<4x9x32x32xbf16, #tpu.memory_space<vmem>>, vector<1x1x32x32xbf16>
    %92 = vector.shape_cast %91 : vector<1x1x32x32xbf16> to vector<32x32xbf16>
    %cst_59 = arith.constant dense<0.000000e+00> : vector<4x32xf32>
    %93 = tpu.matmul %90, %92, %cst_59 {dimension_numbers = #tpu.dot_dimension_numbers<[1], [0], [0], [1], [0, 0, 1, 1], [], []>} : vector<4x32xbf16>, vector<32x32xbf16>, vector<4x32xf32> -> vector<4x32xf32>
    %94 = arith.addf %88, %93 : vector<4x32xf32>
    %95 = vector.extract_strided_slice %75 {offsets = [2, 1, 0], sizes = [2, 2, 32], strides = [1, 1, 1]} : vector<6x6x32xbf16> to vector<2x2x32xbf16>
    %96 = vector.shape_cast %95 : vector<2x2x32xbf16> to vector<4x32xbf16>
    %c0_60 = arith.constant 0 : index
    %c3_61 = arith.constant 3 : index
    %c0_62 = arith.constant 0 : index
    %c0_63 = arith.constant 0 : index
    %97 = vector.load %arg3[%c0_60, %c3_61, %c0_62, %c0_63] : memref<4x9x32x32xbf16, #tpu.memory_space<vmem>>, vector<1x1x32x32xbf16>
    %98 = vector.shape_cast %97 : vector<1x1x32x32xbf16> to vector<32x32xbf16>
    %cst_64 = arith.constant dense<0.000000e+00> : vector<4x32xf32>
    %99 = tpu.matmul %96, %98, %cst_64 {dimension_numbers = #tpu.dot_dimension_numbers<[1], [0], [0], [1], [0, 0, 1, 1], [], []>} : vector<4x32xbf16>, vector<32x32xbf16>, vector<4x32xf32> -> vector<4x32xf32>
    %100 = arith.addf %94, %99 : vector<4x32xf32>
    %101 = vector.extract_strided_slice %75 {offsets = [2, 2, 0], sizes = [2, 2, 32], strides = [1, 1, 1]} : vector<6x6x32xbf16> to vector<2x2x32xbf16>
    %102 = vector.shape_cast %101 : vector<2x2x32xbf16> to vector<4x32xbf16>
    %c0_65 = arith.constant 0 : index
    %c4_66 = arith.constant 4 : index
    %c0_67 = arith.constant 0 : index
    %c0_68 = arith.constant 0 : index
    %103 = vector.load %arg3[%c0_65, %c4_66, %c0_67, %c0_68] : memref<4x9x32x32xbf16, #tpu.memory_space<vmem>>, vector<1x1x32x32xbf16>
    %104 = vector.shape_cast %103 : vector<1x1x32x32xbf16> to vector<32x32xbf16>
    %cst_69 = arith.constant dense<0.000000e+00> : vector<4x32xf32>
    %105 = tpu.matmul %102, %104, %cst_69 {dimension_numbers = #tpu.dot_dimension_numbers<[1], [0], [0], [1], [0, 0, 1, 1], [], []>} : vector<4x32xbf16>, vector<32x32xbf16>, vector<4x32xf32> -> vector<4x32xf32>
    %106 = arith.addf %100, %105 : vector<4x32xf32>
    %107 = vector.extract_strided_slice %75 {offsets = [2, 3, 0], sizes = [2, 2, 32], strides = [1, 1, 1]} : vector<6x6x32xbf16> to vector<2x2x32xbf16>
    %108 = vector.shape_cast %107 : vector<2x2x32xbf16> to vector<4x32xbf16>
    %c0_70 = arith.constant 0 : index
    %c5_71 = arith.constant 5 : index
    %c0_72 = arith.constant 0 : index
    %c0_73 = arith.constant 0 : index
    %109 = vector.load %arg3[%c0_70, %c5_71, %c0_72, %c0_73] : memref<4x9x32x32xbf16, #tpu.memory_space<vmem>>, vector<1x1x32x32xbf16>
    %110 = vector.shape_cast %109 : vector<1x1x32x32xbf16> to vector<32x32xbf16>
    %cst_74 = arith.constant dense<0.000000e+00> : vector<4x32xf32>
    %111 = tpu.matmul %108, %110, %cst_74 {dimension_numbers = #tpu.dot_dimension_numbers<[1], [0], [0], [1], [0, 0, 1, 1], [], []>} : vector<4x32xbf16>, vector<32x32xbf16>, vector<4x32xf32> -> vector<4x32xf32>
    %112 = arith.addf %106, %111 : vector<4x32xf32>
    %113 = vector.extract_strided_slice %75 {offsets = [3, 1, 0], sizes = [2, 2, 32], strides = [1, 1, 1]} : vector<6x6x32xbf16> to vector<2x2x32xbf16>
    %114 = vector.shape_cast %113 : vector<2x2x32xbf16> to vector<4x32xbf16>
    %c0_75 = arith.constant 0 : index
    %c6_76 = arith.constant 6 : index
    %c0_77 = arith.constant 0 : index
    %c0_78 = arith.constant 0 : index
    %115 = vector.load %arg3[%c0_75, %c6_76, %c0_77, %c0_78] : memref<4x9x32x32xbf16, #tpu.memory_space<vmem>>, vector<1x1x32x32xbf16>
    %116 = vector.shape_cast %115 : vector<1x1x32x32xbf16> to vector<32x32xbf16>
    %cst_79 = arith.constant dense<0.000000e+00> : vector<4x32xf32>
    %117 = tpu.matmul %114, %116, %cst_79 {dimension_numbers = #tpu.dot_dimension_numbers<[1], [0], [0], [1], [0, 0, 1, 1], [], []>} : vector<4x32xbf16>, vector<32x32xbf16>, vector<4x32xf32> -> vector<4x32xf32>
    %118 = arith.addf %112, %117 : vector<4x32xf32>
    %119 = vector.extract_strided_slice %75 {offsets = [3, 2, 0], sizes = [2, 2, 32], strides = [1, 1, 1]} : vector<6x6x32xbf16> to vector<2x2x32xbf16>
    %120 = vector.shape_cast %119 : vector<2x2x32xbf16> to vector<4x32xbf16>
    %c0_80 = arith.constant 0 : index
    %c7_81 = arith.constant 7 : index
    %c0_82 = arith.constant 0 : index
    %c0_83 = arith.constant 0 : index
    %121 = vector.load %arg3[%c0_80, %c7_81, %c0_82, %c0_83] : memref<4x9x32x32xbf16, #tpu.memory_space<vmem>>, vector<1x1x32x32xbf16>
    %122 = vector.shape_cast %121 : vector<1x1x32x32xbf16> to vector<32x32xbf16>
    %cst_84 = arith.constant dense<0.000000e+00> : vector<4x32xf32>
    %123 = tpu.matmul %120, %122, %cst_84 {dimension_numbers = #tpu.dot_dimension_numbers<[1], [0], [0], [1], [0, 0, 1, 1], [], []>} : vector<4x32xbf16>, vector<32x32xbf16>, vector<4x32xf32> -> vector<4x32xf32>
    %124 = arith.addf %118, %123 : vector<4x32xf32>
    %125 = vector.extract_strided_slice %75 {offsets = [3, 3, 0], sizes = [2, 2, 32], strides = [1, 1, 1]} : vector<6x6x32xbf16> to vector<2x2x32xbf16>
    %126 = vector.shape_cast %125 : vector<2x2x32xbf16> to vector<4x32xbf16>
    %c0_85 = arith.constant 0 : index
    %c8_86 = arith.constant 8 : index
    %c0_87 = arith.constant 0 : index
    %c0_88 = arith.constant 0 : index
    %127 = vector.load %arg3[%c0_85, %c8_86, %c0_87, %c0_88] : memref<4x9x32x32xbf16, #tpu.memory_space<vmem>>, vector<1x1x32x32xbf16>
    %128 = vector.shape_cast %127 : vector<1x1x32x32xbf16> to vector<32x32xbf16>
    %cst_89 = arith.constant dense<0.000000e+00> : vector<4x32xf32>
    %129 = tpu.matmul %126, %128, %cst_89 {dimension_numbers = #tpu.dot_dimension_numbers<[1], [0], [0], [1], [0, 0, 1, 1], [], []>} : vector<4x32xbf16>, vector<32x32xbf16>, vector<4x32xf32> -> vector<4x32xf32>
    %130 = arith.addf %124, %129 : vector<4x32xf32>
    %cst_90 = arith.constant 0.000000e+00 : f32
    %131 = vector.broadcast %cst_90 : f32 to vector<4x32xf32>
    %132 = arith.maximumf %130, %131 : vector<4x32xf32>
    %133 = arith.truncf %132 : vector<4x32xf32> to vector<4x32xbf16>
    %134 = vector.shape_cast %133 : vector<4x32xbf16> to vector<2x2x32xbf16>
    %c2_91 = arith.constant 2 : index
    %c2_92 = arith.constant 2 : index
    %c0_93 = arith.constant 0 : index
    %135 = vector.load %arg5[%c2_91, %c2_92, %c0_93] : memref<6x6x32xbf16, #tpu.memory_space<vmem>>, vector<2x2x32xbf16>
    tpu.vector_store %arg5[%c2_91, %c2_92, %c0_93], %134 {strides = array<i32>} : memref<6x6x32xbf16, #tpu.memory_space<vmem>>, vector<2x2x32xbf16>,
    %c0_94 = arith.constant 0 : index
    %c0_95 = arith.constant 0 : index
    %c0_96 = arith.constant 0 : index
    %136 = vector.load %arg5[%c0_94, %c0_95, %c0_96] : memref<6x6x32xbf16, #tpu.memory_space<vmem>>, vector<6x6x32xbf16>
    %cst_97 = arith.constant 0.000000e+00 : f32
    %137 = vector.broadcast %cst_97 : f32 to vector<4x32xf32>
    %138 = vector.extract_strided_slice %136 {offsets = [1, 1, 0], sizes = [2, 2, 32], strides = [1, 1, 1]} : vector<6x6x32xbf16> to vector<2x2x32xbf16>
    %139 = vector.shape_cast %138 : vector<2x2x32xbf16> to vector<4x32xbf16>
    %c1_98 = arith.constant 1 : index
    %c0_99 = arith.constant 0 : index
    %c0_100 = arith.constant 0 : index
    %c0_101 = arith.constant 0 : index
    %140 = vector.load %arg3[%c1_98, %c0_99, %c0_100, %c0_101] : memref<4x9x32x32xbf16, #tpu.memory_space<vmem>>, vector<1x1x32x32xbf16>
    %141 = vector.shape_cast %140 : vector<1x1x32x32xbf16> to vector<32x32xbf16>
    %cst_102 = arith.constant dense<0.000000e+00> : vector<4x32xf32>
    %142 = tpu.matmul %139, %141, %cst_102 {dimension_numbers = #tpu.dot_dimension_numbers<[1], [0], [0], [1], [0, 0, 1, 1], [], []>} : vector<4x32xbf16>, vector<32x32xbf16>, vector<4x32xf32> -> vector<4x32xf32>
    %143 = arith.addf %137, %142 : vector<4x32xf32>
    %144 = vector.extract_strided_slice %136 {offsets = [1, 2, 0], sizes = [2, 2, 32], strides = [1, 1, 1]} : vector<6x6x32xbf16> to vector<2x2x32xbf16>
    %145 = vector.shape_cast %144 : vector<2x2x32xbf16> to vector<4x32xbf16>
    %c1_103 = arith.constant 1 : index
    %c1_104 = arith.constant 1 : index
    %c0_105 = arith.constant 0 : index
    %c0_106 = arith.constant 0 : index
    %146 = vector.load %arg3[%c1_103, %c1_104, %c0_105, %c0_106] : memref<4x9x32x32xbf16, #tpu.memory_space<vmem>>, vector<1x1x32x32xbf16>
    %147 = vector.shape_cast %146 : vector<1x1x32x32xbf16> to vector<32x32xbf16>
    %cst_107 = arith.constant dense<0.000000e+00> : vector<4x32xf32>
    %148 = tpu.matmul %145, %147, %cst_107 {dimension_numbers = #tpu.dot_dimension_numbers<[1], [0], [0], [1], [0, 0, 1, 1], [], []>} : vector<4x32xbf16>, vector<32x32xbf16>, vector<4x32xf32> -> vector<4x32xf32>
    %149 = arith.addf %143, %148 : vector<4x32xf32>
    %150 = vector.extract_strided_slice %136 {offsets = [1, 3, 0], sizes = [2, 2, 32], strides = [1, 1, 1]} : vector<6x6x32xbf16> to vector<2x2x32xbf16>
    %151 = vector.shape_cast %150 : vector<2x2x32xbf16> to vector<4x32xbf16>
    %c1_108 = arith.constant 1 : index
    %c2_109 = arith.constant 2 : index
    %c0_110 = arith.constant 0 : index
    %c0_111 = arith.constant 0 : index
    %152 = vector.load %arg3[%c1_108, %c2_109, %c0_110, %c0_111] : memref<4x9x32x32xbf16, #tpu.memory_space<vmem>>, vector<1x1x32x32xbf16>
    %153 = vector.shape_cast %152 : vector<1x1x32x32xbf16> to vector<32x32xbf16>
    %cst_112 = arith.constant dense<0.000000e+00> : vector<4x32xf32>
    %154 = tpu.matmul %151, %153, %cst_112 {dimension_numbers = #tpu.dot_dimension_numbers<[1], [0], [0], [1], [0, 0, 1, 1], [], []>} : vector<4x32xbf16>, vector<32x32xbf16>, vector<4x32xf32> -> vector<4x32xf32>
    %155 = arith.addf %149, %154 : vector<4x32xf32>
    %156 = vector.extract_strided_slice %136 {offsets = [2, 1, 0], sizes = [2, 2, 32], strides = [1, 1, 1]} : vector<6x6x32xbf16> to vector<2x2x32xbf16>
    %157 = vector.shape_cast %156 : vector<2x2x32xbf16> to vector<4x32xbf16>
    %c1_113 = arith.constant 1 : index
    %c3_114 = arith.constant 3 : index
    %c0_115 = arith.constant 0 : index
    %c0_116 = arith.constant 0 : index
    %158 = vector.load %arg3[%c1_113, %c3_114, %c0_115, %c0_116] : memref<4x9x32x32xbf16, #tpu.memory_space<vmem>>, vector<1x1x32x32xbf16>
    %159 = vector.shape_cast %158 : vector<1x1x32x32xbf16> to vector<32x32xbf16>
    %cst_117 = arith.constant dense<0.000000e+00> : vector<4x32xf32>
    %160 = tpu.matmul %157, %159, %cst_117 {dimension_numbers = #tpu.dot_dimension_numbers<[1], [0], [0], [1], [0, 0, 1, 1], [], []>} : vector<4x32xbf16>, vector<32x32xbf16>, vector<4x32xf32> -> vector<4x32xf32>
    %161 = arith.addf %155, %160 : vector<4x32xf32>
    %162 = vector.extract_strided_slice %136 {offsets = [2, 2, 0], sizes = [2, 2, 32], strides = [1, 1, 1]} : vector<6x6x32xbf16> to vector<2x2x32xbf16>
    %163 = vector.shape_cast %162 : vector<2x2x32xbf16> to vector<4x32xbf16>
    %c1_118 = arith.constant 1 : index
    %c4_119 = arith.constant 4 : index
    %c0_120 = arith.constant 0 : index
    %c0_121 = arith.constant 0 : index
    %164 = vector.load %arg3[%c1_118, %c4_119, %c0_120, %c0_121] : memref<4x9x32x32xbf16, #tpu.memory_space<vmem>>, vector<1x1x32x32xbf16>
    %165 = vector.shape_cast %164 : vector<1x1x32x32xbf16> to vector<32x32xbf16>
    %cst_122 = arith.constant dense<0.000000e+00> : vector<4x32xf32>
    %166 = tpu.matmul %163, %165, %cst_122 {dimension_numbers = #tpu.dot_dimension_numbers<[1], [0], [0], [1], [0, 0, 1, 1], [], []>} : vector<4x32xbf16>, vector<32x32xbf16>, vector<4x32xf32> -> vector<4x32xf32>
    %167 = arith.addf %161, %166 : vector<4x32xf32>
    %168 = vector.extract_strided_slice %136 {offsets = [2, 3, 0], sizes = [2, 2, 32], strides = [1, 1, 1]} : vector<6x6x32xbf16> to vector<2x2x32xbf16>
    %169 = vector.shape_cast %168 : vector<2x2x32xbf16> to vector<4x32xbf16>
    %c1_123 = arith.constant 1 : index
    %c5_124 = arith.constant 5 : index
    %c0_125 = arith.constant 0 : index
    %c0_126 = arith.constant 0 : index
    %170 = vector.load %arg3[%c1_123, %c5_124, %c0_125, %c0_126] : memref<4x9x32x32xbf16, #tpu.memory_space<vmem>>, vector<1x1x32x32xbf16>
    %171 = vector.shape_cast %170 : vector<1x1x32x32xbf16> to vector<32x32xbf16>
    %cst_127 = arith.constant dense<0.000000e+00> : vector<4x32xf32>
    %172 = tpu.matmul %169, %171, %cst_127 {dimension_numbers = #tpu.dot_dimension_numbers<[1], [0], [0], [1], [0, 0, 1, 1], [], []>} : vector<4x32xbf16>, vector<32x32xbf16>, vector<4x32xf32> -> vector<4x32xf32>
    %173 = arith.addf %167, %172 : vector<4x32xf32>
    %174 = vector.extract_strided_slice %136 {offsets = [3, 1, 0], sizes = [2, 2, 32], strides = [1, 1, 1]} : vector<6x6x32xbf16> to vector<2x2x32xbf16>
    %175 = vector.shape_cast %174 : vector<2x2x32xbf16> to vector<4x32xbf16>
    %c1_128 = arith.constant 1 : index
    %c6_129 = arith.constant 6 : index
    %c0_130 = arith.constant 0 : index
    %c0_131 = arith.constant 0 : index
    %176 = vector.load %arg3[%c1_128, %c6_129, %c0_130, %c0_131] : memref<4x9x32x32xbf16, #tpu.memory_space<vmem>>, vector<1x1x32x32xbf16>
    %177 = vector.shape_cast %176 : vector<1x1x32x32xbf16> to vector<32x32xbf16>
    %cst_132 = arith.constant dense<0.000000e+00> : vector<4x32xf32>
    %178 = tpu.matmul %175, %177, %cst_132 {dimension_numbers = #tpu.dot_dimension_numbers<[1], [0], [0], [1], [0, 0, 1, 1], [], []>} : vector<4x32xbf16>, vector<32x32xbf16>, vector<4x32xf32> -> vector<4x32xf32>
    %179 = arith.addf %173, %178 : vector<4x32xf32>
    %180 = vector.extract_strided_slice %136 {offsets = [3, 2, 0], sizes = [2, 2, 32], strides = [1, 1, 1]} : vector<6x6x32xbf16> to vector<2x2x32xbf16>
    %181 = vector.shape_cast %180 : vector<2x2x32xbf16> to vector<4x32xbf16>
    %c1_133 = arith.constant 1 : index
    %c7_134 = arith.constant 7 : index
    %c0_135 = arith.constant 0 : index
    %c0_136 = arith.constant 0 : index
    %182 = vector.load %arg3[%c1_133, %c7_134, %c0_135, %c0_136] : memref<4x9x32x32xbf16, #tpu.memory_space<vmem>>, vector<1x1x32x32xbf16>
    %183 = vector.shape_cast %182 : vector<1x1x32x32xbf16> to vector<32x32xbf16>
    %cst_137 = arith.constant dense<0.000000e+00> : vector<4x32xf32>
    %184 = tpu.matmul %181, %183, %cst_137 {dimension_numbers = #tpu.dot_dimension_numbers<[1], [0], [0], [1], [0, 0, 1, 1], [], []>} : vector<4x32xbf16>, vector<32x32xbf16>, vector<4x32xf32> -> vector<4x32xf32>
    %185 = arith.addf %179, %184 : vector<4x32xf32>
    %186 = vector.extract_strided_slice %136 {offsets = [3, 3, 0], sizes = [2, 2, 32], strides = [1, 1, 1]} : vector<6x6x32xbf16> to vector<2x2x32xbf16>
    %187 = vector.shape_cast %186 : vector<2x2x32xbf16> to vector<4x32xbf16>
    %c1_138 = arith.constant 1 : index
    %c8_139 = arith.constant 8 : index
    %c0_140 = arith.constant 0 : index
    %c0_141 = arith.constant 0 : index
    %188 = vector.load %arg3[%c1_138, %c8_139, %c0_140, %c0_141] : memref<4x9x32x32xbf16, #tpu.memory_space<vmem>>, vector<1x1x32x32xbf16>
    %189 = vector.shape_cast %188 : vector<1x1x32x32xbf16> to vector<32x32xbf16>
    %cst_142 = arith.constant dense<0.000000e+00> : vector<4x32xf32>
    %190 = tpu.matmul %187, %189, %cst_142 {dimension_numbers = #tpu.dot_dimension_numbers<[1], [0], [0], [1], [0, 0, 1, 1], [], []>} : vector<4x32xbf16>, vector<32x32xbf16>, vector<4x32xf32> -> vector<4x32xf32>
    %191 = arith.addf %185, %190 : vector<4x32xf32>
    %192 = vector.shape_cast %191 : vector<4x32xf32> to vector<2x2x32xf32>
    %193 = arith.addf %70, %192 : vector<2x2x32xf32>
    %cst_143 = arith.constant 0.000000e+00 : f32
    %194 = vector.broadcast %cst_143 : f32 to vector<2x2x32xf32>
    %195 = arith.maximumf %193, %194 : vector<2x2x32xf32>
    %196 = arith.truncf %195 : vector<2x2x32xf32> to vector<2x2x32xbf16>
    %c2_144 = arith.constant 2 : index
    %c2_145 = arith.constant 2 : index
    %c0_146 = arith.constant 0 : index
    %197 = vector.load %arg5[%c2_144, %c2_145, %c0_146] : memref<6x6x32xbf16, #tpu.memory_space<vmem>>, vector<2x2x32xbf16>
    tpu.vector_store %arg5[%c2_144, %c2_145, %c0_146], %196 {strides = array<i32>} : memref<6x6x32xbf16, #tpu.memory_space<vmem>>, vector<2x2x32xbf16>,
    %c0_147 = arith.constant 0 : index
    %c0_148 = arith.constant 0 : index
    %c0_149 = arith.constant 0 : index
    %198 = vector.load %arg5[%c0_147, %c0_148, %c0_149] : memref<6x6x32xbf16, #tpu.memory_space<vmem>>, vector<6x6x32xbf16>
    %cst_150 = arith.constant 0.000000e+00 : f32
    %199 = vector.broadcast %cst_150 : f32 to vector<4x32xf32>
    %200 = vector.extract_strided_slice %198 {offsets = [0, 0, 0], sizes = [2, 2, 32], strides = [1, 1, 1]} : vector<6x6x32xbf16> to vector<2x2x32xbf16>
    %201 = vector.shape_cast %200 : vector<2x2x32xbf16> to vector<4x32xbf16>
    %c2_151 = arith.constant 2 : index
    %c0_152 = arith.constant 0 : index
    %c0_153 = arith.constant 0 : index
    %c0_154 = arith.constant 0 : index
    %202 = vector.load %arg3[%c2_151, %c0_152, %c0_153, %c0_154] : memref<4x9x32x32xbf16, #tpu.memory_space<vmem>>, vector<1x1x32x32xbf16>
    %203 = vector.shape_cast %202 : vector<1x1x32x32xbf16> to vector<32x32xbf16>
    %cst_155 = arith.constant dense<0.000000e+00> : vector<4x32xf32>
    %204 = tpu.matmul %201, %203, %cst_155 {dimension_numbers = #tpu.dot_dimension_numbers<[1], [0], [0], [1], [0, 0, 1, 1], [], []>} : vector<4x32xbf16>, vector<32x32xbf16>, vector<4x32xf32> -> vector<4x32xf32>
    %205 = arith.addf %199, %204 : vector<4x32xf32>
    %206 = vector.extract_strided_slice %198 {offsets = [0, 2, 0], sizes = [2, 2, 32], strides = [1, 1, 1]} : vector<6x6x32xbf16> to vector<2x2x32xbf16>
    %207 = vector.shape_cast %206 : vector<2x2x32xbf16> to vector<4x32xbf16>
    %c2_156 = arith.constant 2 : index
    %c1_157 = arith.constant 1 : index
    %c0_158 = arith.constant 0 : index
    %c0_159 = arith.constant 0 : index
    %208 = vector.load %arg3[%c2_156, %c1_157, %c0_158, %c0_159] : memref<4x9x32x32xbf16, #tpu.memory_space<vmem>>, vector<1x1x32x32xbf16>
    %209 = vector.shape_cast %208 : vector<1x1x32x32xbf16> to vector<32x32xbf16>
    %cst_160 = arith.constant dense<0.000000e+00> : vector<4x32xf32>
    %210 = tpu.matmul %207, %209, %cst_160 {dimension_numbers = #tpu.dot_dimension_numbers<[1], [0], [0], [1], [0, 0, 1, 1], [], []>} : vector<4x32xbf16>, vector<32x32xbf16>, vector<4x32xf32> -> vector<4x32xf32>
    %211 = arith.addf %205, %210 : vector<4x32xf32>
    %212 = vector.extract_strided_slice %198 {offsets = [0, 4, 0], sizes = [2, 2, 32], strides = [1, 1, 1]} : vector<6x6x32xbf16> to vector<2x2x32xbf16>
    %213 = vector.shape_cast %212 : vector<2x2x32xbf16> to vector<4x32xbf16>
    %c2_161 = arith.constant 2 : index
    %c2_162 = arith.constant 2 : index
    %c0_163 = arith.constant 0 : index
    %c0_164 = arith.constant 0 : index
    %214 = vector.load %arg3[%c2_161, %c2_162, %c0_163, %c0_164] : memref<4x9x32x32xbf16, #tpu.memory_space<vmem>>, vector<1x1x32x32xbf16>
    %215 = vector.shape_cast %214 : vector<1x1x32x32xbf16> to vector<32x32xbf16>
    %cst_165 = arith.constant dense<0.000000e+00> : vector<4x32xf32>
    %216 = tpu.matmul %213, %215, %cst_165 {dimension_numbers = #tpu.dot_dimension_numbers<[1], [0], [0], [1], [0, 0, 1, 1], [], []>} : vector<4x32xbf16>, vector<32x32xbf16>, vector<4x32xf32> -> vector<4x32xf32>
    %217 = arith.addf %211, %216 : vector<4x32xf32>
    %218 = vector.extract_strided_slice %198 {offsets = [2, 0, 0], sizes = [2, 2, 32], strides = [1, 1, 1]} : vector<6x6x32xbf16> to vector<2x2x32xbf16>
    %219 = vector.shape_cast %218 : vector<2x2x32xbf16> to vector<4x32xbf16>
    %c2_166 = arith.constant 2 : index
    %c3_167 = arith.constant 3 : index
    %c0_168 = arith.constant 0 : index
    %c0_169 = arith.constant 0 : index
    %220 = vector.load %arg3[%c2_166, %c3_167, %c0_168, %c0_169] : memref<4x9x32x32xbf16, #tpu.memory_space<vmem>>, vector<1x1x32x32xbf16>
    %221 = vector.shape_cast %220 : vector<1x1x32x32xbf16> to vector<32x32xbf16>
    %cst_170 = arith.constant dense<0.000000e+00> : vector<4x32xf32>
    %222 = tpu.matmul %219, %221, %cst_170 {dimension_numbers = #tpu.dot_dimension_numbers<[1], [0], [0], [1], [0, 0, 1, 1], [], []>} : vector<4x32xbf16>, vector<32x32xbf16>, vector<4x32xf32> -> vector<4x32xf32>
    %223 = arith.addf %217, %222 : vector<4x32xf32>
    %224 = vector.extract_strided_slice %198 {offsets = [2, 2, 0], sizes = [2, 2, 32], strides = [1, 1, 1]} : vector<6x6x32xbf16> to vector<2x2x32xbf16>
    %225 = vector.shape_cast %224 : vector<2x2x32xbf16> to vector<4x32xbf16>
    %c2_171 = arith.constant 2 : index
    %c4_172 = arith.constant 4 : index
    %c0_173 = arith.constant 0 : index
    %c0_174 = arith.constant 0 : index
    %226 = vector.load %arg3[%c2_171, %c4_172, %c0_173, %c0_174] : memref<4x9x32x32xbf16, #tpu.memory_space<vmem>>, vector<1x1x32x32xbf16>
    %227 = vector.shape_cast %226 : vector<1x1x32x32xbf16> to vector<32x32xbf16>
    %cst_175 = arith.constant dense<0.000000e+00> : vector<4x32xf32>
    %228 = tpu.matmul %225, %227, %cst_175 {dimension_numbers = #tpu.dot_dimension_numbers<[1], [0], [0], [1], [0, 0, 1, 1], [], []>} : vector<4x32xbf16>, vector<32x32xbf16>, vector<4x32xf32> -> vector<4x32xf32>
    %229 = arith.addf %223, %228 : vector<4x32xf32>
    %230 = vector.extract_strided_slice %198 {offsets = [2, 4, 0], sizes = [2, 2, 32], strides = [1, 1, 1]} : vector<6x6x32xbf16> to vector<2x2x32xbf16>
    %231 = vector.shape_cast %230 : vector<2x2x32xbf16> to vector<4x32xbf16>
    %c2_176 = arith.constant 2 : index
    %c5_177 = arith.constant 5 : index
    %c0_178 = arith.constant 0 : index
    %c0_179 = arith.constant 0 : index
    %232 = vector.load %arg3[%c2_176, %c5_177, %c0_178, %c0_179] : memref<4x9x32x32xbf16, #tpu.memory_space<vmem>>, vector<1x1x32x32xbf16>
    %233 = vector.shape_cast %232 : vector<1x1x32x32xbf16> to vector<32x32xbf16>
    %cst_180 = arith.constant dense<0.000000e+00> : vector<4x32xf32>
    %234 = tpu.matmul %231, %233, %cst_180 {dimension_numbers = #tpu.dot_dimension_numbers<[1], [0], [0], [1], [0, 0, 1, 1], [], []>} : vector<4x32xbf16>, vector<32x32xbf16>, vector<4x32xf32> -> vector<4x32xf32>
    %235 = arith.addf %229, %234 : vector<4x32xf32>
    %236 = vector.extract_strided_slice %198 {offsets = [4, 0, 0], sizes = [2, 2, 32], strides = [1, 1, 1]} : vector<6x6x32xbf16> to vector<2x2x32xbf16>
    %237 = vector.shape_cast %236 : vector<2x2x32xbf16> to vector<4x32xbf16>
    %c2_181 = arith.constant 2 : index
    %c6_182 = arith.constant 6 : index
    %c0_183 = arith.constant 0 : index
    %c0_184 = arith.constant 0 : index
    %238 = vector.load %arg3[%c2_181, %c6_182, %c0_183, %c0_184] : memref<4x9x32x32xbf16, #tpu.memory_space<vmem>>, vector<1x1x32x32xbf16>
    %239 = vector.shape_cast %238 : vector<1x1x32x32xbf16> to vector<32x32xbf16>
    %cst_185 = arith.constant dense<0.000000e+00> : vector<4x32xf32>
    %240 = tpu.matmul %237, %239, %cst_185 {dimension_numbers = #tpu.dot_dimension_numbers<[1], [0], [0], [1], [0, 0, 1, 1], [], []>} : vector<4x32xbf16>, vector<32x32xbf16>, vector<4x32xf32> -> vector<4x32xf32>
    %241 = arith.addf %235, %240 : vector<4x32xf32>
    %242 = vector.extract_strided_slice %198 {offsets = [4, 2, 0], sizes = [2, 2, 32], strides = [1, 1, 1]} : vector<6x6x32xbf16> to vector<2x2x32xbf16>
    %243 = vector.shape_cast %242 : vector<2x2x32xbf16> to vector<4x32xbf16>
    %c2_186 = arith.constant 2 : index
    %c7_187 = arith.constant 7 : index
    %c0_188 = arith.constant 0 : index
    %c0_189 = arith.constant 0 : index
    %244 = vector.load %arg3[%c2_186, %c7_187, %c0_188, %c0_189] : memref<4x9x32x32xbf16, #tpu.memory_space<vmem>>, vector<1x1x32x32xbf16>
    %245 = vector.shape_cast %244 : vector<1x1x32x32xbf16> to vector<32x32xbf16>
    %cst_190 = arith.constant dense<0.000000e+00> : vector<4x32xf32>
    %246 = tpu.matmul %243, %245, %cst_190 {dimension_numbers = #tpu.dot_dimension_numbers<[1], [0], [0], [1], [0, 0, 1, 1], [], []>} : vector<4x32xbf16>, vector<32x32xbf16>, vector<4x32xf32> -> vector<4x32xf32>
    %247 = arith.addf %241, %246 : vector<4x32xf32>
    %248 = vector.extract_strided_slice %198 {offsets = [4, 4, 0], sizes = [2, 2, 32], strides = [1, 1, 1]} : vector<6x6x32xbf16> to vector<2x2x32xbf16>
    %249 = vector.shape_cast %248 : vector<2x2x32xbf16> to vector<4x32xbf16>
    %c2_191 = arith.constant 2 : index
    %c8_192 = arith.constant 8 : index
    %c0_193 = arith.constant 0 : index
    %c0_194 = arith.constant 0 : index
    %250 = vector.load %arg3[%c2_191, %c8_192, %c0_193, %c0_194] : memref<4x9x32x32xbf16, #tpu.memory_space<vmem>>, vector<1x1x32x32xbf16>
    %251 = vector.shape_cast %250 : vector<1x1x32x32xbf16> to vector<32x32xbf16>
    %cst_195 = arith.constant dense<0.000000e+00> : vector<4x32xf32>
    %252 = tpu.matmul %249, %251, %cst_195 {dimension_numbers = #tpu.dot_dimension_numbers<[1], [0], [0], [1], [0, 0, 1, 1], [], []>} : vector<4x32xbf16>, vector<32x32xbf16>, vector<4x32xf32> -> vector<4x32xf32>
    %253 = arith.addf %247, %252 : vector<4x32xf32>
    %cst_196 = arith.constant 0.000000e+00 : f32
    %254 = vector.broadcast %cst_196 : f32 to vector<4x32xf32>
    %255 = arith.maximumf %253, %254 : vector<4x32xf32>
    %256 = arith.truncf %255 : vector<4x32xf32> to vector<4x32xbf16>
    %257 = vector.shape_cast %256 : vector<4x32xbf16> to vector<2x2x32xbf16>
    %c2_197 = arith.constant 2 : index
    %c2_198 = arith.constant 2 : index
    %c0_199 = arith.constant 0 : index
    %258 = vector.load %arg5[%c2_197, %c2_198, %c0_199] : memref<6x6x32xbf16, #tpu.memory_space<vmem>>, vector<2x2x32xbf16>
    tpu.vector_store %arg5[%c2_197, %c2_198, %c0_199], %257 {strides = array<i32>} : memref<6x6x32xbf16, #tpu.memory_space<vmem>>, vector<2x2x32xbf16>,
    %c0_200 = arith.constant 0 : index
    %c0_201 = arith.constant 0 : index
    %c0_202 = arith.constant 0 : index
    %259 = vector.load %arg5[%c0_200, %c0_201, %c0_202] : memref<6x6x32xbf16, #tpu.memory_space<vmem>>, vector<6x6x32xbf16>
    %cst_203 = arith.constant 0.000000e+00 : f32
    %260 = vector.broadcast %cst_203 : f32 to vector<4x32xf32>
    %261 = vector.extract_strided_slice %259 {offsets = [0, 0, 0], sizes = [2, 2, 32], strides = [1, 1, 1]} : vector<6x6x32xbf16> to vector<2x2x32xbf16>
    %262 = vector.shape_cast %261 : vector<2x2x32xbf16> to vector<4x32xbf16>
    %c3_204 = arith.constant 3 : index
    %c0_205 = arith.constant 0 : index
    %c0_206 = arith.constant 0 : index
    %c0_207 = arith.constant 0 : index
    %263 = vector.load %arg3[%c3_204, %c0_205, %c0_206, %c0_207] : memref<4x9x32x32xbf16, #tpu.memory_space<vmem>>, vector<1x1x32x32xbf16>
    %264 = vector.shape_cast %263 : vector<1x1x32x32xbf16> to vector<32x32xbf16>
    %cst_208 = arith.constant dense<0.000000e+00> : vector<4x32xf32>
    %265 = tpu.matmul %262, %264, %cst_208 {dimension_numbers = #tpu.dot_dimension_numbers<[1], [0], [0], [1], [0, 0, 1, 1], [], []>} : vector<4x32xbf16>, vector<32x32xbf16>, vector<4x32xf32> -> vector<4x32xf32>
    %266 = arith.addf %260, %265 : vector<4x32xf32>
    %267 = vector.extract_strided_slice %259 {offsets = [0, 2, 0], sizes = [2, 2, 32], strides = [1, 1, 1]} : vector<6x6x32xbf16> to vector<2x2x32xbf16>
    %268 = vector.shape_cast %267 : vector<2x2x32xbf16> to vector<4x32xbf16>
    %c3_209 = arith.constant 3 : index
    %c1_210 = arith.constant 1 : index
    %c0_211 = arith.constant 0 : index
    %c0_212 = arith.constant 0 : index
    %269 = vector.load %arg3[%c3_209, %c1_210, %c0_211, %c0_212] : memref<4x9x32x32xbf16, #tpu.memory_space<vmem>>, vector<1x1x32x32xbf16>
    %270 = vector.shape_cast %269 : vector<1x1x32x32xbf16> to vector<32x32xbf16>
    %cst_213 = arith.constant dense<0.000000e+00> : vector<4x32xf32>
    %271 = tpu.matmul %268, %270, %cst_213 {dimension_numbers = #tpu.dot_dimension_numbers<[1], [0], [0], [1], [0, 0, 1, 1], [], []>} : vector<4x32xbf16>, vector<32x32xbf16>, vector<4x32xf32> -> vector<4x32xf32>
    %272 = arith.addf %266, %271 : vector<4x32xf32>
    %273 = vector.extract_strided_slice %259 {offsets = [0, 4, 0], sizes = [2, 2, 32], strides = [1, 1, 1]} : vector<6x6x32xbf16> to vector<2x2x32xbf16>
    %274 = vector.shape_cast %273 : vector<2x2x32xbf16> to vector<4x32xbf16>
    %c3_214 = arith.constant 3 : index
    %c2_215 = arith.constant 2 : index
    %c0_216 = arith.constant 0 : index
    %c0_217 = arith.constant 0 : index
    %275 = vector.load %arg3[%c3_214, %c2_215, %c0_216, %c0_217] : memref<4x9x32x32xbf16, #tpu.memory_space<vmem>>, vector<1x1x32x32xbf16>
    %276 = vector.shape_cast %275 : vector<1x1x32x32xbf16> to vector<32x32xbf16>
    %cst_218 = arith.constant dense<0.000000e+00> : vector<4x32xf32>
    %277 = tpu.matmul %274, %276, %cst_218 {dimension_numbers = #tpu.dot_dimension_numbers<[1], [0], [0], [1], [0, 0, 1, 1], [], []>} : vector<4x32xbf16>, vector<32x32xbf16>, vector<4x32xf32> -> vector<4x32xf32>
    %278 = arith.addf %272, %277 : vector<4x32xf32>
    %279 = vector.extract_strided_slice %259 {offsets = [2, 0, 0], sizes = [2, 2, 32], strides = [1, 1, 1]} : vector<6x6x32xbf16> to vector<2x2x32xbf16>
    %280 = vector.shape_cast %279 : vector<2x2x32xbf16> to vector<4x32xbf16>
    %c3_219 = arith.constant 3 : index
    %c3_220 = arith.constant 3 : index
    %c0_221 = arith.constant 0 : index
    %c0_222 = arith.constant 0 : index
    %281 = vector.load %arg3[%c3_219, %c3_220, %c0_221, %c0_222] : memref<4x9x32x32xbf16, #tpu.memory_space<vmem>>, vector<1x1x32x32xbf16>
    %282 = vector.shape_cast %281 : vector<1x1x32x32xbf16> to vector<32x32xbf16>
    %cst_223 = arith.constant dense<0.000000e+00> : vector<4x32xf32>
    %283 = tpu.matmul %280, %282, %cst_223 {dimension_numbers = #tpu.dot_dimension_numbers<[1], [0], [0], [1], [0, 0, 1, 1], [], []>} : vector<4x32xbf16>, vector<32x32xbf16>, vector<4x32xf32> -> vector<4x32xf32>
    %284 = arith.addf %278, %283 : vector<4x32xf32>
    %285 = vector.extract_strided_slice %259 {offsets = [2, 2, 0], sizes = [2, 2, 32], strides = [1, 1, 1]} : vector<6x6x32xbf16> to vector<2x2x32xbf16>
    %286 = vector.shape_cast %285 : vector<2x2x32xbf16> to vector<4x32xbf16>
    %c3_224 = arith.constant 3 : index
    %c4_225 = arith.constant 4 : index
    %c0_226 = arith.constant 0 : index
    %c0_227 = arith.constant 0 : index
    %287 = vector.load %arg3[%c3_224, %c4_225, %c0_226, %c0_227] : memref<4x9x32x32xbf16, #tpu.memory_space<vmem>>, vector<1x1x32x32xbf16>
    %288 = vector.shape_cast %287 : vector<1x1x32x32xbf16> to vector<32x32xbf16>
    %cst_228 = arith.constant dense<0.000000e+00> : vector<4x32xf32>
    %289 = tpu.matmul %286, %288, %cst_228 {dimension_numbers = #tpu.dot_dimension_numbers<[1], [0], [0], [1], [0, 0, 1, 1], [], []>} : vector<4x32xbf16>, vector<32x32xbf16>, vector<4x32xf32> -> vector<4x32xf32>
    %290 = arith.addf %284, %289 : vector<4x32xf32>
    %291 = vector.extract_strided_slice %259 {offsets = [2, 4, 0], sizes = [2, 2, 32], strides = [1, 1, 1]} : vector<6x6x32xbf16> to vector<2x2x32xbf16>
    %292 = vector.shape_cast %291 : vector<2x2x32xbf16> to vector<4x32xbf16>
    %c3_229 = arith.constant 3 : index
    %c5_230 = arith.constant 5 : index
    %c0_231 = arith.constant 0 : index
    %c0_232 = arith.constant 0 : index
    %293 = vector.load %arg3[%c3_229, %c5_230, %c0_231, %c0_232] : memref<4x9x32x32xbf16, #tpu.memory_space<vmem>>, vector<1x1x32x32xbf16>
    %294 = vector.shape_cast %293 : vector<1x1x32x32xbf16> to vector<32x32xbf16>
    %cst_233 = arith.constant dense<0.000000e+00> : vector<4x32xf32>
    %295 = tpu.matmul %292, %294, %cst_233 {dimension_numbers = #tpu.dot_dimension_numbers<[1], [0], [0], [1], [0, 0, 1, 1], [], []>} : vector<4x32xbf16>, vector<32x32xbf16>, vector<4x32xf32> -> vector<4x32xf32>
    %296 = arith.addf %290, %295 : vector<4x32xf32>
    %297 = vector.extract_strided_slice %259 {offsets = [4, 0, 0], sizes = [2, 2, 32], strides = [1, 1, 1]} : vector<6x6x32xbf16> to vector<2x2x32xbf16>
    %298 = vector.shape_cast %297 : vector<2x2x32xbf16> to vector<4x32xbf16>
    %c3_234 = arith.constant 3 : index
    %c6_235 = arith.constant 6 : index
    %c0_236 = arith.constant 0 : index
    %c0_237 = arith.constant 0 : index
    %299 = vector.load %arg3[%c3_234, %c6_235, %c0_236, %c0_237] : memref<4x9x32x32xbf16, #tpu.memory_space<vmem>>, vector<1x1x32x32xbf16>
    %300 = vector.shape_cast %299 : vector<1x1x32x32xbf16> to vector<32x32xbf16>
    %cst_238 = arith.constant dense<0.000000e+00> : vector<4x32xf32>
    %301 = tpu.matmul %298, %300, %cst_238 {dimension_numbers = #tpu.dot_dimension_numbers<[1], [0], [0], [1], [0, 0, 1, 1], [], []>} : vector<4x32xbf16>, vector<32x32xbf16>, vector<4x32xf32> -> vector<4x32xf32>
    %302 = arith.addf %296, %301 : vector<4x32xf32>
    %303 = vector.extract_strided_slice %259 {offsets = [4, 2, 0], sizes = [2, 2, 32], strides = [1, 1, 1]} : vector<6x6x32xbf16> to vector<2x2x32xbf16>
    %304 = vector.shape_cast %303 : vector<2x2x32xbf16> to vector<4x32xbf16>
    %c3_239 = arith.constant 3 : index
    %c7_240 = arith.constant 7 : index
    %c0_241 = arith.constant 0 : index
    %c0_242 = arith.constant 0 : index
    %305 = vector.load %arg3[%c3_239, %c7_240, %c0_241, %c0_242] : memref<4x9x32x32xbf16, #tpu.memory_space<vmem>>, vector<1x1x32x32xbf16>
    %306 = vector.shape_cast %305 : vector<1x1x32x32xbf16> to vector<32x32xbf16>
    %cst_243 = arith.constant dense<0.000000e+00> : vector<4x32xf32>
    %307 = tpu.matmul %304, %306, %cst_243 {dimension_numbers = #tpu.dot_dimension_numbers<[1], [0], [0], [1], [0, 0, 1, 1], [], []>} : vector<4x32xbf16>, vector<32x32xbf16>, vector<4x32xf32> -> vector<4x32xf32>
    %308 = arith.addf %302, %307 : vector<4x32xf32>
    %309 = vector.extract_strided_slice %259 {offsets = [4, 4, 0], sizes = [2, 2, 32], strides = [1, 1, 1]} : vector<6x6x32xbf16> to vector<2x2x32xbf16>
    %310 = vector.shape_cast %309 : vector<2x2x32xbf16> to vector<4x32xbf16>
    %c3_244 = arith.constant 3 : index
    %c8_245 = arith.constant 8 : index
    %c0_246 = arith.constant 0 : index
    %c0_247 = arith.constant 0 : index
    %311 = vector.load %arg3[%c3_244, %c8_245, %c0_246, %c0_247] : memref<4x9x32x32xbf16, #tpu.memory_space<vmem>>, vector<1x1x32x32xbf16>
    %312 = vector.shape_cast %311 : vector<1x1x32x32xbf16> to vector<32x32xbf16>
    %cst_248 = arith.constant dense<0.000000e+00> : vector<4x32xf32>
    %313 = tpu.matmul %310, %312, %cst_248 {dimension_numbers = #tpu.dot_dimension_numbers<[1], [0], [0], [1], [0, 0, 1, 1], [], []>} : vector<4x32xbf16>, vector<32x32xbf16>, vector<4x32xf32> -> vector<4x32xf32>
    %314 = arith.addf %308, %313 : vector<4x32xf32>
    %315 = vector.shape_cast %314 : vector<4x32xf32> to vector<2x2x32xf32>
    %316 = arith.addf %193, %315 : vector<2x2x32xf32>
    %317 = arith.truncf %316 : vector<2x2x32xf32> to vector<2x2x32xbf16>
    %c0_249 = arith.constant 0 : index
    %c0_250 = arith.constant 0 : index
    %c0_251 = arith.constant 0 : index
    %c0_252 = arith.constant 0 : index
    %318 = vector.load %arg4[%c0_249, %c0_250, %c0_251, %c0_252] : memref<1x2x2x32xbf16, #tpu.memory_space<vmem>>, vector<1x2x2x32xbf16>
    %319 = vector.shape_cast %318 : vector<1x2x2x32xbf16> to vector<2x2x32xbf16>
    %320 = vector.shape_cast %317 : vector<2x2x32xbf16> to vector<1x2x2x32xbf16>
    tpu.vector_store %arg4[%c0_249, %c0_250, %c0_251, %c0_252], %320 {strides = array<i32>} : memref<1x2x2x32xbf16, #tpu.memory_space<vmem>>, vector<1x2x2x32xbf16>,
    return
  }
  func.func @transform_0(%arg0: i32) -> (i32, i32, i32, i32, i32) {
    %c0_i32 = arith.constant 0 : i32
    %c0_i32_0 = arith.constant 0 : i32
    %c0_i32_1 = arith.constant 0 : i32
    %c0_i32_2 = arith.constant 0 : i32
    %c0_i32_3 = arith.constant 0 : i32
    return %arg0, %c0_i32, %c0_i32_0, %c0_i32_1, %c0_i32_2 : i32, i32, i32, i32, i32
  }
  func.func @transform_1(%arg0: i32) -> (i32, i32, i32) {
    %c0_i32 = arith.constant 0 : i32
    %c0_i32_0 = arith.constant 0 : i32
    %c0_i32_1 = arith.constant 0 : i32
    %c0_i32_2 = arith.constant 0 : i32
    return %c0_i32, %c0_i32_0, %c0_i32_1 : i32, i32, i32
  }
  func.func @transform_2(%arg0: i32) -> (i32, i32, i32, i32) {
    %c0_i32 = arith.constant 0 : i32
    %c0_i32_0 = arith.constant 0 : i32
    %c0_i32_1 = arith.constant 0 : i32
    %c0_i32_2 = arith.constant 0 : i32
    %c0_i32_3 = arith.constant 0 : i32
    return %c0_i32, %c0_i32_0, %c0_i32_1, %c0_i32_2 : i32, i32, i32, i32
  }
  func.func @transform_3(%arg0: i32) -> (i32, i32, i32, i32) {
    %c0_i32 = arith.constant 0 : i32
    %c0_i32_0 = arith.constant 0 : i32
    %c0_i32_1 = arith.constant 0 : i32
    %c0_i32_2 = arith.constant 0 : i32
    return %arg0, %c0_i32, %c0_i32_0, %c0_i32_1 : i32, i32, i32, i32
  }
}

</mosaic_0001>

<bundles_post_ra>
// kernel: forward.4
= control target key start
LH: loop header
LB: loop body
LE: loop exit
PB: predicated region body
PF: predicated region fallthrough
CT: control target
= control target key end

     0   :  { %s4702_s9 = smov 0   ;;  %s6167_s0 = inlined_call_operand.vmem [shape: bf16[2,4,17,17,1], index: 0, kind: input, shape index: {}]   ;;  %s6168_s1 = inlined_call_operand.vmem [shape: bf16[9,1,8], index: 1, kind: input, shape index: {}]   ;;  %s6169_s2 = inlined_call_operand.vmem [shape: bf16[2,16,16,8], index: 2, kind: output, shape index: {}]  }
   0x1 LB: > { %s3800_s10 = sadd.s32 4294967295, %s4684_s9   ;;  %p3804_p0 = scmp.ge.s32.totalorder %s4684_s9, 1  ;;  %s4684_s9 = sphi %s4702_s9, %s12_s9  }
   0x2   : > { %p112_p1 = scmp.lt.s32.totalorder %s4684_s9, 3 }
   0x4   : > { %p113_p2 = pnand %p3804_p0, %p112_p1 }
   0x6   : > { %116 = sbr.rel (%p113_p2) target bundleno = 508 (0x1fc), region = 28 }
   0xb   : > { %v3808_v0 = vld [vmem:[%s6168_s1 + $0x1] sm:$0x1]  ;;  %vm442_vm0 = vcmask 1040384   ;;  %p134_p3 = scmp.lt.s32.totalorder %s3800_s10, 1  ;;  %v4686_v1 = vmov 0   ;;  %vm393_vm1 = vcmask 7168  }
   0xc   : > { %v4713_v2 = vsel %vm442_vm0, 65535, %v4686_v1  ;;  %v310_v3 = vld [vmem:[%s6168_s1] sm:$0x1]  ;;  %v3873_v4 = vld [vmem:[%s6168_s1 + $0x2] sm:$0x1]  ;;  %vm3712_vm5 = vcmask 60416  }
   0xd   : > { %v446_v5 = vand.u32 %v3808_v0, %v4713_v2  ;;  %s6342_s10 = smov (!%p134_p3, %s3800_s10), 1  ;;  %v738_v6 = vand.u32 %v4713_v2, %v310_v3  ;;  %v1387_v7 = vand.u32 %v3873_v4, %v4713_v2  ;;  %v3906_v8 = vld [vmem:[%s6168_s1 + $0x3] sm:$0x1]  ;;  %v3939_v9 = vld [vmem:[%s6168_s1 + $0x4] sm:$0x1] }
   0xe   : > { %s4587_s17 = smul.u32 816, %s6342_s10  ;;  %v4745_v14 = vand.u32 %v3906_v8, %v4713_v2  ;;  %v4750_v16 = vand.u32 %v3939_v9, %v4713_v2  ;;  %vm901_vm2 = vsmask.f32 3328  ;;  %vm902_vm3 = vsmask.f32 7440  ;;  %s4093_s5 = sshll.u32 %s6342_s10, 7 }
   0xf   : > { %4585 = vmatprep.subr.bf16.mxu1 %v446_v5  ;;  %4279 = vmatprep.subr.bf16.mxu0 %v446_v5  ;;  %v3972_v22 = vld [vmem:[%s6168_s1 + $0x5] sm:$0x1]  ;;  %v4005_v23 = vld [vmem:[%s6168_s1 + $0x6] sm:$0x1]  ;;  %vm4807_vm4 = vmor %vm901_vm2, %vm902_vm3  ;;  %s6021_s8 = scalar_lea.vmem %s6169_s2, %s4093_s5 }
  0x10   : > { %4586 = vmatpush3.bf16.msra.mxu1 %v446_v5  ;;  %4280 = vmatpush3.bf16.msra.mxu0 %v446_v5  ;;  %s4730_s20 = scalar_lea.vmem %s6167_s0, %s4587_s17  ;;  %v4783_v30 = vand.u32 %v3972_v22, %v4713_v2  ;;  %v4791_v36 = vand.u32 %v4005_v23, %v4713_v2 }
  0x11   : > { %4313 = vmatprep.subr.bf16.mxu1 %v738_v6  ;;  %4347 = vmatprep.subr.bf16.mxu0 %v1387_v7  ;;  %v4597_v10 = vld [vmem:[%s4730_s20 + $0xcc] sm:$0xff]   ;;  %v4599_v12 = vld [vmem:[%s4730_s20 + $0xd8] sm:$0xff]   ;;  %v4601_v15 = vld [vmem:[%s4730_s20 + $0xe4] sm:$0xff]  }
  0x12   : > { %v4598_v11 = vld [vmem:[%s4730_s20 + $0x12c] sm:$0xff]   ;;  %4281 = vmatprep.mubr.msk.bf16.mxu0 %vm393_vm1, %v4597_v10  ;;  %v4600_v13 = vld [vmem:[%s4730_s20 + $0x138] sm:$0xff]   ;;  %v4602_v17 = vld [vmem:[%s4730_s20 + $0x144] sm:$0xff]  }
  0x13   : > { %4297 = vmatprep.mubr.msk.bf16.mxu1 %vm393_vm1, %v4598_v11  ;;  %4282 = vmatmul.mubr.msk.bf16.vlgmr.msra.gmra.mxu0 %vm393_vm1, %v4599_v12  ;;  %v4603_v18 = vld [vmem:[%s4730_s20 + $0xf0] sm:$0xff]   ;;  %v4605_v20 = vld [vmem:[%s4730_s20 + $0xfc] sm:$0xff]   ;;  %v4607_v24 = vld [vmem:[%s4730_s20 + $0x108] sm:$0xff]  }
  0x14   : > { %4298 = vmatmul.mubr.msk.bf16.vlgmr.msra.gmra.mxu1 %vm393_vm1, %v4600_v13  ;;  %4348 = vmatpush3.bf16.msra.mxu0 %v1387_v7  ;;  %v4604_v19 = vld [vmem:[%s4730_s20 + $0x150] sm:$0xff]   ;;  %v4606_v21 = vld [vmem:[%s4730_s20 + $0x15c] sm:$0xff]   ;;  %v4608_v25 = vld [vmem:[%s4730_s20 + $0x168] sm:$0xff]  }
  0x15   : > { %4314 = vmatpush3.bf16.msra.mxu1 %v738_v6  ;;  %4285 = vmatprep.mubr.msk.bf16.mxu0 %vm393_vm1, %v4601_v15  ;;  %v4609_v26 = vld [vmem:[%s4730_s20 + $0x114] sm:$0xff]   ;;  %v4776_v27 = vld [vmem:[%s4730_s20] sm:$0xf]  ;;  %v4779_v28 = vld [vmem:[%s4730_s20 + $0x4] sm:$0xf] }
  0x16   : > { %4301 = vmatprep.mubr.msk.bf16.mxu1 %vm393_vm1, %v4602_v17  ;;  %4381 = vmatprep.subr.bf16.mxu1 %v4745_v14  ;;  %v147_v29 = vld [vmem:[%s4730_s20 + $0x8] sm:$0x1]  ;;  %v4610_v31 = vld [vmem:[%s4730_s20 + $0x174] sm:$0xff]   ;;  %v905_v32 = vshrl.u32 %v4776_v27, 16  ;;  %v908_v33 = vshll.u32 %v4776_v27, 16  ;;  %v914_v34 = vshll.u32 %v4779_v28, 16  ;;  %v3841_v42 = vcombine.low %v4776_v27, %v4779_v28 }
  0x17   : > { %4415 = vmatprep.subr.bf16.mxu0 %v4750_v16  ;;  %v148_v35 = vld [vmem:[%s4730_s20 + $0xc] sm:$0xf]  ;;  %v918_v37 = vshrl.u32 %v4779_v28, 16  ;;  %v924_v38 = vshll.u32 %v147_v29, 16  ;;  %v149_v39 = vld [vmem:[%s4730_s20 + $0x10] sm:$0xf] }
  0x18   : > { %v929_v40 = vshrl.u32 %v148_v35, 16  ;;  %v932_v41 = vshll.u32 %v148_v35, 16  ;;  %v907_v43 = vrot.slane %v905_v32, 4  ;;  %v910_v44 = vrot.slane %v908_v33, 5  ;;  %v150_v46 = vld [vmem:[%s4730_s20 + $0x14] sm:$0x1] }
  0x19   : > { %v916_v45 = vrot.slane %v914_v34, 5  ;;  %v920_v47 = vrot.slane %v918_v37, 4  ;;  %v4799_v48 = vcombine.low %v148_v35, %v149_v39  ;;  %v151_v51 = vld [vmem:[%s4730_s20 + $0x18] sm:$0xf]  ;;  %v938_v53 = vshll.u32 %v149_v39, 16  ;;  %v4611_v4 = vld [vmem:[%s4730_s20 + $0x120] sm:$0xff]  }
  0x1a   : > { %v931_v49 = vrot.slane %v929_v40, 4  ;;  %v934_v50 = vrot.slane %v932_v41, 5  ;;  %v911_v52 = vor.u32 %v910_v44, %v907_v43  ;;  %v942_v54 = vshrl.u32 %v149_v39, 16  ;;  %v152_v60 = vld [vmem:[%s4730_s20 + $0x1c] sm:$0xf]  ;;  %v4612_v9 = vld [vmem:[%s4730_s20 + $0x180] sm:$0xff]  }
  0x1b   : > { %4286 = vmatmul.mubr.msk.bf16.gmra.mxu0 %vm393_vm1, %v4603_v18  ;;  %v948_v55 = vshll.u32 %v150_v46, 16  ;;  %v921_v57 = vor.u32 %v920_v47, %v916_v45  ;;  %v926_v58 = vrot.slane %v924_v38, 5  ;;  %v953_v61 = vshrl.u32 %v151_v51, 16  ;;  %v153_v3 = vld [vmem:[%s4730_s20 + $0x20] sm:$0x1] }
  0x1c   : > { %4302 = vmatmul.mubr.msk.bf16.gmra.mxu1 %vm393_vm1, %v4604_v19  ;;  %4289 = vmatprep.mubr.msk.bf16.mxu0 %vm393_vm1, %v4605_v20  ;;  %v935_v59 = vor.u32 %v934_v50, %v931_v49  ;;  %v912_v62 = vrot.slane %v911_v52, 4  ;;  %v940_v63 = vrot.slane %v938_v53, 5  ;;  %v944_v0 = vrot.slane %v942_v54, 4  ;;  %v154_v15 = vld [vmem:[%s4730_s20 + $0x24] sm:$0xf] }
  0x1d   : > { %4305 = vmatprep.mubr.msk.bf16.mxu1 %vm393_vm1, %v4606_v21  ;;  %v950_v1 = vrot.slane %v948_v55, 5  ;;  %v922_v5 = vrot.slane %v921_v57, 4  ;;  %v955_v7 = vrot.slane %v953_v61, 4  ;;  %v956_v8 = vshll.u32 %v151_v51, 16  ;;  %v155_v21 = vld [vmem:[%s4730_s20 + $0x28] sm:$0xf] }
  0x1e   : > { %v936_v6 = vrot.slane %v935_v59, 4  ;;  %v917_v10 = vsel %vm4807_vm4, %v912_v62, %v916_v45  ;;  %v945_v11 = vor.u32 %v944_v0, %v940_v63  ;;  %v962_v12 = vshll.u32 %v152_v60, 16  ;;  %v157_v37 = vld [vmem:[%s4730_s20 + $0x30] sm:$0xf]  ;;  %v158_v47 = vld [vmem:[%s4730_s20 + $0x34] sm:$0xf] }
  0x1f   : > { %v966_v13 = vshrl.u32 %v152_v60, 16  ;;  %v927_v17 = vsel %vm4807_vm4, %v922_v5, %v926_v58  ;;  %v4820_v18 = vcombine.low %v151_v51, %v152_v60  ;;  %v958_v19 = vrot.slane %v956_v8, 5  ;;  %v160_v58 = vld [vmem:[%s4730_s20 + $0x3c] sm:$0xf] }
  0x20   : > { %v972_v20 = vshll.u32 %v153_v3, 16  ;;  %v3874_v22 = vcombine.low %v917_v10, %v927_v17  ;;  %v946_v23 = vrot.slane %v945_v11, 4  ;;  %v977_v29 = vshrl.u32 %v154_v15, 16 }
  0x21   : > { %v959_v27 = vor.u32 %v958_v19, %v955_v7  ;;  %v980_v34 = vshll.u32 %v154_v15, 16  ;;  %v986_v35 = vshll.u32 %v155_v21, 16  ;;  %v4833_v39 = vcombine.low %v154_v15, %v155_v21 }
  0x22   : > { %v974_v28 = vrot.slane %v972_v20, 5  ;;  %v951_v32 = vsel %vm4807_vm4, %v946_v23, %v950_v1  ;;  %v979_v40 = vrot.slane %v977_v29, 4  ;;  %v990_v41 = vshrl.u32 %v155_v21, 16  ;;  %v163_v20 = vld [vmem:[%s4730_s20 + $0x48] sm:$0xf] }
  0x23   : > { %4290 = vmatmul.mubr.msk.bf16.gmra.mxu0 %vm393_vm1, %v4607_v24  ;;  %v964_v24 = vrot.slane %v962_v12, 5  ;;  %v960_v38 = vrot.slane %v959_v27, 4  ;;  %v982_v44 = vrot.slane %v980_v34, 5  ;;  %v988_v45 = vrot.slane %v986_v35, 5 }
  0x24   : > { %4306 = vmatmul.mubr.msk.bf16.gmra.mxu1 %vm393_vm1, %v4608_v25  ;;  %4293 = vmatprep.mubr.msk.bf16.mxu0 %vm393_vm1, %v4609_v26  ;;  %v968_v25 = vrot.slane %v966_v13, 4  ;;  %v941_v26 = vsel %vm4807_vm4, %v936_v6, %v940_v63  ;;  %v992_v51 = vrot.slane %v990_v41, 4  ;;  %v1001_v52 = vshrl.u32 %v157_v37, 16  ;;  %v162_v13 = vld [vmem:[%s4730_s20 + $0x44] sm:$0x1] }
  0x25   : > { %4309 = vmatprep.mubr.msk.bf16.mxu1 %vm393_vm1, %v4610_v31  ;;  %v156_v31 = vld [vmem:[%s4730_s20 + $0x2c] sm:$0x1]  ;;  %v4836_v49 = vcombine.low %v941_v26, %v951_v32  ;;  %v965_v50 = vsel %vm4807_vm4, %v960_v38, %v964_v24  ;;  %v983_v54 = vor.u32 %v982_v44, %v979_v40  ;;  %v1004_v57 = vshll.u32 %v157_v37, 16  ;;  %v165_v40 = vld [vmem:[%s4730_s20 + $0x50] sm:$0x1] }
  0x26   : > { %v969_v33 = vor.u32 %v968_v25, %v964_v24  ;;  %v996_v46 = vshll.u32 %v156_v31, 16  ;;  %v993_v60 = vor.u32 %v992_v51, %v988_v45  ;;  %v1003_v61 = vrot.slane %v1001_v52, 4  ;;  %v164_v25 = vld [vmem:[%s4730_s20 + $0x4c] sm:$0xf] }
  0x27   : > { %6205 = vst [vmem:[#allocation2_spill] sm:$0xff] %v4836_v49  ;;  %v1010_v62 = vshll.u32 %v158_v47, 16  ;;  %v984_v63 = vrot.slane %v983_v54, 4  ;;  %v1006_v0 = vrot.slane %v1004_v57, 5  ;;  %v1014_v1 = vshrl.u32 %v158_v47, 16 }
  0x28   : > { %v970_v43 = vrot.slane %v969_v33, 4  ;;  %v998_v55 = vrot.slane %v996_v46, 5  ;;  %v994_v5 = vrot.slane %v993_v60, 4  ;;  %v4849_v6 = vcombine.low %v157_v37, %v158_v47  ;;  %v166_v46 = vld [vmem:[%s4730_s20 + $0x54] sm:$0xf] }
  0x29   : > { %v1012_v7 = vrot.slane %v1010_v62, 5  ;;  %v1025_v8 = vshrl.u32 %v160_v58, 16  ;;  %v1016_v10 = vrot.slane %v1014_v1, 4  ;;  %v1007_v11 = vor.u32 %v1006_v0, %v1003_v61 }
  0x2a   : > { %v975_v53 = vsel %vm4807_vm4, %v970_v43, %v974_v28  ;;  %v999_v15 = vsel %vm4807_vm4, %v994_v5, %v998_v55  ;;  %v1028_v19 = vshll.u32 %v160_v58, 16  ;;  %v1044_v28 = vshll.u32 %v162_v13, 16  ;;  %v169_v5 = vld [vmem:[%s4730_s20 + $0x60] sm:$0xf] }
  0x2b   : > { %4294 = vmatmul.mubr.msk.bf16.gmra.mxu0 %vm393_vm1, %v4611_v4  ;;  %v4844_v59 = vcombine.low %v965_v50, %v975_v53  ;;  %v161_v4 = vld [vmem:[%s4730_s20 + $0x40] sm:$0xf]  ;;  %v1027_v17 = vrot.slane %v1025_v8, 4  ;;  %v1008_v21 = vrot.slane %v1007_v11, 4  ;;  %v1049_v33 = vshrl.u32 %v163_v20, 16 }
  0x2c   : > { %4310 = vmatmul.mubr.msk.bf16.gmra.mxu1 %vm393_vm1, %v4612_v9  ;;  %4349 = vmatprep.mubr.msk.bf16.mxu0 %vm393_vm1, %v3874_v22  ;;  %v989_v9 = vsel %vm4807_vm4, %v984_v63, %v988_v45  ;;  %v4856_v12 = vcombine.low %v160_v58, %v161_v4  ;;  %v1017_v22 = vor.u32 %v1016_v10, %v1012_v7  ;;  %v1038_v24 = vshrl.u32 %v161_v4, 16  ;;  %v168_v63 = vld [vmem:[%s4730_s20 + $0x5c] sm:$0x1]  ;;  %v170_v11 = vld [vmem:[%s4730_s20 + $0x64] sm:$0xf] }
  0x2d   : > { %4315 = vmatprep.mubr.msk.bf16.mxu1 %vm393_vm1, %v3841_v42  ;;  %v159_v42 = vld [vmem:[%s4730_s20 + $0x38] sm:$0x1]  ;;  %6206 = vst [vmem:[#allocation3_spill] sm:$0xff] %v4844_v59  ;;  %v1030_v26 = vrot.slane %v1028_v19, 5  ;;  %v1013_v29 = vsel %vm4807_vm4, %v1008_v21, %v1012_v7  ;;  %v1046_v35 = vrot.slane %v1044_v28, 5  ;;  %v1052_v37 = vshll.u32 %v163_v20, 16 }
  0x2e   : > { %v1020_v3 = vshll.u32 %v159_v42, 16  ;;  %v1018_v31 = vrot.slane %v1017_v22, 4  ;;  %v1040_v32 = vrot.slane %v1038_v24, 4  ;;  %v1058_v38 = vshll.u32 %v164_v25, 16  ;;  %v167_v42 = vld [vmem:[%s4730_s20 + $0x58] sm:$0xf] }
  0x2f   : > { %v1031_v34 = vor.u32 %v1030_v26, %v1027_v17  ;;  %v1051_v44 = vrot.slane %v1049_v33, 4  ;;  %v1062_v45 = vshrl.u32 %v164_v25, 16  ;;  %v1054_v51 = vrot.slane %v1052_v37, 5  ;;  %v172_v24 = vld [vmem:[%s4730_s20 + $0x6c] sm:$0xf] }
  0x30   : > { %v1022_v23 = vrot.slane %v1020_v3, 5  ;;  %v1060_v52 = vrot.slane %v1058_v38, 5  ;;  %v4885_v54 = vcombine.low %v163_v20, %v164_v25  ;;  %v1068_v57 = vshll.u32 %v165_v40, 16 }
  0x31   : > { %v1032_v50 = vrot.slane %v1031_v34, 4  ;;  %v1064_v55 = vrot.slane %v1062_v45, 4  ;;  %v1055_v60 = vor.u32 %v1054_v51, %v1051_v44  ;;  %v1073_v61 = vshrl.u32 %v166_v46, 16  ;;  %v173_v34 = vld [vmem:[%s4730_s20 + $0x70] sm:$0xf] }
  0x32   : > { %v1023_v41 = vsel %vm4807_vm4, %v1018_v31, %v1022_v23  ;;  %v1076_v62 = vshll.u32 %v166_v46, 16  ;;  %v1070_v3 = vrot.slane %v1068_v57, 5  ;;  %v1086_v17 = vshrl.u32 %v167_v42, 16 }
  0x33   : > { %4350 = vmatmul.mubr.msk.bf16.vlgmr.msra.gmra.mxu0 %vm393_vm1, %v4836_v49  ;;  %v4880_v47 = vcombine.low %v1013_v29, %v1023_v41  ;;  %v1065_v1 = vor.u32 %v1064_v55, %v1060_v52  ;;  %v1056_v8 = vrot.slane %v1055_v60, 4  ;;  %v1092_v19 = vshll.u32 %v168_v63, 16  ;;  %v174_v41 = vld [vmem:[%s4730_s20 + $0x74] sm:$0x1]  ;;  %v5233_v49 = vld [vmem:[%s4730_s20 + $0x240] sm:$0xf] }
  0x34   : > { %4316 = vmatmul.mubr.msk.bf16.vlgmr.msra.gmra.mxu1 %vm393_vm1, %v4799_v48  ;;  %4416 = vmatpush3.bf16.msra.mxu0 %v4750_v16  ;;  %v1034_v16 = vshll.u32 %v161_v4, 16  ;;  %v1082_v4 = vshll.u32 %v167_v42, 16  ;;  %v1078_v10 = vrot.slane %v1076_v62, 5  ;;  %v4903_v21 = vcombine.low %v166_v46, %v167_v42  ;;  %6229 = vst [vmem:[#allocation26_spill] sm:$0xff] %v5233_v49 }
  0x35   : > { %4382 = vmatpush3.bf16.msra.mxu1 %v4745_v14  ;;  %4319 = vmatprep.mubr.msk.bf16.mxu1 %vm393_vm1, %v4820_v18  ;;  %v4869_v14 = vcombine.low %v989_v9, %v999_v15  ;;  %6208 = vst [vmem:[#allocation5_spill] sm:$0xff] %v4880_v47  ;;  %v1075_v9 = vrot.slane %v1073_v61, 4  ;;  %v1066_v13 = vrot.slane %v1065_v1, 4  ;;  %v1061_v20 = vsel %vm4807_vm4, %v1056_v8, %v1060_v52  ;;  %v176_v61 = vld [vmem:[%s4730_s20 + $0x7c] sm:$0xf] }
  0x36   : > { %4353 = vmatprep.mubr.msk.bf16.mxu0 %vm393_vm1, %v4844_v59  ;;  %4449 = vmatprep.subr.bf16.mxu1 %v4783_v30  ;;  %v1036_v27 = vrot.slane %v1034_v16, 5  ;;  %v1084_v15 = vrot.slane %v1082_v4, 5  ;;  %v171_v16 = vld [vmem:[%s4730_s20 + $0x68] sm:$0x1]  ;;  %v1097_v23 = vshrl.u32 %v169_v5, 16  ;;  %v1088_v26 = vrot.slane %v1086_v17, 4 }
  0x37   : > { %6207 = vst [vmem:[#allocation4_spill] sm:$0xff] %v4869_v14  ;;  %4483 = vmatprep.subr.bf16.mxu0 %v4791_v36  ;;  %v1079_v22 = vor.u32 %v1078_v10, %v1075_v9  ;;  %v1071_v25 = vsel %vm4807_vm4, %v1066_v13, %v1070_v3  ;;  %v1100_v28 = vshll.u32 %v169_v5, 16  ;;  %v1106_v33 = vshll.u32 %v170_v11, 16  ;;  %v177_v9 = vld [vmem:[%s4730_s20 + $0x80] sm:$0x1] }
  0x38   : > { %v1041_v43 = vor.u32 %v1040_v32, %v1036_v27  ;;  %v1037_v58 = vsel %vm4807_vm4, %v1032_v50, %v1036_v27  ;;  %v1094_v27 = vrot.slane %v1092_v19, 5  ;;  %v4910_v29 = vcombine.low %v1061_v20, %v1071_v25 }
  0x39   : > { %v1080_v31 = vrot.slane %v1079_v22, 4  ;;  %v1099_v32 = vrot.slane %v1097_v23, 4  ;;  %v1102_v37 = vrot.slane %v1100_v28, 5  ;;  %v1110_v38 = vshrl.u32 %v170_v11, 16  ;;  %v178_v22 = vld [vmem:[%s4730_s20 + $0x84] sm:$0xf] }
  0x3a   : > { %v1042_v53 = vrot.slane %v1041_v43, 4  ;;  %6210 = vst [vmem:[#allocation7_spill] sm:$0xff] %v4910_v29  ;;  %v1116_v40 = vshll.u32 %v171_v16, 16  ;;  %v4922_v44 = vcombine.low %v169_v5, %v170_v11  ;;  %v1108_v45 = vrot.slane %v1106_v33, 5  ;;  %v180_v28 = vld [vmem:[%s4730_s20 + $0x8c] sm:$0x1] }
  0x3b   : > { %4354 = vmatmul.mubr.msk.bf16.gmra.mxu0 %vm393_vm1, %v4869_v14  ;;  %v1085_v43 = vsel %vm4807_vm4, %v1080_v31, %v1084_v15  ;;  %v1121_v46 = vshrl.u32 %v172_v24, 16  ;;  %v1112_v51 = vrot.slane %v1110_v38, 4  ;;  %v1103_v52 = vor.u32 %v1102_v37, %v1099_v32 }
  0x3c   : > { %4320 = vmatmul.mubr.msk.bf16.gmra.mxu1 %vm393_vm1, %v4833_v39  ;;  %4357 = vmatprep.mubr.msk.bf16.mxu0 %vm393_vm1, %v4880_v47  ;;  %v1047_v0 = vsel %vm4807_vm4, %v1042_v53, %v1046_v35  ;;  %v1089_v35 = vor.u32 %v1088_v26, %v1084_v15  ;;  %6211 = vst [vmem:[#allocation8_spill] sm:$0xff] %v4922_v44  ;;  %v1118_v42 = vrot.slane %v1116_v40, 5  ;;  %v175_v53 = vld [vmem:[%s4730_s20 + $0x78] sm:$0xf]  ;;  %v1124_v57 = vshll.u32 %v172_v24, 16 }
  0x3d   : > { %4323 = vmatprep.mubr.msk.bf16.mxu1 %vm393_vm1, %v4849_v6  ;;  %v4897_v7 = vcombine.low %v1037_v58, %v1047_v0  ;;  %v1123_v55 = vrot.slane %v1121_v46, 4  ;;  %v1130_v58 = vshll.u32 %v173_v34, 16  ;;  %v1134_v60 = vshrl.u32 %v173_v34, 16 }
  0x3e   : > { %v1090_v50 = vrot.slane %v1089_v35, 4  ;;  %v1104_v63 = vrot.slane %v1103_v52, 4  ;;  %v1113_v0 = vor.u32 %v1112_v51, %v1108_v45  ;;  %v1140_v1 = vshll.u32 %v174_v41, 16 }
  0x3f   : > { %6209 = vst [vmem:[#allocation6_spill] sm:$0xff] %v4897_v7  ;;  %v1126_v4 = vrot.slane %v1124_v57, 5  ;;  %v1132_v5 = vrot.slane %v1130_v58, 5  ;;  %v1136_v8 = vrot.slane %v1134_v60, 4  ;;  %v4933_v13 = vcombine.low %v172_v24, %v173_v34  ;;  %v179_v24 = vld [vmem:[%s4730_s20 + $0x88] sm:$0xf] }
  0x40   : > { %v1095_v62 = vsel %vm4807_vm4, %v1090_v50, %v1094_v27  ;;  %v1109_v10 = vsel %vm4807_vm4, %v1104_v63, %v1108_v45  ;;  %v1114_v11 = vrot.slane %v1113_v0, 4  ;;  %v1142_v15 = vrot.slane %v1140_v1, 5  ;;  %v181_v50 = vld [vmem:[%s4730_s20 + $0x90] sm:$0xf] }
  0x41   : > { %v4928_v3 = vcombine.low %v1085_v43, %v1095_v62  ;;  %6213 = vst [vmem:[#allocation10_spill] sm:$0xff] %v4933_v13  ;;  %v1127_v17 = vor.u32 %v1126_v4, %v1123_v55  ;;  %v1137_v19 = vor.u32 %v1136_v8, %v1132_v5  ;;  %v1145_v16 = vshrl.u32 %v175_v53, 16  ;;  %v183_v4 = vld [vmem:[%s4730_s20 + $0x98] sm:$0x1] }
  0x42   : > { %v1148_v20 = vshll.u32 %v175_v53, 16  ;;  %v1119_v23 = vsel %vm4807_vm4, %v1114_v11, %v1118_v42  ;;  %v1154_v25 = vshll.u32 %v176_v61, 16  ;;  %v1158_v26 = vshrl.u32 %v176_v61, 16 }
  0x43   : > { %4358 = vmatmul.mubr.msk.bf16.gmra.mxu0 %vm393_vm1, %v4897_v7  ;;  %6212 = vst [vmem:[#allocation9_spill] sm:$0xff] %v4928_v3  ;;  %v1164_v27 = vshll.u32 %v177_v9, 16  ;;  %v4946_v31 = vcombine.low %v1109_v10, %v1119_v23  ;;  %v1128_v32 = vrot.slane %v1127_v17, 4  ;;  %v1138_v33 = vrot.slane %v1137_v19, 4  ;;  %v232_v7 = vld [vmem:[%s4730_s20 + $0x1a0] sm:$0x1] }
  0x44   : > { %4324 = vmatmul.mubr.msk.bf16.gmra.mxu1 %vm393_vm1, %v4856_v12  ;;  %4361 = vmatprep.mubr.msk.bf16.mxu0 %vm393_vm1, %v4910_v29  ;;  %v1147_v34 = vrot.slane %v1145_v16, 4  ;;  %v4948_v35 = vcombine.low %v175_v53, %v176_v61  ;;  %v1150_v37 = vrot.slane %v1148_v20, 5  ;;  %v1156_v38 = vrot.slane %v1154_v25, 5  ;;  %v182_v61 = vld [vmem:[%s4730_s20 + $0x94] sm:$0xf] }
  0x45   : > { %4327 = vmatprep.mubr.msk.bf16.mxu1 %vm393_vm1, %v4885_v54  ;;  %6214 = vst [vmem:[#allocation11_spill] sm:$0xff] %v4946_v31  ;;  %v1160_v40 = vrot.slane %v1158_v26, 4  ;;  %v1133_v41 = vsel %vm4807_vm4, %v1128_v32, %v1132_v5  ;;  %v1143_v43 = vsel %vm4807_vm4, %v1138_v33, %v1142_v15  ;;  %v1166_v45 = vrot.slane %v1164_v27, 5  ;;  %v184_v16 = vld [vmem:[%s4730_s20 + $0x9c] sm:$0xf]  ;;  %v4654_v29 = vld [vmem:[%s4730_s20 + $0x2f4] sm:$0xff]  }
  0x46   : > { %6215 = vst [vmem:[#allocation12_spill] sm:$0xff] %v4948_v35  ;;  %v1169_v46 = vshrl.u32 %v178_v22, 16  ;;  %v4957_v51 = vcombine.low %v1133_v41, %v1143_v43  ;;  %v1151_v52 = vor.u32 %v1150_v37, %v1147_v34  ;;  %v1172_v53 = vshll.u32 %v178_v22, 16  ;;  %v185_v26 = vld [vmem:[%s4730_s20 + $0xa0] sm:$0xf] }
  0x47   : > { %v1161_v42 = vor.u32 %v1160_v40, %v1156_v38  ;;  %v1178_v57 = vshll.u32 %v179_v24, 16  ;;  %v1182_v58 = vshrl.u32 %v179_v24, 16  ;;  %v1188_v60 = vshll.u32 %v180_v28, 16  ;;  %v186_v40 = vld [vmem:[%s4730_s20 + $0xa4] sm:$0x1] }
  0x48   : > { %6216 = vst [vmem:[#allocation13_spill] sm:$0xff] %v4957_v51  ;;  %v1171_v55 = vrot.slane %v1169_v46, 4  ;;  %v1152_v62 = vrot.slane %v1151_v52, 4  ;;  %v4960_v0 = vcombine.low %v178_v22, %v179_v24  ;;  %v1174_v1 = vrot.slane %v1172_v53, 5  ;;  %v187_v52 = vld [vmem:[%s4730_s20 + $0xa8] sm:$0xf] }
  0x49   : > { %v1162_v63 = vrot.slane %v1161_v42, 4  ;;  %v1180_v5 = vrot.slane %v1178_v57, 5  ;;  %v1184_v8 = vrot.slane %v1182_v58, 4  ;;  %v1190_v9 = vrot.slane %v1188_v60, 5 }
  0x4a   : > { %6217 = vst [vmem:[#allocation14_spill] sm:$0xff] %v4960_v0  ;;  %v1193_v10 = vshrl.u32 %v181_v50, 16  ;;  %v1157_v11 = vsel %vm4807_vm4, %v1152_v62, %v1156_v38  ;;  %v1175_v17 = vor.u32 %v1174_v1, %v1171_v55  ;;  %v1196_v19 = vshll.u32 %v181_v50, 16  ;;  %v188_v62 = vld [vmem:[%s4730_s20 + $0xac] sm:$0xf] }
  0x4b   : > { %4362 = vmatmul.mubr.msk.bf16.gmra.mxu0 %vm393_vm1, %v4928_v3  ;;  %v1167_v15 = vsel %vm4807_vm4, %v1162_v63, %v1166_v45  ;;  %v1185_v22 = vor.u32 %v1184_v8, %v1180_v5  ;;  %v1202_v25 = vshll.u32 %v182_v61, 16  ;;  %v1206_v28 = vshrl.u32 %v182_v61, 16  ;;  %v189_v8 = vld [vmem:[%s4730_s20 + $0xb0] sm:$0x1] }
  0x4c   : > { %4328 = vmatmul.mubr.msk.bf16.gmra.mxu1 %vm393_vm1, %v4903_v21  ;;  %4365 = vmatprep.mubr.msk.bf16.mxu0 %vm393_vm1, %v4946_v31  ;;  %v4974_v20 = vcombine.low %v1157_v11, %v1167_v15  ;;  %v1195_v23 = vrot.slane %v1193_v10, 4  ;;  %v1176_v27 = vrot.slane %v1175_v17, 4  ;;  %v1198_v24 = vrot.slane %v1196_v19, 5  ;;  %v4652_v31 = vld [vmem:[%s4730_s20 + $0x2e8] sm:$0xff]  }
  0x4d   : > { %4331 = vmatprep.mubr.msk.bf16.mxu1 %vm393_vm1, %v4922_v44  ;;  %v1212_v32 = vshll.u32 %v183_v4, 16  ;;  %v1186_v33 = vrot.slane %v1185_v22, 4  ;;  %v4979_v34 = vcombine.low %v181_v50, %v182_v61  ;;  %v1204_v37 = vrot.slane %v1202_v25, 5  ;;  %v5279_v44 = vld [vmem:[%s4730_s20 + $0x250] sm:$0xf] }
  0x4e   : > { %6218 = vst [vmem:[#allocation15_spill] sm:$0xff] %v4974_v20  ;;  %v1217_v38 = vshrl.u32 %v184_v16, 16  ;;  %v1181_v41 = vsel %vm4807_vm4, %v1176_v27, %v1180_v5  ;;  %v1208_v43 = vrot.slane %v1206_v28, 4  ;;  %v1199_v45 = vor.u32 %v1198_v24, %v1195_v23  ;;  %v190_v23 = vld [vmem:[%s4730_s20 + $0xb4] sm:$0xf]  ;;  %6232 = vst [vmem:[#allocation29_spill] sm:$0xff] %v5279_v44 }
  0x4f   : > { %6219 = vst [vmem:[#allocation16_spill] sm:$0xff] %v4979_v34  ;;  %v1214_v46 = vrot.slane %v1212_v32, 5  ;;  %v1191_v42 = vsel %vm4807_vm4, %v1186_v33, %v1190_v9  ;;  %v1220_v55 = vshll.u32 %v184_v16, 16  ;;  %v1226_v57 = vshll.u32 %v185_v26, 16  ;;  %v191_v28 = vld [vmem:[%s4730_s20 + $0xb8] sm:$0xf] }
  0x50   : > { %v1219_v53 = vrot.slane %v1217_v38, 4  ;;  %v4987_v50 = vcombine.low %v1181_v41, %v1191_v42  ;;  %v1200_v58 = vrot.slane %v1199_v45, 4  ;;  %v1209_v60 = vor.u32 %v1208_v43, %v1204_v37 }
  0x51   : > { %v1230_v61 = vshrl.u32 %v185_v26, 16  ;;  %v4990_v63 = vcombine.low %v184_v16, %v185_v26  ;;  %v1222_v1 = vrot.slane %v1220_v55, 5  ;;  %v1228_v4 = vrot.slane %v1226_v57, 5  ;;  %v192_v57 = vld [vmem:[%s4730_s20 + $0xbc] sm:$0x1] }
  0x52   : > { %6220 = vst [vmem:[#allocation17_spill] sm:$0xff] %v4987_v50  ;;  %v1236_v5 = vshll.u32 %v186_v40, 16  ;;  %v1205_v9 = vsel %vm4807_vm4, %v1200_v58, %v1204_v37  ;;  %v1210_v10 = vrot.slane %v1209_v60, 4  ;;  %v1241_v15 = vshrl.u32 %v187_v52, 16 }
  0x53   : > { %4366 = vmatmul.mubr.msk.bf16.gmra.mxu0 %vm393_vm1, %v4957_v51  ;;  %6221 = vst [vmem:[#allocation18_spill] sm:$0xff] %v4990_v63  ;;  %v1232_v11 = vrot.slane %v1230_v61, 4  ;;  %v1223_v17 = vor.u32 %v1222_v1, %v1219_v53  ;;  %v1244_v16 = vshll.u32 %v187_v52, 16  ;;  %v1250_v22 = vshll.u32 %v188_v62, 16 }
  0x54   : > { %4332 = vmatmul.mubr.msk.bf16.gmra.mxu1 %vm393_vm1, %v4933_v13  ;;  %4369 = vmatprep.mubr.msk.bf16.mxu0 %vm393_vm1, %v4974_v20  ;;  %v1238_v19 = vrot.slane %v1236_v5, 5  ;;  %v1215_v25 = vsel %vm4807_vm4, %v1210_v10, %v1214_v46  ;;  %v1243_v27 = vrot.slane %v1241_v15, 4  ;;  %v1254_v24 = vshrl.u32 %v188_v62, 16 }
  0x55   : > { %4335 = vmatprep.mubr.msk.bf16.mxu1 %vm393_vm1, %v4948_v35  ;;  %v1233_v26 = vor.u32 %v1232_v11, %v1228_v4  ;;  %v5005_v32 = vcombine.low %v1205_v9, %v1215_v25  ;;  %v1224_v33 = vrot.slane %v1223_v17, 4  ;;  %v1246_v37 = vrot.slane %v1244_v16, 5  ;;  %v5032_v25 = vld [vmem:[%s4730_s20 + $0x19c] sm:$0xf]  ;;  %v238_v35 = vld [vmem:[%s4730_s20 + $0x1b8] sm:$0x1] }
  0x56   : > { %v1252_v38 = vrot.slane %v1250_v22, 5  ;;  %v5007_v41 = vcombine.low %v187_v52, %v188_v62  ;;  %v1256_v43 = vrot.slane %v1254_v24, 4  ;;  %v1260_v45 = vshll.u32 %v189_v8, 16  ;;  %v5029_v22 = vld [vmem:[%s4730_s20 + $0x198] sm:$0xf] }
  0x57   : > { %6222 = vst [vmem:[#allocation19_spill] sm:$0xff] %v5005_v32  ;;  %v1234_v40 = vrot.slane %v1233_v26, 4  ;;  %v1229_v46 = vsel %vm4807_vm4, %v1224_v33, %v1228_v4  ;;  %v1247_v42 = vor.u32 %v1246_v37, %v1243_v27  ;;  %v1265_v53 = vshrl.u32 %v190_v23, 16 }
  0x58   : > { %6223 = vst [vmem:[#allocation20_spill] sm:$0xff] %v5007_v41  ;;  %v1268_v55 = vshll.u32 %v190_v23, 16  ;;  %v1257_v60 = vor.u32 %v1256_v43, %v1252_v38  ;;  %v1262_v61 = vrot.slane %v1260_v45, 5  ;;  %v1274_v1 = vshll.u32 %v191_v28, 16 }
  0x59   : > { %v1239_v58 = vsel %vm4807_vm4, %v1234_v40, %v1238_v19  ;;  %v1248_v62 = vrot.slane %v1247_v42, 4  ;;  %v1267_v5 = vrot.slane %v1265_v53, 4  ;;  %v1278_v10 = vshrl.u32 %v191_v28, 16  ;;  %v5056_v42 = vld [vmem:[%s4730_s20 + $0x1a8] sm:$0xf] }
  0x5a   : > { %v5016_v52 = vcombine.low %v1229_v46, %v1239_v58  ;;  %v1270_v8 = vrot.slane %v1268_v55, 5  ;;  %v1258_v4 = vrot.slane %v1257_v60, 4  ;;  %v1276_v9 = vrot.slane %v1274_v1, 5  ;;  %v5053_v46 = vld [vmem:[%s4730_s20 + $0x1a4] sm:$0xf]  ;;  %v4632_v60 = vld [vmem:[%s4730_s20 + $0x270] sm:$0xff]  }
  0x5b   : > { %4370 = vmatmul.mubr.msk.bf16.gmra.mxu0 %vm393_vm1, %v4987_v50  ;;  %v1284_v11 = vshll.u32 %v192_v57, 16  ;;  %v1253_v15 = vsel %vm4807_vm4, %v1248_v62, %v1252_v38  ;;  %v1280_v16 = vrot.slane %v1278_v10, 4  ;;  %v5036_v24 = vcombine.low %v190_v23, %v191_v28  ;;  %v4630_v28 = vld [vmem:[%s4730_s20 + $0x264] sm:$0xff]   ;;  %v5059_v53 = vld [vmem:[%s4730_s20 + $0x1b0] sm:$0xf]  ;;  %v4638_v10 = vld [vmem:[%s4730_s20 + $0x294] sm:$0xff]  }
  0x5c   : > { %4336 = vmatmul.mubr.msk.bf16.gmra.mxu1 %vm393_vm1, %v4960_v0  ;;  %4373 = vmatprep.mubr.msk.bf16.mxu0 %vm393_vm1, %v5005_v32  ;;  %6224 = vst [vmem:[#allocation21_spill] sm:$0xff] %v5016_v52  ;;  %v1271_v17 = vor.u32 %v1270_v8, %v1267_v5  ;;  %v1263_v19 = vsel %vm4807_vm4, %v1258_v4, %v1262_v61  ;;  %v5062_v55 = vld [vmem:[%s4730_s20 + $0x1b4] sm:$0xf]  ;;  %v4634_v61 = vld [vmem:[%s4730_s20 + $0x27c] sm:$0xff]   ;;  %v5083_v5 = vld [vmem:[%s4730_s20 + $0x1c8] sm:$0xf] }
  0x5d   : > { %4339 = vmatprep.mubr.msk.bf16.mxu1 %vm393_vm1, %v4979_v34  ;;  %v5034_v26 = vcombine.low %v1253_v15, %v1263_v19  ;;  %6226 = vst [vmem:[#allocation23_spill] sm:$0xff] %v5036_v24  ;;  %v1281_v33 = vor.u32 %v1280_v16, %v1276_v9  ;;  %v1286_v37 = vrot.slane %v1284_v11, 5  ;;  %v3907_v38 = vcombine.low %v5029_v22, %v5032_v25  ;;  %v5077_v1 = vld [vmem:[%s4730_s20 + $0x1bc] sm:$0xf]  ;;  %v5080_v62 = vld [vmem:[%s4730_s20 + $0x1c0] sm:$0xf] }
  0x5e   : > { %v1272_v27 = vrot.slane %v1271_v17, 4  ;;  %v3908_v57 = vcombine.low %v5053_v46, %v5056_v42  ;;  %v3909_v58 = vcombine.low %v5059_v53, %v5062_v55  ;;  %v5086_v8 = vld [vmem:[%s4730_s20 + $0x1cc] sm:$0xf]  ;;  %v5103_v11 = vld [vmem:[%s4730_s20 + $0x1d8] sm:$0xf]  ;;  %v2272_v3 = vshrl.u32 %v5056_v42, 16 }
  0x5f   : > { %6225 = vst [vmem:[#allocation22_spill] sm:$0xff] %v5034_v26  ;;  %v1282_v43 = vrot.slane %v1281_v33, 4  ;;  %v3911_v4 = vcombine.low %v5083_v5, %v5086_v8  ;;  %v5106_v15 = vld [vmem:[%s4730_s20 + $0x1e0] sm:$0xf]  ;;  %v5109_v17 = vld [vmem:[%s4730_s20 + $0x1e4] sm:$0xf] }
  0x60   : > { %v1277_v40 = vsel %vm4807_vm4, %v1272_v27, %v1276_v9  ;;  %v4636_v9 = vld [vmem:[%s4730_s20 + $0x288] sm:$0xff]   ;;  %v3913_v16 = vcombine.low %v5106_v15, %v5109_v17  ;;  %v4640_v27 = vld [vmem:[%s4730_s20 + $0x2a0] sm:$0xff]   ;;  %v2316_v59 = vshll.u32 %v5080_v62, 16  ;;  %v2331_v34 = vshrl.u32 %v5083_v5, 16 }
  0x61   : > { %v1287_v23 = vsel %vm4807_vm4, %v1282_v43, %v1286_v37  ;;  %v4642_v33 = vld [vmem:[%s4730_s20 + $0x2ac] sm:$0xff]   ;;  %v5131_v43 = vld [vmem:[%s4730_s20 + $0x1fc] sm:$0xf]  ;;  %v2334_v0 = vshll.u32 %v5083_v5, 16 }
  0x62   : > { %v5049_v45 = vcombine.low %v1277_v40, %v1287_v23  ;;  %v5122_v37 = vld [vmem:[%s4730_s20 + $0x1ec] sm:$0xf]  ;;  %v5128_v40 = vld [vmem:[%s4730_s20 + $0x1f8] sm:$0xf] }
  0x63   : > { %4374 = vmatmul.mubr.msk.bf16.gmra.mxu0 %vm393_vm1, %v5016_v52  ;;  %v5193_v52 = vld [vmem:[%s4730_s20 + $0x22c] sm:$0xf]  ;;  %v5265_v13 = vrot.slane %v2334_v0, 5 }
  0x64   : > { %4340 = vmatmul.mubr.msk.bf16.gmra.mxu1 %vm393_vm1, %v4990_v63  ;;  %4377 = vmatprep.mubr.msk.bf16.mxu0 %vm393_vm1, %v5034_v26  ;;  %6227 = vst [vmem:[#allocation24_spill] sm:$0xff] %v5049_v45  ;;  %v2248_v26 = vshrl.u32 %v5032_v25, 16 }
  0x65   : > { %4343 = vmatprep.mubr.msk.bf16.mxu1 %vm393_vm1, %v5007_v41  ;;  %v2274_v41 = vrot.slane %v2272_v3, 4 }
  0x6b   : > { %4378 = vmatmul.mubr.msk.bf16.gmra.mxu0 %vm393_vm1, %v5049_v45  ;;  %v2244_v45 = vshll.u32 %v5032_v25, 16 }
  0x6c   : > { %4344 = vmatmul.mubr.msk.bf16.gmra.mxu1 %vm393_vm1, %v5036_v24  ;;  %4417 = vmatprep.mubr.msk.bf16.mxu0 %vm393_vm1, %v4630_v28  ;;  %v3915_v28 = vcombine.low %v5128_v40, %v5131_v43  ;;  %v2254_v24 = vshll.u32 %v232_v7, 16 }
  0x6d   : > { %4383 = vmatprep.mubr.msk.bf16.mxu1 %vm393_vm1, %v3907_v38  ;;  %v5125_v38 = vld [vmem:[%s4730_s20 + $0x1f0] sm:$0xf]  ;;  %v5204_v51 = vrot.slane %v2244_v45, 5  ;;  %v2292_v45 = vshll.u32 %v5062_v55, 16 }
  0x6e   : > { %v3914_v23 = vcombine.low %v5122_v37, %v5125_v38 }
  0x73   : > { %4418 = vmatmul.mubr.msk.bf16.vlgmr.msra.gmra.mxu0 %vm393_vm1, %v4632_v60  ;;  %v4041_v60 = vld [vmem:[%s6168_s1 + $0x8] sm:$0x1] }
  0x74   : > { %4384 = vmatmul.mubr.msk.bf16.vlgmr.msra.gmra.mxu1 %vm393_vm1, %v3908_v57  ;;  %4484 = vmatpush3.bf16.msra.mxu0 %v4791_v36  ;;  %v5100_v36 = vld [vmem:[%s4730_s20 + $0x1d4] sm:$0xf]  ;;  %v4023_v57 = vld [vmem:[%s6168_s1 + $0x7] sm:$0x1] }
  0x75   : > { %4450 = vmatpush3.bf16.msra.mxu1 %v4783_v30  ;;  %4387 = vmatprep.mubr.msk.bf16.mxu1 %vm393_vm1, %v3909_v58  ;;  %v3910_v30 = vcombine.low %v5077_v1, %v5080_v62  ;;  %v3912_v19 = vcombine.low %v5100_v36, %v5103_v11  ;;  %v4644_v58 = vld [vmem:[%s4730_s20 + $0x2b8] sm:$0xff]  }
  0x76   : > { %4421 = vmatprep.mubr.msk.bf16.mxu0 %vm393_vm1, %v4634_v61  ;;  %v4646_v61 = vld [vmem:[%s4730_s20 + $0x2c4] sm:$0xff]  }
  0x7b   : > { %4422 = vmatmul.mubr.msk.bf16.gmra.mxu0 %vm393_vm1, %v4636_v9  ;;  %v5156_v9 = vld [vmem:[%s4730_s20 + $0x208] sm:$0xf] }
  0x7c   : > { %4388 = vmatmul.mubr.msk.bf16.gmra.mxu1 %vm393_vm1, %v3910_v30  ;;  %4425 = vmatprep.mubr.msk.bf16.mxu0 %vm393_vm1, %v4638_v10  ;;  %v5149_v30 = vand.u32 %v4023_v57, %v4713_v2  ;;  %v5159_v10 = vld [vmem:[%s4730_s20 + $0x210] sm:$0xf]  ;;  %v5183_v57 = vld [vmem:[%s4730_s20 + $0x220] sm:$0xf] }
  0x7d   : > { %4391 = vmatprep.mubr.msk.bf16.mxu1 %vm393_vm1, %v3911_v4  ;;  %v5153_v4 = vld [vmem:[%s4730_s20 + $0x204] sm:$0xf] }
  0x7e   : > { %4517 = vmatprep.subr.bf16.mxu1 %v5149_v30 }
  0x83   : > { %4426 = vmatmul.mubr.msk.bf16.gmra.mxu0 %vm393_vm1, %v4640_v27  ;;  %v3916_v27 = vcombine.low %v5153_v4, %v5156_v9 }
  0x84   : > { %4392 = vmatmul.mubr.msk.bf16.gmra.mxu1 %vm393_vm1, %v3912_v19  ;;  %4429 = vmatprep.mubr.msk.bf16.mxu0 %vm393_vm1, %v4642_v33  ;;  %v5162_v19 = vld [vmem:[%s4730_s20 + $0x214] sm:$0xf] }
  0x85   : > { %4395 = vmatprep.mubr.msk.bf16.mxu1 %vm393_vm1, %v3913_v16  ;;  %v5166_v16 = vand.u32 %v4041_v60, %v4713_v2  ;;  %v3917_v33 = vcombine.low %v5159_v10, %v5162_v19  ;;  %v5180_v2 = vld [vmem:[%s4730_s20 + $0x21c] sm:$0xf]  ;;  %v2235_v60 = vshrl.u32 %v5029_v22, 16 }
  0x86   : > { %v3918_v32 = vcombine.low %v5180_v2, %v5183_v57 }
  0x87   : > { %4551 = vmatprep.subr.bf16.mxu0 %v5166_v16  ;;  %v2237_v50 = vrot.slane %v2235_v60, 4 }
  0x8b   : > { %4430 = vmatmul.mubr.msk.bf16.gmra.mxu0 %vm393_vm1, %v4644_v58  ;;  %v5186_v58 = vld [vmem:[%s4730_s20 + $0x228] sm:$0xf] }
  0x8c   : > { %4396 = vmatmul.mubr.msk.bf16.gmra.mxu1 %vm393_vm1, %v3914_v23  ;;  %4433 = vmatprep.mubr.msk.bf16.mxu0 %vm393_vm1, %v4646_v61  ;;  %v4648_v23 = vld [vmem:[%s4730_s20 + $0x2d0] sm:$0xff]   ;;  %v2238_v61 = vshll.u32 %v5029_v22, 16  ;;  %v2268_v22 = vshll.u32 %v5056_v42, 16  ;;  %v3919_v25 = vcombine.low %v5186_v58, %v5193_v52 }
  0x8d   : > { %4399 = vmatprep.mubr.msk.bf16.mxu1 %vm393_vm1, %v3915_v28  ;;  %v4650_v28 = vld [vmem:[%s4730_s20 + $0x2dc] sm:$0xff]   ;;  %v5220_v42 = vld [vmem:[%s4730_s20 + $0x234] sm:$0xf] }
  0x8e   : > { %v2240_v20 = vrot.slane %v2238_v61, 5  ;;  %v5222_v60 = vrot.slane %v2268_v22, 5  ;;  %v2310_v61 = vshll.u32 %v5077_v1, 16 }
  0x90   : > { %v5249_v3 = vrot.slane %v2310_v61, 5  ;;  %v2355_v61 = vshrl.u32 %v5100_v36, 16  ;;  %v2275_v0 = vor.u32 %v2274_v41, %v5222_v60  ;;  %v2379_v41 = vshrl.u32 %v5106_v15, 16 }
  0x93   : > { %4434 = vmatmul.mubr.msk.bf16.gmra.mxu0 %vm393_vm1, %v4648_v23  ;;  %v2250_v23 = vrot.slane %v2248_v26, 4  ;;  %v2296_v26 = vshrl.u32 %v5062_v55, 16  ;;  %v5236_v55 = vld [vmem:[%s4730_s20 + $0x244] sm:$0xf] }
  0x94   : > { %4400 = vmatmul.mubr.msk.bf16.gmra.mxu1 %vm393_vm1, %v3916_v27  ;;  %v2259_v27 = vshrl.u32 %v5053_v46, 16  ;;  %4437 = vmatprep.mubr.msk.bf16.mxu0 %vm393_vm1, %v4650_v28  ;;  %v2286_v28 = vshll.u32 %v5059_v53, 16  ;;  %6230 = vst [vmem:[#allocation27_spill] sm:$0xff] %v5236_v55 }
  0x95   : > { %4403 = vmatprep.mubr.msk.bf16.mxu1 %vm393_vm1, %v3917_v33  ;;  %v2262_v33 = vshll.u32 %v5053_v46, 16  ;;  %v2283_v46 = vshrl.u32 %v5059_v53, 16  ;;  %v2307_v53 = vshrl.u32 %v5077_v1, 16  ;;  %v2251_v22 = vor.u32 %v2250_v23, %v5204_v51  ;;  %v4656_v23 = vld [vmem:[%s4730_s20 + $0x300] sm:$0xff]  }
  0x96   : > { %v5212_v47 = vrot.slane %v2259_v27, 4  ;;  %v5229_v27 = vld [vmem:[%s4730_s20 + $0x238] sm:$0xf]  ;;  %v2288_v1 = vrot.slane %v2286_v28, 5 }
  0x97   : > { %v5214_v14 = vrot.slane %v2262_v33, 5  ;;  %6228 = vst [vmem:[#allocation25_spill] sm:$0xff] %v5229_v27  ;;  %v2320_v33 = vshrl.u32 %v5080_v62, 16  ;;  %v2285_v63 = vrot.slane %v2283_v46, 4  ;;  %v2298_v62 = vrot.slane %v2296_v26, 4 }
  0x98   : > { %v5247_v7 = vrot.slane %v2307_v53, 4  ;;  %v2252_v28 = vrot.slane %v2251_v22, 4  ;;  %v5259_v26 = vrot.slane %v2331_v34, 4  ;;  %v2340_v53 = vshll.u32 %v5086_v8, 16 }
  0x99   : > { %v5256_v46 = vrot.slane %v2320_v33, 4  ;;  %v2358_v33 = vshll.u32 %v5100_v36, 16  ;;  %v2265_v34 = vor.u32 %v5214_v14, %v5212_v47  ;;  %v2368_v22 = vshrl.u32 %v5103_v11, 16 }
  0x9a   : > { %v2289_v36 = vor.u32 %v2288_v1, %v2285_v63 }
  0x9b   : > { %4438 = vmatmul.mubr.msk.bf16.gmra.mxu0 %vm393_vm1, %v4652_v31  ;;  %v3921_v31 = vcombine.low %v5233_v49, %v5236_v55  ;;  %v5294_v63 = vrot.slane %v2358_v33, 5  ;;  %v241_v33 = vld [vmem:[%s4730_s20 + $0x1c4] sm:$0x1] }
  0x9c   : > { %4404 = vmatmul.mubr.msk.bf16.gmra.mxu1 %vm393_vm1, %v3918_v32  ;;  %v2241_v32 = vor.u32 %v2240_v20, %v2237_v50  ;;  %4441 = vmatprep.mubr.msk.bf16.mxu0 %vm393_vm1, %v4654_v29  ;;  %v3920_v20 = vcombine.low %v5220_v42, %v5229_v27  ;;  %v5251_v50 = vrot.slane %v2316_v59, 5  ;;  %v2256_v29 = vrot.slane %v2254_v24, 5  ;;  %v4658_v24 = vld [vmem:[%s4730_s20 + $0x30c] sm:$0xff]  }
  0x9d   : > { %4407 = vmatprep.mubr.msk.bf16.mxu1 %vm393_vm1, %v3919_v25  ;;  %v5241_v25 = vrot.slane %v2292_v45, 5  ;;  %v235_v45 = vld [vmem:[%s4730_s20 + $0x1ac] sm:$0x1]  ;;  %v2344_v59 = vshrl.u32 %v5086_v8, 16  ;;  %v5290_v27 = vrot.slane %v2355_v61, 4 }
  0x9e   : > { %v2242_v5 = vrot.slane %v2241_v32, 4  ;;  %v2364_v32 = vshll.u32 %v5103_v11, 16  ;;  %v5276_v8 = vld [vmem:[%s4730_s20 + $0x24c] sm:$0xf]  ;;  %v2278_v55 = vshll.u32 %v235_v45, 16  ;;  %v2257_v14 = vsel %vm4807_vm4, %v2252_v28, %v2256_v29 }
  0x9f   : > { %6231 = vst [vmem:[#allocation28_spill] sm:$0xff] %v5276_v8  ;;  %v2299_v47 = vor.u32 %v2298_v62, %v5241_v25  ;;  %v2302_v11 = vshll.u32 %v238_v35, 16  ;;  %v2346_v49 = vrot.slane %v2344_v59, 4  ;;  %v2266_v35 = vrot.slane %v2265_v34, 4 }
  0xa0   : > { %v5296_v1 = vrot.slane %v2364_v32, 5  ;;  %v2382_v62 = vshll.u32 %v5106_v15, 16  ;;  %v2276_v29 = vrot.slane %v2275_v0, 4  ;;  %v2280_v45 = vrot.slane %v2278_v55, 5 }
  0xa1   : > { %v2300_v59 = vrot.slane %v2299_v47, 4  ;;  %v2304_v61 = vrot.slane %v2302_v11, 5  ;;  %v5306_v32 = vrot.slane %v2379_v41, 4  ;;  %v2403_v34 = vshrl.u32 %v5122_v37, 16 }
  0xa2   : > { %v2406_v15 = vshll.u32 %v5122_v37, 16  ;;  %v2412_v0 = vshll.u32 %v5125_v38, 16  ;;  %v2271_v55 = vsel %vm4807_vm4, %v2266_v35, %v5222_v60  ;;  %v2326_v37 = vshll.u32 %v241_v33, 16 }
  0xa3   : > { %4442 = vmatmul.mubr.msk.bf16.gmra.mxu0 %vm393_vm1, %v4656_v23  ;;  %v2290_v23 = vrot.slane %v2289_v36, 4  ;;  %v2323_v36 = vor.u32 %v5256_v46, %v5251_v50  ;;  %v2305_v60 = vsel %vm4807_vm4, %v2300_v59, %v2304_v61  ;;  %v2384_v47 = vrot.slane %v2382_v62, 5  ;;  %v250_v61 = vld [vmem:[%s4730_s20 + $0x1e8] sm:$0x1] }
  0xa4   : > { %4408 = vmatmul.mubr.msk.bf16.gmra.mxu1 %vm393_vm1, %v3920_v20  ;;  %v2247_v20 = vsel %vm4807_vm4, %v2242_v5, %v5204_v51  ;;  %4445 = vmatprep.mubr.msk.bf16.mxu0 %vm393_vm1, %v4658_v24  ;;  %v3922_v51 = vcombine.low %v5276_v8, %v5279_v44  ;;  %v4660_v5 = vld [vmem:[%s4730_s20 + $0x318] sm:$0xff]   ;;  %v2388_v24 = vshll.u32 %v5109_v17, 16  ;;  %v2392_v44 = vshrl.u32 %v5109_v17, 16  ;;  %v244_v8 = vld [vmem:[%s4730_s20 + $0x1d0] sm:$0x1] }
  0xa5   : > { %4411 = vmatprep.mubr.msk.bf16.mxu1 %vm393_vm1, %v3921_v31  ;;  %v5288_v31 = vrot.slane %v2340_v53, 5  ;;  %v3973_v28 = vcombine.low %v2247_v20, %v2257_v14  ;;  %v5303_v53 = vrot.slane %v2368_v22, 4  ;;  %v2313_v22 = vor.u32 %v5249_v3, %v5247_v7 }
  0xa6   : > { %v2281_v17 = vsel %vm4807_vm4, %v2276_v29, %v2280_v45  ;;  %v2337_v20 = vor.u32 %v5265_v13, %v5259_v26  ;;  %v2295_v14 = vsel %vm4807_vm4, %v2290_v23, %v5241_v25  ;;  %v2350_v3 = vshll.u32 %v244_v8, 16  ;;  %v247_v29 = vld [vmem:[%s4730_s20 + $0x1dc] sm:$0x1] }
  0xa7   : > { %v2347_v7 = vor.u32 %v2346_v49, %v5288_v31  ;;  %v5333_v11 = vrot.slane %v2388_v24, 5  ;;  %v2394_v41 = vrot.slane %v2392_v44, 4  ;;  %v2416_v46 = vshrl.u32 %v5125_v38, 16 }
  0xa8   : > { %v5337_v13 = vrot.slane %v2403_v34, 4  ;;  %v5339_v26 = vrot.slane %v2406_v15, 5  ;;  %v3974_v25 = vcombine.low %v2271_v55, %v2281_v17  ;;  %v2314_v49 = vrot.slane %v2313_v22, 4 }
  0xa9   : > { %v3975_v8 = vcombine.low %v2295_v14, %v2305_v60  ;;  %v2328_v35 = vrot.slane %v2326_v37, 5  ;;  %v2338_v62 = vrot.slane %v2337_v20, 4  ;;  %v5343_v44 = vrot.slane %v2412_v0, 5 }
  0xaa   : > { %v2427_v38 = vshrl.u32 %v5128_v40, 16  ;;  %v5347_v45 = vrot.slane %v2416_v46, 4  ;;  %v2430_v23 = vshll.u32 %v5128_v40, 16  ;;  %v2440_v59 = vshrl.u32 %v5131_v43, 16 }
  0xab   : > { %4446 = vmatmul.mubr.msk.bf16.gmra.mxu0 %vm393_vm1, %v4660_v5  ;;  %v2352_v5 = vrot.slane %v2350_v3, 5  ;;  %v2451_v33 = vshrl.u32 %v5153_v4, 16  ;;  %v2454_v24 = vshll.u32 %v5153_v4, 16  ;;  %v2319_v34 = vsel %vm4807_vm4, %v2314_v49, %v5251_v50  ;;  %v256_v49 = vld [vmem:[%s4730_s20 + $0x200] sm:$0x1] }
  0xac   : > { %4412 = vmatmul.mubr.msk.bf16.gmra.mxu1 %vm393_vm1, %v3922_v51  ;;  %4485 = vmatprep.mubr.msk.bf16.mxu0 %vm393_vm1, %v4799_v48  ;;  %v2324_v51 = vrot.slane %v2323_v36, 4  ;;  %v2436_v48 = vshll.u32 %v5131_v43, 16  ;;  %v2361_v15 = vor.u32 %v5294_v63, %v5290_v27  ;;  %v2343_v43 = vsel %vm4807_vm4, %v2338_v62, %v5288_v31 }
  0xad   : > { %4451 = vmatprep.mubr.msk.bf16.mxu1 %vm393_vm1, %v3973_v28  ;;  %v2348_v28 = vrot.slane %v2347_v7, 4  ;;  %v2371_v4 = vor.u32 %v5303_v53, %v5296_v1  ;;  %v2374_v0 = vshll.u32 %v247_v29, 16  ;;  %v2385_v27 = vor.u32 %v2384_v47, %v5306_v32 }
  0xae   : > { %v2329_v40 = vsel %vm4807_vm4, %v2324_v51, %v2328_v35  ;;  %v2398_v63 = vshll.u32 %v250_v61, 16  ;;  %v2429_v55 = vrot.slane %v2427_v38, 4  ;;  %v2432_v22 = vrot.slane %v2430_v23, 5 }
  0xaf   : > { %v2353_v50 = vsel %vm4807_vm4, %v2348_v28, %v2352_v5  ;;  %v2460_v17 = vshll.u32 %v5156_v9, 16  ;;  %v2464_v36 = vshrl.u32 %v5156_v9, 16  ;;  %v5378_v31 = vrot.slane %v2436_v48, 5 }
  0xb0   : > { %v2442_v53 = vrot.slane %v2440_v59, 4  ;;  %v3976_v32 = vcombine.low %v2319_v34, %v2329_v40  ;;  %v2362_v37 = vrot.slane %v2361_v15, 4  ;;  %v5383_v20 = vrot.slane %v2451_v33, 4 }
  0xb1   : > { %v3977_v14 = vcombine.low %v2343_v43, %v2353_v50  ;;  %v2372_v60 = vrot.slane %v2371_v4, 4  ;;  %v2376_v9 = vrot.slane %v2374_v0, 5  ;;  %v5385_v7 = vrot.slane %v2454_v24, 5 }
  0xb2   : > { %v2386_v3 = vrot.slane %v2385_v27, 4  ;;  %v2400_v47 = vrot.slane %v2398_v63, 5  ;;  %v5388_v46 = vrot.slane %v2460_v17, 5  ;;  %v2488_v51 = vshrl.u32 %v5162_v19, 16  ;;  %v262_v63 = vld [vmem:[%s4730_s20 + $0x218] sm:$0x1] }
  0xb3   : > { %4486 = vmatmul.mubr.msk.bf16.vlgmr.msra.gmra.mxu0 %vm393_vm1, %v4820_v18  ;;  %v2367_v35 = vsel %vm4807_vm4, %v2362_v37, %v5296_v1  ;;  %v2409_v62 = vor.u32 %v5339_v26, %v5337_v13  ;;  %v2377_v38 = vsel %vm4807_vm4, %v2372_v60, %v2376_v9  ;;  %v2433_v5 = vor.u32 %v2432_v22, %v2429_v55 }
  0xb4   : > { %4452 = vmatmul.mubr.msk.bf16.vlgmr.msra.gmra.mxu1 %vm393_vm1, %v3974_v25  ;;  %4552 = vmatpush3.bf16.msra.mxu0 %v5166_v16  ;;  %v5390_v16 = vrot.slane %v2464_v36, 4  ;;  %v2478_v25 = vshll.u32 %v5159_v10, 16  ;;  %v2443_v29 = vor.u32 %v2442_v53, %v5378_v31  ;;  %v2446_v13 = vshll.u32 %v256_v49, 16 }
  0xb5   : > { %4518 = vmatpush3.bf16.msra.mxu1 %v5149_v30  ;;  %4455 = vmatprep.mubr.msk.bf16.mxu1 %vm393_vm1, %v3975_v8  ;;  %v2395_v30 = vor.u32 %v2394_v41, %v5333_v11  ;;  %v253_v41 = vld [vmem:[%s4730_s20 + $0x1f4] sm:$0x1]  ;;  %v2484_v8 = vshll.u32 %v5162_v19, 16  ;;  %v2391_v19 = vsel %vm4807_vm4, %v2386_v3, %v5333_v11  ;;  %v2499_v48 = vshrl.u32 %v5180_v2, 16 }
  0xb6   : > { %4489 = vmatprep.mubr.msk.bf16.mxu0 %vm393_vm1, %v4833_v39  ;;  %v2475_v39 = vshrl.u32 %v5159_v10, 16  ;;  %v2419_v10 = vor.u32 %v5347_v45, %v5343_v44  ;;  %v2422_v28 = vshll.u32 %v253_v41, 16  ;;  %v2480_v23 = vrot.slane %v2478_v25, 5 }
  0xb7   : > { %v2396_v18 = vrot.slane %v2395_v30, 4  ;;  %v2502_v59 = vshll.u32 %v5180_v2, 16  ;;  %v5418_v45 = vrot.slane %v2484_v8, 5  ;;  %v2490_v61 = vrot.slane %v2488_v51, 4 }
  0xb8   : > { %v2477_v26 = vrot.slane %v2475_v39, 4  ;;  %v3978_v11 = vcombine.low %v2367_v35, %v2377_v38  ;;  %v2410_v33 = vrot.slane %v2409_v62, 4  ;;  %v2420_v34 = vrot.slane %v2419_v10, 4  ;;  %v265_v62 = vld [vmem:[%s4730_s20 + $0x224] sm:$0x1] }
  0xb9   : > { %v2401_v1 = vsel %vm4807_vm4, %v2396_v18, %v2400_v47  ;;  %v2424_v15 = vrot.slane %v2422_v28, 5  ;;  %v2434_v40 = vrot.slane %v2433_v5, 4  ;;  %v2508_v43 = vshll.u32 %v5183_v57, 16  ;;  %v6234_v28 = vld [vmem:[#allocation26_spill] sm:$0xff] }
  0xba   : > { %v3979_v24 = vcombine.low %v2391_v19, %v2401_v1  ;;  %v2512_v2 = vshrl.u32 %v5183_v57, 16  ;;  %v2444_v4 = vrot.slane %v2443_v29, 4  ;;  %v2448_v0 = vrot.slane %v2446_v13, 5  ;;  %v268_v19 = vld [vmem:[%s4730_s20 + $0x230] sm:$0x1]  ;;  %v6235_v1 = vld [vmem:[#allocation27_spill] sm:$0xff] }
  0xbb   : > { %4490 = vmatmul.mubr.msk.bf16.gmra.mxu0 %vm393_vm1, %v4849_v6  ;;  %v259_v6 = vld [vmem:[%s4730_s20 + $0x20c] sm:$0x1]  ;;  %v5425_v50 = vrot.slane %v2499_v48, 4  ;;  %v5427_v27 = vrot.slane %v2502_v59, 5  ;;  %v2526_v30 = vshll.u32 %v5186_v58, 16  ;;  %v2532_v55 = vshll.u32 %v5193_v52, 16 }
  0xbc   : > { %4456 = vmatmul.mubr.msk.bf16.gmra.mxu1 %vm393_vm1, %v3976_v32  ;;  %4493 = vmatprep.mubr.msk.bf16.mxu0 %vm393_vm1, %v4856_v12  ;;  %v2523_v12 = vshrl.u32 %v5186_v58, 16  ;;  %v2536_v22 = vshrl.u32 %v5193_v52, 16  ;;  %v2415_v57 = vsel %vm4807_vm4, %v2410_v33, %v5343_v44  ;;  %v2457_v17 = vor.u32 %v5385_v7, %v5383_v20 }
  0xbd   : > { %4459 = vmatprep.mubr.msk.bf16.mxu1 %vm393_vm1, %v3977_v14  ;;  %v2425_v36 = vsel %vm4807_vm4, %v2420_v34, %v2424_v15  ;;  %v2439_v58 = vsel %vm4807_vm4, %v2434_v40, %v5378_v31  ;;  %v2467_v52 = vor.u32 %v5390_v16, %v5388_v46  ;;  %v2470_v53 = vshll.u32 %v259_v6, 16  ;;  %v6237_v6 = vld [vmem:[#allocation10_spill] sm:$0xff] }
  0xbe   : > { %v2449_v32 = vsel %vm4807_vm4, %v2444_v4, %v2448_v0  ;;  %v2481_v44 = vor.u32 %v2480_v23, %v2477_v26  ;;  %v2491_v37 = vor.u32 %v2490_v61, %v5418_v45  ;;  %v2494_v20 = vshll.u32 %v262_v63, 16 }
  0xbf   : > { %v5451_v14 = vrot.slane %v2508_v43, 5  ;;  %v2514_v60 = vrot.slane %v2512_v2, 4  ;;  %v2525_v9 = vrot.slane %v2523_v12, 4  ;;  %v2547_v7 = vshrl.u32 %v5220_v42, 16  ;;  %v6236_v2 = vld [vmem:[#allocation8_spill] sm:$0xff] }
  0xc0   : > { %v2528_v31 = vrot.slane %v2526_v30, 5  ;;  %v5456_v3 = vrot.slane %v2532_v55, 5  ;;  %v3980_v18 = vcombine.low %v2415_v57, %v2425_v36  ;;  %v2458_v47 = vrot.slane %v2457_v17, 4  ;;  %v271_v36 = vld [vmem:[%s4730_s20 + $0x23c] sm:$0x1] }
  0xc1   : > { %v2550_v41 = vshll.u32 %v5220_v42, 16  ;;  %v3981_v16 = vcombine.low %v2439_v58, %v2449_v32  ;;  %v2468_v39 = vrot.slane %v2467_v52, 4  ;;  %v2472_v25 = vrot.slane %v2470_v53, 5  ;;  %v6238_v58 = vld [vmem:[#allocation28_spill] sm:$0xff] }
  0xc2   : > { %v2538_v49 = vrot.slane %v2536_v22, 4  ;;  %v2482_v8 = vrot.slane %v2481_v44, 4  ;;  %v2492_v51 = vrot.slane %v2491_v37, 4  ;;  %v2496_v35 = vrot.slane %v2494_v20, 5  ;;  %v274_v44 = vld [vmem:[%s4730_s20 + $0x248] sm:$0x1] }
  0xc3   : > { %4494 = vmatmul.mubr.msk.bf16.gmra.mxu0 %vm393_vm1, %v4885_v54  ;;  %v6233_v54 = vld [vmem:[#allocation25_spill] sm:$0xff]  ;;  %v2571_v5 = vshrl.u32 %v6234_v28, 16  ;;  %v2580_v29 = vshll.u32 %v6235_v1, 16  ;;  %v2584_v42 = vshrl.u32 %v6235_v1, 16  ;;  %v2463_v13 = vsel %vm4807_vm4, %v2458_v47, %v5388_v46 }
  0xc4   : > { %4460 = vmatmul.mubr.msk.bf16.gmra.mxu1 %vm393_vm1, %v3978_v11  ;;  %4497 = vmatprep.mubr.msk.bf16.mxu0 %vm393_vm1, %v4903_v21  ;;  %v2556_v38 = vshll.u32 %v6233_v54, 16  ;;  %v2560_v10 = vshrl.u32 %v6233_v54, 16  ;;  %v2574_v21 = vshll.u32 %v6234_v28, 16  ;;  %v2505_v26 = vor.u32 %v5427_v27, %v5425_v50  ;;  %v6239_v37 = vld [vmem:[#allocation29_spill] sm:$0xff]  ;;  %v6241_v28 = vld [vmem:[#allocation14_spill] sm:$0xff] }
  0xc5   : > { %4463 = vmatprep.mubr.msk.bf16.mxu1 %vm393_vm1, %v3979_v24  ;;  %v2473_v23 = vsel %vm4807_vm4, %v2468_v39, %v2472_v25  ;;  %v2515_v48 = vor.u32 %v2514_v60, %v5451_v14  ;;  %v2518_v59 = vshll.u32 %v265_v62, 16  ;;  %v2529_v61 = vor.u32 %v2528_v31, %v2525_v9  ;;  %v6240_v62 = vld [vmem:[#allocation12_spill] sm:$0xff] }
  0xc6   : > { %v2487_v11 = vsel %vm4807_vm4, %v2482_v8, %v5418_v45  ;;  %v2497_v33 = vsel %vm4807_vm4, %v2492_v51, %v2496_v35  ;;  %v2539_v46 = vor.u32 %v2538_v49, %v5456_v3  ;;  %v2542_v24 = vshll.u32 %v268_v19, 16 }
  0xc7   : > { %v2549_v34 = vrot.slane %v2547_v7, 4  ;;  %v2552_v15 = vrot.slane %v2550_v41, 5  ;;  %v5485_v40 = vrot.slane %v2556_v38, 5  ;;  %v2562_v43 = vrot.slane %v2560_v10, 4 }
  0xc8   : > { %v2573_v4 = vrot.slane %v2571_v5, 4  ;;  %v2576_v0 = vrot.slane %v2574_v21, 5  ;;  %v3982_v45 = vcombine.low %v2463_v13, %v2473_v23  ;;  %v2506_v50 = vrot.slane %v2505_v26, 4 }
  0xc9   : > { %v3983_v27 = vcombine.low %v2487_v11, %v2497_v33  ;;  %v2516_v12 = vrot.slane %v2515_v48, 4  ;;  %v2520_v30 = vrot.slane %v2518_v59, 5  ;;  %v2530_v63 = vrot.slane %v2529_v61, 4  ;;  %v277_v61 = vld [vmem:[%s4730_s20 + $0x254] sm:$0x1] }
  0xca   : > { %v5491_v55 = vrot.slane %v2580_v29, 5  ;;  %v2586_v22 = vrot.slane %v2584_v42, 4  ;;  %v2540_v57 = vrot.slane %v2539_v46, 4  ;;  %v2544_v17 = vrot.slane %v2542_v24, 5 }
  0xcb   : > { %4498 = vmatmul.mubr.msk.bf16.gmra.mxu0 %vm393_vm1, %v6236_v2  ;;  %v2595_v52 = vshrl.u32 %v6238_v58, 16  ;;  %v2598_v53 = vshll.u32 %v6238_v58, 16  ;;  %v2604_v20 = vshll.u32 %v6239_v37, 16  ;;  %v2608_v60 = vshrl.u32 %v6239_v37, 16 }
  0xcc   : > { %4464 = vmatmul.mubr.msk.bf16.gmra.mxu1 %vm393_vm1, %v3980_v18  ;;  %4501 = vmatprep.mubr.msk.bf16.mxu0 %vm393_vm1, %v6237_v6  ;;  %v2511_v7 = vsel %vm4807_vm4, %v2506_v50, %v5451_v14  ;;  %v2553_v31 = vor.u32 %v2552_v15, %v2549_v34  ;;  %v2521_v47 = vsel %vm4807_vm4, %v2516_v12, %v2520_v30  ;;  %v2566_v39 = vshll.u32 %v271_v36, 16 }
  0xcd   : > { %4467 = vmatprep.mubr.msk.bf16.mxu1 %vm393_vm1, %v3981_v16  ;;  %v2535_v41 = vsel %vm4807_vm4, %v2530_v63, %v5456_v3  ;;  %v2563_v16 = vor.u32 %v2562_v43, %v5485_v40  ;;  %v2545_v14 = vsel %vm4807_vm4, %v2540_v57, %v2544_v17  ;;  %v2577_v49 = vor.u32 %v2576_v0, %v2573_v4 }
  0xce   : > { %v2587_v8 = vor.u32 %v2586_v22, %v5491_v55  ;;  %v2590_v51 = vshll.u32 %v274_v44, 16  ;;  %v2597_v35 = vrot.slane %v2595_v52, 4  ;;  %v2600_v3 = vrot.slane %v2598_v53, 5 }
  0xcf   : > { %v2606_v38 = vrot.slane %v2604_v20, 5  ;;  %v3984_v5 = vcombine.low %v2511_v7, %v2521_v47  ;;  %v2554_v21 = vrot.slane %v2553_v31, 4  ;;  %v2610_v19 = vrot.slane %v2608_v60, 4  ;;  %v6244_v20 = vld [vmem:[#allocation20_spill] sm:$0xff]  ;;  %v6245_v31 = vld [vmem:[#allocation23_spill] sm:$0xff] }
  0xd0   : > { %v3985_v29 = vcombine.low %v2535_v41, %v2545_v14  ;;  %v2564_v42 = vrot.slane %v2563_v16, 4  ;;  %v2568_v13 = vrot.slane %v2566_v39, 5  ;;  %v2578_v23 = vrot.slane %v2577_v49, 4  ;;  %v5589_v41 = vld [vmem:[%s4730_s20 + $0xc0] sm:$0xf] }
  0xd1   : > { %v2588_v48 = vrot.slane %v2587_v8, 4  ;;  %v2592_v59 = vrot.slane %v2590_v51, 5  ;;  %v2559_v46 = vsel %vm4807_vm4, %v2554_v21, %v5485_v40  ;;  %v2601_v15 = vor.u32 %v2600_v3, %v2597_v35  ;;  %v6242_v40 = vld [vmem:[#allocation16_spill] sm:$0xff]  ;;  %v5592_v16 = vld [vmem:[%s4730_s20 + $0xc4] sm:$0xf] }
  0xd2   : > { %v2569_v34 = vsel %vm4807_vm4, %v2564_v42, %v2568_v13  ;;  %v2611_v43 = vor.u32 %v2610_v19, %v2606_v38  ;;  %v2614_v2 = vshll.u32 %v277_v61, 16  ;;  %v2583_v0 = vsel %vm4807_vm4, %v2578_v23, %v5491_v55  ;;  %v4664_v13 = vld [vmem:[%s4730_s20 + $0xe4] sm:$0xff]  }
  0xd3   : > { %v5496_v32 = vpop.f32.mrf.mxu0  ;;  %4502 = vmatmul.mubr.msk.bf16.gmra.mxu0 %vm393_vm1, %v6240_v62  ;;  %v2593_v6 = vsel %vm4807_vm4, %v2588_v48, %v2592_v59  ;;  %v3986_v12 = vcombine.low %v2559_v46, %v2569_v34  ;;  %v2602_v22 = vrot.slane %v2601_v15, 4  ;;  %v4006_v8 = vcombine.low %v5589_v41, %v5592_v16  ;;  %v4663_v62 = vld [vmem:[%s4730_s20 + $0xd8] sm:$0xff]   ;;  %v4665_v59 = vld [vmem:[%s4730_s20 + $0xf0] sm:$0xff]   ;;  %v6247_v34 = vld [vmem:[#allocation3_spill] sm:$0xff] }
  0xd4   : > { %v5501_v9 = vpop.f32.mrf.mxu1  ;;  %4468 = vmatmul.mubr.msk.bf16.gmra.mxu1 %vm393_vm1, %v3982_v45  ;;  %4505 = vmatprep.mubr.msk.bf16.mxu0 %vm393_vm1, %v6241_v28  ;;  %v3987_v63 = vcombine.low %v2583_v0, %v2593_v6  ;;  %v2612_v57 = vrot.slane %v2611_v43, 4  ;;  %v2616_v55 = vrot.slane %v2614_v2, 5  ;;  %v6248_v0 = vld [vmem:[#allocation4_spill] sm:$0xff] }
  0xd5   : > { %v5507_v18 = vpop.f32.mrf.mxu0  ;;  %4471 = vmatprep.mubr.msk.bf16.mxu1 %vm393_vm1, %v3983_v27  ;;  %v6243_v27 = vld [vmem:[#allocation18_spill] sm:$0xff]  ;;  %v2607_v53 = vsel %vm4807_vm4, %v2602_v22, %v2606_v38 }
  0xd6   : > { %v5516_v25 = vpop.f32.mrf.mxu1  ;;  %v2617_v44 = vsel %vm4807_vm4, %v2612_v57, %v2616_v55  ;;  %v4666_v55 = vld [vmem:[%s4730_s20 + $0xfc] sm:$0xff]  }
  0xd7   : > { %v5523_v54 = vpop.f32.mrf.mxu0  ;;  %v3988_v47 = vcombine.low %v2607_v53, %v2617_v44 }
  0xd8   : > { %v5525_v10 = vpop.f32.mrf.mxu1 }
  0xd9   : > { %v5529_v1 = vpop.f32.mrf.mxu0 }
  0xda   : > { %v5531_v26 = vpop.f32.mrf.mxu1 }
  0xdb   : > { %v5534_v11 = vpop.f32.mrf.mxu0  ;;  %4506 = vmatmul.mubr.msk.bf16.gmra.mxu0 %vm393_vm1, %v6242_v40 }
  0xdc   : > { %v5536_v33 = vpop.f32.mrf.mxu1  ;;  %4472 = vmatmul.mubr.msk.bf16.gmra.mxu1 %vm393_vm1, %v3984_v5  ;;  %4509 = vmatprep.mubr.msk.bf16.mxu0 %vm393_vm1, %v6243_v27  ;;  %v6246_v5 = vld [vmem:[#allocation2_spill] sm:$0xff] }
  0xdd   : > { %v5542_v24 = vpop.f32.mrf.mxu0  ;;  %4475 = vmatprep.mubr.msk.bf16.mxu1 %vm393_vm1, %v3985_v29 }
  0xde   : > { %v5547_v4 = vpop.f32.mrf.mxu1 }
  0xdf   : > { %v5556_v45 = vpop.f32.mrf.mxu0 }
  0xe0   : > { %v5558_v50 = vpop.f32.mrf.mxu1 }
  0xe1   : > { %v5562_v30 = vpop.f32.mrf.mxu0 }
  0xe2   : > { %v5564_v17 = vpop.f32.mrf.mxu1 }
  0xe3   : > { %v5566_v36 = vpop.f32.mrf.mxu0  ;;  %4510 = vmatmul.mubr.msk.bf16.gmra.mxu0 %vm393_vm1, %v6244_v20  ;;  %v4667_v20 = vld [vmem:[%s4730_s20 + $0x108] sm:$0xff]  }
  0xe4   : > { %v5568_v58 = vpop.f32.mrf.mxu1  ;;  %4476 = vmatmul.mubr.msk.bf16.gmra.mxu1 %vm393_vm1, %v3986_v12  ;;  %4513 = vmatprep.mubr.msk.bf16.mxu0 %vm393_vm1, %v6245_v31 }
  0xe5   : > { %v5571_v52 = vpop.f32.mrf.mxu0  ;;  %4479 = vmatprep.mubr.msk.bf16.mxu1 %vm393_vm1, %v3987_v63 }
  0xe6   : > { %v5578_v37 = vpop.f32.mrf.mxu1 }
  0xe7   : > { %v5582_v60 = vpop.f32.mrf.mxu0 }
  0xe8   : > { %v5584_v7 = vpop.f32.mrf.mxu1 }
  0xe9   : > { %v5594_v39 = vpop.f32.mrf.mxu0 }
  0xea   : > { %v5596_v14 = vpop.f32.mrf.mxu1 }
  0xeb   : > { %v5598_v49 = vpop.f32.mrf.mxu0  ;;  %4514 = vmatmul.mubr.msk.bf16.gmra.mxu0 %vm393_vm1, %v4006_v8 }
  0xec   : > { %v5602_v51 = vpop.f32.mrf.mxu1  ;;  %4480 = vmatmul.mubr.msk.bf16.gmra.mxu1 %vm393_vm1, %v3988_v47  ;;  %4553 = vmatprep.mubr.msk.bf16.mxu0 %vm393_vm1, %v6246_v5  ;;  %v6249_v47 = vld [vmem:[#allocation5_spill] sm:$0xff]  ;;  %v6250_v5 = vld [vmem:[#allocation6_spill] sm:$0xff] }
  0xed   : > { %v5605_v35 = vpop.f32.mrf.mxu0  ;;  %4519 = vmatprep.mubr.msk.bf16.mxu1 %vm393_vm1, %v4663_v62 }
  0xee   : > { %v5609_v3 = vpop.f32.mrf.mxu1 }
  0xef   : > { %v5612_v38 = vpop.f32.mrf.mxu0 }
  0xf0   : > { %v5614_v28 = vpop.f32.mrf.mxu1 }
  0xf1   : > { %v5618_v21 = vpop.f32.mrf.mxu0 }
  0xf2   : > { %v5620_v19 = vpop.f32.mrf.mxu1 }
  0xf3   : > { %v4351_v29 = vpop.f32.mrf.mxu0  ;;  %4554 = vmatmul.mubr.msk.bf16.vlgmr.msra.gmra.mxu0 %vm393_vm1, %v6247_v34  ;;  %v4668_v34 = vld [vmem:[%s4730_s20 + $0x114] sm:$0xff]  }
  0xf4   : > { %v4317_v42 = vpop.f32.mrf.mxu1  ;;  %4520 = vmatmul.mubr.msk.bf16.vlgmr.msra.gmra.mxu1 %vm393_vm1, %v4664_v13  ;;  %4557 = vmatprep.mubr.msk.bf16.mxu0 %vm393_vm1, %v6248_v0 }
  0xf5   : > { %v783_v23 = vadd.f32 %v4317_v42, %v5496_v32  ;;  %v1423_v48 = vpop.f32.mrf.mxu0  ;;  %4523 = vmatprep.mubr.msk.bf16.mxu1 %vm393_vm1, %v4665_v59 }
  0xf6   : > { %v774_v61 = vpop.f32.mrf.mxu1 }
  0xf7   : > { %v5627_v46 = vadd.f32 %v4351_v29, %v783_v23  ;;  %v775_v15 = vadd.f32 %v774_v61, %v5507_v18  ;;  %v4352_v43 = vpop.f32.mrf.mxu0 }
  0xf8   : > { %v4318_v2 = vpop.f32.mrf.mxu1 }
  0xf9   : > { %v5634_v32 = vadd.f32 %v1423_v48, %v775_v15  ;;  %v786_v6 = vadd.f32 %v4318_v2, %v5523_v54  ;;  %v1426_v40 = vpop.f32.mrf.mxu0  ;;  %v4669_v2 = vld [vmem:[%s4730_s20 + $0x120] sm:$0xff]  }
  0xfa   : > { %v777_v27 = vpop.f32.mrf.mxu1 }
  0xfb   : > { %v5637_v12 = vadd.f32 %v4352_v43, %v786_v6  ;;  %v778_v63 = vadd.f32 %v777_v27, %v5529_v1  ;;  %v4355_v22 = vpop.f32.mrf.mxu0  ;;  %4558 = vmatmul.mubr.msk.bf16.gmra.mxu0 %vm393_vm1, %v6249_v47  ;;  %v6251_v6 = vld [vmem:[#allocation7_spill] sm:$0xff] }
  0xfc   : > { %v4321_v57 = vpop.f32.mrf.mxu1  ;;  %4524 = vmatmul.mubr.msk.bf16.gmra.mxu1 %vm393_vm1, %v4666_v55  ;;  %4561 = vmatprep.mubr.msk.bf16.mxu0 %vm393_vm1, %v6250_v5  ;;  %v4670_v47 = vld [vmem:[%s4730_s20 + $0x12c] sm:$0xff]  }
  0xfd   : > { %v5642_v18 = vadd.f32 %v1426_v40, %v778_v63  ;;  %v799_v53 = vadd.f32 %v4321_v57, %v5534_v11  ;;  %v1439_v44 = vpop.f32.mrf.mxu0  ;;  %4527 = vmatprep.mubr.msk.bf16.mxu1 %vm393_vm1, %v4667_v20  ;;  %v6252_v63 = vld [vmem:[#allocation9_spill] sm:$0xff] }
  0xfe   : > { %v790_v54 = vpop.f32.mrf.mxu1 }
  0xff   : > { %v5647_v31 = vadd.f32 %v4355_v22, %v799_v53  ;;  %v791_v1 = vadd.f32 %v790_v54, %v5542_v24  ;;  %v4356_v8 = vpop.f32.mrf.mxu0 }
 0x100   : > { %v4322_v62 = vpop.f32.mrf.mxu1 }
 0x101   : > { %v5654_v11 = vadd.f32 %v1439_v44, %v791_v1  ;;  %v802_v29 = vadd.f32 %v4322_v62, %v5556_v45  ;;  %v1442_v42 = vpop.f32.mrf.mxu0  ;;  %v4671_v62 = vld [vmem:[%s4730_s20 + $0x138] sm:$0xff]  }
 0x102   : > { %v793_v13 = vpop.f32.mrf.mxu1 }
 0x103   : > { %v5657_v23 = vadd.f32 %v4356_v8, %v802_v29  ;;  %v794_v48 = vadd.f32 %v793_v13, %v5562_v30  ;;  %v4359_v59 = vpop.f32.mrf.mxu0  ;;  %4562 = vmatmul.mubr.msk.bf16.gmra.mxu0 %vm393_vm1, %v6251_v6  ;;  %v6253_v29 = vld [vmem:[#allocation11_spill] sm:$0xff] }
 0x104   : > { %v4325_v61 = vpop.f32.mrf.mxu1  ;;  %4528 = vmatmul.mubr.msk.bf16.gmra.mxu1 %vm393_vm1, %v4668_v34  ;;  %4565 = vmatprep.mubr.msk.bf16.mxu0 %vm393_vm1, %v6252_v63  ;;  %v4672_v6 = vld [vmem:[%s4730_s20 + $0x144] sm:$0xff]  }
 0x105   : > { %v5662_v24 = vadd.f32 %v1442_v42, %v794_v48  ;;  %v815_v15 = vadd.f32 %v4325_v61, %v5566_v36  ;;  %v1455_v43 = vpop.f32.mrf.mxu0  ;;  %4531 = vmatprep.mubr.msk.bf16.mxu1 %vm393_vm1, %v4669_v2  ;;  %v6254_v48 = vld [vmem:[#allocation13_spill] sm:$0xff] }
 0x106   : > { %v806_v45 = vpop.f32.mrf.mxu1 }
 0x107   : > { %v5667_v0 = vadd.f32 %v4359_v59, %v815_v15  ;;  %v807_v30 = vadd.f32 %v806_v45, %v5571_v52  ;;  %v4360_v40 = vpop.f32.mrf.mxu0 }
 0x108   : > { %v4326_v27 = vpop.f32.mrf.mxu1 }
 0x109   : > { %v5674_v36 = vadd.f32 %v1455_v43, %v807_v30  ;;  %v818_v22 = vadd.f32 %v4326_v27, %v5582_v60  ;;  %v1458_v57 = vpop.f32.mrf.mxu0  ;;  %v4673_v27 = vld [vmem:[%s4730_s20 + $0x150] sm:$0xff]  }
 0x10a   : > { %v809_v55 = vpop.f32.mrf.mxu1 }
 0x10b   : > { %v5677_v53 = vadd.f32 %v4360_v40, %v818_v22  ;;  %v810_v44 = vadd.f32 %v809_v55, %v5594_v39  ;;  %v4363_v20 = vpop.f32.mrf.mxu0  ;;  %4566 = vmatmul.mubr.msk.bf16.gmra.mxu0 %vm393_vm1, %v6253_v29  ;;  %v6255_v22 = vld [vmem:[#allocation15_spill] sm:$0xff]  ;;  %v3325_v55 = vshrl.u32 %v5589_v41, 16 }
 0x10c   : > { %v4329_v54 = vpop.f32.mrf.mxu1  ;;  %4532 = vmatmul.mubr.msk.bf16.gmra.mxu1 %vm393_vm1, %v4670_v47  ;;  %4569 = vmatprep.mubr.msk.bf16.mxu0 %vm393_vm1, %v6254_v48  ;;  %v6256_v47 = vld [vmem:[#allocation17_spill] sm:$0xff] }
 0x10d   : > { %v5682_v52 = vadd.f32 %v1458_v57, %v810_v44  ;;  %v831_v1 = vadd.f32 %v4329_v54, %v5598_v49  ;;  %v1471_v8 = vpop.f32.mrf.mxu0  ;;  %4535 = vmatprep.mubr.msk.bf16.mxu1 %vm393_vm1, %v4671_v62  ;;  %v3328_v44 = vshll.u32 %v5589_v41, 16  ;;  %v3327_v29 = vrot.slane %v3325_v55, 4 }
 0x10e   : > { %v822_v60 = vpop.f32.mrf.mxu1 }
 0x10f   : > { %v5687_v5 = vadd.f32 %v4363_v20, %v831_v1  ;;  %v823_v39 = vadd.f32 %v822_v60, %v5605_v35  ;;  %v4364_v42 = vpop.f32.mrf.mxu0  ;;  %v3334_v20 = vshll.u32 %v5592_v16, 16 }
 0x110   : > { %v4330_v13 = vpop.f32.mrf.mxu1 }
 0x111   : > { %v5694_v49 = vadd.f32 %v1471_v8, %v823_v39  ;;  %v834_v59 = vadd.f32 %v4330_v13, %v5612_v38  ;;  %v1474_v61 = vpop.f32.mrf.mxu0  ;;  %v3330_v39 = vrot.slane %v3328_v44, 5 }
 0x112   : > { %v825_v34 = vpop.f32.mrf.mxu1 }
 0x113   : > { %v5697_v15 = vadd.f32 %v4364_v42, %v834_v59  ;;  %v826_v43 = vadd.f32 %v825_v34, %v5618_v21  ;;  %v4367_v2 = vpop.f32.mrf.mxu0  ;;  %4570 = vmatmul.mubr.msk.bf16.gmra.mxu0 %vm393_vm1, %v6255_v22  ;;  %v3336_v42 = vrot.slane %v3334_v20, 5  ;;  %v4674_v59 = vld [vmem:[%s4730_s20 + $0x15c] sm:$0xff]   ;;  %v4675_v34 = vld [vmem:[%s4730_s20 + $0x168] sm:$0xff]  }
 0x114   : > { %v4333_v45 = vpop.f32.mrf.mxu1  ;;  %4536 = vmatmul.mubr.msk.bf16.gmra.mxu1 %vm393_vm1, %v4672_v6  ;;  %4573 = vmatprep.mubr.msk.bf16.mxu0 %vm393_vm1, %v6256_v47  ;;  %v6257_v6 = vld [vmem:[#allocation19_spill] sm:$0xff] }
 0x115   : > { %v5702_v35 = vadd.f32 %v1474_v61, %v826_v43  ;;  %v847_v30 = vadd.f32 %v4333_v45, %v5501_v9  ;;  %v1487_v40 = vpop.f32.mrf.mxu0  ;;  %4539 = vmatprep.mubr.msk.bf16.mxu1 %vm393_vm1, %v4673_v27  ;;  %v3338_v9 = vshrl.u32 %v5592_v16, 16  ;;  %v195_v43 = vld [vmem:[%s4730_s20 + $0xc8] sm:$0x1] }
 0x116   : > { %v838_v38 = vpop.f32.mrf.mxu1 }
 0x117   : > { %v5707_v63 = vadd.f32 %v4367_v2, %v847_v30  ;;  %v839_v21 = vadd.f32 %v838_v38, %v5516_v25  ;;  %v4368_v57 = vpop.f32.mrf.mxu0  ;;  %v3340_v16 = vrot.slane %v3338_v9, 4 }
 0x118   : > { %v4334_v54 = vpop.f32.mrf.mxu1 }
 0x119   : > { %v5718_v1 = vadd.f32 %v1487_v40, %v839_v21  ;;  %v850_v8 = vadd.f32 %v4334_v54, %v5525_v10  ;;  %v1490_v25 = vpop.f32.mrf.mxu0  ;;  %v3331_v40 = vor.u32 %v3330_v39, %v3327_v29  ;;  %v3341_v27 = vor.u32 %v3340_v16, %v3336_v42  ;;  %v6258_v21 = vld [vmem:[#allocation21_spill] sm:$0xff] }
 0x11a   : > { %v841_v62 = vpop.f32.mrf.mxu1 }
 0x11b   : > { %v5721_v60 = vadd.f32 %v4368_v57, %v850_v8  ;;  %v842_v41 = vadd.f32 %v841_v62, %v5531_v26  ;;  %v4371_v48 = vpop.f32.mrf.mxu0  ;;  %4574 = vmatmul.mubr.msk.bf16.gmra.mxu0 %vm393_vm1, %v6257_v6  ;;  %v3332_v54 = vrot.slane %v3331_v40, 4  ;;  %v3342_v47 = vrot.slane %v3341_v27, 4 }
 0x11c   : > { %v4337_v13 = vpop.f32.mrf.mxu1  ;;  %4540 = vmatmul.mubr.msk.bf16.gmra.mxu1 %vm393_vm1, %v4674_v59  ;;  %4577 = vmatprep.mubr.msk.bf16.mxu0 %vm393_vm1, %v6258_v21 }
 0x11d   : > { %v5726_v61 = vadd.f32 %v1490_v25, %v842_v41  ;;  %v863_v10 = vadd.f32 %v4337_v13, %v5536_v33  ;;  %4543 = vmatprep.mubr.msk.bf16.mxu1 %vm393_vm1, %v4675_v34  ;;  %v1503_v45 = vpop.f32.mrf.mxu0  ;;  %v3344_v33 = vshll.u32 %v195_v43, 16  ;;  %v4676_v25 = vld [vmem:[%s4730_s20 + $0x174] sm:$0xff]   ;;  %v4662_v43 = vld [vmem:[%s4730_s20 + $0x18c] sm:$0xff]  }
 0x11e   : > { %v854_v2 = vpop.f32.mrf.mxu1  ;;  %v6260_v34 = vld [vmem:[#allocation24_spill] sm:$0xff] }
 0x11f   : > { %v5732_v26 = vadd.f32 %v4371_v48, %v863_v10  ;;  %v855_v30 = vadd.f32 %v854_v2, %v5547_v4  ;;  %v4372_v22 = vpop.f32.mrf.mxu0  ;;  %v3346_v62 = vrot.slane %v3344_v33, 5 }
 0x120   : > { %v4338_v38 = vpop.f32.mrf.mxu1 }
 0x121   : > { %v5739_v57 = vadd.f32 %v1503_v45, %v855_v30  ;;  %v866_v55 = vadd.f32 %v4338_v38, %v5558_v50  ;;  %v1506_v20 = vpop.f32.mrf.mxu0  ;;  %v4677_v50 = vld [vmem:[%s4730_s20 + $0x180] sm:$0xff]   ;;  %v3347_v2 = vsel %vm4807_vm4, %v3342_v47, %v3346_v62 }
 0x122   : > { %v857_v44 = vpop.f32.mrf.mxu1 }
 0x123   : > { %v5742_v9 = vadd.f32 %v4372_v22, %v866_v55  ;;  %v858_v4 = vadd.f32 %v857_v44, %v5564_v17  ;;  %v4375_v39 = vpop.f32.mrf.mxu0  ;;  %v6259_v17 = vld [vmem:[#allocation22_spill] sm:$0xff] }
 0x124   : > { %v4341_v8 = vpop.f32.mrf.mxu1  ;;  %4544 = vmatmul.mubr.msk.bf16.gmra.mxu1 %vm393_vm1, %v4676_v25  ;;  %4578 = vmatmul.mubr.msk.bf16.gmra.mxu0 %vm393_vm1, %v6259_v17 }
 0x125   : > { %v5747_v41 = vadd.f32 %v1506_v20, %v858_v4  ;;  %v879_v29 = vadd.f32 %v4341_v8, %v5568_v58  ;;  %4547 = vmatprep.mubr.msk.bf16.mxu1 %vm393_vm1, %v4677_v50  ;;  %v1519_v59 = vpop.f32.mrf.mxu0  ;;  %4581 = vmatprep.mubr.msk.bf16.mxu0 %vm393_vm1, %v6260_v34  ;;  %v3337_v58 = vsel %vm4807_vm4, %v3332_v54, %v3336_v42 }
 0x126   : > { %v870_v16 = vpop.f32.mrf.mxu1  ;;  %v4042_v22 = vcombine.low %v3337_v58, %v3347_v2 }
 0x127   : > { %v5752_v13 = vadd.f32 %v4375_v39, %v879_v29  ;;  %v871_v48 = vadd.f32 %v870_v16, %v5578_v37  ;;  %v4376_v30 = vpop.f32.mrf.mxu0 }
 0x128   : > { %v4342_v10 = vpop.f32.mrf.mxu1 }
 0x129   : > { %v5764_v45 = vadd.f32 %v1519_v59, %v871_v48  ;;  %v882_v6 = vadd.f32 %v4342_v10, %v5584_v7  ;;  %v1522_v38 = vpop.f32.mrf.mxu0 }
 0x12a   : > { %v873_v40 = vpop.f32.mrf.mxu1 }
 0x12b   : > { %v5767_v27 = vadd.f32 %v4376_v30, %v882_v6  ;;  %v874_v37 = vadd.f32 %v873_v40, %v5596_v14  ;;  %v4379_v55 = vpop.f32.mrf.mxu0 }
 0x12c   : > { %v4345_v21 = vpop.f32.mrf.mxu1  ;;  %4548 = vmatmul.mubr.msk.bf16.gmra.mxu1 %vm393_vm1, %v4662_v43  ;;  %4582 = vmatmul.mubr.msk.bf16.gmra.mxu0 %vm393_vm1, %v4042_v22 }
 0x12d   : > { %v5771_v33 = vadd.f32 %v1522_v38, %v874_v37  ;;  %v895_v56 = vadd.f32 %v4345_v21, %v5602_v51  ;;  %v1535_v4 = vpop.f32.mrf.mxu0 }
 0x12e   : > { %v886_v42 = vpop.f32.mrf.mxu1 }
 0x12f   : > { %v887_v7 = vadd.f32 %v886_v42, %v5609_v3  ;;  %v5776_v44 = vadd.f32 %v4379_v55, %v895_v56  ;;  %v4380_v8 = vpop.f32.mrf.mxu0 }
 0x130   : > { %v4346_v20 = vpop.f32.mrf.mxu1 }
 0x131   : > { %v898_v14 = vadd.f32 %v4346_v20, %v5614_v28  ;;  %v5779_v54 = vadd.f32 %v1535_v4, %v887_v7  ;;  %v1538_v29 = vpop.f32.mrf.mxu0 }
 0x132   : > { %v889_v47 = vpop.f32.mrf.mxu1 }
 0x133   : > { %v890_v25 = vadd.f32 %v889_v47, %v5620_v19  ;;  %v5782_v62 = vadd.f32 %v4380_v8, %v898_v14  ;;  %v4419_v16 = vpop.f32.mrf.mxu0 }
 0x134   : > { %v4385_v51 = vpop.f32.mrf.mxu1 }
 0x135   : > { %v1878_v39 = vadd.f32 %v4385_v51, %v5627_v46  ;;  %v5785_v50 = vadd.f32 %v1538_v29, %v890_v25  ;;  %v2075_v59 = vpop.f32.mrf.mxu0 }
 0x136   : > { %v1749_v3 = vpop.f32.mrf.mxu1 }
 0x137   : > { %v1876_v17 = vadd.f32 %v1749_v3, %v5634_v32  ;;  %v5788_v48 = vadd.f32 %v4419_v16, %v1878_v39  ;;  %v4420_v43 = vpop.f32.mrf.mxu0 }
 0x138   : > { %v4386_v28 = vpop.f32.mrf.mxu1 }
 0x139   : > { %v1879_v10 = vadd.f32 %v4386_v28, %v5637_v12  ;;  %v5791_v34 = vadd.f32 %v2075_v59, %v1876_v17  ;;  %v2078_v6 = vpop.f32.mrf.mxu0 }
 0x13a   : > { %v1752_v19 = vpop.f32.mrf.mxu1 }
 0x13b   : > { %v1877_v58 = vadd.f32 %v1752_v19, %v5642_v18  ;;  %v5794_v2 = vadd.f32 %v4420_v43, %v1879_v10  ;;  %v4423_v37 = vpop.f32.mrf.mxu0 }
 0x13c   : > { %v4389_v46 = vpop.f32.mrf.mxu1 }
 0x13d   : > { %v1882_v30 = vadd.f32 %v4389_v46, %v5647_v31  ;;  %v5797_v40 = vadd.f32 %v2078_v6, %v1877_v58  ;;  %v2091_v21 = vpop.f32.mrf.mxu0 }
 0x13e   : > { %v1765_v32 = vpop.f32.mrf.mxu1 }
 0x13f   : > { %v1880_v38 = vadd.f32 %v1765_v32, %v5654_v11  ;;  %v5800_v22 = vadd.f32 %v4423_v37, %v1882_v30  ;;  %v4424_v55 = vpop.f32.mrf.mxu0 }
 0x140   : > { %v4390_v12 = vpop.f32.mrf.mxu1 }
 0x141   : > { %v1883_v56 = vadd.f32 %v4390_v12, %v5657_v23  ;;  %v5803_v42 = vadd.f32 %v2091_v21, %v1880_v38  ;;  %v2094_v4 = vpop.f32.mrf.mxu0 }
 0x142   : > { %v1768_v18 = vpop.f32.mrf.mxu1 }
 0x143   : > { %v1881_v7 = vadd.f32 %v1768_v18, %v5662_v24  ;;  %v5806_v20 = vadd.f32 %v4424_v55, %v1883_v56  ;;  %v4427_v8 = vpop.f32.mrf.mxu0 }
 0x144   : > { %v4393_v31 = vpop.f32.mrf.mxu1 }
 0x145   : > { %v1886_v14 = vadd.f32 %v4393_v31, %v5667_v0  ;;  %v5809_v47 = vadd.f32 %v2094_v4, %v1881_v7  ;;  %v2107_v29 = vpop.f32.mrf.mxu0 }
 0x146   : > { %v1781_v11 = vpop.f32.mrf.mxu1 }
 0x147   : > { %v1884_v25 = vadd.f32 %v1781_v11, %v5674_v36  ;;  %v5812_v51 = vadd.f32 %v4427_v8, %v1886_v14  ;;  %v4428_v16 = vpop.f32.mrf.mxu0 }
 0x148   : > { %v4394_v23 = vpop.f32.mrf.mxu1 }
 0x149   : > { %v1887_v39 = vadd.f32 %v4394_v23, %v5677_v53  ;;  %v5815_v3 = vadd.f32 %v2107_v29, %v1884_v25  ;;  %v2110_v59 = vpop.f32.mrf.mxu0 }
 0x14a   : > { %v1784_v24 = vpop.f32.mrf.mxu1 }
 0x14b   : > { %v1885_v17 = vadd.f32 %v1784_v24, %v5682_v52  ;;  %v5818_v28 = vadd.f32 %v4428_v16, %v1887_v39  ;;  %v4431_v43 = vpop.f32.mrf.mxu0 }
 0x14c   : > { %v4397_v0 = vpop.f32.mrf.mxu1 }
 0x14d   : > { %v1890_v10 = vadd.f32 %v4397_v0, %v5687_v5  ;;  %v5821_v19 = vadd.f32 %v2110_v59, %v1885_v17  ;;  %v2123_v6 = vpop.f32.mrf.mxu0 }
 0x14e   : > { %v1797_v36 = vpop.f32.mrf.mxu1 }
 0x14f   : > { %v1888_v58 = vadd.f32 %v1797_v36, %v5694_v49  ;;  %v5824_v46 = vadd.f32 %v4431_v43, %v1890_v10  ;;  %v4432_v37 = vpop.f32.mrf.mxu0 }
 0x150   : > { %v4398_v53 = vpop.f32.mrf.mxu1 }
 0x151   : > { %v1891_v30 = vadd.f32 %v4398_v53, %v5697_v15  ;;  %v5827_v32 = vadd.f32 %v2123_v6, %v1888_v58  ;;  %v2126_v21 = vpop.f32.mrf.mxu0 }
 0x152   : > { %v1800_v52 = vpop.f32.mrf.mxu1 }
 0x153   : > { %v1889_v38 = vadd.f32 %v1800_v52, %v5702_v35  ;;  %v5830_v12 = vadd.f32 %v4432_v37, %v1891_v30  ;;  %v4435_v55 = vpop.f32.mrf.mxu0 }
 0x154   : > { %v4401_v5 = vpop.f32.mrf.mxu1 }
 0x155   : > { %v1894_v56 = vadd.f32 %v4401_v5, %v5707_v63  ;;  %v5833_v18 = vadd.f32 %v2126_v21, %v1889_v38  ;;  %v2139_v4 = vpop.f32.mrf.mxu0 }
 0x156   : > { %v1813_v49 = vpop.f32.mrf.mxu1 }
 0x157   : > { %v1892_v7 = vadd.f32 %v1813_v49, %v5718_v1  ;;  %v5836_v31 = vadd.f32 %v4435_v55, %v1894_v56  ;;  %v4436_v8 = vpop.f32.mrf.mxu0 }
 0x158   : > { %v4402_v15 = vpop.f32.mrf.mxu1 }
 0x159   : > { %v1895_v14 = vadd.f32 %v4402_v15, %v5721_v60  ;;  %v5839_v11 = vadd.f32 %v2139_v4, %v1892_v7  ;;  %v2142_v29 = vpop.f32.mrf.mxu0 }
 0x15a   : > { %v1816_v35 = vpop.f32.mrf.mxu1 }
 0x15b   : > { %v1893_v25 = vadd.f32 %v1816_v35, %v5726_v61  ;;  %v5842_v23 = vadd.f32 %v4436_v8, %v1895_v14  ;;  %v4439_v16 = vpop.f32.mrf.mxu0 }
 0x15c   : > { %v4405_v63 = vpop.f32.mrf.mxu1 }
 0x15d   : > { %6261 = vst [vmem:[#allocation25_spill] sm:$0xff] %v5842_v23  ;;  %v1898_v39 = vadd.f32 %v4405_v63, %v5732_v26  ;;  %v5845_v24 = vadd.f32 %v2142_v29, %v1893_v25  ;;  %v2155_v59 = vpop.f32.mrf.mxu0 }
 0x15e   : > { %v1829_v1 = vpop.f32.mrf.mxu1 }
 0x15f   : > { %6262 = vst [vmem:[#allocation26_spill] sm:$0xff] %v5845_v24  ;;  %v1896_v17 = vadd.f32 %v1829_v1, %v5739_v57  ;;  %v5848_v0 = vadd.f32 %v4439_v16, %v1898_v39  ;;  %v4440_v43 = vpop.f32.mrf.mxu0 }
 0x160   : > { %v4406_v60 = vpop.f32.mrf.mxu1 }
 0x161   : > { %6263 = vst [vmem:[#allocation27_spill] sm:$0xff] %v5848_v0  ;;  %v1899_v10 = vadd.f32 %v4406_v60, %v5742_v9  ;;  %v5851_v36 = vadd.f32 %v2155_v59, %v1896_v17  ;;  %v2158_v6 = vpop.f32.mrf.mxu0 }
 0x162   : > { %v1832_v61 = vpop.f32.mrf.mxu1 }
 0x163   : > { %6264 = vst [vmem:[#allocation8_spill] sm:$0xff] %v5851_v36  ;;  %v1897_v58 = vadd.f32 %v1832_v61, %v5747_v41  ;;  %v5854_v53 = vadd.f32 %v4440_v43, %v1899_v10  ;;  %v4443_v37 = vpop.f32.mrf.mxu0 }
 0x164   : > { %v4409_v26 = vpop.f32.mrf.mxu1 }
 0x165   : > { %6265 = vst [vmem:[#allocation10_spill] sm:$0xff] %v5854_v53  ;;  %v1902_v30 = vadd.f32 %v4409_v26, %v5752_v13  ;;  %v5857_v52 = vadd.f32 %v2158_v6, %v1897_v58  ;;  %v2171_v21 = vpop.f32.mrf.mxu0 }
 0x166   : > { %v1845_v57 = vpop.f32.mrf.mxu1 }
 0x167   : > { %6266 = vst [vmem:[#allocation28_spill] sm:$0xff] %v5857_v52  ;;  %v1900_v38 = vadd.f32 %v1845_v57, %v5764_v45  ;;  %v5860_v5 = vadd.f32 %v4443_v37, %v1902_v30  ;;  %v4444_v55 = vpop.f32.mrf.mxu0 }
 0x168   : > { %v4410_v9 = vpop.f32.mrf.mxu1 }
 0x169   : > { %6267 = vst [vmem:[#allocation29_spill] sm:$0xff] %v5860_v5  ;;  %v1903_v56 = vadd.f32 %v4410_v9, %v5767_v27  ;;  %v5863_v49 = vadd.f32 %v2171_v21, %v1900_v38  ;;  %v2174_v4 = vpop.f32.mrf.mxu0 }
 0x16a   : > { %v1848_v41 = vpop.f32.mrf.mxu1 }
 0x16b   : > { %6268 = vst [vmem:[#allocation12_spill] sm:$0xff] %v5863_v49  ;;  %v1901_v7 = vadd.f32 %v1848_v41, %v5771_v33  ;;  %v5866_v15 = vadd.f32 %v4444_v55, %v1903_v56  ;;  %v4447_v8 = vpop.f32.mrf.mxu0 }
 0x16c   : > { %v4413_v13 = vpop.f32.mrf.mxu1 }
 0x16d   : > { %6269 = vst [vmem:[#allocation14_spill] sm:$0xff] %v5866_v15  ;;  %v1906_v14 = vadd.f32 %v4413_v13, %v5776_v44  ;;  %v5869_v35 = vadd.f32 %v2174_v4, %v1901_v7  ;;  %v2187_v29 = vpop.f32.mrf.mxu0 }
 0x16e   : > { %v1861_v45 = vpop.f32.mrf.mxu1 }
 0x16f   : > { %6270 = vst [vmem:[#allocation16_spill] sm:$0xff] %v5869_v35  ;;  %v1904_v25 = vadd.f32 %v1861_v45, %v5779_v54  ;;  %v5872_v63 = vadd.f32 %v4447_v8, %v1906_v14  ;;  %v4448_v16 = vpop.f32.mrf.mxu0 }
 0x170   : > { %v4414_v27 = vpop.f32.mrf.mxu1 }
 0x171   : > { %6271 = vst [vmem:[#allocation18_spill] sm:$0xff] %v5872_v63  ;;  %v1907_v39 = vadd.f32 %v4414_v27, %v5782_v62  ;;  %v5875_v1 = vadd.f32 %v2187_v29, %v1904_v25  ;;  %v2190_v59 = vpop.f32.mrf.mxu0 }
 0x172   : > { %v1864_v33 = vpop.f32.mrf.mxu1 }
 0x173   : > { %6272 = vst [vmem:[#allocation20_spill] sm:$0xff] %v5875_v1  ;;  %v1905_v17 = vadd.f32 %v1864_v33, %v5785_v50  ;;  %v5878_v60 = vadd.f32 %v4448_v16, %v1907_v39  ;;  %v4487_v54 = vpop.f32.mrf.mxu0 }
 0x174   : > { %v4453_v44 = vpop.f32.mrf.mxu1 }
 0x175   : > { %6273 = vst [vmem:[#allocation23_spill] sm:$0xff] %v5878_v60  ;;  %v5880_v10 = vadd.f32 %v2190_v59, %v1905_v17  ;;  %v5882_v58 = vpop.f32.mrf.mxu0 }
 0x176   : > { %v2753_v61 = vpop.f32.mrf.mxu1 }
 0x177   : > { %6274 = vst [vmem:[#allocation2_spill] sm:$0xff] %v5880_v10  ;;  %v5886_v62 = vpop.f32.mrf.mxu0 }
 0x178   : > { %v4454_v43 = vpop.f32.mrf.mxu1 }
 0x179   : > { %v5890_v30 = vpop.f32.mrf.mxu0 }
 0x17a   : > { %v5884_v26 = vpop.f32.mrf.mxu1 }
 0x17b   : > { %v5894_v57 = vpop.f32.mrf.mxu0 }
 0x17c   : > { %v5888_v6 = vpop.f32.mrf.mxu1 }
 0x17d   : > { %v5898_v38 = vpop.f32.mrf.mxu0 }
 0x17e   : > { %v5892_v50 = vpop.f32.mrf.mxu1 }
 0x17f   : > { %v5902_v21 = vpop.f32.mrf.mxu0 }
 0x180   : > { %v5896_v37 = vpop.f32.mrf.mxu1 }
 0x181   : > { %v5906_v41 = vpop.f32.mrf.mxu0 }
 0x182   : > { %v5900_v9 = vpop.f32.mrf.mxu1 }
 0x183   : > { %v5910_v7 = vpop.f32.mrf.mxu0 }
 0x184   : > { %v5904_v56 = vpop.f32.mrf.mxu1 }
 0x185   : > { %v5914_v4 = vpop.f32.mrf.mxu0 }
 0x186   : > { %v5908_v55 = vpop.f32.mrf.mxu1 }
 0x187   : > { %v5918_v45 = vpop.f32.mrf.mxu0 }
 0x188   : > { %v5912_v13 = vpop.f32.mrf.mxu1 }
 0x189   : > { %v5922_v25 = vpop.f32.mrf.mxu0 }
 0x18a   : > { %v5916_v14 = vpop.f32.mrf.mxu1 }
 0x18b   : > { %v5926_v29 = vpop.f32.mrf.mxu0 }
 0x18c   : > { %v5920_v8 = vpop.f32.mrf.mxu1 }
 0x18d   : > { %v5930_v33 = vpop.f32.mrf.mxu0 }
 0x18e   : > { %v5924_v27 = vpop.f32.mrf.mxu1 }
 0x18f   : > { %v5934_v17 = vpop.f32.mrf.mxu0 }
 0x190   : > { %v5928_v39 = vpop.f32.mrf.mxu1 }
 0x191   : > { %v5938_v10 = vpop.f32.mrf.mxu0 }
 0x192   : > { %v5932_v16 = vpop.f32.mrf.mxu1 }
 0x193   : > { %v5942_v1 = vpop.f32.mrf.mxu0 }
 0x194   : > { %v5936_v59 = vpop.f32.mrf.mxu1 }
 0x195   : > { %v5946_v35 = vpop.f32.mrf.mxu0 }
 0x196   : > { %v5940_v60 = vpop.f32.mrf.mxu1  ;;  %6276 = vst [vmem:[#allocation4_spill] sm:$0xff] %v5946_v35 }
 0x197   : > { %v5950_v49 = vpop.f32.mrf.mxu0 }
 0x198   : > { %v5944_v63 = vpop.f32.mrf.mxu1  ;;  %6278 = vst [vmem:[#allocation6_spill] sm:$0xff] %v5950_v49 }
 0x199   : > { %6275 = vst [vmem:[#allocation3_spill] sm:$0xff] %v5944_v63  ;;  %v5954_v52 = vpop.f32.mrf.mxu0 }
 0x19a   : > { %v5948_v15 = vpop.f32.mrf.mxu1  ;;  %6280 = vst [vmem:[#allocation9_spill] sm:$0xff] %v5954_v52 }
 0x19b   : > { %6277 = vst [vmem:[#allocation5_spill] sm:$0xff] %v5948_v15  ;;  %v5958_v36 = vpop.f32.mrf.mxu0 }
 0x19c   : > { %v5952_v5 = vpop.f32.mrf.mxu1  ;;  %6282 = vst [vmem:[#allocation13_spill] sm:$0xff] %v5958_v36 }
 0x19d   : > { %6279 = vst [vmem:[#allocation7_spill] sm:$0xff] %v5952_v5  ;;  %v5962_v24 = vpop.f32.mrf.mxu0 }
 0x19e   : > { %v5956_v53 = vpop.f32.mrf.mxu1  ;;  %6284 = vst [vmem:[#allocation17_spill] sm:$0xff] %v5962_v24 }
 0x19f   : > { %6281 = vst [vmem:[#allocation11_spill] sm:$0xff] %v5956_v53  ;;  %v5966_v63 = vpop.f32.mrf.mxu0 }
 0x1a0   : > { %v5960_v0 = vpop.f32.mrf.mxu1  ;;  %6286 = vst [vmem:[#allocation21_spill] sm:$0xff] %v5966_v63 }
 0x1a1   : > { %6283 = vst [vmem:[#allocation15_spill] sm:$0xff] %v5960_v0  ;;  %v5970_v15 = vpop.f32.mrf.mxu0 }
 0x1a2   : > { %v5964_v23 = vpop.f32.mrf.mxu1  ;;  %6288 = vst [vmem:[#allocation24_spill] sm:$0xff] %v5970_v15  ;;  %v2882_v15 = vadd.f32 %v4453_v44, %v5788_v48  ;;  %v2881_v48 = vadd.f32 %v5884_v26, %v5797_v40 }
 0x1a3   : > { %6285 = vst [vmem:[#allocation19_spill] sm:$0xff] %v5964_v23  ;;  %v5974_v5 = vpop.f32.mrf.mxu0 }
 0x1a4   : > { %v5968_v35 = vpop.f32.mrf.mxu1  ;;  %6290 = vst [vmem:[#allocation31_spill] sm:$0xff] %v5974_v5 }
 0x1a5   : > { %6287 = vst [vmem:[#allocation22_spill] sm:$0xff] %v5968_v35  ;;  %v5978_v53 = vpop.f32.mrf.mxu0 }
 0x1a6   : > { %v5972_v49 = vpop.f32.mrf.mxu1  ;;  %6292 = vst [vmem:[#allocation33_spill] sm:$0xff] %v5978_v53 }
 0x1a7   : > { %6289 = vst [vmem:[#allocation30_spill] sm:$0xff] %v5972_v49  ;;  %v5982_v0 = vpop.f32.mrf.mxu0 }
 0x1a8   : > { %v5976_v52 = vpop.f32.mrf.mxu1  ;;  %6294 = vst [vmem:[#allocation35_spill] sm:$0xff] %v5982_v0  ;;  %v3088_v0 = vadd.f32 %v4487_v54, %v2882_v15 }
 0x1a9   : > { %6291 = vst [vmem:[#allocation32_spill] sm:$0xff] %v5976_v52  ;;  %v5986_v23 = vpop.f32.mrf.mxu0  ;;  %v2880_v52 = vadd.f32 %v2753_v61, %v5791_v34 }
 0x1aa   : > { %v5980_v36 = vpop.f32.mrf.mxu1  ;;  %6296 = vst [vmem:[#allocation37_spill] sm:$0xff] %v5986_v23 }
 0x1ab   : > { %6293 = vst [vmem:[#allocation34_spill] sm:$0xff] %v5980_v36  ;;  %v5991_v35 = vpop.f32.mrf.mxu0 }
 0x1ac   : > { %v5984_v24 = vpop.f32.mrf.mxu1 }
 0x1ad   : > { %6295 = vst [vmem:[#allocation36_spill] sm:$0xff] %v5984_v24  ;;  %v5996_v53 = vpop.f32.mrf.mxu0  ;;  %v2883_v24 = vadd.f32 %v4454_v43, %v5794_v2 }
 0x1ae   : > { %v5988_v63 = vpop.f32.mrf.mxu1 }
 0x1af   : > { %6297 = vst [vmem:[#allocation38_spill] sm:$0xff] %v5988_v63  ;;  %v6001_v5 = vpop.f32.mrf.mxu0  ;;  %v3086_v63 = vadd.f32 %v5882_v58, %v2880_v52  ;;  %v3089_v61 = vadd.f32 %v5886_v62, %v2883_v24  ;;  %v2884_v52 = vadd.f32 %v5892_v50, %v5803_v42 }
 0x1b0   : > { %v5993_v49 = vpop.f32.mrf.mxu1  ;;  %6300 = vst [vmem:[#allocation41_spill] sm:$0xff] %v6001_v5  ;;  %v3087_v5 = vadd.f32 %v5890_v30, %v2881_v48 }
 0x1b1   : > { %6298 = vst [vmem:[#allocation39_spill] sm:$0xff] %v5993_v49  ;;  %v6006_v44 = vpop.f32.mrf.mxu0  ;;  %v3090_v50 = vadd.f32 %v5898_v38, %v2884_v52 }
 0x1b2   : > { %v5998_v36 = vpop.f32.mrf.mxu1 }
 0x1b3   : > { %6299 = vst [vmem:[#allocation40_spill] sm:$0xff] %v5998_v36  ;;  %v2886_v36 = vadd.f32 %v5888_v6, %v5800_v22  ;;  %v4555_v15 = vpop.f32.mrf.mxu0  ;;  %v2887_v22 = vadd.f32 %v5896_v37, %v5806_v20 }
 0x1b4   : > { %v4521_v23 = vpop.f32.mrf.mxu1 }
 0x1b5   : > { %v3294_v49 = vadd.f32 %v4521_v23, %v3088_v0  ;;  %v3393_v40 = vpop.f32.mrf.mxu0  ;;  %v3092_v24 = vadd.f32 %v5894_v57, %v2886_v36  ;;  %v2885_v36 = vadd.f32 %v5900_v9, %v5809_v47 }
 0x1b6   : > { %v3165_v34 = vpop.f32.mrf.mxu1 }
 0x1b7   : > { %v3292_v54 = vadd.f32 %v3165_v34, %v3086_v63  ;;  %v3522_v2 = vadd.f32 %v4555_v15, %v3294_v49  ;;  %v4556_v49 = vpop.f32.mrf.mxu0  ;;  %v2890_v15 = vadd.f32 %v5904_v56, %v5812_v51  ;;  %v3091_v52 = vadd.f32 %v5906_v41, %v2885_v36 }
 0x1b8   : > { %v4522_v43 = vpop.f32.mrf.mxu1 }
 0x1b9   : > { %v3295_v58 = vadd.f32 %v4522_v43, %v3089_v61  ;;  %v3554_v26 = vmax.f32 %v3522_v2, 0.0  ;;  %v3520_v23 = vadd.f32 %v3393_v40, %v3292_v54  ;;  %v3396_v20 = vpop.f32.mrf.mxu0  ;;  %v2888_v40 = vadd.f32 %v5908_v55, %v5815_v3 }
 0x1ba   : > { %v3168_v0 = vpop.f32.mrf.mxu1 }
 0x1bb   : > { %v3293_v63 = vadd.f32 %v3168_v0, %v3087_v5  ;;  %v4096_v42 = vpack.c.bf16 %v3554_v26, %v3554_v26  ;;  %v3552_v62 = vmax.f32 %v3520_v23, 0.0  ;;  %v3523_v6 = vadd.f32 %v4556_v49, %v3295_v58  ;;  %v4559_v54 = vpop.f32.mrf.mxu0 }
 0x1bc   : > { %v4525_v30 = vpop.f32.mrf.mxu1  ;;  %v3093_v5 = vadd.f32 %v5902_v21, %v2887_v22  ;;  %v3096_v0 = vadd.f32 %v5910_v7, %v2890_v15 }
 0x1bd   : > { %v3298_v57 = vadd.f32 %v4525_v30, %v3092_v24  ;;  %3715 = vst.msk [vmem:[%s6021_s8 + $0x8] sm:$0xf] %vm3712_vm5, %v4096_v42  ;;  %v4094_v37 = vpack.c.bf16 %v3552_v62, %v3552_v62  ;;  %v3555_v48 = vmax.f32 %v3523_v6, 0.0  ;;  %v3521_v34 = vadd.f32 %v3396_v20, %v3293_v63  ;;  %v3409_v58 = vpop.f32.mrf.mxu0 }
 0x1be   : > { %v3181_v61 = vpop.f32.mrf.mxu1  ;;  %v2891_v24 = vadd.f32 %v5912_v13, %v5818_v28  ;;  %v3094_v42 = vadd.f32 %v5914_v4, %v2888_v40  ;;  %v2889_v62 = vadd.f32 %v5916_v14, %v5821_v19  ;;  %v2894_v20 = vadd.f32 %v5920_v8, %v5824_v46 }
 0x1bf   : > { %v3296_v2 = vadd.f32 %v3181_v61, %v3090_v50  ;;  %3713 = vst.msk [vmem:[%s6021_s8] sm:$0xf] %vm3712_vm5, %v4094_v37  ;;  %v4097_v38 = vpack.c.bf16 %v3555_v48, %v3555_v48  ;;  %v3553_v47 = vmax.f32 %v3521_v34, 0.0  ;;  %v3526_v9 = vadd.f32 %v4559_v54, %v3298_v57  ;;  %v4560_v22 = vpop.f32.mrf.mxu0 }
 0x1c0   : > { %v4526_v43 = vpop.f32.mrf.mxu1  ;;  %v3097_v36 = vadd.f32 %v5918_v45, %v2891_v24  ;;  %v3095_v34 = vadd.f32 %v5922_v25, %v2889_v62  ;;  %v2892_v61 = vadd.f32 %v5924_v27, %v5827_v32  ;;  %v2893_v40 = vadd.f32 %v5932_v16, %v5833_v18  ;;  %v6302_v62 = vld [vmem:[#allocation3_spill] sm:$0xff] }
 0x1c1   : > { %v3299_v26 = vadd.f32 %v4526_v43, %v3093_v5  ;;  %3716 = vst.msk [vmem:[%s6021_s8 + $0xc] sm:$0xf] %vm3712_vm5, %v4097_v38  ;;  %v4095_v21 = vpack.c.bf16 %v3553_v47, %v3553_v47  ;;  %v3558_v51 = vmax.f32 %v3526_v9, 0.0  ;;  %v3524_v56 = vadd.f32 %v3409_v58, %v3296_v2  ;;  %v3412_v6 = vpop.f32.mrf.mxu0 }
 0x1c2   : > { %v3184_v23 = vpop.f32.mrf.mxu1  ;;  %v3100_v2 = vadd.f32 %v5926_v29, %v2894_v20  ;;  %v2895_v38 = vadd.f32 %v5928_v39, %v5830_v12  ;;  %v6305_v20 = vld [vmem:[#allocation5_spill] sm:$0xff] }
 0x1c3   : > { %v3297_v49 = vadd.f32 %v3184_v23, %v3091_v52  ;;  %3714 = vst.msk [vmem:[%s6021_s8 + $0x4] sm:$0xf] %vm3712_vm5, %v4095_v21  ;;  %v4100_v41 = vpack.c.bf16 %v3558_v51, %v3558_v51  ;;  %v3556_v3 = vmax.f32 %v3524_v56, 0.0  ;;  %v3527_v55 = vadd.f32 %v4560_v22, %v3299_v26  ;;  %v4563_v57 = vpop.f32.mrf.mxu0 }
 0x1c4   : > { %v4529_v63 = vpop.f32.mrf.mxu1  ;;  %v3098_v52 = vadd.f32 %v5930_v33, %v2892_v61  ;;  %v3101_v51 = vadd.f32 %v5934_v17, %v2895_v38  ;;  %v2898_v56 = vadd.f32 %v5936_v59, %v5836_v31  ;;  %v3099_v22 = vadd.f32 %v5938_v10, %v2893_v40 }
 0x1c5   : > { %v3302_v30 = vadd.f32 %v4529_v63, %v3096_v0  ;;  %3719 = vst.msk [vmem:[%s6021_s8 + $0x18] sm:$0xf] %vm3712_vm5, %v4100_v41  ;;  %v4098_v7 = vpack.c.bf16 %v3556_v3, %v3556_v3  ;;  %v3559_v28 = vmax.f32 %v3527_v55, 0.0  ;;  %v3525_v13 = vadd.f32 %v3412_v6, %v3297_v49  ;;  %v3425_v5 = vpop.f32.mrf.mxu0 }
 0x1c6   : > { %v3197_v50 = vpop.f32.mrf.mxu1  ;;  %v2896_v49 = vadd.f32 %v5940_v60, %v5839_v11  ;;  %v3104_v63 = vadd.f32 %v5942_v1, %v2898_v56  ;;  %v6314_v56 = vld [vmem:[#allocation15_spill] sm:$0xff] }
 0x1c7   : > { %v3300_v37 = vadd.f32 %v3197_v50, %v3094_v42  ;;  %3717 = vst.msk [vmem:[%s6021_s8 + $0x10] sm:$0xf] %vm3712_vm5, %v4098_v7  ;;  %v4101_v4 = vpack.c.bf16 %v3559_v28, %v3559_v28  ;;  %v3557_v19 = vmax.f32 %v3525_v13, 0.0  ;;  %v3530_v14 = vadd.f32 %v4563_v57, %v3302_v30  ;;  %v4564_v47 = vpop.f32.mrf.mxu0  ;;  %v6301_v42 = vld [vmem:[#allocation25_spill] sm:$0xff]  ;;  %v6303_v13 = vld [vmem:[#allocation4_spill] sm:$0xff] }
 0x1c8   : > { %v4530_v48 = vpop.f32.mrf.mxu1  ;;  %v2899_v6 = vadd.f32 %v6302_v62, %v6301_v42  ;;  %v3102_v50 = vadd.f32 %v6303_v13, %v2896_v49  ;;  %v6315_v49 = vld [vmem:[#allocation17_spill] sm:$0xff] }
 0x1c9   : > { %v3303_v15 = vadd.f32 %v4530_v48, %v3097_v36  ;;  %3720 = vst.msk [vmem:[%s6021_s8 + $0x1c] sm:$0xf] %vm3712_vm5, %v4101_v4  ;;  %v4099_v45 = vpack.c.bf16 %v3557_v19, %v3557_v19  ;;  %v3562_v46 = vmax.f32 %v3530_v14, 0.0  ;;  %v3528_v8 = vadd.f32 %v3425_v5, %v3300_v37  ;;  %v3428_v58 = vpop.f32.mrf.mxu0  ;;  %v6304_v36 = vld [vmem:[#allocation26_spill] sm:$0xff]  ;;  %v6307_v5 = vld [vmem:[#allocation27_spill] sm:$0xff] }
 0x1ca   : > { %v3200_v54 = vpop.f32.mrf.mxu1  ;;  %v2897_v57 = vadd.f32 %v6305_v20, %v6304_v36 }
 0x1cb   : > { %v3301_v9 = vadd.f32 %v3200_v54, %v3095_v34  ;;  %3718 = vst.msk [vmem:[%s6021_s8 + $0x14] sm:$0xf] %vm3712_vm5, %v4099_v45  ;;  %v4104_v25 = vpack.c.bf16 %v3562_v46, %v3562_v46  ;;  %v3560_v32 = vmax.f32 %v3528_v8, 0.0  ;;  %v3531_v27 = vadd.f32 %v4564_v47, %v3303_v15  ;;  %v4567_v23 = vpop.f32.mrf.mxu0  ;;  %v6306_v34 = vld [vmem:[#allocation6_spill] sm:$0xff]  ;;  %v6308_v15 = vld [vmem:[#allocation7_spill] sm:$0xff] }
 0x1cc   : > { %v4533_v43 = vpop.f32.mrf.mxu1  ;;  %v3105_v61 = vadd.f32 %v6306_v34, %v2899_v6  ;;  %v2902_v45 = vadd.f32 %v6308_v15, %v6307_v5 }
 0x1cd   : > { %v3306_v26 = vadd.f32 %v4533_v43, %v3100_v2  ;;  %3723 = vst.msk [vmem:[%s6021_s8 + $0x28] sm:$0xf] %vm3712_vm5, %v4104_v25  ;;  %v4102_v29 = vpack.c.bf16 %v3560_v32, %v3560_v32  ;;  %v3563_v12 = vmax.f32 %v3531_v27, 0.0  ;;  %v3529_v39 = vadd.f32 %v3428_v58, %v3301_v9  ;;  %v3441_v41 = vpop.f32.mrf.mxu0  ;;  %v6309_v9 = vld [vmem:[#allocation9_spill] sm:$0xff]  ;;  %v6310_v32 = vld [vmem:[#allocation8_spill] sm:$0xff]  ;;  %v6311_v27 = vld [vmem:[#allocation11_spill] sm:$0xff] }
 0x1ce   : > { %v3213_v21 = vpop.f32.mrf.mxu1  ;;  %v3103_v25 = vadd.f32 %v6309_v9, %v2897_v57  ;;  %v2900_v43 = vadd.f32 %v6311_v27, %v6310_v32 }
 0x1cf   : > { %v3304_v0 = vadd.f32 %v3213_v21, %v3098_v52  ;;  %3721 = vst.msk [vmem:[%s6021_s8 + $0x20] sm:$0xf] %vm3712_vm5, %v4102_v29  ;;  %v4105_v33 = vpack.c.bf16 %v3563_v12, %v3563_v12  ;;  %v3561_v18 = vmax.f32 %v3529_v39, 0.0  ;;  %v3534_v16 = vadd.f32 %v4567_v23, %v3306_v26  ;;  %v4568_v30 = vpop.f32.mrf.mxu0  ;;  %v6312_v39 = vld [vmem:[#allocation13_spill] sm:$0xff] }
 0x1d0   : > { %v4534_v24 = vpop.f32.mrf.mxu1  ;;  %v3108_v21 = vadd.f32 %v6312_v39, %v2902_v45 }
 0x1d1   : > { %v3307_v3 = vadd.f32 %v4534_v24, %v3101_v51  ;;  %3724 = vst.msk [vmem:[%s6021_s8 + $0x2c] sm:$0xf] %vm3712_vm5, %v4105_v33  ;;  %v4103_v17 = vpack.c.bf16 %v3561_v18, %v3561_v18  ;;  %v3566_v31 = vmax.f32 %v3534_v16, 0.0  ;;  %v3532_v59 = vadd.f32 %v3441_v41, %v3304_v0  ;;  %v3444_v37 = vpop.f32.mrf.mxu0  ;;  %v6313_v51 = vld [vmem:[#allocation10_spill] sm:$0xff] }
 0x1d2   : > { %v3216_v55 = vpop.f32.mrf.mxu1  ;;  %v2903_v23 = vadd.f32 %v6314_v56, %v6313_v51  ;;  %v3106_v41 = vadd.f32 %v6315_v49, %v2900_v43 }
 0x1d3   : > { %v3305_v7 = vadd.f32 %v3216_v55, %v3099_v22  ;;  %3722 = vst.msk [vmem:[%s6021_s8 + $0x24] sm:$0xf] %vm3712_vm5, %v4103_v17  ;;  %v4108_v10 = vpack.c.bf16 %v3566_v31, %v3566_v31  ;;  %v3564_v11 = vmax.f32 %v3532_v59, 0.0  ;;  %v3535_v60 = vadd.f32 %v4568_v30, %v3307_v3  ;;  %v4571_v46 = vpop.f32.mrf.mxu0  ;;  %v6316_v3 = vld [vmem:[#allocation28_spill] sm:$0xff]  ;;  %v6317_v17 = vld [vmem:[#allocation19_spill] sm:$0xff]  ;;  %v6318_v30 = vld [vmem:[#allocation21_spill] sm:$0xff] }
 0x1d4   : > { %v4537_v28 = vpop.f32.mrf.mxu1  ;;  %v2901_v31 = vadd.f32 %v6317_v17, %v6316_v3 }
 0x1d5   : > { %v3310_v4 = vadd.f32 %v4537_v28, %v3104_v63  ;;  %3727 = vst.msk [vmem:[%s6021_s8 + $0x38] sm:$0xf] %vm3712_vm5, %v4108_v10  ;;  %v4106_v1 = vpack.c.bf16 %v3564_v11, %v3564_v11  ;;  %v3567_v19 = vmax.f32 %v3535_v60, 0.0  ;;  %v3533_v14 = vadd.f32 %v3444_v37, %v3305_v7  ;;  %v3457_v52 = vpop.f32.mrf.mxu0  ;;  %v6319_v10 = vld [vmem:[#allocation29_spill] sm:$0xff]  ;;  %v6320_v11 = vld [vmem:[#allocation22_spill] sm:$0xff]  ;;  %v6321_v37 = vld [vmem:[#allocation24_spill] sm:$0xff] }
 0x1d6   : > { %v3229_v48 = vpop.f32.mrf.mxu1  ;;  %v3109_v7 = vadd.f32 %v6318_v30, %v2903_v23  ;;  %v2906_v60 = vadd.f32 %v6320_v11, %v6319_v10 }
 0x1d7   : > { %v3308_v8 = vadd.f32 %v3229_v48, %v3102_v50  ;;  %3725 = vst.msk [vmem:[%s6021_s8 + $0x30] sm:$0xf] %vm3712_vm5, %v4106_v1  ;;  %v4109_v54 = vpack.c.bf16 %v3567_v19, %v3567_v19  ;;  %v3565_v2 = vmax.f32 %v3533_v14, 0.0  ;;  %v3538_v38 = vadd.f32 %v4571_v46, %v3310_v4  ;;  %v4572_v0 = vpop.f32.mrf.mxu0  ;;  %v6322_v1 = vld [vmem:[#allocation12_spill] sm:$0xff]  ;;  %v6323_v19 = vld [vmem:[#allocation30_spill] sm:$0xff]  ;;  %v6324_v46 = vld [vmem:[#allocation31_spill] sm:$0xff] }
 0x1d8   : > { %v4538_v47 = vpop.f32.mrf.mxu1  ;;  %v3107_v4 = vadd.f32 %v6321_v37, %v2901_v31  ;;  %v2904_v14 = vadd.f32 %v6323_v19, %v6322_v1 }
 0x1d9   : > { %v3311_v40 = vadd.f32 %v4538_v47, %v3105_v61  ;;  %3728 = vst.msk [vmem:[%s6021_s8 + $0x3c] sm:$0xf] %vm3712_vm5, %v4109_v54  ;;  %v4107_v58 = vpack.c.bf16 %v3565_v2, %v3565_v2  ;;  %v3570_v26 = vmax.f32 %v3538_v38, 0.0  ;;  %v3536_v29 = vadd.f32 %v3457_v52, %v3308_v8  ;;  %v3460_v59 = vpop.f32.mrf.mxu0  ;;  %v6325_v54 = vld [vmem:[#allocation14_spill] sm:$0xff]  ;;  %v6326_v2 = vld [vmem:[#allocation32_spill] sm:$0xff]  ;;  %v6327_v52 = vld [vmem:[#allocation33_spill] sm:$0xff] }
 0x1da   : > { %v3232_v12 = vpop.f32.mrf.mxu1  ;;  %v3112_v8 = vadd.f32 %v6324_v46, %v2906_v60  ;;  %v2907_v38 = vadd.f32 %v6326_v2, %v6325_v54  ;;  %v6340_v54 = vld [vmem:[#allocation41_spill] sm:$0xff] }
 0x1db   : > { %v3309_v33 = vadd.f32 %v3232_v12, %v3103_v25  ;;  %3726 = vst.msk [vmem:[%s6021_s8 + $0x34] sm:$0xf] %vm3712_vm5, %v4107_v58  ;;  %v4112_v18 = vpack.c.bf16 %v3570_v26, %v3570_v26  ;;  %v3568_v16 = vmax.f32 %v3536_v29, 0.0  ;;  %v3539_v24 = vadd.f32 %v4572_v0, %v3311_v40  ;;  %v4575_v28 = vpop.f32.mrf.mxu0  ;;  %v6328_v58 = vld [vmem:[#allocation16_spill] sm:$0xff]  ;;  %v6329_v26 = vld [vmem:[#allocation34_spill] sm:$0xff]  ;;  %v6330_v0 = vld [vmem:[#allocation35_spill] sm:$0xff] }
 0x1dc   : > { %v4541_v22 = vpop.f32.mrf.mxu1  ;;  %v3110_v40 = vadd.f32 %v6327_v52, %v2904_v14  ;;  %v2905_v29 = vadd.f32 %v6329_v26, %v6328_v58 }
 0x1dd   : > { %v3314_v55 = vadd.f32 %v4541_v22, %v3108_v21  ;;  %3731 = vst.msk [vmem:[%s6021_s8 + $0x48] sm:$0xf] %vm3712_vm5, %v4112_v18  ;;  %v4110_v63 = vpack.c.bf16 %v3568_v16, %v3568_v16  ;;  %v3571_v42 = vmax.f32 %v3539_v24, 0.0  ;;  %v3537_v62 = vadd.f32 %v3460_v59, %v3309_v33  ;;  %v3473_v48 = vpop.f32.mrf.mxu0  ;;  %v6331_v18 = vld [vmem:[#allocation18_spill] sm:$0xff]  ;;  %v6332_v16 = vld [vmem:[#allocation36_spill] sm:$0xff]  ;;  %v6333_v59 = vld [vmem:[#allocation37_spill] sm:$0xff] }
 0x1de   : > { %v3245_v6 = vpop.f32.mrf.mxu1  ;;  %v3113_v33 = vadd.f32 %v6330_v0, %v2907_v38  ;;  %v2910_v24 = vadd.f32 %v6332_v16, %v6331_v18 }
 0x1df   : > { %v3312_v13 = vadd.f32 %v3245_v6, %v3106_v41  ;;  %3729 = vst.msk [vmem:[%s6021_s8 + $0x40] sm:$0xf] %vm3712_vm5, %v4110_v63  ;;  %v4113_v50 = vpack.c.bf16 %v3571_v42, %v3571_v42  ;;  %v3569_v36 = vmax.f32 %v3537_v62, 0.0  ;;  %v3542_v20 = vadd.f32 %v4575_v28, %v3314_v55  ;;  %v4576_v47 = vpop.f32.mrf.mxu0  ;;  %v6334_v63 = vld [vmem:[#allocation20_spill] sm:$0xff]  ;;  %v6335_v42 = vld [vmem:[#allocation38_spill] sm:$0xff] }
 0x1e0   : > { %v4542_v57 = vpop.f32.mrf.mxu1  ;;  %v3111_v55 = vadd.f32 %v6333_v59, %v2905_v29  ;;  %v2908_v62 = vadd.f32 %v6335_v42, %v6334_v63  ;;  %v3116_v28 = vadd.f32 %v5991_v35, %v2910_v24 }
 0x1e1   : > { %v3315_v34 = vadd.f32 %v4542_v57, %v3109_v7  ;;  %3732 = vst.msk [vmem:[%s6021_s8 + $0x4c] sm:$0xf] %vm3712_vm5, %v4113_v50  ;;  %v4111_v61 = vpack.c.bf16 %v3569_v36, %v3569_v36  ;;  %v3574_v5 = vmax.f32 %v3542_v20, 0.0  ;;  %v3540_v15 = vadd.f32 %v3473_v48, %v3312_v13  ;;  %v3476_v12 = vpop.f32.mrf.mxu0  ;;  %v6336_v13 = vld [vmem:[#allocation23_spill] sm:$0xff]  ;;  %v6338_v48 = vld [vmem:[#allocation2_spill] sm:$0xff] }
 0x1e2   : > { %v3248_v45 = vpop.f32.mrf.mxu1  ;;  %v6337_v50 = vld [vmem:[#allocation39_spill] sm:$0xff]  ;;  %v3114_v14 = vadd.f32 %v5996_v53, %v2908_v62 }
 0x1e3   : > { %v3313_v9 = vadd.f32 %v3248_v45, %v3107_v4  ;;  %3730 = vst.msk [vmem:[%s6021_s8 + $0x44] sm:$0xf] %vm3712_vm5, %v4111_v61  ;;  %v4116_v25 = vpack.c.bf16 %v3574_v5, %v3574_v5  ;;  %v3572_v32 = vmax.f32 %v3540_v15, 0.0  ;;  %v3543_v27 = vadd.f32 %v4576_v47, %v3315_v34  ;;  %v6339_v34 = vld [vmem:[#allocation40_spill] sm:$0xff] }
 0x1e4   : > { %v4545_v43 = vpop.f32.mrf.mxu1  ;;  %v4579_v22 = vpop.f32.mrf.mxu0  ;;  %v2911_v36 = vadd.f32 %v6337_v50, %v6336_v13  ;;  %v2909_v61 = vadd.f32 %v6339_v34, %v6338_v48 }
 0x1e5   : > { %v3318_v39 = vadd.f32 %v4545_v43, %v3112_v8  ;;  %3735 = vst.msk [vmem:[%s6021_s8 + $0x58] sm:$0xf] %vm3712_vm5, %v4116_v25  ;;  %v4114_v21 = vpack.c.bf16 %v3572_v32, %v3572_v32  ;;  %v3575_v51 = vmax.f32 %v3543_v27, 0.0  ;;  %v3541_v56 = vadd.f32 %v3476_v12, %v3313_v9 }
 0x1e6   : > { %v3261_v23 = vpop.f32.mrf.mxu1  ;;  %v3489_v6 = vpop.f32.mrf.mxu0  ;;  %v3117_v2 = vadd.f32 %v6340_v54, %v2911_v36  ;;  %v3115_v27 = vadd.f32 %v6006_v44, %v2909_v61 }
 0x1e7   : > { %v3316_v49 = vadd.f32 %v3261_v23, %v3110_v40  ;;  %3733 = vst.msk [vmem:[%s6021_s8 + $0x50] sm:$0xf] %vm3712_vm5, %v4114_v21  ;;  %v4117_v41 = vpack.c.bf16 %v3575_v51, %v3575_v51  ;;  %v3573_v3 = vmax.f32 %v3541_v56, 0.0  ;;  %v3546_v17 = vadd.f32 %v4579_v22, %v3318_v39 }
 0x1e8   : > { %v4546_v31 = vpop.f32.mrf.mxu1  ;;  %v4580_v20 = vpop.f32.mrf.mxu0 }
 0x1e9   : > { %v3319_v30 = vadd.f32 %v4546_v31, %v3113_v33  ;;  %3736 = vst.msk [vmem:[%s6021_s8 + $0x5c] sm:$0xf] %vm3712_vm5, %v4117_v41  ;;  %v4115_v7 = vpack.c.bf16 %v3573_v3, %v3573_v3  ;;  %v3578_v10 = vmax.f32 %v3546_v17, 0.0  ;;  %v3544_v11 = vadd.f32 %v3489_v6, %v3316_v49 }
 0x1ea   : > { %v3264_v60 = vpop.f32.mrf.mxu1  ;;  %v3492_v5 = vpop.f32.mrf.mxu0 }
 0x1eb   : > { %v3317_v57 = vadd.f32 %v3264_v60, %v3111_v55  ;;  %3734 = vst.msk [vmem:[%s6021_s8 + $0x54] sm:$0xf] %vm3712_vm5, %v4115_v7  ;;  %v4120_v37 = vpack.c.bf16 %v3578_v10, %v3578_v10  ;;  %v3576_v4 = vmax.f32 %v3544_v11, 0.0  ;;  %v3547_v1 = vadd.f32 %v4580_v20, %v3319_v30 }
 0x1ec   : > { %v4549_v19 = vpop.f32.mrf.mxu1  ;;  %v4583_v38 = vpop.f32.mrf.mxu0 }
 0x1ed   : > { %v3322_v15 = vadd.f32 %v4549_v19, %v3116_v28  ;;  %3739 = vst.msk [vmem:[%s6021_s8 + $0x68] sm:$0xf] %vm3712_vm5, %v4120_v37  ;;  %v4118_v35 = vpack.c.bf16 %v3576_v4, %v3576_v4  ;;  %v3579_v45 = vmax.f32 %v3547_v1, 0.0  ;;  %v3545_v46 = vadd.f32 %v3492_v5, %v3317_v57 }
 0x1ee   : > { %v3277_v8 = vpop.f32.mrf.mxu1  ;;  %v3505_v43 = vpop.f32.mrf.mxu0 }
 0x1ef   : > { %v3320_v47 = vadd.f32 %v3277_v8, %v3114_v14  ;;  %3737 = vst.msk [vmem:[%s6021_s8 + $0x60] sm:$0xf] %vm3712_vm5, %v4118_v35  ;;  %v4121_v53 = vpack.c.bf16 %v3579_v45, %v3579_v45  ;;  %v3577_v9 = vmax.f32 %v3545_v46, 0.0  ;;  %v3550_v25 = vadd.f32 %v4583_v38, %v3322_v15 }
 0x1f0   : > { %v4550_v32 = vpop.f32.mrf.mxu1  ;;  %v4584_v12 = vpop.f32.mrf.mxu0 }
 0x1f1   : > { %v3323_v52 = vadd.f32 %v4550_v32, %v3117_v2  ;;  %3740 = vst.msk [vmem:[%s6021_s8 + $0x6c] sm:$0xf] %vm3712_vm5, %v4121_v53  ;;  %v4119_v40 = vpack.c.bf16 %v3577_v9, %v3577_v9  ;;  %v3582_v58 = vmax.f32 %v3550_v25, 0.0  ;;  %v3548_v26 = vadd.f32 %v3505_v43, %v3320_v47 }
 0x1f2   : > { %v3280_v29 = vpop.f32.mrf.mxu1  ;;  %v3508_v23 = vpop.f32.mrf.mxu0 }
 0x1f3   : > { %v3321_v39 = vadd.f32 %v3280_v29, %v3115_v27  ;;  %3738 = vst.msk [vmem:[%s6021_s8 + $0x64] sm:$0xf] %vm3712_vm5, %v4119_v40  ;;  %v4124_v21 = vpack.c.bf16 %v3582_v58, %v3582_v58  ;;  %v3580_v51 = vmax.f32 %v3548_v26, 0.0  ;;  %v3551_v56 = vadd.f32 %v4584_v12, %v3323_v52 }
 0x1f5   : > { %3743 = vst.msk [vmem:[%s6021_s8 + $0x78] sm:$0xf] %vm3712_vm5, %v4124_v21  ;;  %v4122_v44 = vpack.c.bf16 %v3580_v51, %v3580_v51  ;;  %v3583_v0 = vmax.f32 %v3551_v56, 0.0  ;;  %v3549_v33 = vadd.f32 %v3508_v23, %v3321_v39 }
 0x1f7   : > { %3741 = vst.msk [vmem:[%s6021_s8 + $0x70] sm:$0xf] %vm3712_vm5, %v4122_v44  ;;  %v4125_v18 = vpack.c.bf16 %v3583_v0, %v3583_v0  ;;  %v3581_v16 = vmax.f32 %v3549_v33, 0.0 }
 0x1f9   : > { %3744 = vst.msk [vmem:[%s6021_s8 + $0x7c] sm:$0xf] %vm3712_vm5, %v4125_v18  ;;  %v4123_v24 = vpack.c.bf16 %v3581_v16, %v3581_v16 }
 0x1fb   : > { %3742 = vst.msk [vmem:[%s6021_s8 + $0x74] sm:$0xf] %vm3712_vm5, %v4123_v24 }
 0x1fc PF: > { %s12_s9 = sadd.s32 1, %s4684_s9  }
 0x1fd   : > { %p9_p4 = scmp.ge.s32.totalorder %s12_s9, 4  }
 0x1ff   :  { %11 = sbr.rel (!%p9_p4) target bundleno = 1 (0x1), region = 66 }

// kernel: forward.5
= control target key start
LH: loop header
LB: loop body
LE: loop exit
PB: predicated region body
PF: predicated region fallthrough
CT: control target
= control target key end

     0   :  { %s4716_s12 = smov 0   ;;  %s5898_s0 = inlined_call_operand.vmem [shape: bf16[2,4,9,9,8], index: 0, kind: input, shape index: {}]   ;;  %s5899_s1 = inlined_call_operand.vmem [shape: bf16[9,8,8], index: 1, kind: input, shape index: {}]   ;;  %s5900_s2 = inlined_call_operand.vmem [shape: bf16[2,9,8,8], index: 2, kind: input, shape index: {}]   ;;  %s5901_s3 = inlined_call_operand.vmem [shape: bf16[2,8,8,8], index: 3, kind: output, shape index: {}]  }
   0x1 LB: > { %s3914_s13 = sadd.s32 4294967295, %s4693_s12   ;;  %p3918_p0 = scmp.ge.s32.totalorder %s4693_s12, 1  ;;  %s4693_s12 = sphi %s4716_s12, %s13_s12  }
   0x2   : > { %p137_p1 = scmp.lt.s32.totalorder %s4693_s12, 3 }
   0x4   : > { %p138_p2 = pnand %p3918_p0, %p137_p1 }
   0x6   : > { %141 = sbr.rel (%p138_p2) target bundleno = 904 (0x388), region = 32 }
   0xb   : > { %v3922_v0 = vld [vmem:[%s5899_s1 + $0x4] sm:$0xf]  ;;  %vm281_vm0 = vcmask 1043456   ;;  %p161_p3 = scmp.lt.s32.totalorder %s3914_s13, 1  ;;  %v245_v2 = vld [vmem:[%s5899_s1] sm:$0xf] }
   0xc   : > { %4608 = vmatprep.subr.msk.bf16.mxu1 %vm281_vm0, %v3922_v0  ;;  %4607 = vmatprep.subr.msk.bf16.mxu0 %vm281_vm0, %v3922_v0  ;;  %v283_v1 = vsel %vm281_vm0, %v3922_v0, 0  ;;  %v3939_v3 = vld [vmem:[%s5899_s1 + $0x8] sm:$0xf]  ;;  %v3948_v4 = vld [vmem:[%s5899_s1 + $0xc] sm:$0xf]  ;;  %vm268_vm1 = vcmask 64512  }
   0xd   : > { %4606 = vmatpush3.bf16.msra.mxu1 %v283_v1  ;;  %4336 = vmatpush3.bf16.msra.mxu0 %v283_v1  ;;  %s5985_s13 = smov (!%p161_p3, %s3914_s13), 1  ;;  %v383_v5 = vsel %vm281_vm0, %v245_v2, 0  ;;  %v592_v6 = vsel %vm281_vm0, %v3939_v3, 0  ;;  %vm450_vm2 = vsmask.f32 3328  ;;  %v4752_v7 = vsel %vm281_vm0, %v3948_v4, 0 }
   0xe   : > { %4609 = vmatprep.subr.msk.bf16.mxu1 %vm281_vm0, %v245_v2  ;;  %4610 = vmatprep.subr.msk.bf16.mxu0 %vm281_vm0, %v3939_v3  ;;  %s4635_s22 = smul.u32 288, %s5985_s13  ;;  %vm451_vm3 = vsmask.f32 7440  ;;  %v3957_v11 = vld [vmem:[%s5899_s1 + $0x10] sm:$0xf]  ;;  %v5928_v47 = vmov 0 }
   0xf   : > { %v4807_v35 = vsel %vm281_vm0, %v3957_v11, 0  ;;  %vm4821_vm4 = vmor %vm450_vm2, %vm451_vm3  ;;  %v3966_v57 = vld [vmem:[%s5899_s1 + $0x14] sm:$0xf]  ;;  %vm172_vm5 = vcmask 60416   ;;  %vm174_vm6 = vcmask 57344   ;;  %vm1920_vm11 = vcmask 1042432  }
  0x10   : > { %s4748_s25 = scalar_lea.vmem %s5898_s0, %s4635_s22  ;;  %v5929_v47 = vsel %vm4821_vm4, 4294967295, %v5928_v47  ;;  %vm1532_vm7 = vsmask.f32 7938  ;;  %vm1538_vm8 = vsmask.f32 256  ;;  %vm1921_vm12 = vcmask 1046532  }
  0x11   : > { %v212_v8 = vld [vmem:[%s4748_s25 + $0x48] sm:$0xf]  ;;  %v4756_v9 = vld [vmem:[%s4748_s25 + $0x50] sm:$0xf]  ;;  %v4759_v10 = vld [vmem:[%s4748_s25 + $0x58] sm:$0xf] }
  0x12   : > { %v3923_v12 = vcombine.low %v212_v8, %v4756_v9  ;;  %v4766_v13 = vld [vmem:[%s4748_s25 + $0x60] sm:$0xf]  ;;  %v4769_v14 = vld [vmem:[%s4748_s25 + $0x68] sm:$0xf]  ;;  %v4772_v15 = vld [vmem:[%s4748_s25 + $0x70] sm:$0xf] }
  0x13   : > { %v4775_v16 = vld [vmem:[%s4748_s25 + $0x78] sm:$0xf]  ;;  %v4778_v17 = vld [vmem:[%s4748_s25 + $0x80] sm:$0xf]  ;;  %v3924_v18 = vcombine.low %v4759_v10, %v4766_v13  ;;  %v3925_v19 = vcombine.low %v4769_v14, %v4772_v15  ;;  %v4789_v22 = vld [vmem:[%s4748_s25 + $0x8] sm:$0xf] }
  0x14   : > { %v194_v20 = vld [vmem:[%s4748_s25] sm:$0xf]  ;;  %4337 = vmatprep.mubr.msk.bf16.mxu0 %vm268_vm1, %v3923_v12  ;;  %v3926_v21 = vcombine.low %v4775_v16, %v4778_v17  ;;  %v4792_v25 = vld [vmem:[%s4748_s25 + $0x10] sm:$0xf]  ;;  %v468_v27 = vshrl.u32 %v4789_v22, 16  ;;  %v471_v28 = vshll.u32 %v4789_v22, 16  ;;  %vm5126_vm9 = vmand %vm172_vm5, %vm1532_vm7 }
  0x15   : > { %v454_v23 = vshrl.u32 %v194_v20, 16  ;;  %v457_v24 = vshll.u32 %v194_v20, 16  ;;  %4341 = vmatprep.mubr.msk.bf16.mxu1 %vm268_vm1, %v3925_v19  ;;  %4338 = vmatmul.mubr.msk.bf16.vlgmr.msra.gmra.mxu0 %vm268_vm1, %v3924_v18  ;;  %v3931_v26 = vcombine.low %v194_v20, %v4789_v22  ;;  %v4800_v29 = vld [vmem:[%s4748_s25 + $0x18] sm:$0xf]  ;;  %v482_v30 = vshrl.u32 %v4792_v25, 16  ;;  %5930 = vst [vmem:[#allocation3_spill] sm:$0xff] %v5929_v47  ;;  %vm5132_vm10 = vmand %vm174_vm6, %vm1538_vm8 }
  0x16   : > { %4342 = vmatmul.mubr.msk.bf16.vlgmr.msra.gmra.mxu1 %vm268_vm1, %v3926_v21  ;;  %4356 = vmatpush3.bf16.msra.mxu0 %v592_v6  ;;  %v485_v33 = vshll.u32 %v4792_v25, 16  ;;  %v195_v34 = vld [vmem:[%s4748_s25 + $0x4] sm:$0x1]  ;;  %v496_v36 = vshrl.u32 %v4800_v29, 16  ;;  %v499_v37 = vshll.u32 %v4800_v29, 16  ;;  %v470_v40 = vrot.slane %v468_v27, 4  ;;  %vm5329_vm13 = vmor %vm1920_vm11, %vm1921_vm12 }
  0x17   : > { %v456_v31 = vrot.slane %v454_v23, 4  ;;  %v459_v32 = vrot.slane %v457_v24, 5  ;;  %4346 = vmatpush3.bf16.msra.mxu1 %v383_v5  ;;  %4347 = vmatprep.mubr.msk.bf16.mxu1 %vm268_vm1, %v3931_v26  ;;  %v197_v38 = vld [vmem:[%s4748_s25 + $0xc] sm:$0x1]  ;;  %v463_v39 = vshll.u32 %v195_v34, 16  ;;  %v3932_v41 = vcombine.low %v4792_v25, %v4800_v29  ;;  %s4183_s22 = sshll.u32 %s5985_s13, 5 }
  0x18   : > { %4611 = vmatprep.subr.msk.bf16.mxu1 %vm281_vm0, %v3948_v4  ;;  %v473_v43 = vrot.slane %v471_v28, 5  ;;  %v477_v44 = vshll.u32 %v197_v38, 16  ;;  %v199_v45 = vld [vmem:[%s4748_s25 + $0x14] sm:$0x1]  ;;  %v201_v46 = vld [vmem:[%s4748_s25 + $0x1c] sm:$0x1]  ;;  %4612 = vmatprep.subr.msk.bf16.mxu0 %vm281_vm0, %v3957_v11  ;;  %s5862_s13 = scalar_lea.vmem %s5901_s3, %s4183_s22 }
  0x19   : > { %v460_v42 = vor.u32 %v459_v32, %v456_v31  ;;  %v465_v48 = vrot.slane %v463_v39, 5  ;;  %v484_v49 = vrot.slane %v482_v30, 4  ;;  %v487_v50 = vrot.slane %v485_v33, 5  ;;  %v4826_v52 = vld [vmem:[%s4748_s25 + $0x20] sm:$0xf] }
  0x1a   : > { %v491_v51 = vshll.u32 %v199_v45, 16  ;;  %v474_v54 = vor.u32 %v473_v43, %v470_v40  ;;  %v479_v55 = vrot.slane %v477_v44, 5  ;;  %v498_v56 = vrot.slane %v496_v36, 4  ;;  %v4832_v62 = vld [vmem:[%s4748_s25 + $0x28] sm:$0xf] }
  0x1b   : > { %v461_v53 = vrot.slane %v460_v42, 4  ;;  %v488_v58 = vor.u32 %v487_v50, %v484_v49  ;;  %v501_v60 = vrot.slane %v499_v37, 5  ;;  %v505_v61 = vshll.u32 %v201_v46, 16  ;;  %v4840_v3 = vld [vmem:[%s4748_s25 + $0x30] sm:$0xf] }
  0x1c   : > { %v493_v59 = vrot.slane %v491_v51, 5  ;;  %v475_v0 = vrot.slane %v474_v54, 4  ;;  %v3933_v1 = vcombine.low %v4826_v52, %v4832_v62  ;;  %v510_v2 = vshrl.u32 %v4826_v52, 16  ;;  %v4844_v11 = vld [vmem:[%s4748_s25 + $0x38] sm:$0xf] }
  0x1d   : > { %v466_v63 = vsel %vm4821_vm4, %v461_v53, %v465_v48  ;;  %v489_v4 = vrot.slane %v488_v58, 4  ;;  %v502_v5 = vor.u32 %v501_v60, %v498_v56  ;;  %v507_v6 = vrot.slane %v505_v61, 5  ;;  %v203_v20 = vld [vmem:[%s4748_s25 + $0x24] sm:$0x1]  ;;  %v205_v28 = vld [vmem:[%s4748_s25 + $0x2c] sm:$0x1] }
  0x1e   : > { %v513_v8 = vshll.u32 %v4826_v52, 16  ;;  %4348 = vmatmul.mubr.msk.bf16.vlgmr.msra.gmra.mxu1 %vm268_vm1, %v3932_v41  ;;  %v4849_v12 = vsel %vm4821_vm4, %v475_v0, %v479_v55  ;;  %v524_v18 = vshrl.u32 %v4832_v62, 16  ;;  %v527_v19 = vshll.u32 %v4832_v62, 16  ;;  %v207_v30 = vld [vmem:[%s4748_s25 + $0x34] sm:$0x1] }
  0x1f   : > { %v4855_v21 = vsel %vm281_vm0, %v3966_v57, 0  ;;  %v3940_v23 = vcombine.low %v466_v63, %v4849_v12  ;;  %4366 = vmatpush3.bf16.msra.mxu1 %v4752_v7  ;;  %v4861_v24 = vsel %vm4821_vm4, %v489_v4, %v493_v59  ;;  %v503_v26 = vrot.slane %v502_v5, 4  ;;  %4351 = vmatprep.mubr.msk.bf16.mxu1 %vm268_vm1, %v3933_v1  ;;  %v209_v34 = vld [vmem:[%s4748_s25 + $0x3c] sm:$0x1]  ;;  %v221_v40 = vld [vmem:[%s4748_s25 + $0x90] sm:$0xf] }
  0x20   : > { %v3934_v27 = vcombine.low %v4840_v3, %v4844_v11  ;;  %v538_v31 = vshrl.u32 %v4840_v3, 16  ;;  %v541_v32 = vshll.u32 %v4840_v3, 16  ;;  %v552_v7 = vshrl.u32 %v4844_v11, 16  ;;  %4613 = vmatprep.subr.msk.bf16.mxu1 %vm281_vm0, %v3966_v57  ;;  %v223_v41 = vld [vmem:[%s4748_s25 + $0x98] sm:$0xf] }
  0x21   : > { %v555_v33 = vshll.u32 %v4844_v11, 16  ;;  %4357 = vmatprep.mubr.msk.bf16.mxu0 %vm268_vm1, %v3940_v23  ;;  %v4877_v36 = vsel %vm4821_vm4, %v503_v26, %v507_v6  ;;  %v512_v37 = vrot.slane %v510_v2, 4  ;;  %v515_v38 = vrot.slane %v513_v8, 5  ;;  %v3975_v42 = vld [vmem:[%s5899_s1 + $0x18] sm:$0xf] }
  0x22   : > { %v519_v39 = vshll.u32 %v203_v20, 16  ;;  %v3941_v43 = vcombine.low %v4861_v24, %v4877_v36  ;;  %v526_v44 = vrot.slane %v524_v18, 4  ;;  %v529_v45 = vrot.slane %v527_v19, 5  ;;  %v225_v6 = vld [vmem:[%s4748_s25 + $0xa0] sm:$0xf] }
  0x23   : > { %v533_v46 = vshll.u32 %v205_v28, 16  ;;  %v516_v48 = vor.u32 %v515_v38, %v512_v37  ;;  %v540_v50 = vrot.slane %v538_v31, 4  ;;  %v543_v51 = vrot.slane %v541_v32, 5  ;;  %v227_v8 = vld [vmem:[%s4748_s25 + $0xa8] sm:$0xf] }
  0x24   : > { %v521_v49 = vrot.slane %v519_v39, 5  ;;  %4358 = vmatmul.mubr.msk.bf16.vlgmr.msra.gmra.mxu0 %vm268_vm1, %v3941_v43  ;;  %v530_v53 = vor.u32 %v529_v45, %v526_v44  ;;  %v547_v55 = vshll.u32 %v207_v30, 16  ;;  %v554_v56 = vrot.slane %v552_v7, 4  ;;  %v4659_v31 = vld [vmem:[%s4748_s25 + $0xd8] ss:$8 sps:$4 sm:$0xff]  }
  0x25   : > { %v535_v54 = vrot.slane %v533_v46, 5  ;;  %4376 = vmatpush3.bf16.msra.mxu0 %v4807_v35  ;;  %v517_v57 = vrot.slane %v516_v48, 4  ;;  %v544_v58 = vor.u32 %v543_v51, %v540_v50  ;;  %v557_v59 = vrot.slane %v555_v33, 5  ;;  %v229_v32 = vld [vmem:[%s4748_s25 + $0xb0] sm:$0xf] }
  0x26   : > { %v561_v60 = vshll.u32 %v209_v34, 16  ;;  %4352 = vmatmul.mubr.msk.bf16.gmra.mxu1 %vm268_vm1, %v3934_v27  ;;  %v531_v61 = vrot.slane %v530_v53, 4  ;;  %v549_v63 = vrot.slane %v547_v55, 5  ;;  %v3949_v0 = vcombine.low %v221_v40, %v223_v41  ;;  %4614 = vmatprep.subr.msk.bf16.mxu0 %vm281_vm0, %v3975_v42  ;;  %v231_v37 = vld [vmem:[%s4748_s25 + $0xb8] sm:$0xf] }
  0x27   : > { %v888_v1 = vshrl.u32 %v221_v40, 16  ;;  %v4892_v2 = vsel %vm4821_vm4, %v517_v57, %v521_v49  ;;  %v545_v35 = vrot.slane %v544_v58, 4  ;;  %v558_v4 = vor.u32 %v557_v59, %v554_v56  ;;  %v233_v44 = vld [vmem:[%s4748_s25 + $0xc0] sm:$0xf]  ;;  %v235_v45 = vld [vmem:[%s4748_s25 + $0xc8] sm:$0xf] }
  0x28   : > { %v563_v5 = vrot.slane %v561_v60, 5  ;;  %v4898_v18 = vsel %vm4821_vm4, %v531_v61, %v535_v54  ;;  %4367 = vmatprep.mubr.msk.bf16.mxu1 %vm268_vm1, %v3949_v0  ;;  %v891_v20 = vshll.u32 %v221_v40, 16  ;;  %v4904_v23 = vsel %vm281_vm0, %v3975_v42, 0 }
  0x29   : > { %v4901_v19 = vrot.slane %v888_v1, 4  ;;  %v3942_v26 = vcombine.low %v4892_v2, %v4898_v18  ;;  %v4910_v27 = vsel %vm4821_vm4, %v545_v35, %v549_v63  ;;  %v559_v28 = vrot.slane %v558_v4, 4  ;;  %v222_v1 = vld [vmem:[%s4748_s25 + $0x94] sm:$0x1]  ;;  %v4660_v35 = vld [vmem:[%s4748_s25 + $0xe8] ss:$8 sps:$4 sm:$0xff]  }
  0x2a   : > { %v902_v30 = vshrl.u32 %v223_v41, 16  ;;  %v905_v7 = vshll.u32 %v223_v41, 16  ;;  %v3950_v33 = vcombine.low %v225_v6, %v227_v8  ;;  %v916_v34 = vshrl.u32 %v225_v6, 16  ;;  %v4927_v41 = vld [vmem:[%s5899_s1 + $0x1c] sm:$0xf] }
  0x2b   : > { %v3976_v38 = vcombine.low %v4789_v22, %v4792_v25  ;;  %4361 = vmatprep.mubr.msk.bf16.mxu0 %vm268_vm1, %v3942_v26  ;;  %v4920_v39 = vsel %vm4821_vm4, %v559_v28, %v563_v5  ;;  %v893_v40 = vrot.slane %v891_v20, 5  ;;  %v919_v42 = vshll.u32 %v225_v6, 16  ;;  %v224_v20 = vld [vmem:[%s4748_s25 + $0x9c] sm:$0x1] }
  0x2c   : > { %v930_v43 = vshrl.u32 %v227_v8, 16  ;;  %v3943_v46 = vcombine.low %v4910_v27, %v4920_v39  ;;  %v904_v48 = vrot.slane %v902_v30, 4  ;;  %v907_v49 = vrot.slane %v905_v7, 5 }
  0x2d   : > { %v933_v50 = vshll.u32 %v227_v8, 16  ;;  %v918_v51 = vrot.slane %v916_v34, 4  ;;  %v921_v53 = vrot.slane %v919_v42, 5  ;;  %v3951_v54 = vcombine.low %v229_v32, %v231_v37 }
  0x2e   : > { %v944_v55 = vshrl.u32 %v229_v32, 16  ;;  %4362 = vmatmul.mubr.msk.bf16.gmra.mxu0 %vm268_vm1, %v3943_v46  ;;  %4368 = vmatmul.mubr.msk.bf16.vlgmr.msra.gmra.mxu1 %vm268_vm1, %v3950_v33  ;;  %v932_v56 = vrot.slane %v930_v43, 4  ;;  %v947_v57 = vshll.u32 %v229_v32, 16  ;;  %v958_v58 = vshrl.u32 %v231_v37, 16  ;;  %v4663_v43 = vld [vmem:[%s4748_s25 + $0xf8] ss:$8 sps:$4 sm:$0xff]  }
  0x2f   : > { %v961_v59 = vshll.u32 %v231_v37, 16  ;;  %v935_v60 = vrot.slane %v933_v50, 5  ;;  %4377 = vmatprep.mubr.msk.bf16.mxu0 %vm268_vm1, %v4659_v31  ;;  %4386 = vmatpush3.bf16.msra.mxu1 %v4855_v21  ;;  %v972_v63 = vshrl.u32 %v233_v44, 16  ;;  %v975_v0 = vshll.u32 %v233_v44, 16  ;;  %v226_v31 = vld [vmem:[%s4748_s25 + $0xa4] sm:$0x1] }
  0x30   : > { %v946_v61 = vrot.slane %v944_v55, 4  ;;  %4371 = vmatprep.mubr.msk.bf16.mxu1 %vm268_vm1, %v3951_v54  ;;  %v949_v4 = vrot.slane %v947_v57, 5  ;;  %v960_v5 = vrot.slane %v958_v58, 4  ;;  %v3952_v6 = vcombine.low %v233_v44, %v235_v45  ;;  %4615 = vmatprep.subr.msk.bf16.mxu1 %vm281_vm0, %v4927_v41  ;;  %v228_v37 = vld [vmem:[%s4748_s25 + $0xac] sm:$0x1] }
  0x31   : > { %v986_v8 = vshrl.u32 %v235_v45, 16  ;;  %v963_v26 = vrot.slane %v961_v59, 5  ;;  %v974_v21 = vrot.slane %v972_v63, 4  ;;  %v989_v28 = vshll.u32 %v235_v45, 16  ;;  %v3993_v54 = vld [vmem:[%s5899_s1 + $0x20] sm:$0xf] }
  0x32   : > { %v894_v30 = vor.u32 %v893_v40, %v4901_v19  ;;  %v977_v32 = vrot.slane %v975_v0, 5  ;;  %v897_v7 = vshll.u32 %v222_v1, 16  ;;  %v908_v33 = vor.u32 %v907_v49, %v904_v48  ;;  %v230_v57 = vld [vmem:[%s4748_s25 + $0xb4] sm:$0x1]  ;;  %v232_v63 = vld [vmem:[%s4748_s25 + $0xbc] sm:$0x1] }
  0x33   : > { %v911_v34 = vshll.u32 %v224_v20, 16  ;;  %v988_v42 = vrot.slane %v986_v8, 4  ;;  %v922_v46 = vor.u32 %v921_v53, %v918_v51  ;;  %v925_v50 = vshll.u32 %v226_v31, 16  ;;  %v236_v31 = vld [vmem:[%s4748_s25 + $0xcc] sm:$0x1] }
  0x34   : > { %v895_v44 = vrot.slane %v894_v30, 4  ;;  %v899_v45 = vrot.slane %v897_v7, 5  ;;  %v909_v19 = vrot.slane %v908_v33, 4  ;;  %v936_v55 = vor.u32 %v935_v60, %v932_v56  ;;  %v234_v56 = vld [vmem:[%s4748_s25 + $0xc4] sm:$0x1] }
  0x35   : > { %v913_v40 = vrot.slane %v911_v34, 5  ;;  %v991_v58 = vrot.slane %v989_v28, 5  ;;  %v923_v48 = vrot.slane %v922_v46, 4  ;;  %v927_v49 = vrot.slane %v925_v50, 5  ;;  %v4664_v34 = vld [vmem:[%s4748_s25 + $0x108] ss:$8 sps:$4 sm:$0xff]  }
  0x36   : > { %v939_v59 = vshll.u32 %v228_v37, 16  ;;  %4378 = vmatmul.mubr.msk.bf16.vlgmr.msra.gmra.mxu0 %vm268_vm1, %v4660_v35  ;;  %4372 = vmatmul.mubr.msk.bf16.gmra.mxu1 %vm268_vm1, %v3952_v6  ;;  %v900_v51 = vsel %vm4821_vm4, %v895_v44, %v899_v45  ;;  %v937_v0 = vrot.slane %v936_v55, 4  ;;  %v950_v1 = vor.u32 %v949_v4, %v946_v61 }
  0x37   : > { %v914_v53 = vsel %vm4821_vm4, %v909_v19, %v913_v40  ;;  %4396 = vmatpush3.bf16.msra.mxu0 %v4904_v23  ;;  %4381 = vmatprep.mubr.msk.bf16.mxu0 %vm268_vm1, %v4663_v43  ;;  %v928_v35 = vsel %vm4821_vm4, %v923_v48, %v927_v49  ;;  %v953_v8 = vshll.u32 %v230_v57, 16  ;;  %v964_v28 = vor.u32 %v963_v26, %v960_v5 }
  0x38   : > { %v3967_v60 = vcombine.low %v900_v51, %v914_v53  ;;  %v941_v6 = vrot.slane %v939_v59, 5  ;;  %4616 = vmatprep.subr.msk.bf16.mxu0 %vm281_vm0, %v3993_v54  ;;  %v951_v20 = vrot.slane %v950_v1, 4  ;;  %v967_v30 = vshll.u32 %v232_v63, 16  ;;  %v211_v59 = vld [vmem:[%s4748_s25 + $0x44] sm:$0x1] }
  0x39   : > { %v978_v61 = vor.u32 %v977_v32, %v974_v21  ;;  %v955_v4 = vrot.slane %v953_v8, 5  ;;  %v981_v7 = vshll.u32 %v234_v56, 16  ;;  %v992_v33 = vor.u32 %v991_v58, %v988_v42  ;;  %v220_v21 = vld [vmem:[%s4748_s25 + $0x88] sm:$0xf]  ;;  %v5061_v53 = vld [vmem:[%s5900_s2 + $0xc] sm:$0xf] }
  0x3a   : > { %4387 = vmatprep.mubr.msk.bf16.mxu1 %vm268_vm1, %v3967_v60  ;;  %v942_v23 = vsel %vm4821_vm4, %v937_v0, %v941_v6  ;;  %v965_v43 = vrot.slane %v964_v28, 4  ;;  %v969_v44 = vrot.slane %v967_v30, 5  ;;  %v995_v45 = vshll.u32 %v236_v31, 16  ;;  %v5054_v51 = vld [vmem:[%s5900_s2 + $0x8] sm:$0xf] }
  0x3b   : > { %v3968_v37 = vcombine.low %v928_v35, %v942_v23  ;;  %v979_v46 = vrot.slane %v978_v61, 4  ;;  %v956_v5 = vsel %vm4821_vm4, %v951_v20, %v955_v4  ;;  %v983_v26 = vrot.slane %v981_v7, 5 }
  0x3c   : > { %v993_v50 = vrot.slane %v992_v33, 4  ;;  %v1218_v32 = vsel %vm281_vm0, %v4927_v41, 0  ;;  %v970_v19 = vsel %vm4821_vm4, %v965_v43, %v969_v44  ;;  %v997_v42 = vrot.slane %v995_v45, 5 }
  0x3d   : > { %v3969_v40 = vcombine.low %v956_v5, %v970_v19  ;;  %v3988_v55 = vcombine.low %v4778_v17, %v220_v21  ;;  %v984_v41 = vsel %vm4821_vm4, %v979_v46, %v983_v26  ;;  %v3977_v58 = vcombine.low %v4800_v29, %v4826_v52 }
  0x3e   : > { %4382 = vmatmul.mubr.msk.bf16.gmra.mxu0 %vm268_vm1, %v4664_v34  ;;  %4388 = vmatmul.mubr.msk.bf16.vlgmr.msra.gmra.mxu1 %vm268_vm1, %v3968_v37  ;;  %v998_v57 = vsel %vm4821_vm4, %v993_v50, %v997_v42  ;;  %v3978_v17 = vcombine.low %v4832_v62, %v4840_v3  ;;  %v3985_v22 = vcombine.low %v4756_v9, %v4759_v10  ;;  %v1327_v25 = vsel %vm281_vm0, %v3993_v54, 0 }
  0x3f   : > { %4397 = vmatprep.mubr.msk.bf16.mxu0 %vm268_vm1, %v3976_v38  ;;  %4406 = vmatpush3.bf16.msra.mxu1 %v1218_v32  ;;  %v3970_v48 = vcombine.low %v984_v41, %v998_v57  ;;  %v210_v38 = vld [vmem:[%s4748_s25 + $0x40] sm:$0xf]  ;;  %v3986_v52 = vcombine.low %v4766_v13, %v4769_v14  ;;  %v3987_v10 = vcombine.low %v4772_v15, %v4775_v16  ;;  %v1303_v14 = vshll.u32 %v211_v59, 16 }
  0x40   : > { %4391 = vmatprep.mubr.msk.bf16.mxu1 %vm268_vm1, %v3969_v40  ;;  %v1294_v49 = vshrl.u32 %v210_v38, 16  ;;  %v1297_v29 = vshll.u32 %v210_v38, 16  ;;  %v3979_v9 = vcombine.low %v4844_v11, %v210_v38  ;;  %v3994_v54 = vcombine.low %v4849_v12, %v4861_v24 }
  0x41   : > { %v3995_v11 = vcombine.low %v4877_v36, %v4892_v2  ;;  %v3996_v15 = vcombine.low %v4898_v18, %v4910_v27  ;;  %v1305_v63 = vrot.slane %v1303_v14, 5  ;;  %v4695_v36 = vmov 0   ;;  %v1605_v2 = vld [vmem:[%s5900_s2] sm:$0xf]  ;;  %v4010_v27 = vld [vmem:[%s5900_s2 + $0x4] sm:$0xf] }
  0x42   : > { %v1296_v62 = vrot.slane %v1294_v49, 4  ;;  %v1299_v3 = vrot.slane %v1297_v29, 5  ;;  %180 = vst.msk [vmem:[#allocation2 + $0x18] sm:$0xf] %vm172_vm5, %v4695_v36  ;;  %173 = vst.msk [vmem:[#allocation2] sm:$0xf] %vm172_vm5, %v4695_v36  ;;  %4617 = vmatprep.subr.msk.bf16.mxu1 %vm281_vm0, %v4010_v27 }
  0x43   : > { %181 = vst.msk [vmem:[#allocation2 + $0x1c] sm:$0x1] %vm174_vm6, %v4695_v36  ;;  %175 = vst.msk [vmem:[#allocation2 + $0x4] sm:$0x1] %vm174_vm6, %v4695_v36  ;;  %v1845_v18 = vsel %vm281_vm0, %v1605_v2, 0 }
  0x44   : > { %v1300_v13 = vor.u32 %v1299_v3, %v1296_v62  ;;  %176 = vst.msk [vmem:[#allocation2 + $0x8] sm:$0xf] %vm172_vm5, %v4695_v36  ;;  %178 = vst.msk [vmem:[#allocation2 + $0x10] sm:$0xf] %vm172_vm5, %v4695_v36 }
  0x45   : > { %177 = vst.msk [vmem:[#allocation2 + $0xc] sm:$0x1] %vm174_vm6, %v4695_v36  ;;  %179 = vst.msk [vmem:[#allocation2 + $0x14] sm:$0x1] %vm174_vm6, %v4695_v36 }
  0x46   : > { %4398 = vmatmul.mubr.msk.bf16.vlgmr.msra.gmra.mxu0 %vm268_vm1, %v3977_v58  ;;  %4392 = vmatmul.mubr.msk.bf16.gmra.mxu1 %vm268_vm1, %v3970_v48  ;;  %v1301_v16 = vrot.slane %v1300_v13, 4  ;;  %182 = vst.msk [vmem:[#allocation2 + $0x20] sm:$0xf] %vm172_vm5, %v4695_v36  ;;  %184 = vst.msk [vmem:[#allocation2 + $0x28] sm:$0xf] %vm172_vm5, %v4695_v36 }
  0x47   : > { %4416 = vmatpush3.bf16.msra.mxu0 %v1327_v25  ;;  %4401 = vmatprep.mubr.msk.bf16.mxu0 %vm268_vm1, %v3978_v17  ;;  %183 = vst.msk [vmem:[#allocation2 + $0x24] sm:$0x1] %vm174_vm6, %v4695_v36  ;;  %185 = vst.msk [vmem:[#allocation2 + $0x2c] sm:$0x1] %vm174_vm6, %v4695_v36 }
  0x48   : > { %4407 = vmatprep.mubr.msk.bf16.mxu1 %vm268_vm1, %v3985_v22  ;;  %v1306_v12 = vsel %vm4821_vm4, %v1301_v16, %v1305_v63  ;;  %186 = vst.msk [vmem:[#allocation2 + $0x30] sm:$0xf] %vm172_vm5, %v4695_v36  ;;  %188 = vst.msk [vmem:[#allocation2 + $0x38] sm:$0xf] %vm172_vm5, %v4695_v36  ;;  %4618 = vmatprep.subr.msk.bf16.mxu0 %vm281_vm0, %v1605_v2 }
  0x49   : > { %v3997_v24 = vcombine.low %v4920_v39, %v1306_v12  ;;  %187 = vst.msk [vmem:[#allocation2 + $0x34] sm:$0x1] %vm174_vm6, %v4695_v36  ;;  %189 = vst.msk [vmem:[#allocation2 + $0x3c] sm:$0x1] %vm174_vm6, %v4695_v36  ;;  %v1745_v39 = vsel %vm281_vm0, %v4010_v27, 0 }
  0x4a   : > { %190 = vst.msk [vmem:[#allocation2 + $0x40] sm:$0xf] %vm172_vm5, %v4695_v36  ;;  %192 = vst.msk [vmem:[#allocation2 + $0x48] sm:$0xf] %vm172_vm5, %v4695_v36 }
  0x4b   : > { %191 = vst.msk [vmem:[#allocation2 + $0x44] sm:$0x1] %vm174_vm6, %v4695_v36  ;;  %193 = vst.msk [vmem:[#allocation2 + $0x4c] sm:$0x1] %vm174_vm6, %v4695_v36 }
  0x4e   : > { %4402 = vmatmul.mubr.msk.bf16.gmra.mxu0 %vm268_vm1, %v3979_v9  ;;  %4408 = vmatmul.mubr.msk.bf16.vlgmr.msra.gmra.mxu1 %vm268_vm1, %v3986_v52 }
  0x4f   : > { %4417 = vmatprep.mubr.msk.bf16.mxu0 %vm268_vm1, %v3994_v54  ;;  %4411 = vmatprep.mubr.msk.bf16.mxu1 %vm268_vm1, %v3987_v10 }
  0x50   : > { %4426 = vmatpush3.bf16.msra.mxu1 %v1745_v39 }
  0x51   : > { %4619 = vmatprep.subr.msk.bf16.mxu1 %vm281_vm0, %v5054_v51 }
  0x56   : > { %4418 = vmatmul.mubr.msk.bf16.vlgmr.msra.gmra.mxu0 %vm268_vm1, %v3995_v11  ;;  %4412 = vmatmul.mubr.msk.bf16.gmra.mxu1 %vm268_vm1, %v3988_v55 }
  0x57   : > { %4421 = vmatprep.mubr.msk.bf16.mxu0 %vm268_vm1, %v3996_v15  ;;  %4436 = vmatpush3.bf16.msra.mxu0 %v1845_v18 }
  0x58   : > { %4620 = vmatprep.subr.msk.bf16.mxu0 %vm281_vm0, %v5061_v53 }
  0x5e   : > { %4422 = vmatmul.mubr.msk.bf16.gmra.mxu0 %vm268_vm1, %v3997_v24 }
  0xd5   : > { %v4339_v0 = vpop.f32.mrf.mxu0 }
  0xd6   : > { %v4343_v1 = vpop.f32.mrf.mxu1 }
  0xd7   : > { %v319_v56 = vpop.f32.mrf.mxu0 }
  0xd8   : > { %v335_v60 = vpop.f32.mrf.mxu1 }
  0xd9   : > { %v4340_v6 = vpop.f32.mrf.mxu0 }
  0xda   : > { %v5065_v35 = vpop.f32.mrf.mxu1 }
  0xdb   : > { %v322_v28 = vpop.f32.mrf.mxu0 }
  0xdc   : > { %v5067_v8 = vpop.f32.mrf.mxu1 }
  0xde   : > { %v4349_v20 = vpop.f32.mrf.mxu1 }
  0xdf   : > { %v428_v29 = vadd.f32 %v4349_v20, %v4339_v0  ;;  %v5081_v20 = vld [vmem:[#allocation2] sm:$0xf] }
  0xe0   : > { %v419_v30 = vpop.f32.mrf.mxu1 }
  0xe1   : > { %v420_v10 = vadd.f32 %v419_v30, %v319_v56 }
  0xe2   : > { %v4350_v31 = vpop.f32.mrf.mxu1 }
  0xe3   : > { %v431_v59 = vadd.f32 %v4350_v31, %v4340_v6 }
  0xe4   : > { %v4359_v61 = vpop.f32.mrf.mxu0  ;;  %v422_v23 = vpop.f32.mrf.mxu1 }
  0xe5   : > { %v661_v54 = vadd.f32 %v4359_v61, %v428_v29  ;;  %v423_v15 = vadd.f32 %v422_v23, %v322_v28 }
  0xe6   : > { %v628_v4 = vpop.f32.mrf.mxu0  ;;  %v4353_v7 = vpop.f32.mrf.mxu1 }
  0xe7   : > { %v659_v11 = vadd.f32 %v628_v4, %v420_v10  ;;  %v444_v2 = vadd.f32 %v4353_v7, %v4343_v1 }
  0xe8   : > { %v4360_v33 = vpop.f32.mrf.mxu0  ;;  %v435_v34 = vpop.f32.mrf.mxu1 }
  0xe9   : > { %v662_v24 = vadd.f32 %v4360_v33, %v431_v59  ;;  %v436_v30 = vadd.f32 %v435_v34, %v335_v60 }
  0xea   : > { %v631_v37 = vpop.f32.mrf.mxu0  ;;  %v4354_v43 = vpop.f32.mrf.mxu1 }
  0xeb   : > { %v660_v39 = vadd.f32 %v631_v37, %v423_v15 }
  0xec   : > { %v438_v44 = vpop.f32.mrf.mxu1 }
  0xed   : > { %v439_v33 = vadd.f32 %v438_v44, %v5067_v8 }
  0xee   : > { %v4363_v46 = vpop.f32.mrf.mxu0  ;;  %v4369_v5 = vpop.f32.mrf.mxu1 }
  0xef   : > { %v771_v16 = vadd.f32 %v4369_v5, %v661_v54  ;;  %v665_v23 = vadd.f32 %v4363_v46, %v444_v2  ;;  %v447_v5 = vadd.f32 %v4354_v43, %v5065_v35 }
  0xf0   : > { %v644_v26 = vpop.f32.mrf.mxu0  ;;  %v738_v50 = vpop.f32.mrf.mxu1 }
  0xf1   : > { %v769_v36 = vadd.f32 %v738_v50, %v659_v11  ;;  %v1607_v50 = vshrl.u32 %v5081_v20, 16  ;;  %v663_v29 = vadd.f32 %v644_v26, %v436_v30 }
  0xf2   : > { %v4364_v45 = vpop.f32.mrf.mxu0  ;;  %v4370_v21 = vpop.f32.mrf.mxu1 }
  0xf3   : > { %v772_v56 = vadd.f32 %v4370_v21, %v662_v24  ;;  %v1610_v21 = vshll.u32 %v5081_v20, 16  ;;  %v666_v46 = vadd.f32 %v4364_v45, %v447_v5  ;;  %v1609_v44 = vrot.slane %v1607_v50, 4 }
  0xf4   : > { %v647_v32 = vpop.f32.mrf.mxu0  ;;  %v741_v19 = vpop.f32.mrf.mxu1 }
  0xf5   : > { %v770_v4 = vadd.f32 %v741_v19, %v660_v39  ;;  %v664_v54 = vadd.f32 %v647_v32, %v439_v33 }
  0xf6   : > { %v4379_v40 = vpop.f32.mrf.mxu0  ;;  %v4373_v42 = vpop.f32.mrf.mxu1 }
  0xf7   : > { %v881_v0 = vadd.f32 %v4379_v40, %v771_v16  ;;  %v775_v60 = vadd.f32 %v4373_v42, %v665_v23 }
  0xf8   : > { %v848_v55 = vpop.f32.mrf.mxu0  ;;  %v754_v41 = vpop.f32.mrf.mxu1 }
  0xf9   : > { %v879_v61 = vadd.f32 %v848_v55, %v769_v36  ;;  %v773_v35 = vadd.f32 %v754_v41, %v663_v29 }
  0xfa   : > { %v4380_v57 = vpop.f32.mrf.mxu0  ;;  %v5069_v58 = vpop.f32.mrf.mxu1 }
  0xfb   : > { %v882_v37 = vadd.f32 %v4380_v57, %v772_v56  ;;  %v1612_v57 = vrot.slane %v1610_v21, 5  ;;  %v776_v16 = vadd.f32 %v5069_v58, %v666_v46 }
  0xfc   : > { %v851_v48 = vpop.f32.mrf.mxu0  ;;  %v5071_v17 = vpop.f32.mrf.mxu1 }
  0xfd   : > { %v880_v55 = vadd.f32 %v851_v48, %v770_v4  ;;  %v774_v26 = vadd.f32 %v5071_v17, %v664_v54  ;;  %v1613_v58 = vor.u32 %v1612_v57, %v1609_v44  ;;  %v1549_v57 = vld [vmem:[#allocation2 + $0x18] sm:$0xf] }
  0xfe   : > { %v4383_v22 = vpop.f32.mrf.mxu0  ;;  %v4389_v25 = vpop.f32.mrf.mxu1 }
  0xff   : > { %v1095_v28 = vadd.f32 %v4389_v25, %v881_v0  ;;  %v5108_v33 = vrot.slane %v1613_v58, 4  ;;  %v1540_v58 = vld [vmem:[#allocation2 + $0xc] sm:$0x1] }
 0x100   : > { %v5073_v38 = vpop.f32.mrf.mxu0  ;;  %v1062_v49 = vpop.f32.mrf.mxu1 }
 0x101   : > { %v1093_v40 = vadd.f32 %v1062_v49, %v879_v61  ;;  %v885_v49 = vadd.f32 %v4383_v22, %v775_v60  ;;  %v883_v45 = vadd.f32 %v5073_v38, %v773_v35 }
 0x102   : > { %v5075_v52 = vpop.f32.mrf.mxu0  ;;  %v4390_v9 = vpop.f32.mrf.mxu1 }
 0x103   : > { %v1096_v25 = vadd.f32 %v4390_v9, %v882_v37  ;;  %v5089_v9 = vld [vmem:[#allocation2 + $0x4] sm:$0x1]  ;;  %v886_v17 = vadd.f32 %v5075_v52, %v776_v16 }
 0x104   : > { %v5077_v62 = vpop.f32.mrf.mxu0  ;;  %v1065_v3 = vpop.f32.mrf.mxu1 }
 0x105   : > { %v1094_v11 = vadd.f32 %v1065_v3, %v880_v55  ;;  %v1616_v3 = vshll.u32 %v5089_v9, 16  ;;  %v884_v39 = vadd.f32 %v5077_v62, %v774_v26  ;;  %v5939_v26 = vmov 0 }
 0x106   : > { %v4399_v13 = vpop.f32.mrf.mxu0  ;;  %v4393_v14 = vpop.f32.mrf.mxu1  ;;  %v5940_v26 = vsel %vm5132_vm10, 4294967295, %v5939_v26 }
 0x107   : > { %v1191_v19 = vadd.f32 %v4399_v13, %v1095_v28  ;;  %v1099_v32 = vadd.f32 %v4393_v14, %v885_v49  ;;  %v5101_v5 = vrot.slane %v1616_v3, 5  ;;  %5941 = vst [vmem:[#allocation10_spill] sm:$0xff] %v5940_v26  ;;  %v5512_v26 = vld [vmem:[#allocation2] sm:$0xf] }
 0x108   : > { %v1158_v63 = vpop.f32.mrf.mxu0  ;;  %v1078_v12 = vpop.f32.mrf.mxu1 }
 0x109   : > { %v1189_v59 = vadd.f32 %v1158_v63, %v1093_v40  ;;  %v1619_v46 = vsel %vm4821_vm4, %v5108_v33, %v5101_v5 }
 0x10a   : > { %v4400_v18 = vpop.f32.mrf.mxu0  ;;  %v5079_v27 = vpop.f32.mrf.mxu1 }
 0x10b   : > { %v1192_v48 = vadd.f32 %v4400_v18, %v1096_v25  ;;  %v1097_v18 = vadd.f32 %v1078_v12, %v883_v45  ;;  %v1100_v4 = vadd.f32 %v5079_v27, %v886_v17 }
 0x10c   : > { %v1161_v6 = vpop.f32.mrf.mxu0  ;;  %v1081_v31 = vpop.f32.mrf.mxu1 }
 0x10d   : > { %v1190_v63 = vadd.f32 %v1161_v6, %v1094_v11  ;;  %v1098_v6 = vadd.f32 %v1081_v31, %v884_v39 }
 0x10e   : > { %v4403_v1 = vpop.f32.mrf.mxu0  ;;  %v4409_v7 = vpop.f32.mrf.mxu1 }
 0x10f   : > { %v1287_v15 = vadd.f32 %v4409_v7, %v1191_v19  ;;  %v1195_v61 = vadd.f32 %v4403_v1, %v1099_v32 }
 0x110   : > { %v1174_v34 = vpop.f32.mrf.mxu0  ;;  %v1254_v10 = vpop.f32.mrf.mxu1 }
 0x111   : > { %v1285_v13 = vadd.f32 %v1254_v10, %v1189_v59  ;;  %v1193_v7 = vadd.f32 %v1174_v34, %v1097_v18 }
 0x112   : > { %v4404_v43 = vpop.f32.mrf.mxu0  ;;  %v4410_v8 = vpop.f32.mrf.mxu1 }
 0x113   : > { %v1288_v22 = vadd.f32 %v4410_v8, %v1192_v48  ;;  %v1196_v29 = vadd.f32 %v4404_v43, %v1100_v4 }
 0x114   : > { %v1177_v42 = vpop.f32.mrf.mxu0  ;;  %v1257_v24 = vpop.f32.mrf.mxu1 }
 0x115   : > { %v1286_v14 = vadd.f32 %v1257_v24, %v1190_v63  ;;  %v1194_v60 = vadd.f32 %v1177_v42, %v1098_v6  ;;  %v1552_v42 = vld [vmem:[#allocation2 + $0x1c] sm:$0x1]  ;;  %v1534_v63 = vld [vmem:[#allocation2 + $0x8] sm:$0xf] }
 0x116   : > { %v4419_v41 = vpop.f32.mrf.mxu0  ;;  %v4413_v36 = vpop.f32.mrf.mxu1 }
 0x117   : > { %v5093_v2 = vadd.f32 %v4419_v41, %v1287_v15  ;;  %v1291_v1 = vadd.f32 %v4413_v36, %v1195_v61  ;;  %v5936_v15 = vmov 0 }
 0x118   : > { %v1363_v0 = vpop.f32.mrf.mxu0  ;;  %v1270_v56 = vpop.f32.mrf.mxu1  ;;  %v5937_v15 = vsel %vm5126_vm9, 4294967295, %v5936_v15 }
 0x119   : > { %5931 = vst [vmem:[#allocation4_spill] sm:$0xff] %v5093_v2  ;;  %v5909_v30 = vmax.f32 %v5093_v2, 0.0  ;;  %v5098_v38 = vadd.f32 %v1363_v0, %v1285_v13  ;;  %v1289_v55 = vadd.f32 %v1270_v56, %v1193_v7  ;;  %5938 = vst [vmem:[#allocation9_spill] sm:$0xff] %v5937_v15 }
 0x11a   : > { %v4420_v28 = vpop.f32.mrf.mxu0  ;;  %v4414_v23 = vpop.f32.mrf.mxu1 }
 0x11b   : > { %5932 = vst [vmem:[#allocation5_spill] sm:$0xff] %v5098_v38  ;;  %v1412_v52 = vmax.f32 %v5909_v30, 0.0  ;;  %v5908_v62 = vmax.f32 %v5098_v38, 0.0  ;;  %v5106_v12 = vadd.f32 %v4420_v28, %v1288_v22  ;;  %v1292_v43 = vadd.f32 %v4414_v23, %v1196_v29 }
 0x11c   : > { %v1366_v50 = vpop.f32.mrf.mxu0  ;;  %v1273_v21 = vpop.f32.mrf.mxu1 }
 0x11d   : > { %5933 = vst [vmem:[#allocation6_spill] sm:$0xff] %v5106_v12  ;;  %v4186_v37 = vpack.c.bf16 %v1412_v52, %v1412_v52  ;;  %v1410_v27 = vmax.f32 %v5908_v62, 0.0  ;;  %v5907_v31 = vmax.f32 %v5106_v12, 0.0  ;;  %v5113_v40 = vadd.f32 %v1366_v50, %v1286_v14 }
 0x11e   : > { %v4423_v10 = vpop.f32.mrf.mxu0  ;;  %v1290_v44 = vadd.f32 %v1273_v21, %v1194_v60 }
 0x11f   : > { %5934 = vst [vmem:[#allocation7_spill] sm:$0xff] %v5113_v40  ;;  %v1467_v19 = vshrl.u32 %v4186_v37, 16  ;;  %v4184_v25 = vpack.c.bf16 %v1410_v27, %v1410_v27  ;;  %v1413_v34 = vmax.f32 %v5907_v31, 0.0  ;;  %v5906_v54 = vmax.f32 %v5113_v40, 0.0  ;;  %v1558_v27 = vld [vmem:[#allocation2 + $0x24] sm:$0x1] }
 0x120   : > { %v5122_v35 = vadd.f32 %v4423_v10, %v1291_v1  ;;  %v1379_v8 = vpop.f32.mrf.mxu0  ;;  %v1470_v11 = vshll.u32 %v4186_v37, 16  ;;  %v1555_v37 = vld [vmem:[#allocation2 + $0x20] sm:$0xf] }
 0x121   : > { %v1469_v59 = vrot.slane %v1467_v19, 7  ;;  %v1451_v49 = vshrl.u32 %v4184_v25, 16  ;;  %v4187_v16 = vpack.c.bf16 %v1413_v34, %v1413_v34  ;;  %v1454_v24 = vshll.u32 %v4184_v25, 16  ;;  %v1543_v25 = vld [vmem:[#allocation2 + $0x10] sm:$0xf] }
 0x122   : > { %5935 = vst [vmem:[#allocation8_spill] sm:$0xff] %v5122_v35  ;;  %v1411_v48 = vmax.f32 %v5906_v54, 0.0  ;;  %v5905_v13 = vmax.f32 %v5122_v35, 0.0  ;;  %v5139_v45 = vadd.f32 %v1379_v8, %v1289_v55  ;;  %v4424_v32 = vpop.f32.mrf.mxu0  ;;  %v1546_v34 = vld [vmem:[#allocation2 + $0x14] sm:$0x1] }
 0x123   : > { %v1472_v41 = vor.u32 %v1470_v11, %v1469_v59  ;;  %v1473_v36 = vrot.slane %v1469_v59, 4  ;;  %v1453_v3 = vrot.slane %v1451_v49, 7  ;;  %v1475_v22 = vshrl.u32 %v4187_v16, 16 }
 0x124   : > { %5942 = vst [vmem:[#allocation11_spill] sm:$0xff] %v5139_v45  ;;  %v1478_v17 = vshll.u32 %v4187_v16, 16  ;;  %v4185_v39 = vpack.c.bf16 %v1411_v48, %v1411_v48  ;;  %v1416_v18 = vmax.f32 %v5905_v13, 0.0  ;;  %v5904_v0 = vmax.f32 %v5139_v45, 0.0  ;;  %v1382_v7 = vpop.f32.mrf.mxu0 }
 0x125   : > { %v1550_v56 = vsel %vm5126_vm9, %v1472_v41, %v1549_v57  ;;  %v1553_v14 = vsel %vm5132_vm10, %v1473_v36, %v1552_v42  ;;  %v1456_v61 = vor.u32 %v1454_v24, %v1453_v3  ;;  %v1457_v4 = vrot.slane %v1453_v3, 4  ;;  %v1576_v3 = vld [vmem:[#allocation2 + $0x3c] sm:$0x1] }
 0x126   : > { %1551 = vst [vmem:[#allocation2 + $0x18] sm:$0xf] %v1550_v56  ;;  %1554 = vst [vmem:[#allocation2 + $0x1c] sm:$0x1] %v1553_v14  ;;  %v1477_v6 = vrot.slane %v1475_v22, 7  ;;  %v1459_v28 = vshrl.u32 %v4185_v39, 16  ;;  %v4190_v52 = vpack.c.bf16 %v1416_v18, %v1416_v18  ;;  %v5154_v29 = vadd.f32 %v4424_v32, %v1292_v43 }
 0x127   : > { %v1462_v23 = vshll.u32 %v4185_v39, 16  ;;  %v1535_v50 = vsel %vm5126_vm9, %v1456_v61, %v1534_v63  ;;  %v1541_v1 = vsel %vm5132_vm10, %v1457_v4, %v1540_v58  ;;  %v1414_v21 = vmax.f32 %v5904_v0, 0.0  ;;  %v1573_v32 = vld [vmem:[#allocation2 + $0x38] sm:$0xf]  ;;  %v1561_v22 = vld [vmem:[#allocation2 + $0x28] sm:$0xf] }
 0x128   : > { %5943 = vst [vmem:[#allocation12_spill] sm:$0xff] %v5154_v29  ;;  %1536 = vst [vmem:[#allocation2 + $0x8] sm:$0xf] %v1535_v50  ;;  %v1480_v60 = vor.u32 %v1478_v17, %v1477_v6  ;;  %v1481_v10 = vrot.slane %v1477_v6, 4  ;;  %v1461_v55 = vrot.slane %v1459_v28, 7  ;;  %v1499_v19 = vshrl.u32 %v4190_v52, 16 }
 0x129   : > { %1542 = vst [vmem:[#allocation2 + $0xc] sm:$0x1] %v1541_v1  ;;  %v4188_v8 = vpack.c.bf16 %v1414_v21, %v1414_v21  ;;  %v5903_v59 = vmax.f32 %v5154_v29, 0.0  ;;  %v5157_v11 = vadd.f32 %v1382_v7, %v1290_v44  ;;  %v5161_v57 = vsel %vm281_vm0, %v5061_v53, 0  ;;  %v1564_v4 = vld [vmem:[#allocation2 + $0x2c] sm:$0x1] }
 0x12a   : > { %v1556_v43 = vsel %vm5126_vm9, %v1480_v60, %v1555_v37  ;;  %v1559_v49 = vsel %vm5132_vm10, %v1481_v10, %v1558_v27  ;;  %v1464_v16 = vor.u32 %v1462_v23, %v1461_v55  ;;  %v1465_v42 = vrot.slane %v1461_v55, 4 }
 0x12b   : > { %5944 = vst [vmem:[#allocation13_spill] sm:$0xff] %v5157_v11  ;;  %1557 = vst [vmem:[#allocation2 + $0x20] sm:$0xf] %v1556_v43  ;;  %v1501_v24 = vrot.slane %v1499_v19, 7  ;;  %v1502_v48 = vshll.u32 %v4190_v52, 16  ;;  %v1483_v41 = vshrl.u32 %v4188_v8, 16 }
 0x12c   : > { %1560 = vst [vmem:[#allocation2 + $0x24] sm:$0x1] %v1559_v49  ;;  %v1417_v44 = vmax.f32 %v5903_v59, 0.0  ;;  %v1544_v53 = vsel %vm5126_vm9, %v1464_v16, %v1543_v25  ;;  %v1547_v36 = vsel %vm5132_vm10, %v1465_v42, %v1546_v34  ;;  %v1486_v63 = vshll.u32 %v4188_v8, 16  ;;  %v1579_v8 = vld [vmem:[#allocation2 + $0x40] sm:$0xf] }
 0x12d   : > { %v5902_v58 = vmax.f32 %v5157_v11, 0.0  ;;  %1545 = vst [vmem:[#allocation2 + $0x10] sm:$0xf] %v1544_v53  ;;  %1548 = vst [vmem:[#allocation2 + $0x14] sm:$0x1] %v1547_v36  ;;  %v1504_v17 = vor.u32 %v1502_v48, %v1501_v24  ;;  %v1505_v39 = vrot.slane %v1501_v24, 4 }
 0x12e   : > { %v1485_v18 = vrot.slane %v1483_v41, 7  ;;  %v4191_v56 = vpack.c.bf16 %v1417_v44, %v1417_v44  ;;  %v5174_v14 = vld [vmem:[#allocation2 + $0x18] sm:$0xf]  ;;  %v5176_v61 = vld [vmem:[#allocation2 + $0x1c] sm:$0x1] }
 0x12f   : > { %v1415_v6 = vmax.f32 %v5902_v58, 0.0  ;;  %v1649_v28 = vshrl.u32 %v5174_v14, 16  ;;  %v1652_v23 = vshll.u32 %v5174_v14, 16  ;;  %v1658_v52 = vshll.u32 %v5176_v61, 16  ;;  %v5187_v27 = vld [vmem:[#allocation2 + $0x8] sm:$0xf] }
 0x130   : > { %v1574_v7 = vsel %vm5126_vm9, %v1504_v17, %v1573_v32  ;;  %v1577_v50 = vsel %vm5132_vm10, %v1505_v39, %v1576_v3  ;;  %v1488_v1 = vor.u32 %v1486_v63, %v1485_v18  ;;  %v1489_v37 = vrot.slane %v1485_v18, 4  ;;  %v5189_v21 = vld [vmem:[#allocation2 + $0xc] sm:$0x1]  ;;  %v1582_v42 = vld [vmem:[#allocation2 + $0x44] sm:$0x1] }
 0x131   : > { %1575 = vst [vmem:[#allocation2 + $0x38] sm:$0xf] %v1574_v7  ;;  %1578 = vst [vmem:[#allocation2 + $0x3c] sm:$0x1] %v1577_v50  ;;  %v1507_v60 = vshrl.u32 %v4191_v56, 16  ;;  %v1510_v10 = vshll.u32 %v4191_v56, 16  ;;  %v4189_v55 = vpack.c.bf16 %v1415_v6, %v1415_v6  ;;  %v4019_v19 = vcombine.low %v5081_v20, %v5187_v27 }
 0x132   : > { %v1562_v25 = vsel %vm5126_vm9, %v1488_v1, %v1561_v22  ;;  %v1565_v34 = vsel %vm5132_vm10, %v1489_v37, %v1564_v4  ;;  %v1621_v43 = vshrl.u32 %v5187_v27, 16  ;;  %v1624_v49 = vshll.u32 %v5187_v27, 16  ;;  %v1567_v41 = vld [vmem:[#allocation2 + $0x30] sm:$0xf]  ;;  %v1570_v56 = vld [vmem:[#allocation2 + $0x34] sm:$0x1] }
 0x133   : > { %1563 = vst [vmem:[#allocation2 + $0x28] sm:$0xf] %v1562_v25  ;;  %1566 = vst [vmem:[#allocation2 + $0x2c] sm:$0x1] %v1565_v34  ;;  %v1509_v16 = vrot.slane %v1507_v60, 7  ;;  %v1491_v24 = vshrl.u32 %v4189_v55, 16  ;;  %4437 = vmatprep.mubr.msk.bf16.mxu0 %vm268_vm1, %v4019_v19 }
 0x134   : > { %v1494_v48 = vshll.u32 %v4189_v55, 16  ;;  %v1630_v32 = vshll.u32 %v5189_v21, 16  ;;  %v1623_v44 = vrot.slane %v1621_v43, 4  ;;  %v1626_v53 = vrot.slane %v1624_v49, 5  ;;  %v5201_v39 = vld [vmem:[#allocation2 + $0x10] sm:$0xf] }
 0x135   : > { %v1651_v36 = vrot.slane %v1649_v28, 4  ;;  %v1654_v3 = vrot.slane %v1652_v23, 5  ;;  %v1512_v63 = vor.u32 %v1510_v10, %v1509_v16  ;;  %v1513_v22 = vrot.slane %v1509_v16, 4  ;;  %v5207_v7 = vld [vmem:[#allocation2 + $0x14] sm:$0x1] }
 0x136   : > { %v1493_v17 = vrot.slane %v1491_v24, 7  ;;  %v1632_v18 = vrot.slane %v1630_v32, 5  ;;  %v5205_v4 = vcombine.low %v5201_v39, %v5174_v14  ;;  %v1627_v6 = vor.u32 %v1626_v53, %v1623_v44  ;;  %v5218_v10 = vld [vmem:[%s5900_s2 + $0x14] sm:$0xf]  ;;  %v5222_v55 = vld [vmem:[#allocation2 + $0x20] sm:$0xf] }
 0x137   : > { %v1635_v50 = vshrl.u32 %v5201_v39, 16  ;;  %v1638_v1 = vshll.u32 %v5201_v39, 16  ;;  %v1580_v28 = vsel %vm5126_vm9, %v1512_v63, %v1579_v8  ;;  %v1583_v23 = vsel %vm5132_vm10, %v1513_v22, %v1582_v42  ;;  %v5229_v42 = vld [vmem:[#allocation2 + $0x24] sm:$0x1] }
 0x138   : > { %v1496_v37 = vor.u32 %v1494_v48, %v1493_v17  ;;  %v1497_v60 = vrot.slane %v1493_v17, 4  ;;  %1581 = vst [vmem:[#allocation2 + $0x40] sm:$0xf] %v1580_v28  ;;  %1584 = vst [vmem:[#allocation2 + $0x44] sm:$0x1] %v1583_v23  ;;  %4438 = vmatmul.mubr.msk.bf16.vlgmr.msra.gmra.mxu0 %vm268_vm1, %v5205_v4  ;;  %v1628_v19 = vrot.slane %v1627_v6, 4  ;;  %v1655_v16 = vor.u32 %v1654_v3, %v1651_v36 }
 0x139   : > { %v1637_v25 = vrot.slane %v1635_v50, 4  ;;  %v1640_v34 = vrot.slane %v1638_v1, 5  ;;  %v1644_v8 = vshll.u32 %v5207_v7, 16  ;;  %4456 = vmatpush3.bf16.msra.mxu0 %v5161_v57  ;;  %v4027_v53 = vrot.slane %v5081_v20, 9 }
 0x13a   : > { %v1568_v43 = vsel %vm5126_vm9, %v1496_v37, %v1567_v41  ;;  %v1571_v49 = vsel %vm5132_vm10, %v1497_v60, %v1570_v56  ;;  %v5232_v24 = vld [vmem:[#allocation2 + $0x28] sm:$0xf]  ;;  %v5236_v48 = vsel %vm4821_vm4, %v1628_v19, %v1632_v18  ;;  %v1660_v41 = vrot.slane %v1658_v52, 5  ;;  %v5240_v44 = vld [vmem:[#allocation2 + $0x2c] sm:$0x1]  ;;  %4622 = vmatprep.subr.msk.bf16.mxu0 %vm281_vm0, %v5218_v10 }
 0x13b   : > { %1569 = vst [vmem:[#allocation2 + $0x30] sm:$0xf] %v1568_v43  ;;  %1572 = vst [vmem:[#allocation2 + $0x34] sm:$0x1] %v1571_v49  ;;  %v1641_v32 = vor.u32 %v1640_v34, %v1637_v25  ;;  %v5247_v57 = vcombine.low %v5222_v55, %v5232_v24  ;;  %v4011_v36 = vcombine.low %v1619_v46, %v5236_v48  ;;  %v1656_v3 = vrot.slane %v1655_v16, 4 }
 0x13c   : > { %v1663_v52 = vshrl.u32 %v5222_v55, 16  ;;  %v1646_v22 = vrot.slane %v1644_v8, 5  ;;  %v1666_v17 = vshll.u32 %v5222_v55, 16  ;;  %v1677_v18 = vshrl.u32 %v5232_v24, 16  ;;  %v5261_v56 = vld [vmem:[#allocation2 + $0x38] sm:$0xf] }
 0x13d   : > { %v1642_v63 = vrot.slane %v1641_v32, 4  ;;  %4441 = vmatprep.mubr.msk.bf16.mxu0 %vm268_vm1, %v5247_v57  ;;  %4427 = vmatprep.mubr.msk.bf16.mxu1 %vm268_vm1, %v4011_v36  ;;  %v1672_v5 = vshll.u32 %v5229_v42, 16  ;;  %v1680_v33 = vshll.u32 %v5232_v24, 16  ;;  %v1686_v46 = vshll.u32 %v5240_v44, 16  ;;  %v5281_v8 = vld [vmem:[#allocation2 + $0x3c] sm:$0x1] }
 0x13e   : > { %v1665_v6 = vrot.slane %v1663_v52, 4  ;;  %v5272_v1 = vsel %vm4821_vm4, %v1656_v3, %v1660_v41  ;;  %v1668_v28 = vrot.slane %v1666_v17, 5  ;;  %v1679_v23 = vrot.slane %v1677_v18, 4  ;;  %v5288_v16 = vld [vmem:[%s5900_s2 + $0x10] sm:$0xf] }
 0x13f   : > { %v5268_v50 = vsel %vm4821_vm4, %v1642_v63, %v1646_v22  ;;  %v1982_v60 = vsel %vm281_vm0, %v5054_v51, 0  ;;  %v1682_v19 = vrot.slane %v1680_v33, 5  ;;  %v1925_v25 = vrot.slane %v5089_v9, 5 }
 0x140   : > { %v5276_v37 = vcombine.low %v5268_v50, %v5272_v1  ;;  %v1669_v34 = vor.u32 %v1668_v28, %v1665_v6  ;;  %v1705_v43 = vshrl.u32 %v5261_v56, 16  ;;  %v1708_v49 = vshll.u32 %v5261_v56, 16 }
 0x141   : > { %v4045_v51 = vcombine.low %v5187_v27, %v5201_v39  ;;  %v1674_v9 = vrot.slane %v1672_v5, 5  ;;  %v1683_v41 = vor.u32 %v1682_v19, %v1679_v23  ;;  %v1688_v36 = vrot.slane %v1686_v46, 5 }
 0x142   : > { %v5290_v32 = vld [vmem:[#allocation2 + $0x30] sm:$0xf]  ;;  %4428 = vmatmul.mubr.msk.bf16.vlgmr.msra.gmra.mxu1 %vm268_vm1, %v5276_v37  ;;  %v5296_v3 = vld [vmem:[#allocation2 + $0x34] sm:$0x1]  ;;  %v1670_v63 = vrot.slane %v1669_v34, 4  ;;  %v1707_v6 = vrot.slane %v1705_v43, 4 }
 0x143   : > { %v5300_v52 = vcombine.low %v5290_v32, %v5261_v56  ;;  %4446 = vmatpush3.bf16.msra.mxu1 %v1982_v60  ;;  %v1691_v22 = vshrl.u32 %v5290_v32, 16  ;;  %v1694_v17 = vshll.u32 %v5290_v32, 16  ;;  %v1684_v18 = vrot.slane %v1683_v41, 4 }
 0x144   : > { %v1710_v33 = vrot.slane %v1708_v49, 5  ;;  %v1714_v28 = vshll.u32 %v5281_v8, 16  ;;  %4621 = vmatprep.subr.msk.bf16.mxu1 %vm281_vm0, %v5288_v16  ;;  %v1700_v23 = vshll.u32 %v5296_v3, 16  ;;  %v4028_v60 = vrot.slane %v5187_v27, 9 }
 0x145   : > { %4442 = vmatmul.mubr.msk.bf16.gmra.mxu0 %vm268_vm1, %v5300_v52  ;;  %v1693_v5 = vrot.slane %v1691_v22, 4  ;;  %v1696_v46 = vrot.slane %v1694_v17, 5  ;;  %v5314_v19 = vsel %vm4821_vm4, %v1670_v63, %v1674_v9  ;;  %v5318_v34 = vsel %vm4821_vm4, %v1684_v18, %v1688_v36 }
 0x146   : > { %4457 = vmatprep.mubr.msk.bf16.mxu0 %vm268_vm1, %v4045_v51  ;;  %v1711_v43 = vor.u32 %v1710_v33, %v1707_v6  ;;  %v1929_v49 = vrot.slane %v5189_v21, 5  ;;  %v5323_v41 = vcombine.low %v5314_v19, %v5318_v34  ;;  %v1702_v51 = vrot.slane %v1700_v23, 5  ;;  %v4078_v23 = vld [vmem:[%s5900_s2 + $0x1c] sm:$0xf] }
 0x147   : > { %v1697_v22 = vor.u32 %v1696_v46, %v1693_v5  ;;  %v1716_v9 = vrot.slane %v1714_v28, 5  ;;  %v5945_v36 = vmov 0  ;;  %v1926_v21 = vsel %vm5329_vm13, %v4027_v53, %v1925_v25 }
 0x148   : > { %v1712_v17 = vrot.slane %v1711_v43, 4  ;;  %4431 = vmatprep.mubr.msk.bf16.mxu1 %vm268_vm1, %v5323_v41  ;;  %v5946_v36 = vsel %vm5329_vm13, 4294967295, %v5945_v36  ;;  %v1930_v63 = vsel %vm5329_vm13, %v4028_v60, %v1929_v49  ;;  %v4046_v18 = vcombine.low %v5174_v14, %v5222_v55 }
 0x149   : > { %v1698_v27 = vrot.slane %v1697_v22, 4  ;;  %5947 = vst [vmem:[#allocation14_spill] sm:$0xff] %v5946_v36  ;;  %v4047_v53 = vcombine.low %v5232_v24, %v5290_v32  ;;  %v2287_v25 = vsel %vm281_vm0, %v5218_v10, 0  ;;  %v4036_v28 = vcombine.low %v1926_v21, %v1930_v63 }
 0x14a   : > { %v5347_v33 = vsel %vm4821_vm4, %v1712_v17, %v1716_v9  ;;  %v4029_v5 = vrot.slane %v5201_v39, 9  ;;  %v1933_v46 = vrot.slane %v5207_v7, 5  ;;  %v4032_v60 = vrot.slane %v5232_v24, 9  ;;  %v5371_v7 = vld [vmem:[#allocation2 + $0x40] sm:$0xf] }
 0x14b   : > { %v5343_v6 = vsel %vm4821_vm4, %v1698_v27, %v1702_v51  ;;  %v1945_v10 = vrot.slane %v5240_v44, 5  ;;  %v4030_v43 = vrot.slane %v5174_v14, 9  ;;  %v1937_v39 = vrot.slane %v5176_v61, 5 }
 0x14c   : > { %v5351_v20 = vcombine.low %v5343_v6, %v5347_v33  ;;  %v4031_v49 = vrot.slane %v5222_v55, 9  ;;  %v1941_v22 = vrot.slane %v5229_v42, 5  ;;  %v1934_v24 = vsel %vm5329_vm13, %v4029_v5, %v1933_v46 }
 0x14d   : > { %4458 = vmatmul.mubr.msk.bf16.vlgmr.msra.gmra.mxu0 %vm268_vm1, %v4046_v18  ;;  %v1946_v44 = vsel %vm5329_vm13, %v4032_v60, %v1945_v10  ;;  %v4048_v14 = vcombine.low %v5261_v56, %v5371_v7  ;;  %v1938_v61 = vsel %vm5329_vm13, %v4030_v43, %v1937_v39  ;;  %v2187_v55 = vsel %vm281_vm0, %v5288_v16, 0  ;;  %v4072_v18 = vld [vmem:[%s5900_s2 + $0x18] sm:$0xf] }
 0x14e   : > { %4432 = vmatmul.mubr.msk.bf16.gmra.mxu1 %vm268_vm1, %v5351_v20  ;;  %4461 = vmatprep.mubr.msk.bf16.mxu0 %vm268_vm1, %v4047_v53  ;;  %v5384_v17 = vcombine.low %v1934_v24, %v1938_v61  ;;  %v4064_v42 = vcombine.low %v1930_v63, %v1934_v24  ;;  %v1942_v27 = vsel %vm5329_vm13, %v4031_v49, %v1941_v22  ;;  %v4033_v9 = vrot.slane %v5290_v32, 9  ;;  %v1603_v22 = vld [vmem:[#allocation2 + $0x48] sm:$0xf] }
 0x14f   : > { %4447 = vmatprep.mubr.msk.bf16.mxu1 %vm268_vm1, %v4036_v28  ;;  %4476 = vmatpush3.bf16.msra.mxu0 %v2287_v25  ;;  %v5391_v51 = vcombine.low %v1942_v27, %v1946_v44  ;;  %v1949_v21 = vrot.slane %v5296_v3, 5  ;;  %v4034_v16 = vrot.slane %v5261_v56, 9  ;;  %v1953_v63 = vrot.slane %v5281_v8, 5  ;;  %v1602_v3 = vld [vmem:[#allocation2 + $0x44] sm:$0x1] }
 0x150   : > { %4624 = vmatprep.subr.msk.bf16.mxu0 %vm281_vm0, %v4078_v23  ;;  %v2154_v53 = vshrl.u32 %v5371_v7, 16  ;;  %v2157_v25 = vshll.u32 %v5371_v7, 16  ;;  %v4065_v28 = vcombine.low %v1938_v61, %v1942_v27  ;;  %v2468_v46 = vsel %vm281_vm0, %v4078_v23, 0 }
 0x151   : > { %v1950_v32 = vsel %vm5329_vm13, %v4033_v9, %v1949_v21  ;;  %v1954_v5 = vsel %vm5329_vm13, %v4034_v16, %v1953_v63  ;;  %v4062_v8 = vrot.slane %v5371_v7, 9  ;;  %v2265_v10 = vrot.slane %v1602_v3, 5  ;;  %v4085_v16 = vld [vmem:[%s5900_s2 + $0x20] sm:$0xf] }
 0x152   : > { %v4039_v60 = vcombine.low %v1950_v32, %v1954_v5  ;;  %v4066_v56 = vcombine.low %v1946_v44, %v1950_v32  ;;  %v4054_v43 = vcombine.low %v5236_v48, %v5268_v50  ;;  %v2156_v39 = vrot.slane %v2154_v53, 4 }
 0x153   : > { %v2159_v49 = vrot.slane %v2157_v25, 5  ;;  %v2266_v23 = vsel %vm5329_vm13, %v4062_v8, %v2265_v10  ;;  %v2447_v24 = vshrl.u32 %v1603_v22, 16  ;;  %v2450_v44 = vshll.u32 %v1603_v22, 16 }
 0x154   : > { %v4067_v61 = vcombine.low %v1954_v5, %v2266_v23  ;;  %v4055_v48 = vcombine.low %v5272_v1, %v5314_v19  ;;  %v2371_v50 = vsel %vm281_vm0, %v4072_v18, 0  ;;  %v4056_v9 = vcombine.low %v5318_v34, %v5343_v6  ;;  %v1604_v19 = vld [vmem:[#allocation2 + $0x4c] sm:$0x1]  ;;  %v5484_v5 = vld [vmem:[%s5900_s2 + $0x30] sm:$0xf] }
 0x155   : > { %4462 = vmatmul.mubr.msk.bf16.gmra.mxu0 %vm268_vm1, %v4048_v14  ;;  %v2160_v14 = vor.u32 %v2159_v49, %v2156_v39  ;;  %v2452_v27 = vrot.slane %v2450_v44, 5  ;;  %v2456_v63 = vshll.u32 %v1604_v19, 16  ;;  %v2556_v25 = vsel %vm281_vm0, %v4085_v16, 0  ;;  %5949 = vst [vmem:[#allocation16_spill] sm:$0xff] %v5484_v5 }
 0x156   : > { %4448 = vmatmul.mubr.msk.bf16.vlgmr.msra.gmra.mxu1 %vm268_vm1, %v5384_v17  ;;  %4477 = vmatprep.mubr.msk.bf16.mxu0 %vm268_vm1, %v4064_v42  ;;  %v2449_v42 = vrot.slane %v2447_v24, 4 }
 0x157   : > { %4466 = vmatpush3.bf16.msra.mxu1 %v2187_v55  ;;  %4451 = vmatprep.mubr.msk.bf16.mxu1 %vm268_vm1, %v5391_v51  ;;  %v2163_v55 = vshll.u32 %v1602_v3, 16  ;;  %v2161_v21 = vrot.slane %v2160_v14, 4  ;;  %v2458_v3 = vrot.slane %v2456_v63, 5 }
 0x158   : > { %4623 = vmatprep.subr.msk.bf16.mxu1 %vm281_vm0, %v4072_v18  ;;  %v2453_v18 = vor.u32 %v2452_v27, %v2449_v42 }
 0x159   : > { %v2165_v1 = vrot.slane %v2163_v55, 5 }
 0x15a   : > { %v2454_v32 = vrot.slane %v2453_v18, 4 }
 0x15b   : > { %v2166_v34 = vsel %vm4821_vm4, %v2161_v21, %v2165_v1 }
 0x15c   : > { %v4057_v6 = vcombine.low %v5347_v33, %v2166_v34  ;;  %v2546_v33 = vrot.slane %v1604_v19, 5 }
 0x15d   : > { %4478 = vmatmul.mubr.msk.bf16.vlgmr.msra.gmra.mxu0 %vm268_vm1, %v4065_v28  ;;  %v5477_v28 = vld [vmem:[%s5900_s2 + $0x2c] sm:$0xf] }
 0x15e   : > { %4452 = vmatmul.mubr.msk.bf16.gmra.mxu1 %vm268_vm1, %v4039_v60  ;;  %4481 = vmatprep.mubr.msk.bf16.mxu0 %vm268_vm1, %v4066_v56  ;;  %5948 = vst [vmem:[#allocation15_spill] sm:$0xff] %v5477_v28 }
 0x15f   : > { %4467 = vmatprep.mubr.msk.bf16.mxu1 %vm268_vm1, %v4054_v43  ;;  %4496 = vmatpush3.bf16.msra.mxu0 %v2468_v46 }
 0x165   : > { %4482 = vmatmul.mubr.msk.bf16.gmra.mxu0 %vm268_vm1, %v4067_v61 }
 0x166   : > { %4468 = vmatmul.mubr.msk.bf16.vlgmr.msra.gmra.mxu1 %vm268_vm1, %v4055_v48  ;;  %4497 = vmatprep.mubr.msk.bf16.mxu0 %vm268_vm1, %v5276_v37  ;;  %v2459_v37 = vsel %vm4821_vm4, %v2454_v32, %v2458_v3 }
 0x167   : > { %4486 = vmatpush3.bf16.msra.mxu1 %v2371_v50  ;;  %4471 = vmatprep.mubr.msk.bf16.mxu1 %vm268_vm1, %v4056_v9  ;;  %v4079_v53 = vcombine.low %v2166_v34, %v2459_v37 }
 0x168   : > { %4625 = vmatprep.subr.msk.bf16.mxu1 %vm281_vm0, %v4085_v16 }
 0x16d   : > { %4498 = vmatmul.mubr.msk.bf16.vlgmr.msra.gmra.mxu0 %vm268_vm1, %v5323_v41  ;;  %v4073_v41 = vcombine.low %v5371_v7, %v1603_v22  ;;  %v4099_v7 = vld [vmem:[%s5900_s2 + $0x24] sm:$0xf] }
 0x16e   : > { %4472 = vmatmul.mubr.msk.bf16.gmra.mxu1 %vm268_vm1, %v4057_v6  ;;  %4501 = vmatprep.mubr.msk.bf16.mxu0 %vm268_vm1, %v5351_v20 }
 0x16f   : > { %4487 = vmatprep.mubr.msk.bf16.mxu1 %vm268_vm1, %v5205_v4  ;;  %v4084_v4 = vrot.slane %v1603_v22, 9 }
 0x175   : > { %4502 = vmatmul.mubr.msk.bf16.gmra.mxu0 %vm268_vm1, %v4079_v53 }
 0x176   : > { %4488 = vmatmul.mubr.msk.bf16.vlgmr.msra.gmra.mxu1 %vm268_vm1, %v5247_v57  ;;  %v2547_v57 = vsel %vm5329_vm13, %v4084_v4, %v2546_v33 }
 0x177   : > { %4506 = vmatpush3.bf16.msra.mxu1 %v2556_v25  ;;  %4491 = vmatprep.mubr.msk.bf16.mxu1 %vm268_vm1, %v5300_v52  ;;  %v4086_v20 = vcombine.low %v2266_v23, %v2547_v57  ;;  %v4100_v52 = vld [vmem:[%s5900_s2 + $0x28] sm:$0xf] }
 0x178   : > { %4626 = vmatprep.subr.msk.bf16.mxu0 %vm281_vm0, %v4100_v52  ;;  %4627 = vmatprep.subr.msk.bf16.mxu1 %vm281_vm0, %v4099_v7 }
 0x17e   : > { %4492 = vmatmul.mubr.msk.bf16.gmra.mxu1 %vm268_vm1, %v4073_v41 }
 0x17f   : > { %4507 = vmatprep.mubr.msk.bf16.mxu1 %vm268_vm1, %v5384_v17  ;;  %v2952_v17 = vsel %vm281_vm0, %v4100_v52, 0 }
 0x180   : > { %4516 = vmatpush3.bf16.msra.mxu0 %v2952_v17 }
 0x181   : > { %4628 = vmatprep.subr.msk.bf16.mxu0 %vm281_vm0, %v5477_v28 }
 0x186   : > { %4508 = vmatmul.mubr.msk.bf16.vlgmr.msra.gmra.mxu1 %vm268_vm1, %v5391_v51  ;;  %v3052_v51 = vsel %vm281_vm0, %v4099_v7, 0 }
 0x187   : > { %4511 = vmatprep.mubr.msk.bf16.mxu1 %vm268_vm1, %v4039_v60  ;;  %4526 = vmatpush3.bf16.msra.mxu1 %v3052_v51 }
 0x188   : > { %4629 = vmatprep.subr.msk.bf16.mxu1 %vm281_vm0, %v5484_v5 }
 0x18e   : > { %4512 = vmatmul.mubr.msk.bf16.gmra.mxu1 %vm268_vm1, %v4086_v20 }
 0x1f8   : > { %v4439_v46 = vpop.f32.mrf.mxu0 }
 0x1fa   : > { %v1881_v60 = vpop.f32.mrf.mxu0 }
 0x1fc   : > { %v4440_v56 = vpop.f32.mrf.mxu0 }
 0x1fe   : > { %v1884_v8 = vpop.f32.mrf.mxu0 }
 0x202   : > { %v4429_v10 = vpop.f32.mrf.mxu1 }
 0x203   : > { %v1890_v31 = vadd.f32 %v4439_v46, %v4429_v10 }
 0x204   : > { %v1781_v43 = vpop.f32.mrf.mxu1 }
 0x205   : > { %v4443_v39 = vpop.f32.mrf.mxu0  ;;  %v1882_v11 = vadd.f32 %v1881_v60, %v1781_v43 }
 0x206   : > { %v4430_v49 = vpop.f32.mrf.mxu1 }
 0x207   : > { %v1897_v22 = vpop.f32.mrf.mxu0  ;;  %v1893_v35 = vadd.f32 %v4440_v56, %v4430_v49  ;;  %v2817_v56 = vshll.u32 %v5512_v26, 16 }
 0x208   : > { %v1784_v24 = vpop.f32.mrf.mxu1 }
 0x209   : > { %v4444_v23 = vpop.f32.mrf.mxu0  ;;  %v1885_v28 = vadd.f32 %v1884_v8, %v1784_v24 }
 0x20b   : > { %v5488_v44 = vpop.f32.mrf.mxu0 }
 0x20d   : > { %v4459_v14 = vpop.f32.mrf.mxu0 }
 0x20e   : > { %v4433_v61 = vpop.f32.mrf.mxu1 }
 0x20f   : > { %v2114_v55 = vpop.f32.mrf.mxu0 }
 0x210   : > { %v1797_v48 = vpop.f32.mrf.mxu1 }
 0x211   : > { %v4460_v50 = vpop.f32.mrf.mxu0  ;;  %v1898_v46 = vadd.f32 %v1897_v22, %v1797_v48 }
 0x212   : > { %v4434_v42 = vpop.f32.mrf.mxu1 }
 0x213   : > { %v5490_v27 = vpop.f32.mrf.mxu0  ;;  %v1909_v10 = vadd.f32 %v4444_v23, %v4434_v42 }
 0x214   : > { %v1800_v9 = vpop.f32.mrf.mxu1 }
 0x215   : > { %v5492_v21 = vpop.f32.mrf.mxu0 }
 0x216   : > { %v4449_v16 = vpop.f32.mrf.mxu1 }
 0x217   : > { %v5494_v1 = vpop.f32.mrf.mxu0  ;;  %v2051_v29 = vadd.f32 %v4449_v16, %v1890_v31 }
 0x218   : > { %v2018_v19 = vpop.f32.mrf.mxu1 }
 0x219   : > { %v5496_v18 = vpop.f32.mrf.mxu0  ;;  %v2049_v40 = vadd.f32 %v2018_v19, %v1882_v11  ;;  %v2147_v36 = vadd.f32 %v4459_v14, %v2051_v29  ;;  %v2814_v11 = vshrl.u32 %v5512_v26, 16 }
 0x21a   : > { %v4450_v63 = vpop.f32.mrf.mxu1 }
 0x21b   : > { %v5498_v34 = vpop.f32.mrf.mxu0  ;;  %v2052_v2 = vadd.f32 %v4450_v63, %v1893_v35  ;;  %v2145_v47 = vadd.f32 %v2114_v55, %v2049_v40  ;;  %v1901_v35 = vadd.f32 %v5488_v44, %v1800_v9  ;;  %v5521_v9 = vld [vmem:[#allocation2 + $0x4] sm:$0x1] }
 0x21c   : > { %v2021_v6 = vpop.f32.mrf.mxu1 }
 0x21d   : > { %v4479_v32 = vpop.f32.mrf.mxu0  ;;  %v2148_v43 = vadd.f32 %v4460_v50, %v2052_v2  ;;  %v2816_v2 = vrot.slane %v2814_v11, 4 }
 0x21e   : > { %v4453_v3 = vpop.f32.mrf.mxu1 }
 0x21f   : > { %v2323_v37 = vpop.f32.mrf.mxu0 }
 0x220   : > { %v2034_v53 = vpop.f32.mrf.mxu1 }
 0x221   : > { %v5500_v25 = vpop.f32.mrf.mxu0  ;;  %v2053_v8 = vadd.f32 %v2034_v53, %v1898_v46 }
 0x222   : > { %v4454_v41 = vpop.f32.mrf.mxu1 }
 0x223   : > { %v5502_v4 = vpop.f32.mrf.mxu0  ;;  %v2056_v49 = vadd.f32 %v4454_v41, %v1909_v10  ;;  %v2149_v44 = vadd.f32 %v5494_v1, %v2053_v8 }
 0x224   : > { %v2037_v33 = vpop.f32.mrf.mxu1 }
 0x225   : > { %v5504_v57 = vpop.f32.mrf.mxu0  ;;  %v2152_v50 = vadd.f32 %v5496_v18, %v2056_v49 }
 0x226   : > { %v4469_v20 = vpop.f32.mrf.mxu1 }
 0x227   : > { %v5506_v52 = vpop.f32.mrf.mxu0  ;;  %v2256_v15 = vadd.f32 %v4469_v20, %v2147_v36 }
 0x228   : > { %5950 = vst [vmem:[#allocation17_spill] sm:$0xff] %v5506_v52  ;;  %v2223_v7 = vpop.f32.mrf.mxu1  ;;  %v2050_v52 = vadd.f32 %v2021_v6, %v1885_v28 }
 0x229   : > { %v5508_v51 = vpop.f32.mrf.mxu0  ;;  %v2254_v31 = vadd.f32 %v2223_v7, %v2145_v47  ;;  %v2356_v14 = vadd.f32 %v4479_v32, %v2256_v15 }
 0x22a   : > { %v4470_v17 = vpop.f32.mrf.mxu1  ;;  %5951 = vst [vmem:[#allocation18_spill] sm:$0xff] %v5508_v51  ;;  %v1906_v51 = vadd.f32 %v4443_v39, %v4433_v61  ;;  %v2054_v39 = vadd.f32 %v2037_v33, %v1901_v35  ;;  %v2146_v22 = vadd.f32 %v5490_v27, %v2050_v52  ;;  %v2819_v61 = vrot.slane %v2817_v56, 5 }
 0x22b   : > { %v5510_v0 = vpop.f32.mrf.mxu0  ;;  %v2257_v36 = vadd.f32 %v4470_v17, %v2148_v43  ;;  %v2354_v47 = vadd.f32 %v2323_v37, %v2254_v31  ;;  %v2823_v27 = vshll.u32 %v5521_v9, 16 }
 0x22c   : > { %v2226_v58 = vpop.f32.mrf.mxu1  ;;  %5952 = vst [vmem:[#allocation19_spill] sm:$0xff] %v5510_v0  ;;  %v2055_v29 = vadd.f32 %v4453_v3, %v1906_v51  ;;  %v2820_v1 = vor.u32 %v2819_v61, %v2816_v2 }
 0x22d   : > { %v4499_v62 = vpop.f32.mrf.mxu0  ;;  %v2255_v55 = vadd.f32 %v2226_v58, %v2146_v22  ;;  %v2357_v19 = vadd.f32 %v5500_v25, %v2257_v36  ;;  %v2150_v58 = vadd.f32 %v5498_v34, %v2054_v39  ;;  %v5527_v20 = vrot.slane %v2823_v27, 5 }
 0x22e   : > { %v4473_v59 = vpop.f32.mrf.mxu1  ;;  %v2151_v48 = vadd.f32 %v5492_v21, %v2055_v29 }
 0x22f   : > { %v2504_v12 = vpop.f32.mrf.mxu0  ;;  %v2355_v18 = vadd.f32 %v5502_v4, %v2255_v55 }
 0x230   : > { %v2239_v13 = vpop.f32.mrf.mxu1 }
 0x231   : > { %v4500_v0 = vpop.f32.mrf.mxu0  ;;  %v2258_v63 = vadd.f32 %v2239_v13, %v2149_v44  ;;  %v5953_v13 = vld [vmem:[#allocation17_spill] sm:$0xff]  ;;  %v5954_v52 = vld [vmem:[#allocation18_spill] sm:$0xff] }
 0x232   : > { %v4474_v54 = vpop.f32.mrf.mxu1 }
 0x233   : > { %v2507_v40 = vpop.f32.mrf.mxu0  ;;  %v2261_v6 = vadd.f32 %v4474_v54, %v2152_v50  ;;  %v2358_v54 = vadd.f32 %v5953_v13, %v2258_v63  ;;  %v5955_v10 = vld [vmem:[#allocation19_spill] sm:$0xff] }
 0x234   : > { %v2242_v30 = vpop.f32.mrf.mxu1 }
 0x235   : > { %v4503_v16 = vpop.f32.mrf.mxu0  ;;  %v2259_v37 = vadd.f32 %v2242_v30, %v2150_v58  ;;  %v2361_v34 = vadd.f32 %v5954_v52, %v2261_v6  ;;  %v5532_v30 = vrot.slane %v2820_v1, 4  ;;  %v2755_v6 = vld [vmem:[#allocation2 + $0x18] sm:$0xf]  ;;  %v2758_v58 = vld [vmem:[#allocation2 + $0x1c] sm:$0x1] }
 0x236   : > { %v4489_v45 = vpop.f32.mrf.mxu1 }
 0x237   : > { %v2440_v23 = vadd.f32 %v4489_v45, %v2356_v14  ;;  %v2260_v45 = vadd.f32 %v4473_v59, %v2151_v48  ;;  %v2520_v41 = vpop.f32.mrf.mxu0 }
 0x238   : > { %v2407_v38 = vpop.f32.mrf.mxu1 }
 0x239   : > { %v2438_v15 = vadd.f32 %v2407_v38, %v2354_v47  ;;  %v2537_v3 = vadd.f32 %v4499_v62, %v2440_v23  ;;  %v2360_v59 = vadd.f32 %v5504_v57, %v2260_v45  ;;  %v4504_v43 = vpop.f32.mrf.mxu0 }
 0x23a   : > { %v4490_v5 = vpop.f32.mrf.mxu1 }
 0x23b   : > { %v2441_v21 = vadd.f32 %v4490_v5, %v2357_v19  ;;  %v2535_v38 = vadd.f32 %v2504_v12, %v2438_v15  ;;  %v2359_v12 = vadd.f32 %v5955_v10, %v2259_v37  ;;  %v2523_v47 = vpop.f32.mrf.mxu0 }
 0x23c   : > { %v2410_v60 = vpop.f32.mrf.mxu1 }
 0x23d   : > { %v2439_v25 = vadd.f32 %v2410_v60, %v2355_v18  ;;  %v2538_v17 = vadd.f32 %v4500_v0, %v2441_v21 }
 0x23e   : > { %v4493_v24 = vpop.f32.mrf.mxu1 }
 0x23f   : > { %v2444_v4 = vadd.f32 %v4493_v24, %v2360_v59  ;;  %v2536_v35 = vadd.f32 %v2507_v40, %v2439_v25  ;;  %v2826_v24 = vsel %vm4821_vm4, %v5532_v30, %v5527_v20  ;;  %v2743_v25 = vld [vmem:[#allocation2 + $0x8] sm:$0xf]  ;;  %v2746_v59 = vld [vmem:[#allocation2 + $0xc] sm:$0x1] }
 0x240   : > { %v2423_v28 = vpop.f32.mrf.mxu1 }
 0x241   : > { %v2442_v51 = vadd.f32 %v2423_v28, %v2358_v54  ;;  %v2541_v39 = vadd.f32 %v4503_v16, %v2444_v4 }
 0x242   : > { %v4494_v42 = vpop.f32.mrf.mxu1 }
 0x243   : > { %v2445_v46 = vadd.f32 %v4494_v42, %v2361_v34  ;;  %v2539_v28 = vadd.f32 %v2520_v41, %v2442_v51 }
 0x244   : > { %v2426_v32 = vpop.f32.mrf.mxu1 }
 0x245   : > { %v2443_v56 = vadd.f32 %v2426_v32, %v2359_v12  ;;  %v2542_v23 = vadd.f32 %v4504_v43, %v2445_v46  ;;  %v2764_v43 = vld [vmem:[#allocation2 + $0x24] sm:$0x1] }
 0x246   : > { %v4509_v53 = vpop.f32.mrf.mxu1 }
 0x247   : > { %v2625_v33 = vadd.f32 %v4509_v53, %v2537_v3  ;;  %v2540_v15 = vadd.f32 %v2523_v47, %v2443_v56  ;;  %v5959_v56 = vld [vmem:[#allocation16_spill] sm:$0xff] }
 0x248   : > { %v2592_v7 = vpop.f32.mrf.mxu1 }
 0x249   : > { %v2633_v5 = vmax.f32 %v2625_v33, 0.0  ;;  %v2623_v62 = vadd.f32 %v2592_v7, %v2535_v38 }
 0x24a   : > { %v4510_v31 = vpop.f32.mrf.mxu1 }
 0x24b   : > { %v4194_v60 = vpack.c.bf16 %v2633_v5, %v2633_v5  ;;  %v2631_v11 = vmax.f32 %v2623_v62, 0.0  ;;  %v2626_v57 = vadd.f32 %v4510_v31, %v2538_v17  ;;  %v2761_v31 = vld [vmem:[#allocation2 + $0x20] sm:$0xf] }
 0x24c   : > { %v2595_v29 = vpop.f32.mrf.mxu1 }
 0x24d   : > { %v2680_v8 = vshrl.u32 %v4194_v60, 16  ;;  %v4192_v49 = vpack.c.bf16 %v2631_v11, %v2631_v11  ;;  %v2634_v36 = vmax.f32 %v2626_v57, 0.0  ;;  %v2624_v14 = vadd.f32 %v2595_v29, %v2536_v35 }
 0x24e   : > { %v4513_v22 = vpop.f32.mrf.mxu1  ;;  %v2683_v61 = vshll.u32 %v4194_v60, 16  ;;  %v5549_v35 = vsel %vm281_vm0, %v5959_v56, 0 }
 0x24f   : > { %v2682_v2 = vrot.slane %v2680_v8, 7  ;;  %v2664_v55 = vshrl.u32 %v4192_v49, 16  ;;  %v4195_v48 = vpack.c.bf16 %v2634_v36, %v2634_v36  ;;  %v2667_v40 = vshll.u32 %v4192_v49, 16 }
 0x250   : > { %v2632_v44 = vmax.f32 %v2624_v14, 0.0  ;;  %v2629_v50 = vadd.f32 %v4513_v22, %v2541_v39  ;;  %v2608_v42 = vpop.f32.mrf.mxu1  ;;  %v2749_v14 = vld [vmem:[#allocation2 + $0x10] sm:$0xf]  ;;  %v2752_v39 = vld [vmem:[#allocation2 + $0x14] sm:$0x1] }
 0x251   : > { %v2685_v19 = vor.u32 %v2683_v61, %v2682_v2  ;;  %v2686_v27 = vrot.slane %v2682_v2, 4  ;;  %v2666_v45 = vrot.slane %v2664_v55, 7  ;;  %v2688_v63 = vshrl.u32 %v4195_v48, 16  ;;  %v2779_v55 = vld [vmem:[#allocation2 + $0x38] sm:$0xf] }
 0x252   : > { %v2691_v16 = vshll.u32 %v4195_v48, 16  ;;  %v4193_v32 = vpack.c.bf16 %v2632_v44, %v2632_v44  ;;  %v2637_v21 = vmax.f32 %v2629_v50, 0.0  ;;  %v2627_v3 = vadd.f32 %v2608_v42, %v2539_v28  ;;  %v4514_v1 = vpop.f32.mrf.mxu1  ;;  %v2782_v48 = vld [vmem:[#allocation2 + $0x3c] sm:$0x1] }
 0x253   : > { %v2756_v18 = vsel %vm5126_vm9, %v2685_v19, %v2755_v6  ;;  %v2759_v41 = vsel %vm5132_vm10, %v2686_v27, %v2758_v58  ;;  %v2669_v33 = vor.u32 %v2667_v40, %v2666_v45  ;;  %v2670_v38 = vrot.slane %v2666_v45, 4  ;;  %v2767_v45 = vld [vmem:[#allocation2 + $0x28] sm:$0xf] }
 0x254   : > { %2757 = vst [vmem:[#allocation2 + $0x18] sm:$0xf] %v2756_v18  ;;  %2760 = vst [vmem:[#allocation2 + $0x1c] sm:$0x1] %v2759_v41  ;;  %v2690_v13 = vrot.slane %v2688_v63, 7  ;;  %v2672_v54 = vshrl.u32 %v4193_v32, 16  ;;  %v4198_v34 = vpack.c.bf16 %v2637_v21, %v2637_v21  ;;  %v2611_v7 = vpop.f32.mrf.mxu1  ;;  %v2630_v4 = vadd.f32 %v4514_v1, %v2542_v23 }
 0x255   : > { %v2675_v52 = vshll.u32 %v4193_v32, 16  ;;  %v2744_v5 = vsel %vm5126_vm9, %v2669_v33, %v2743_v25  ;;  %v2747_v62 = vsel %vm5132_vm10, %v2670_v38, %v2746_v59  ;;  %v2635_v17 = vmax.f32 %v2627_v3, 0.0  ;;  %v2770_v33 = vld [vmem:[#allocation2 + $0x2c] sm:$0x1] }
 0x256   : > { %2745 = vst [vmem:[#allocation2 + $0x8] sm:$0xf] %v2744_v5  ;;  %2748 = vst [vmem:[#allocation2 + $0xc] sm:$0x1] %v2747_v62  ;;  %v2693_v51 = vor.u32 %v2691_v16, %v2690_v13  ;;  %v2694_v46 = vrot.slane %v2690_v13, 4  ;;  %v2674_v10 = vrot.slane %v2672_v54, 7  ;;  %v2628_v57 = vadd.f32 %v2611_v7, %v2540_v15 }
 0x257   : > { %v2712_v12 = vshrl.u32 %v4198_v34, 16  ;;  %v4196_v60 = vpack.c.bf16 %v2635_v17, %v2635_v17  ;;  %v2638_v11 = vmax.f32 %v2630_v4, 0.0  ;;  %v2715_v28 = vshll.u32 %v4198_v34, 16  ;;  %v2785_v34 = vld [vmem:[#allocation2 + $0x40] sm:$0xf] }
 0x258   : > { %v2762_v29 = vsel %vm5126_vm9, %v2693_v51, %v2761_v31  ;;  %v2765_v8 = vsel %vm5132_vm10, %v2694_v46, %v2764_v43  ;;  %v2677_v49 = vor.u32 %v2675_v52, %v2674_v10  ;;  %v2678_v36 = vrot.slane %v2674_v10, 4  ;;  %v2788_v4 = vld [vmem:[#allocation2 + $0x44] sm:$0x1]  ;;  %v2773_v10 = vld [vmem:[#allocation2 + $0x30] sm:$0xf] }
 0x259   : > { %2763 = vst [vmem:[#allocation2 + $0x20] sm:$0xf] %v2762_v29  ;;  %2766 = vst [vmem:[#allocation2 + $0x24] sm:$0x1] %v2765_v8  ;;  %v2714_v22 = vrot.slane %v2712_v12, 7  ;;  %v2696_v23 = vshrl.u32 %v4196_v60, 16  ;;  %v4199_v47 = vpack.c.bf16 %v2638_v11, %v2638_v11 }
 0x25a   : > { %v2750_v2 = vsel %vm5126_vm9, %v2677_v49, %v2749_v14  ;;  %v2753_v61 = vsel %vm5132_vm10, %v2678_v36, %v2752_v39  ;;  %v2699_v40 = vshll.u32 %v4196_v60, 16  ;;  %v2636_v44 = vmax.f32 %v2628_v57, 0.0  ;;  %v2776_v14 = vld [vmem:[#allocation2 + $0x34] sm:$0x1] }
 0x25b   : > { %2751 = vst [vmem:[#allocation2 + $0x10] sm:$0xf] %v2750_v2  ;;  %2754 = vst [vmem:[#allocation2 + $0x14] sm:$0x1] %v2753_v61  ;;  %v2717_v50 = vor.u32 %v2715_v28, %v2714_v22  ;;  %v2718_v42 = vrot.slane %v2714_v22, 4  ;;  %v2698_v15 = vrot.slane %v2696_v23, 7 }
 0x25c   : > { %v2720_v19 = vshrl.u32 %v4199_v47, 16  ;;  %v5559_v27 = vld [vmem:[#allocation2 + $0x18] sm:$0xf]  ;;  %v2723_v63 = vshll.u32 %v4199_v47, 16  ;;  %v4197_v6 = vpack.c.bf16 %v2636_v44, %v2636_v44  ;;  %v5581_v43 = vld [vmem:[#allocation2 + $0x1c] sm:$0x1] }
 0x25d   : > { %v2856_v58 = vshrl.u32 %v5559_v27, 16  ;;  %v2859_v16 = vshll.u32 %v5559_v27, 16  ;;  %v2780_v32 = vsel %vm5126_vm9, %v2717_v50, %v2779_v55  ;;  %v2783_v21 = vsel %vm5132_vm10, %v2718_v42, %v2782_v48  ;;  %v5567_v18 = vld [vmem:[#allocation2 + $0x8] sm:$0xf]  ;;  %v5569_v41 = vld [vmem:[#allocation2 + $0xc] sm:$0x1] }
 0x25e   : > { %v2701_v3 = vor.u32 %v2699_v40, %v2698_v15  ;;  %v2702_v1 = vrot.slane %v2698_v15, 4  ;;  %2781 = vst [vmem:[#allocation2 + $0x38] sm:$0xf] %v2780_v32  ;;  %2784 = vst [vmem:[#allocation2 + $0x3c] sm:$0x1] %v2783_v21  ;;  %v2722_v38 = vrot.slane %v2720_v19, 7  ;;  %v4109_v13 = vcombine.low %v5512_v26, %v5567_v18 }
 0x25f   : > { %v2704_v25 = vshrl.u32 %v4197_v6, 16  ;;  %v2707_v59 = vshll.u32 %v4197_v6, 16  ;;  %v2828_v7 = vshrl.u32 %v5567_v18, 16  ;;  %v2831_v5 = vshll.u32 %v5567_v18, 16  ;;  %v5607_v40 = vld [vmem:[%s5900_s2 + $0x38] sm:$0xf] }
 0x260   : > { %v2768_v54 = vsel %vm5126_vm9, %v2701_v3, %v2767_v45  ;;  %v2771_v52 = vsel %vm5132_vm10, %v2702_v1, %v2770_v33  ;;  %v2725_v62 = vor.u32 %v2723_v63, %v2722_v38  ;;  %v2726_v17 = vrot.slane %v2722_v38, 4  ;;  %4527 = vmatprep.mubr.msk.bf16.mxu1 %vm268_vm1, %v4109_v13  ;;  %v5595_v22 = vld [vmem:[#allocation2 + $0x20] sm:$0xf]  ;;  %v5612_v15 = vld [vmem:[#allocation2 + $0x24] sm:$0x1] }
 0x261   : > { %2769 = vst [vmem:[#allocation2 + $0x28] sm:$0xf] %v2768_v54  ;;  %2772 = vst [vmem:[#allocation2 + $0x2c] sm:$0x1] %v2771_v52  ;;  %v2706_v51 = vrot.slane %v2704_v25, 7  ;;  %v2837_v46 = vshll.u32 %v5569_v41, 16 }
 0x262   : > { %v2830_v12 = vrot.slane %v2828_v7, 4  ;;  %v2833_v31 = vrot.slane %v2831_v5, 5  ;;  %v2858_v60 = vrot.slane %v2856_v58, 4  ;;  %v2861_v11 = vrot.slane %v2859_v16, 5  ;;  %v5587_v49 = vld [vmem:[#allocation2 + $0x10] sm:$0xf] }
 0x263   : > { %v2786_v57 = vsel %vm5126_vm9, %v2725_v62, %v2785_v34  ;;  %v2789_v56 = vsel %vm5132_vm10, %v2726_v17, %v2788_v4  ;;  %v2709_v29 = vor.u32 %v2707_v59, %v2706_v51  ;;  %v2710_v8 = vrot.slane %v2706_v51, 4  ;;  %v5589_v36 = vld [vmem:[#allocation2 + $0x14] sm:$0x1] }
 0x264   : > { %2787 = vst [vmem:[#allocation2 + $0x40] sm:$0xf] %v2786_v57  ;;  %2790 = vst [vmem:[#allocation2 + $0x44] sm:$0x1] %v2789_v56  ;;  %v5593_v39 = vcombine.low %v5587_v49, %v5559_v27  ;;  %v2834_v28 = vor.u32 %v2833_v31, %v2830_v12  ;;  %v2839_v23 = vrot.slane %v2837_v46, 5  ;;  %v2842_v47 = vshrl.u32 %v5587_v49, 16 }
 0x265   : > { %v2774_v2 = vsel %vm5126_vm9, %v2709_v29, %v2773_v10  ;;  %v2777_v61 = vsel %vm5132_vm10, %v2710_v8, %v2776_v14  ;;  %v2845_v55 = vshll.u32 %v5587_v49, 16  ;;  %v2851_v48 = vshll.u32 %v5589_v36, 16  ;;  %v5622_v6 = vld [vmem:[#allocation2 + $0x38] sm:$0xf]  ;;  %v5960_v16 = vld [vmem:[#allocation15_spill] sm:$0xff] }
 0x266   : > { %2775 = vst [vmem:[#allocation2 + $0x30] sm:$0xf] %v2774_v2  ;;  %2778 = vst [vmem:[#allocation2 + $0x34] sm:$0x1] %v2777_v61  ;;  %4528 = vmatmul.mubr.msk.bf16.vlgmr.msra.gmra.mxu1 %vm268_vm1, %v5593_v39  ;;  %v2835_v44 = vrot.slane %v2834_v28, 4  ;;  %v2844_v37 = vrot.slane %v2842_v47, 4  ;;  %v2862_v50 = vor.u32 %v2861_v11, %v2858_v60  ;;  %v4135_v51 = vcombine.low %v5567_v18, %v5587_v49 }
 0x267   : > { %v2865_v53 = vshll.u32 %v5581_v43, 16  ;;  %v2847_v42 = vrot.slane %v2845_v55, 5  ;;  %v2870_v19 = vshrl.u32 %v5595_v22, 16  ;;  %4546 = vmatpush3.bf16.msra.mxu1 %v5549_v35  ;;  %v2853_v58 = vrot.slane %v2851_v48, 5  ;;  %v5672_v11 = vld [vmem:[#allocation2 + $0x3c] sm:$0x1] }
 0x268   : > { %v5616_v45 = vld [vmem:[#allocation2 + $0x28] sm:$0xf]  ;;  %v5620_v63 = vsel %vm4821_vm4, %v2835_v44, %v2839_v23  ;;  %v3186_v32 = vsel %vm281_vm0, %v5960_v16, 0  ;;  %4631 = vmatprep.subr.msk.bf16.mxu1 %vm281_vm0, %v5607_v40  ;;  %v2863_v1 = vrot.slane %v2862_v50, 4  ;;  %v5638_v33 = vld [vmem:[#allocation2 + $0x2c] sm:$0x1] }
 0x269   : > { %v5630_v21 = vcombine.low %v5595_v22, %v5616_v45  ;;  %v4101_v35 = vcombine.low %v2826_v24, %v5620_v63  ;;  %v2848_v3 = vor.u32 %v2847_v42, %v2844_v37  ;;  %v2867_v38 = vrot.slane %v2865_v53, 5  ;;  %v4143_v28 = vld [vmem:[%s5900_s2 + $0x34] sm:$0xf] }
 0x26a   : > { %v2872_v25 = vrot.slane %v2870_v19, 4  ;;  %v2873_v59 = vshll.u32 %v5595_v22, 16  ;;  %v2884_v13 = vshrl.u32 %v5616_v45, 16  ;;  %v2879_v52 = vshll.u32 %v5612_v15, 16 }
 0x26b   : > { %4531 = vmatprep.mubr.msk.bf16.mxu1 %vm268_vm1, %v5630_v21  ;;  %4517 = vmatprep.mubr.msk.bf16.mxu0 %vm268_vm1, %v4101_v35  ;;  %v2849_v54 = vrot.slane %v2848_v3, 4  ;;  %v2887_v20 = vshll.u32 %v5616_v45, 16  ;;  %v2912_v30 = vshrl.u32 %v5622_v6, 16  ;;  %v2893_v7 = vshll.u32 %v5638_v33, 16 }
 0x26c   : > { %v2875_v24 = vrot.slane %v2873_v59, 5  ;;  %v2886_v34 = vrot.slane %v2884_v13, 4  ;;  %v2915_v5 = vshll.u32 %v5622_v6, 16  ;;  %v5658_v4 = vsel %vm4821_vm4, %v2863_v1, %v2867_v38 }
 0x26d   : > { %v5650_v62 = vld [vmem:[#allocation2 + $0x30] sm:$0xf]  ;;  %v5654_v17 = vsel %vm4821_vm4, %v2849_v54, %v2853_v58  ;;  %v2889_v46 = vrot.slane %v2887_v20, 5  ;;  %v5670_v60 = vld [vmem:[#allocation2 + $0x34] sm:$0x1]  ;;  %v2881_v56 = vrot.slane %v2879_v52, 5  ;;  %v4136_v38 = vcombine.low %v5559_v27, %v5595_v22 }
 0x26e   : > { %v5664_v10 = vcombine.low %v5650_v62, %v5622_v6  ;;  %v5668_v12 = vcombine.low %v5654_v17, %v5658_v4  ;;  %v2876_v31 = vor.u32 %v2875_v24, %v2872_v25  ;;  %v2898_v57 = vshrl.u32 %v5650_v62, 16 }
 0x26f   : > { %v2890_v29 = vor.u32 %v2889_v46, %v2886_v34  ;;  %v2901_v8 = vshll.u32 %v5650_v62, 16  ;;  %v2914_v14 = vrot.slane %v2912_v30, 4  ;;  %v2895_v47 = vrot.slane %v2893_v7, 5  ;;  %v4168_v30 = vld [vmem:[%s5900_s2 + $0x40] sm:$0xf] }
 0x270   : > { %4532 = vmatmul.mubr.msk.bf16.gmra.mxu1 %vm268_vm1, %v5664_v10  ;;  %4518 = vmatmul.mubr.msk.bf16.vlgmr.msra.gmra.mxu0 %vm268_vm1, %v5668_v12  ;;  %v2877_v23 = vrot.slane %v2876_v31, 4  ;;  %v2900_v2 = vrot.slane %v2898_v57, 4  ;;  %v2917_v61 = vrot.slane %v2915_v5, 5  ;;  %v2907_v44 = vshll.u32 %v5670_v60, 16  ;;  %v5740_v46 = vld [vmem:[#allocation2 + $0x40] sm:$0xf] }
 0x271   : > { %4536 = vmatpush3.bf16.msra.mxu0 %v3186_v32  ;;  %4547 = vmatprep.mubr.msk.bf16.mxu1 %vm268_vm1, %v4135_v51  ;;  %v2891_v55 = vrot.slane %v2890_v29, 4  ;;  %v2903_v48 = vrot.slane %v2901_v8, 5  ;;  %v2921_v37 = vshll.u32 %v5672_v11, 16  ;;  %v4117_v53 = vrot.slane %v5512_v26, 9 }
 0x272   : > { %v2918_v50 = vor.u32 %v2917_v61, %v2914_v14  ;;  %v3129_v42 = vrot.slane %v5521_v9, 5  ;;  %v4118_v19 = vrot.slane %v5567_v18, 9  ;;  %4630 = vmatprep.subr.msk.bf16.mxu0 %vm281_vm0, %v4143_v28  ;;  %v5692_v58 = vsel %vm4821_vm4, %v2877_v23, %v2881_v56 }
 0x273   : > { %v5696_v16 = vsel %vm4821_vm4, %v2891_v55, %v2895_v47  ;;  %v2904_v32 = vor.u32 %v2903_v48, %v2900_v2  ;;  %v3133_v35 = vrot.slane %v5569_v41, 5  ;;  %v2909_v18 = vrot.slane %v2907_v44, 5  ;;  %v2808_v2 = vld [vmem:[#allocation2 + $0x44] sm:$0x1] }
 0x274   : > { %v5701_v26 = vcombine.low %v5692_v58, %v5696_v16  ;;  %v2919_v9 = vrot.slane %v2918_v50, 4  ;;  %v2923_v1 = vrot.slane %v2921_v37, 5  ;;  %v3130_v59 = vsel %vm5329_vm13, %v4117_v53, %v3129_v42  ;;  %v2809_v42 = vld [vmem:[#allocation2 + $0x48] sm:$0xf] }
 0x275   : > { %v2905_v3 = vrot.slane %v2904_v32, 4  ;;  %v3134_v41 = vsel %vm5329_vm13, %v4118_v19, %v3133_v35  ;;  %v3491_v13 = vsel %vm281_vm0, %v5607_v40, 0  ;;  %v4137_v20 = vcombine.low %v5616_v45, %v5650_v62 }
 0x276   : > { %4521 = vmatprep.mubr.msk.bf16.mxu0 %vm268_vm1, %v5701_v26  ;;  %v5719_v52 = vsel %vm4821_vm4, %v2919_v9, %v2923_v1  ;;  %v4119_v24 = vrot.slane %v5587_v49, 9  ;;  %v3137_v34 = vrot.slane %v5589_v36, 5  ;;  %v4126_v7 = vcombine.low %v3130_v59, %v3134_v41 }
 0x277   : > { %v5715_v54 = vsel %vm4821_vm4, %v2905_v3, %v2909_v18  ;;  %v4122_v5 = vrot.slane %v5616_v45, 9  ;;  %v3149_v51 = vrot.slane %v5638_v33, 5  ;;  %v4120_v49 = vrot.slane %v5559_v27, 9 }
 0x278   : > { %4548 = vmatmul.mubr.msk.bf16.vlgmr.msra.gmra.mxu1 %vm268_vm1, %v4136_v38  ;;  %v5729_v40 = vcombine.low %v5715_v54, %v5719_v52  ;;  %v3141_v36 = vrot.slane %v5581_v43, 5  ;;  %v3138_v31 = vsel %vm5329_vm13, %v4119_v24, %v3137_v34  ;;  %v4121_v57 = vrot.slane %v5595_v22, 9  ;;  %v4175_v24 = vld [vmem:[%s5900_s2 + $0x44] sm:$0xf]  ;;  %v2810_v34 = vld [vmem:[#allocation2 + $0x4c] sm:$0x1] }
 0x279   : > { %4551 = vmatprep.mubr.msk.bf16.mxu1 %vm268_vm1, %v4137_v20  ;;  %4566 = vmatpush3.bf16.msra.mxu1 %v3491_v13  ;;  %v3145_v56 = vrot.slane %v5612_v15, 5  ;;  %v4138_v45 = vcombine.low %v5622_v6, %v5740_v46  ;;  %v3150_v33 = vsel %vm5329_vm13, %v4122_v5, %v3149_v51  ;;  %v3391_v27 = vsel %vm281_vm0, %v4143_v28, 0  ;;  %v4162_v28 = vld [vmem:[%s5900_s2 + $0x3c] sm:$0xf] }
 0x27a   : > { %4522 = vmatmul.mubr.msk.bf16.gmra.mxu0 %vm268_vm1, %v5729_v40  ;;  %4633 = vmatprep.subr.msk.bf16.mxu1 %vm281_vm0, %v4168_v30  ;;  %v3142_v29 = vsel %vm5329_vm13, %v4120_v49, %v3141_v36  ;;  %v4154_v8 = vcombine.low %v3134_v41, %v3138_v31  ;;  %v4123_v15 = vrot.slane %v5650_v62, 9  ;;  %v3153_v14 = vrot.slane %v5670_v60, 5 }
 0x27b   : > { %4537 = vmatprep.mubr.msk.bf16.mxu0 %vm268_vm1, %v4126_v7  ;;  %v5756_v43 = vcombine.low %v3138_v31, %v3142_v29  ;;  %v3146_v22 = vsel %vm5329_vm13, %v4121_v57, %v3145_v56  ;;  %v4124_v47 = vrot.slane %v5622_v6, 9  ;;  %v3157_v62 = vrot.slane %v5672_v11, 5 }
 0x27c   : > { %v5763_v23 = vcombine.low %v3146_v22, %v3150_v33  ;;  %v3154_v60 = vsel %vm5329_vm13, %v4123_v15, %v3153_v14  ;;  %v3358_v61 = vshrl.u32 %v5740_v46, 16  ;;  %v3361_v55 = vshll.u32 %v5740_v46, 16 }
 0x27d   : > { %v4155_v48 = vcombine.low %v3142_v29, %v3146_v22  ;;  %v3672_v44 = vsel %vm281_vm0, %v4168_v30, 0  ;;  %v3158_v37 = vsel %vm5329_vm13, %v4124_v47, %v3157_v62  ;;  %v4156_v50 = vcombine.low %v3150_v33, %v3154_v60 }
 0x27e   : > { %v4152_v6 = vrot.slane %v5740_v46, 9  ;;  %v3469_v11 = vrot.slane %v2808_v2, 5  ;;  %v4129_v53 = vcombine.low %v3154_v60, %v3158_v37  ;;  %v4144_v19 = vcombine.low %v5620_v63, %v5654_v17 }
 0x27f   : > { %v3360_v32 = vrot.slane %v3358_v61, 4  ;;  %v3363_v35 = vrot.slane %v3361_v55, 5  ;;  %v3651_v3 = vshrl.u32 %v2809_v42, 16  ;;  %v3654_v18 = vshll.u32 %v2809_v42, 16 }
 0x280   : > { %4552 = vmatmul.mubr.msk.bf16.gmra.mxu1 %vm268_vm1, %v4138_v45  ;;  %v3470_v9 = vsel %vm5329_vm13, %v4152_v6, %v3469_v11  ;;  %v3367_v59 = vshll.u32 %v2808_v2, 16  ;;  %v4145_v63 = vcombine.low %v5658_v4, %v5692_v58  ;;  %v3575_v17 = vsel %vm281_vm0, %v4162_v28, 0 }
 0x281   : > { %4567 = vmatprep.mubr.msk.bf16.mxu1 %vm268_vm1, %v4154_v8  ;;  %v3364_v1 = vor.u32 %v3363_v35, %v3360_v32  ;;  %v4157_v38 = vcombine.low %v3158_v37, %v3470_v9  ;;  %v3653_v41 = vrot.slane %v3651_v3, 4  ;;  %v3656_v13 = vrot.slane %v3654_v18, 5 }
 0x282   : > { %4538 = vmatmul.mubr.msk.bf16.vlgmr.msra.gmra.mxu0 %vm268_vm1, %v5756_v43  ;;  %v4146_v20 = vcombine.low %v5696_v16, %v5715_v54  ;;  %v3369_v4 = vrot.slane %v3367_v59, 5  ;;  %v3660_v7 = vshll.u32 %v2810_v34, 16  ;;  %v3760_v36 = vsel %vm281_vm0, %v4175_v24, 0 }
 0x283   : > { %4556 = vmatpush3.bf16.msra.mxu0 %v3391_v27  ;;  %4541 = vmatprep.mubr.msk.bf16.mxu0 %vm268_vm1, %v5763_v23  ;;  %v3365_v30 = vrot.slane %v3364_v1, 4  ;;  %v3657_v58 = vor.u32 %v3656_v13, %v3653_v41  ;;  %v4174_v0 = vrot.slane %v2809_v42, 9 }
 0x284   : > { %4632 = vmatprep.subr.msk.bf16.mxu0 %vm281_vm0, %v4162_v28  ;;  %v3662_v54 = vrot.slane %v3660_v7, 5 }
 0x285   : > { %v3658_v16 = vrot.slane %v3657_v58, 4 }
 0x287   : > { %v3663_v51 = vsel %vm4821_vm4, %v3658_v16, %v3662_v54 }
 0x288   : > { %4568 = vmatmul.mubr.msk.bf16.vlgmr.msra.gmra.mxu1 %vm268_vm1, %v4155_v48 }
 0x289   : > { %4571 = vmatprep.mubr.msk.bf16.mxu1 %vm268_vm1, %v4156_v50  ;;  %4586 = vmatpush3.bf16.msra.mxu1 %v3672_v44 }
 0x28a   : > { %4542 = vmatmul.mubr.msk.bf16.gmra.mxu0 %vm268_vm1, %v4129_v53 }
 0x28b   : > { %4557 = vmatprep.mubr.msk.bf16.mxu0 %vm268_vm1, %v4144_v19 }
 0x290   : > { %4572 = vmatmul.mubr.msk.bf16.gmra.mxu1 %vm268_vm1, %v4157_v38 }
 0x291   : > { %4587 = vmatprep.mubr.msk.bf16.mxu1 %vm268_vm1, %v5668_v12  ;;  %v3370_v12 = vsel %vm4821_vm4, %v3365_v30, %v3369_v4 }
 0x292   : > { %4558 = vmatmul.mubr.msk.bf16.vlgmr.msra.gmra.mxu0 %vm268_vm1, %v4145_v63  ;;  %v4147_v5 = vcombine.low %v5719_v52, %v3370_v12  ;;  %v4169_v49 = vcombine.low %v3370_v12, %v3663_v51 }
 0x293   : > { %4576 = vmatpush3.bf16.msra.mxu0 %v3575_v17  ;;  %4561 = vmatprep.mubr.msk.bf16.mxu0 %vm268_vm1, %v4146_v20 }
 0x294   : > { %4634 = vmatprep.subr.msk.bf16.mxu0 %vm281_vm0, %v4175_v24 }
 0x298   : > { %4588 = vmatmul.mubr.msk.bf16.vlgmr.msra.gmra.mxu1 %vm268_vm1, %v5701_v26  ;;  %v4163_v26 = vcombine.low %v5740_v46, %v2809_v42 }
 0x299   : > { %4591 = vmatprep.mubr.msk.bf16.mxu1 %vm268_vm1, %v5729_v40 }
 0x29a   : > { %4562 = vmatmul.mubr.msk.bf16.gmra.mxu0 %vm268_vm1, %v4147_v5 }
 0x29b   : > { %4577 = vmatprep.mubr.msk.bf16.mxu0 %vm268_vm1, %v5593_v39  ;;  %v3750_v39 = vrot.slane %v2810_v34, 5 }
 0x2a0   : > { %4592 = vmatmul.mubr.msk.bf16.gmra.mxu1 %vm268_vm1, %v4169_v49 }
 0x2a2   : > { %4578 = vmatmul.mubr.msk.bf16.vlgmr.msra.gmra.mxu0 %vm268_vm1, %v5630_v21  ;;  %v3751_v21 = vsel %vm5329_vm13, %v4174_v0, %v3750_v39 }
 0x2a3   : > { %4596 = vmatpush3.bf16.msra.mxu0 %v3760_v36  ;;  %4581 = vmatprep.mubr.msk.bf16.mxu0 %vm268_vm1, %v5664_v10  ;;  %v4176_v52 = vcombine.low %v3470_v9, %v3751_v21 }
 0x2aa   : > { %4582 = vmatmul.mubr.msk.bf16.gmra.mxu0 %vm268_vm1, %v4163_v26 }
 0x2ab   : > { %4597 = vmatprep.mubr.msk.bf16.mxu0 %vm268_vm1, %v5756_v43 }
 0x2b2   : > { %4598 = vmatmul.mubr.msk.bf16.vlgmr.msra.gmra.mxu0 %vm268_vm1, %v5763_v23 }
 0x2b3   : > { %4601 = vmatprep.mubr.msk.bf16.mxu0 %vm268_vm1, %v4129_v53 }
 0x2ba   : > { %4602 = vmatmul.mubr.msk.bf16.gmra.mxu0 %vm268_vm1, %v4176_v52 }
 0x326   : > { %v4529_v10 = vpop.f32.mrf.mxu1 }
 0x328   : > { %v3088_v40 = vpop.f32.mrf.mxu1 }
 0x32a   : > { %v4530_v46 = vpop.f32.mrf.mxu1 }
 0x32c   : > { %v3091_v31 = vpop.f32.mrf.mxu1 }
 0x330   : > { %v4533_v57 = vpop.f32.mrf.mxu1  ;;  %v4519_v56 = vpop.f32.mrf.mxu0 }
 0x331   : > { %v3097_v24 = vadd.f32 %v4529_v10, %v4519_v56 }
 0x332   : > { %v3104_v45 = vpop.f32.mrf.mxu1  ;;  %v2988_v33 = vpop.f32.mrf.mxu0 }
 0x333   : > { %v3089_v4 = vadd.f32 %v3088_v40, %v2988_v33 }
 0x334   : > { %v4534_v29 = vpop.f32.mrf.mxu1  ;;  %v4520_v27 = vpop.f32.mrf.mxu0 }
 0x335   : > { %v3100_v16 = vadd.f32 %v4530_v46, %v4520_v27 }
 0x336   : > { %v5833_v8 = vpop.f32.mrf.mxu1  ;;  %v2991_v43 = vpop.f32.mrf.mxu0 }
 0x337   : > { %v3092_v51 = vadd.f32 %v3091_v31, %v2991_v43 }
 0x338   : > { %v4549_v22 = vpop.f32.mrf.mxu1 }
 0x33a   : > { %v4523_v15 = vpop.f32.mrf.mxu0  ;;  %v3318_v25 = vpop.f32.mrf.mxu1 }
 0x33b   : > { %v3113_v26 = vadd.f32 %v4533_v57, %v4523_v15 }
 0x33c   : > { %v3004_v14 = vpop.f32.mrf.mxu0  ;;  %v4550_v23 = vpop.f32.mrf.mxu1 }
 0x33e   : > { %v4524_v28 = vpop.f32.mrf.mxu0  ;;  %v3321_v47 = vpop.f32.mrf.mxu1 }
 0x33f   : > { %v3116_v33 = vadd.f32 %v4534_v29, %v4524_v28 }
 0x340   : > { %v3007_v62 = vpop.f32.mrf.mxu0  ;;  %v4553_v60 = vpop.f32.mrf.mxu1 }
 0x341   : > { %v3108_v43 = vadd.f32 %v5833_v8, %v3007_v62 }
 0x342   : > { %v4539_v2 = vpop.f32.mrf.mxu0  ;;  %v5835_v61 = vpop.f32.mrf.mxu1 }
 0x343   : > { %v3255_v58 = vadd.f32 %v4539_v2, %v3097_v24 }
 0x344   : > { %v3222_v55 = vpop.f32.mrf.mxu0  ;;  %v5837_v48 = vpop.f32.mrf.mxu1 }
 0x345   : > { %v3253_v54 = vadd.f32 %v3222_v55, %v3089_v4  ;;  %v3351_v36 = vadd.f32 %v4549_v22, %v3255_v58 }
 0x346   : > { %v4540_v44 = vpop.f32.mrf.mxu0  ;;  %v5839_v37 = vpop.f32.mrf.mxu1 }
 0x347   : > { %v3256_v49 = vadd.f32 %v4540_v44, %v3100_v16 }
 0x348   : > { %v3225_v50 = vpop.f32.mrf.mxu0  ;;  %v4569_v6 = vpop.f32.mrf.mxu1 }
 0x349   : > { %v3254_v21 = vadd.f32 %v3225_v50, %v3092_v51  ;;  %v3352_v40 = vadd.f32 %v4550_v23, %v3256_v49 }
 0x34a   : > { %v4543_v11 = vpop.f32.mrf.mxu0  ;;  %v3527_v53 = vpop.f32.mrf.mxu1 }
 0x34b   : > { %v3350_v55 = vadd.f32 %v3321_v47, %v3254_v21 }
 0x34c   : > { %v3238_v42 = vpop.f32.mrf.mxu0  ;;  %v4570_v19 = vpop.f32.mrf.mxu1 }
 0x34e   : > { %v4544_v32 = vpop.f32.mrf.mxu0  ;;  %v3530_v35 = vpop.f32.mrf.mxu1 }
 0x34f   : > { %v3260_v57 = vadd.f32 %v4544_v32, %v3116_v33 }
 0x350   : > { %v3241_v9 = vpop.f32.mrf.mxu0  ;;  %v5841_v3 = vpop.f32.mrf.mxu1 }
 0x351   : > { %v3356_v47 = vadd.f32 %v5837_v48, %v3260_v57 }
 0x352   : > { %v4559_v18 = vpop.f32.mrf.mxu0  ;;  %v5843_v38 = vpop.f32.mrf.mxu1 }
 0x353   : > { %5962 = vst [vmem:[#allocation17_spill] sm:$0xff] %v5843_v38  ;;  %v3460_v52 = vadd.f32 %v4559_v18, %v3351_v36  ;;  %v3259_v38 = vadd.f32 %v4543_v11, %v3113_v26 }
 0x354   : > { %v3427_v1 = vpop.f32.mrf.mxu0  ;;  %v5845_v13 = vpop.f32.mrf.mxu1 }
 0x355   : > { %5963 = vst [vmem:[#allocation18_spill] sm:$0xff] %v5845_v13  ;;  %v3349_v13 = vadd.f32 %v3318_v25, %v3253_v54  ;;  %v3560_v31 = vadd.f32 %v4569_v6, %v3460_v52  ;;  %v3355_v22 = vadd.f32 %v4553_v60, %v3259_v38  ;;  %v5969_v54 = vld [vmem:[#allocation5_spill] sm:$0xff] }
 0x356   : > { %v4560_v59 = vpop.f32.mrf.mxu0  ;;  %v5847_v20 = vpop.f32.mrf.mxu1 }
 0x357   : > { %5964 = vst [vmem:[#allocation19_spill] sm:$0xff] %v5847_v20  ;;  %v3105_v20 = vadd.f32 %v3104_v45, %v3004_v14  ;;  %v3458_v56 = vadd.f32 %v3427_v1, %v3349_v13  ;;  %v3461_v27 = vadd.f32 %v4560_v59, %v3352_v40  ;;  %v3258_v45 = vadd.f32 %v3241_v9, %v3108_v43  ;;  %v5974_v43 = vld [vmem:[#allocation7_spill] sm:$0xff] }
 0x358   : > { %v3430_v41 = vpop.f32.mrf.mxu0  ;;  %v4589_v7 = vpop.f32.mrf.mxu1  ;;  %v5975_v57 = vmax.f32 %v5974_v43, 0.0 }
 0x359   : > { %v3257_v2 = vadd.f32 %v3238_v42, %v3105_v20  ;;  %v3459_v44 = vadd.f32 %v3430_v41, %v3350_v55  ;;  %v3558_v25 = vadd.f32 %v3527_v53, %v3458_v56  ;;  %v3561_v42 = vadd.f32 %v4570_v19, %v3461_v27  ;;  %v5966_v20 = vld [vmem:[#allocation4_spill] sm:$0xff]  ;;  %v5972_v56 = vld [vmem:[#allocation6_spill] sm:$0xff] }
 0x35a   : > { %v4563_v63 = vpop.f32.mrf.mxu0  ;;  %v3708_v0 = vpop.f32.mrf.mxu1  ;;  %v3354_v1 = vadd.f32 %v5839_v37, %v3258_v45  ;;  %v5967_v4 = vmax.f32 %v5966_v20, 0.0  ;;  %v5973_v40 = vmax.f32 %v5972_v56, 0.0 }
 0x35b   : > { %v3464_v14 = vadd.f32 %v4563_v63, %v3355_v22  ;;  %v3353_v11 = vadd.f32 %v5835_v61, %v3257_v2  ;;  %v3559_v62 = vadd.f32 %v3530_v35, %v3459_v44  ;;  %v5965_v63 = vld [vmem:[#allocation17_spill] sm:$0xff] }
 0x35c   : > { %v3443_v17 = vpop.f32.mrf.mxu0  ;;  %v4590_v24 = vpop.f32.mrf.mxu1 }
 0x35d   : > { %v3462_v18 = vadd.f32 %v3443_v17, %v3353_v11  ;;  %v3564_v9 = vadd.f32 %v5841_v3, %v3464_v14 }
 0x35e   : > { %v4564_v30 = vpop.f32.mrf.mxu0  ;;  %v3711_v23 = vpop.f32.mrf.mxu1  ;;  %v5971_v26 = vld [vmem:[#allocation19_spill] sm:$0xff] }
 0x35f   : > { %v3465_v32 = vadd.f32 %v4564_v30, %v3356_v47  ;;  %v3562_v17 = vadd.f32 %v5965_v63, %v3462_v18  ;;  %v5978_v18 = vld [vmem:[#allocation11_spill] sm:$0xff] }
 0x360   : > { %v3446_v34 = vpop.f32.mrf.mxu0  ;;  %v4593_v53 = vpop.f32.mrf.mxu1  ;;  %v5979_v47 = vmax.f32 %v5978_v18, 0.0 }
 0x361   : > { %v3463_v13 = vadd.f32 %v3446_v34, %v3354_v1  ;;  %v5980_v1 = vld [vmem:[#allocation12_spill] sm:$0xff] }
 0x362   : > { %v4579_v12 = vpop.f32.mrf.mxu0 }
 0x363   : > { %v3644_v50 = vadd.f32 %v4579_v12, %v3560_v31  ;;  %v5968_v12 = vld [vmem:[#allocation18_spill] sm:$0xff] }
 0x364   : > { %v3611_v5 = vpop.f32.mrf.mxu0  ;;  %v3565_v16 = vadd.f32 %v5968_v12, %v3465_v32 }
 0x365   : > { %v3642_v28 = vadd.f32 %v3611_v5, %v3558_v25  ;;  %v3741_v60 = vadd.f32 %v4589_v7, %v3644_v50  ;;  %v3724_v7 = vpop.f32.mrf.mxu1  ;;  %v5970_v5 = vmax.f32 %v5969_v54, 0.0  ;;  %v5976_v25 = vld [vmem:[#allocation8_spill] sm:$0xff] }
 0x366   : > { %v4580_v39 = vpop.f32.mrf.mxu0  ;;  %v5977_v45 = vmax.f32 %v5976_v25, 0.0 }
 0x367   : > { %v3645_v8 = vadd.f32 %v4580_v39, %v3561_v42  ;;  %v3739_v41 = vadd.f32 %v3708_v0, %v3642_v28  ;;  %v3563_v0 = vadd.f32 %v5971_v26, %v3463_v13 }
 0x368   : > { %v3614_v10 = vpop.f32.mrf.mxu0 }
 0x369   : > { %v3643_v61 = vadd.f32 %v3614_v10, %v3559_v62  ;;  %v3742_v30 = vadd.f32 %v4590_v24, %v3645_v8  ;;  %v4594_v24 = vpop.f32.mrf.mxu1 }
 0x36a   : > { %v4583_v46 = vpop.f32.mrf.mxu0 }
 0x36b   : > { %v3648_v19 = vadd.f32 %v4583_v46, %v3564_v9  ;;  %v3740_v36 = vadd.f32 %v3711_v23, %v3643_v61 }
 0x36c   : > { %v3627_v15 = vpop.f32.mrf.mxu0 }
 0x36d   : > { %v3646_v37 = vadd.f32 %v3627_v15, %v3562_v17  ;;  %v3745_v21 = vadd.f32 %v4593_v53, %v3648_v19  ;;  %v5981_v53 = vmax.f32 %v5980_v1, 0.0 }
 0x36e   : > { %v4584_v29 = vpop.f32.mrf.mxu0 }
 0x36f   : > { %v3649_v52 = vadd.f32 %v4584_v29, %v3565_v16  ;;  %v3743_v27 = vadd.f32 %v3724_v7, %v3646_v37  ;;  %v3727_v29 = vpop.f32.mrf.mxu1 }
 0x370   : > { %v3630_v6 = vpop.f32.mrf.mxu0 }
 0x371   : > { %v3647_v55 = vadd.f32 %v3630_v6, %v3563_v0  ;;  %v3746_v23 = vadd.f32 %v4594_v24, %v3649_v52 }
 0x372   : > { %v4599_v38 = vpop.f32.mrf.mxu0 }
 0x373   : > { %v3829_v59 = vadd.f32 %v4599_v38, %v3741_v60  ;;  %v3744_v62 = vadd.f32 %v3727_v29, %v3647_v55 }
 0x374   : > { %v3796_v48 = vpop.f32.mrf.mxu0 }
 0x375   : > { %v3837_v35 = vadd.f32 %v3829_v59, %v5967_v4  ;;  %v3827_v58 = vadd.f32 %v3796_v48, %v3739_v41  ;;  %v5982_v59 = vld [vmem:[#allocation13_spill] sm:$0xff] }
 0x376   : > { %v4600_v3 = vpop.f32.mrf.mxu0  ;;  %v5983_v41 = vmax.f32 %v5982_v59, 0.0 }
 0x377   : > { %v3845_v34 = vpack.c.bf16 %v3837_v35, %v3837_v35  ;;  %v3835_v51 = vadd.f32 %v3827_v58, %v5970_v5  ;;  %v3830_v49 = vadd.f32 %v4600_v3, %v3742_v30 }
 0x378   : > { %v3799_v39 = vpop.f32.mrf.mxu0 }
 0x379   : > { %3853 = vst.msk [vmem:[%s5862_s13 + $0x8] sm:$0xf] %vm172_vm5, %v3845_v34  ;;  %v3843_v10 = vpack.c.bf16 %v3835_v51, %v3835_v51  ;;  %v3838_v33 = vadd.f32 %v3830_v49, %v5973_v40  ;;  %v3828_v2 = vadd.f32 %v3799_v39, %v3740_v36 }
 0x37a   : > { %v4603_v46 = vpop.f32.mrf.mxu0 }
 0x37b   : > { %3851 = vst.msk [vmem:[%s5862_s13] sm:$0xf] %vm172_vm5, %v3843_v10  ;;  %v3846_v31 = vpack.c.bf16 %v3838_v33, %v3838_v33  ;;  %v3836_v22 = vadd.f32 %v3828_v2, %v5975_v57  ;;  %v3833_v15 = vadd.f32 %v4603_v46, %v3745_v21 }
 0x37c   : > { %v3812_v44 = vpop.f32.mrf.mxu0 }
 0x37d   : > { %3854 = vst.msk [vmem:[%s5862_s13 + $0xc] sm:$0xf] %vm172_vm5, %v3846_v31  ;;  %v3844_v50 = vpack.c.bf16 %v3836_v22, %v3836_v22  ;;  %v3841_v14 = vadd.f32 %v3833_v15, %v5977_v45  ;;  %v3831_v11 = vadd.f32 %v3812_v44, %v3743_v27 }
 0x37e   : > { %v4604_v28 = vpop.f32.mrf.mxu0 }
 0x37f   : > { %3852 = vst.msk [vmem:[%s5862_s13 + $0x4] sm:$0xf] %vm172_vm5, %v3844_v50  ;;  %v3849_v42 = vpack.c.bf16 %v3841_v14, %v3841_v14  ;;  %v3839_v6 = vadd.f32 %v3831_v11, %v5979_v47  ;;  %v3834_v8 = vadd.f32 %v4604_v28, %v3746_v23 }
 0x380   : > { %v3815_v60 = vpop.f32.mrf.mxu0 }
 0x381   : > { %3857 = vst.msk [vmem:[%s5862_s13 + $0x18] sm:$0xf] %vm172_vm5, %v3849_v42  ;;  %v3847_v32 = vpack.c.bf16 %v3839_v6, %v3839_v6  ;;  %v3842_v9 = vadd.f32 %v3834_v8, %v5981_v53  ;;  %v3832_v38 = vadd.f32 %v3815_v60, %v3744_v62 }
 0x383   : > { %3855 = vst.msk [vmem:[%s5862_s13 + $0x10] sm:$0xf] %vm172_vm5, %v3847_v32  ;;  %v3850_v61 = vpack.c.bf16 %v3842_v9, %v3842_v9  ;;  %v3840_v13 = vadd.f32 %v3832_v38, %v5983_v41 }
 0x385   : > { %3858 = vst.msk [vmem:[%s5862_s13 + $0x1c] sm:$0xf] %vm172_vm5, %v3850_v61  ;;  %v3848_v19 = vpack.c.bf16 %v3840_v13, %v3840_v13 }
 0x387   : > { %3856 = vst.msk [vmem:[%s5862_s13 + $0x14] sm:$0xf] %vm172_vm5, %v3848_v19 }
 0x388 PF: > { %s13_s12 = sadd.s32 1, %s4693_s12  }
 0x389   : > { %p10_p4 = scmp.ge.s32.totalorder %s13_s12, 4  }
 0x38b   :  { %12 = sbr.rel (!%p10_p4) target bundleno = 1 (0x1), region = 88 }

// kernel: forward.6
= control target key start
LH: loop header
LB: loop body
LE: loop exit
PB: predicated region body
PF: predicated region fallthrough
CT: control target
= control target key end

     0   :  { %s3277_s12 = smov 0   ;;  %s3949_s0 = inlined_call_operand.vmem [shape: bf16[2,4,5,5,8], index: 0, kind: input, shape index: {}]   ;;  %s3950_s1 = inlined_call_operand.vmem [shape: bf16[9,8,16], index: 1, kind: input, shape index: {}]   ;;  %s3951_s2 = inlined_call_operand.vmem [shape: bf16[2,9,16,16], index: 2, kind: input, shape index: {}]   ;;  %s3952_s3 = inlined_call_operand.vmem [shape: bf16[2,4,4,16], index: 3, kind: output, shape index: {}]  }
   0x1 LB: > { %s2855_s13 = sadd.s32 4294967295, %s3251_s12   ;;  %p2859_p0 = scmp.ge.s32.totalorder %s3251_s12, 1  ;;  %s3251_s12 = sphi %s3277_s12, %s13_s12  }
   0x2   : > { %p137_p1 = scmp.lt.s32.totalorder %s3251_s12, 3 }
   0x4   : > { %p138_p2 = pnand %p2859_p0, %p137_p1 }
   0x5   : > { %p161_p3 = scmp.lt.s32.totalorder (!%p138_p2), %s2855_s13, 1 }
   0x6   : > { %141 = sbr.rel (%p138_p2) target bundleno = 818 (0x332), region = 32 }
   0xb   : > { %v2863_v0 = vld [vmem:[%s3950_s1 + $0x4] sm:$0xf]  ;;  %vm225_vm0 = vcmask 1043456   ;;  %v197_v1 = vld [vmem:[%s3950_s1] sm:$0xf]  ;;  %v209_v2 = vlaneseq  ;;  %v3253_v3 = vmov 0.0  }
   0xc   : > { %3028 = vmatprep.subr.bf16.mxu0 %v3253_v3  ;;  %3034 = vmatprep.subr.bf16.mxu1 %v3253_v3  ;;  %v227_v4 = vsel %vm225_vm0, %v2863_v0, 0  ;;  %v295_v5 = vsel %vm225_vm0, %v197_v1, 0  ;;  %v3254_v6 = vmov 1983009808   ;;  %v2866_v9 = vld [vmem:[%s3950_s1 + $0x8] sm:$0xf] }
   0xd   : > { %3029 = vmatpush3.bf16.msra.mxu0 %v227_v4  ;;  %3035 = vmatpush3.bf16.msra.mxu1 %v295_v5  ;;  %v207_v7 = vunpack.c.l.s4 %v3254_v6  ;;  %v210_v8 = vshrl.u32 %v209_v2, 7  ;;  %v2868_v10 = vld [vmem:[%s3950_s1 + $0xc] sm:$0xf]  ;;  %vm3255_vm1 = vmmov 0   ;;  %s3964_s13 = smov (!%p161_p3, %s2855_s13), 1  ;;  %vm221_vm2 = vcmask 64512  }
   0xe   : > { %3030 = vmatprep.mubr.msk.bf16.mxu0 %vm3255_vm1, %v3253_v3  ;;  %3036 = vmatprep.mubr.msk.bf16.mxu1 %vm3255_vm1, %v3253_v3  ;;  %s3190_s22 = smul.u32 80, %s3964_s13  ;;  %v456_v12 = vsel %vm225_vm0, %v2866_v9, 0  ;;  %v528_v13 = vsel %vm225_vm0, %v2868_v10, 0  ;;  %vm370_vm3 = vsmask.f32 1280  ;;  %vm172_vm10 = vcmask 124928  }
   0xf   : > { %v208_v11 = vunpack.c.0.s8 %v207_v7  ;;  %3040 = vmatprep.subr.bf16.mxu0 %v3253_v3  ;;  %3046 = vmatprep.subr.bf16.mxu1 %v3253_v3  ;;  %v2870_v15 = vld [vmem:[%s3950_s1 + $0x10] sm:$0xf]  ;;  %v2872_v16 = vld [vmem:[%s3950_s1 + $0x14] sm:$0xf]  ;;  %vm371_vm4 = vsmask.f32 3336 }
  0x10   : > { %s3323_s29 = scalar_lea.vmem %s3949_s0, %s3190_s22  ;;  %vm373_vm5 = vsmask.f32 5392  ;;  %vm375_vm6 = vsmask.f32 7448  ;;  %v3338_v23 = vsel %vm225_vm0, %v2870_v15, 0  ;;  %v3341_v24 = vsel %vm225_vm0, %v2872_v16, 0  ;;  %vm372_vm7 = vmor %vm370_vm3, %vm371_vm4 }
  0x11   : > { %v3312_v14 = vsub.s32 %v208_v11, %v210_v8  ;;  %v184_v17 = vld [vmem:[%s3323_s29 + $0x14] sm:$0x7]  ;;  %v3327_v18 = vld [vmem:[%s3323_s29 + $0x18] sm:$0x7]  ;;  %v3330_v19 = vld [vmem:[%s3323_s29 + $0x1c] sm:$0x7] }
  0x12   : > { %v3333_v20 = vld [vmem:[%s3323_s29 + $0x20] sm:$0x7]  ;;  %v204_v21 = vcombine.low %v184_v17, %v3327_v18  ;;  %v3346_v26 = vld [vmem:[%s3323_s29 + $0x4] sm:$0x7]  ;;  %v3349_v27 = vld [vmem:[%s3323_s29 + $0x8] sm:$0x7] }
  0x13   : > { %v179_v22 = vld [vmem:[%s3323_s29] sm:$0x7]  ;;  %v205_v25 = vcombine.low %v3330_v19, %v3333_v20  ;;  %v3352_v28 = vld [vmem:[%s3323_s29 + $0xc] sm:$0x7]  ;;  %v352_v33 = vrot.slane %v3346_v26, %v3312_v14  ;;  %v360_v36 = vrot.slane %v3349_v27, %v3312_v14  ;;  %vm3372_vm8 = vmor %vm372_vm7, %vm373_vm5  ;;  %vm1091_vm11 = vsmask.f32 2306 }
  0x14   : > { %v344_v29 = vrot.slane %v179_v22, %v3312_v14  ;;  %v212_v30 = vrot.slane %v204_v21, %v3312_v14  ;;  %v274_v31 = vcombine.low %v179_v22, %v3346_v26  ;;  %v275_v32 = vcombine.low %v3349_v27, %v3352_v28  ;;  %v189_v59 = vld [vmem:[%s3323_s29 + $0x28] sm:$0x7]  ;;  %v190_v0 = vld [vmem:[%s3323_s29 + $0x2c] sm:$0x7]  ;;  %vm3387_vm9 = vmor %vm3372_vm8, %vm375_vm6  ;;  %s2969_s22 = sshll.u32 %s3964_s13, 3 }
  0x15   : > { %v219_v34 = vrot.slane %v205_v25, %v3312_v14  ;;  %v368_v37 = vrot.slane %v3352_v28, %v3312_v14  ;;  %v353_v40 = vcombine.high %v352_v33, %v352_v33  ;;  %v361_v43 = vcombine.high %v360_v36, %v360_v36  ;;  %v191_v7 = vld [vmem:[%s3323_s29 + $0x30] sm:$0x7]  ;;  %v192_v8 = vld [vmem:[%s3323_s29 + $0x34] sm:$0x7]  ;;  %vm3538_vm12 = vmand %vm172_vm10, %vm1091_vm11  ;;  %s170_s25 = scalar_lea.vmem %s3952_s3, %s2969_s22 }
  0x16   : > { %v345_v35 = vcombine.high %v344_v29, %v344_v29  ;;  %v282_v38 = vrot.slane %v274_v31, %v3312_v14  ;;  %v289_v39 = vrot.slane %v275_v32, %v3312_v14  ;;  %v378_v41 = vshrl.u32 %v344_v29, 16 }
  0x17   : > { %v220_v42 = vcombine.low %v212_v30, %v219_v34  ;;  %v369_v44 = vcombine.high %v368_v37, %v368_v37  ;;  %v381_v45 = vshll.u32 %v344_v29, 16  ;;  %v392_v49 = vshrl.u32 %v352_v33, 16 }
  0x18   : > { %v290_v46 = vcombine.low %v282_v38, %v289_v39  ;;  %v380_v47 = vrot.slane %v378_v41, 6  ;;  %v387_v48 = vshll.u32 %v345_v35, 16  ;;  %v395_v51 = vshll.u32 %v352_v33, 16 }
  0x19   : > { %3031 = vmatmul.mubr.msk.bf16.vlgmr.msra.gmra.mxu0 %vm221_vm2, %v220_v42  ;;  %v383_v50 = vrot.slane %v381_v45, 7  ;;  %v401_v52 = vshll.u32 %v353_v40, 16  ;;  %v406_v53 = vshrl.u32 %v360_v36, 16  ;;  %v394_v56 = vrot.slane %v392_v49, 6 }
  0x1a   : > { %3037 = vmatmul.mubr.msk.bf16.vlgmr.msra.gmra.mxu1 %vm221_vm2, %v290_v46  ;;  %v389_v55 = vrot.slane %v387_v48, 7  ;;  %v409_v57 = vshll.u32 %v360_v36, 16  ;;  %v415_v58 = vshll.u32 %v361_v43, 16  ;;  %3041 = vmatpush3.bf16.msra.mxu0 %v456_v12  ;;  %v397_v61 = vrot.slane %v395_v51, 7 }
  0x1b   : > { %v384_v60 = vor.u32 %v383_v50, %v380_v47  ;;  %v408_v62 = vrot.slane %v406_v53, 6  ;;  %v420_v63 = vshrl.u32 %v368_v37, 16  ;;  %3047 = vmatpush3.bf16.msra.mxu1 %v528_v13  ;;  %3042 = vmatprep.mubr.msk.bf16.mxu0 %vm3255_vm1, %v3253_v3  ;;  %v423_v2 = vshll.u32 %v368_v37, 16 }
  0x1c   : > { %v411_v1 = vrot.slane %v409_v57, 7  ;;  %v429_v4 = vshll.u32 %v369_v44, 16  ;;  %3048 = vmatprep.mubr.msk.bf16.mxu1 %vm3255_vm1, %v3253_v3  ;;  %3052 = vmatprep.subr.bf16.mxu0 %v3253_v3  ;;  %v403_v6 = vrot.slane %v401_v52, 7  ;;  %v398_v11 = vor.u32 %v397_v61, %v394_v56 }
  0x1d   : > { %v385_v9 = vrot.slane %v384_v60, 2  ;;  %v422_v10 = vrot.slane %v420_v63, 6  ;;  %v417_v12 = vrot.slane %v415_v58, 7  ;;  %3058 = vmatprep.subr.bf16.mxu1 %v3253_v3  ;;  %v425_v13 = vrot.slane %v423_v2, 7 }
  0x1e   : > { %v412_v15 = vor.u32 %v411_v1, %v408_v62  ;;  %v431_v16 = vrot.slane %v429_v4, 7  ;;  %v507_v17 = vcombine.low %v189_v59, %v190_v0  ;;  %v399_v22 = vrot.slane %v398_v11, 2  ;;  %v3407_v38 = vld.sshfl [vmem:[%s3323_s29 + $0x3c] sm:$0x5f pattern:$0x76325410] }
  0x1f   : > { %v390_v21 = vsel %vm3387_vm9, %v385_v9, %v389_v55  ;;  %v508_v25 = vcombine.low %v191_v7, %v192_v8  ;;  %v651_v29 = vrot.slane %v189_v59, %v3312_v14  ;;  %v426_v31 = vor.u32 %v425_v13, %v422_v10  ;;  %v3410_v39 = vld.sshfl [vmem:[%s3323_s29 + $0x44] sm:$0x5f pattern:$0x76325410]  ;;  %v183_v11 = vld [vmem:[%s3323_s29 + $0x10] sm:$0x7] }
  0x20   : > { %v413_v30 = vrot.slane %v412_v15, 2  ;;  %v515_v32 = vrot.slane %v507_v17, %v3312_v14  ;;  %v659_v33 = vrot.slane %v190_v0, %v3312_v14  ;;  %v3401_v34 = vsel %vm3387_vm9, %v399_v22, %v403_v6 }
  0x21   : > { %v522_v35 = vrot.slane %v508_v25, %v3312_v14  ;;  %v667_v36 = vrot.slane %v191_v7, %v3312_v14  ;;  %v675_v37 = vrot.slane %v192_v8, %v3312_v14  ;;  %v427_v41 = vrot.slane %v426_v31, 2 }
  0x22   : > { %v3414_v40 = vsel %vm3387_vm9, %v413_v30, %v417_v12  ;;  %v435_v42 = vcombine.low %v390_v21, %v3401_v34  ;;  %v678_v43 = vshrl.u32 %v651_v29, 16  ;;  %v681_v45 = vshll.u32 %v651_v29, 16 }
  0x23   : > { %v523_v44 = vcombine.low %v515_v32, %v522_v35  ;;  %v692_v46 = vshrl.u32 %v659_v33, 16  ;;  %v695_v47 = vshll.u32 %v659_v33, 16  ;;  %v3419_v48 = vsel %vm3387_vm9, %v427_v41, %v431_v16  ;;  %v2874_v35 = vld [vmem:[%s3950_s1 + $0x18] sm:$0xf] }
  0x24   : > { %v443_v49 = vrot.slane %v435_v42, %v3312_v14  ;;  %v680_v50 = vrot.slane %v678_v43, 6  ;;  %v706_v51 = vshrl.u32 %v667_v36, 16  ;;  %v436_v52 = vcombine.low %v3414_v40, %v3419_v48 }
  0x25   : > { %3049 = vmatmul.mubr.msk.bf16.vlgmr.msra.gmra.mxu1 %vm221_vm2, %v523_v44  ;;  %v683_v53 = vrot.slane %v681_v45, 7  ;;  %v694_v54 = vrot.slane %v692_v46, 6  ;;  %v697_v55 = vrot.slane %v695_v47, 7  ;;  %v709_v57 = vshll.u32 %v667_v36, 16 }
  0x26   : > { %v708_v56 = vrot.slane %v706_v51, 6  ;;  %v720_v58 = vshrl.u32 %v675_v37, 16  ;;  %v723_v59 = vshll.u32 %v675_v37, 16  ;;  %3059 = vmatpush3.bf16.msra.mxu1 %v3341_v24  ;;  %3060 = vmatprep.mubr.msk.bf16.mxu1 %vm3255_vm1, %v3253_v3  ;;  %v450_v60 = vrot.slane %v436_v52, %v3312_v14 }
  0x27   : > { %v652_v61 = vcombine.high %v651_v29, %v651_v29  ;;  %3070 = vmatprep.subr.bf16.mxu1 %v3253_v3  ;;  %v711_v62 = vrot.slane %v709_v57, 7  ;;  %v660_v1 = vcombine.high %v659_v33, %v659_v33  ;;  %v595_v4 = vcombine.low %v3407_v38, %v3410_v39  ;;  %v188_v38 = vld [vmem:[%s3323_s29 + $0x24] sm:$0x7] }
  0x28   : > { %v722_v63 = vrot.slane %v720_v58, 6  ;;  %v725_v0 = vrot.slane %v723_v59, 7  ;;  %v451_v2 = vcombine.low %v443_v49, %v450_v60  ;;  %v668_v6 = vcombine.high %v667_v36, %v667_v36  ;;  %v2878_v59 = vld [vmem:[%s3950_s1 + $0x20] sm:$0xf] }
  0x29   : > { %v676_v7 = vcombine.high %v675_v37, %v675_v37  ;;  %v684_v24 = vor.u32 %v683_v53, %v680_v50  ;;  %v687_v8 = vshll.u32 %v652_v61, 16  ;;  %v698_v9 = vor.u32 %v697_v55, %v694_v54 }
  0x2a   : > { %v701_v10 = vshll.u32 %v660_v1, 16  ;;  %3043 = vmatmul.mubr.msk.bf16.vlgmr.msra.gmra.mxu0 %vm221_vm2, %v451_v2  ;;  %v712_v12 = vor.u32 %v711_v62, %v708_v56  ;;  %v715_v13 = vshll.u32 %v668_v6, 16  ;;  %v726_v15 = vor.u32 %v725_v0, %v722_v63 }
  0x2b   : > { %v729_v16 = vshll.u32 %v676_v7, 16  ;;  %3053 = vmatpush3.bf16.msra.mxu0 %v3338_v23  ;;  %3054 = vmatprep.mubr.msk.bf16.mxu0 %vm3255_vm1, %v3253_v3  ;;  %v685_v17 = vrot.slane %v684_v24, 2  ;;  %v689_v21 = vrot.slane %v687_v8, 7  ;;  %v699_v22 = vrot.slane %v698_v9, 2  ;;  %v3215_v7 = vld [vmem:[%s3951_s2] sm:$0xff]   ;;  %v3218_v24 = vld [vmem:[%s3951_s2 + $0x8] sm:$0xff]  }
  0x2c   : > { %v703_v25 = vrot.slane %v701_v10, 7  ;;  %3064 = vmatprep.subr.bf16.mxu0 %v3253_v3  ;;  %v713_v29 = vrot.slane %v712_v12, 2  ;;  %v717_v30 = vrot.slane %v715_v13, 7  ;;  %v727_v31 = vrot.slane %v726_v15, 2 }
  0x2d   : > { %v731_v32 = vrot.slane %v729_v16, 7  ;;  %v690_v33 = vsel %vm3387_vm9, %v685_v17, %v689_v21  ;;  %v804_v36 = vcombine.low %v3346_v26, %v3349_v27  ;;  %v805_v37 = vcombine.low %v3352_v28, %v183_v11  ;;  %v2876_v26 = vld [vmem:[%s3950_s1 + $0x1c] sm:$0xf] }
  0x2e   : > { %v704_v23 = vsel %vm3387_vm9, %v699_v22, %v703_v25  ;;  %v718_v39 = vsel %vm3387_vm9, %v713_v29, %v717_v30  ;;  %v945_v43 = vrot.slane %v183_v11, %v3312_v14  ;;  %v825_v46 = vsel %vm225_vm0, %v2874_v35, 0 }
  0x2f   : > { %v732_v41 = vsel %vm3387_vm9, %v727_v31, %v731_v32  ;;  %v735_v42 = vcombine.low %v690_v33, %v704_v23  ;;  %v873_v47 = vcombine.low %v3327_v18, %v3330_v19  ;;  %v874_v49 = vcombine.low %v3333_v20, %v188_v38 }
  0x30   : > { %v736_v44 = vcombine.low %v718_v39, %v732_v41  ;;  %v948_v27 = vshrl.u32 %v945_v43, 16  ;;  %v951_v28 = vshll.u32 %v945_v43, 16  ;;  %v946_v51 = vcombine.high %v945_v43, %v945_v43 }
  0x31   : > { %v743_v45 = vrot.slane %v735_v42, %v3312_v14  ;;  %v812_v52 = vrot.slane %v804_v36, %v3312_v14  ;;  %v819_v53 = vrot.slane %v805_v37, %v3312_v14  ;;  %v894_v57 = vsel %vm225_vm0, %v2876_v26, 0 }
  0x32   : > { %v750_v50 = vrot.slane %v736_v44, %v3312_v14  ;;  %3055 = vmatmul.mubr.msk.bf16.vlgmr.msra.gmra.mxu0 %vm221_vm2, %v595_v4  ;;  %v950_v54 = vrot.slane %v948_v27, 6  ;;  %v953_v55 = vrot.slane %v951_v28, 7  ;;  %v957_v18 = vshll.u32 %v946_v51, 16 }
  0x33   : > { %3065 = vmatpush3.bf16.msra.mxu0 %v825_v46  ;;  %3066 = vmatprep.mubr.msk.bf16.mxu0 %vm3255_vm1, %v3253_v3  ;;  %v881_v20 = vrot.slane %v873_v47, %v3312_v14  ;;  %v888_v58 = vrot.slane %v874_v49, %v3312_v14  ;;  %v820_v61 = vcombine.low %v812_v52, %v819_v53  ;;  %v984_v0 = vsel %vm225_vm0, %v2878_v59, 0 }
  0x34   : > { %v751_v56 = vcombine.low %v743_v45, %v750_v50  ;;  %3076 = vmatprep.subr.bf16.mxu0 %v3253_v3  ;;  %v954_v19 = vor.u32 %v953_v55, %v950_v54  ;;  %v959_v60 = vrot.slane %v957_v18, 7  ;;  %v963_v63 = vcombine.low %v3401_v34, %v3414_v40 }
  0x35   : > { %v889_v2 = vcombine.low %v881_v20, %v888_v58  ;;  %vm1231_vm13 = vcmask 130048   ;;  %vm1343_vm14 = vcmask 1040384   ;;  %vm1344_vm15 = vcmask 1042434  }
  0x36   : > { %3061 = vmatmul.mubr.msk.bf16.vlgmr.msra.gmra.mxu1 %vm221_vm2, %v751_v56  ;;  %v955_v62 = vrot.slane %v954_v19, 2  ;;  %v971_v6 = vrot.slane %v963_v63, %v3312_v14  ;;  %vm1346_vm0 = vcmask 1044484   ;;  %vm3604_vm3 = vmor %vm1343_vm14, %vm1344_vm15 }
  0x37   : > { %3071 = vmatpush3.bf16.msra.mxu1 %v894_v57  ;;  %3072 = vmatprep.mubr.msk.bf16.mxu1 %vm3255_vm1, %v3253_v3  ;;  %vm1347_vm4 = vmor %vm3604_vm3, %vm1346_vm0 }
  0x38   : > { %3082 = vmatprep.subr.bf16.mxu1 %v3253_v3  ;;  %v960_v1 = vsel %vm3387_vm9, %v955_v62, %v959_v60 }
  0x39   : > { %v964_v4 = vcombine.low %v3419_v48, %v960_v1  ;;  %v3256_v48 = vmov 0  }
  0x3a   : > { %3067 = vmatmul.mubr.msk.bf16.vlgmr.msra.gmra.mxu0 %vm221_vm2, %v820_v61  ;;  %173 = vst.msk [vmem:[#allocation2] sm:$0x7] %vm172_vm10, %v3256_v48  ;;  %174 = vst.msk [vmem:[#allocation2 + $0x4] sm:$0x7] %vm172_vm10, %v3256_v48 }
  0x3b   : > { %3077 = vmatpush3.bf16.msra.mxu0 %v984_v0  ;;  %3078 = vmatprep.mubr.msk.bf16.mxu0 %vm3255_vm1, %v3253_v3  ;;  %v978_v34 = vrot.slane %v964_v4, %v3312_v14  ;;  %175 = vst.msk [vmem:[#allocation2 + $0x8] sm:$0x7] %vm172_vm10, %v3256_v48  ;;  %178 = vst.msk [vmem:[#allocation2 + $0x14] sm:$0x7] %vm172_vm10, %v3256_v48 }
  0x3c   : > { %3088 = vmatprep.subr.bf16.mxu0 %v3253_v3  ;;  %176 = vst.msk [vmem:[#allocation2 + $0xc] sm:$0x7] %vm172_vm10, %v3256_v48  ;;  %177 = vst.msk [vmem:[#allocation2 + $0x10] sm:$0x7] %vm172_vm10, %v3256_v48 }
  0x3d   : > { %v979_v40 = vcombine.low %v971_v6, %v978_v34 }
  0x3e   : > { %3073 = vmatmul.mubr.msk.bf16.vlgmr.msra.gmra.mxu1 %vm221_vm2, %v889_v2 }
  0x3f   : > { %3084 = vmatprep.mubr.msk.bf16.mxu1 %vm3255_vm1, %v3253_v3  ;;  %3083 = vmatpush3.bf16.msra.mxu1 %v3218_v24 }
  0x40   : > { %3094 = vmatprep.subr.bf16.mxu1 %v3253_v3 }
  0x41   : > { %v3513_v63 = vld [vmem:[#allocation2] sm:$0x7] }
  0x42   : > { %3079 = vmatmul.mubr.msk.bf16.vlgmr.msra.gmra.mxu0 %vm221_vm2, %v979_v40  ;;  %v3522_v34 = vrot.slane %v3513_v63, %v3312_v14  ;;  %vm1348_vm2 = vcmask 1046534  }
  0x43   : > { %3090 = vmatprep.mubr.msk.bf16.mxu0 %vm3255_vm1, %v3253_v3  ;;  %3089 = vmatpush3.bf16.msra.mxu0 %v3215_v7  ;;  %vm3638_vm5 = vmor %vm1347_vm4, %vm1348_vm2 }
  0x44   : > { %3100 = vmatprep.subr.bf16.mxu0 %v3253_v3 }
  0xd9   : > { %v263_v8 = vpop.f32.mrf.mxu0 }
  0xda   : > { %v331_v9 = vpop.f32.mrf.mxu1 }
  0xdb   : > { %v3032_v10 = vpop.f32.mrf.mxu0  ;;  %v332_v32 = vadd.f32 %v331_v9, %v263_v8 }
  0xdc   : > { %v3038_v11 = vpop.f32.mrf.mxu1  ;;  %v3531_v10 = vld [vmem:[#allocation2 + $0x14] sm:$0x7] }
  0xdd   : > { %v266_v12 = vpop.f32.mrf.mxu0 }
  0xde   : > { %v334_v13 = vpop.f32.mrf.mxu1 }
  0xdf   : > { %v3033_v15 = vpop.f32.mrf.mxu0  ;;  %v335_v36 = vadd.f32 %v334_v13, %v266_v12  ;;  %v1150_v12 = vshrl.u32 %v3522_v34, 16  ;;  %v1153_v13 = vshll.u32 %v3522_v34, 16 }
  0xe0   : > { %v3039_v16 = vpop.f32.mrf.mxu1 }
  0xe5   : > { %v564_v17 = vpop.f32.mrf.mxu1 }
  0xe7   : > { %v3050_v21 = vpop.f32.mrf.mxu1 }
  0xe9   : > { %v567_v22 = vpop.f32.mrf.mxu1 }
  0xea   : > { %v492_v25 = vpop.f32.mrf.mxu0 }
  0xeb   : > { %v3051_v29 = vpop.f32.mrf.mxu1  ;;  %v499_v23 = vadd.f32 %v492_v25, %v332_v32  ;;  %v1093_v25 = vld [vmem:[#allocation2 + $0x4] sm:$0x7] }
  0xec   : > { %v3044_v30 = vpop.f32.mrf.mxu0 }
  0xed   : > { %v571_v38 = vadd.f32 %v564_v17, %v499_v23  ;;  %v3544_v30 = vrot.slane %v3531_v10, %v3312_v14 }
  0xee   : > { %v495_v31 = vpop.f32.mrf.mxu0 }
  0xef   : > { %v500_v39 = vadd.f32 %v495_v31, %v335_v36 }
  0xf0   : > { %v3045_v33 = vpop.f32.mrf.mxu0 }
  0xf1   : > { %v572_v46 = vadd.f32 %v567_v22, %v500_v39 }
  0xf2   : > { %v636_v35 = vpop.f32.mrf.mxu0 }
  0xf3   : > { %v643_v43 = vadd.f32 %v636_v35, %v571_v38  ;;  %v1096_v35 = vld [vmem:[#allocation2 + $0x8] sm:$0x7] }
  0xf4   : > { %v3056_v37 = vpop.f32.mrf.mxu0 }
  0xf5   : > { %v1152_v37 = vrot.slane %v1150_v12, 6 }
  0xf6   : > { %v792_v41 = vpop.f32.mrf.mxu1  ;;  %v639_v42 = vpop.f32.mrf.mxu0 }
  0xf7   : > { %v799_v28 = vadd.f32 %v792_v41, %v643_v43  ;;  %v644_v47 = vadd.f32 %v639_v42, %v572_v46  ;;  %v1155_v42 = vrot.slane %v1153_v13, 7  ;;  %v1758_v46 = vshll.u32 %v3544_v30, 16 }
  0xf8   : > { %v3062_v44 = vpop.f32.mrf.mxu1  ;;  %v3057_v45 = vpop.f32.mrf.mxu0 }
  0xf9   : > { %v1755_v45 = vshrl.u32 %v3544_v30, 16 }
  0xfa   : > { %v795_v26 = vpop.f32.mrf.mxu1  ;;  %v861_v27 = vpop.f32.mrf.mxu0 }
  0xfb   : > { %v868_v51 = vadd.f32 %v861_v27, %v799_v28  ;;  %v800_v54 = vadd.f32 %v795_v26, %v644_v47  ;;  %v1099_v47 = vld [vmem:[#allocation2 + $0xc] sm:$0x7] }
  0xfc   : > { %v3063_v49 = vpop.f32.mrf.mxu1  ;;  %v3068_v50 = vpop.f32.mrf.mxu0 }
  0xfd   : > { %v3554_v49 = vcombine.high %v3522_v34, %v3522_v34 }
  0xfe   : > { %v930_v52 = vpop.f32.mrf.mxu1  ;;  %v864_v53 = vpop.f32.mrf.mxu0 }
  0xff   : > { %v937_v57 = vadd.f32 %v930_v52, %v868_v51  ;;  %v869_v18 = vadd.f32 %v864_v53, %v800_v54  ;;  %v1102_v51 = vld [vmem:[#allocation2 + $0x10] sm:$0x7]  ;;  %v1156_v53 = vor.u32 %v1155_v42, %v1152_v37  ;;  %v1159_v54 = vshll.u32 %v3554_v49, 16 }
 0x100   : > { %v3074_v55 = vpop.f32.mrf.mxu1  ;;  %v3069_v56 = vpop.f32.mrf.mxu0  ;;  %v1352_v12 = vrot.slane %v3554_v49, 7 }
 0x101   : > { %v1757_v56 = vrot.slane %v1755_v45, 6 }
 0x102   : > { %v933_v19 = vpop.f32.mrf.mxu1  ;;  %v1020_v20 = vpop.f32.mrf.mxu0 }
 0x103   : > { %v1027_v59 = vadd.f32 %v1020_v20, %v937_v57  ;;  %v938_v61 = vadd.f32 %v933_v19, %v869_v18  ;;  %v1760_v57 = vrot.slane %v1758_v46, 7  ;;  %v3561_v20 = vrot.slane %v1156_v53, 2 }
 0x104   : > { %v3075_v58 = vpop.f32.mrf.mxu1  ;;  %v3080_v60 = vpop.f32.mrf.mxu0 }
 0x105   : > { %v3511_v62 = vmax.f32 %v1027_v59, 0.0  ;;  %v3563_v58 = vrot.slane %v1159_v54, 7  ;;  %v3570_v60 = vcombine.high %v3544_v30, %v3544_v30 }
 0x106   : > { %v1023_v0 = vpop.f32.mrf.mxu0 }
 0x107   : > { %v3517_v1 = vcombine.high %v3511_v62, %v3511_v62  ;;  %v1037_v2 = vmax.f32 %v3511_v62, 0.0  ;;  %v1028_v4 = vadd.f32 %v1023_v0, %v938_v61  ;;  %v1761_v61 = vor.u32 %v1760_v57, %v1757_v56 }
 0x108   : > { %v3081_v6 = vpop.f32.mrf.mxu0 }
 0x109   : > { %v1038_v40 = vmax.f32 %v3517_v1, 0.0  ;;  %v2970_v48 = vpack.c.bf16 %v1037_v2, %v1037_v2  ;;  %v3525_v7 = vmax.f32 %v1028_v4, 0.0  ;;  %v2890_v2 = vrot.slane %v3522_v34, 9 }
 0x10b   : > { %v2971_v24 = vpack.c.bf16 %v1038_v40, %v1038_v40  ;;  %v1058_v8 = vshrl.u32 %v2970_v48, 16  ;;  %v3529_v9 = vcombine.high %v3525_v7, %v3525_v7  ;;  %v1039_v11 = vmax.f32 %v3525_v7, 0.0 }
 0x10c   : > { %v1061_v16 = vshll.u32 %v2970_v48, 16  ;;  %v1764_v48 = vshll.u32 %v3570_v60, 16 }
 0x10d   : > { %v1060_v15 = vrot.slane %v1058_v8, 7  ;;  %v1065_v17 = vshrl.u32 %v2971_v24, 16  ;;  %v1040_v21 = vmax.f32 %v3529_v9, 0.0  ;;  %v2972_v29 = vpack.c.bf16 %v1039_v11, %v1039_v11 }
 0x10e   : > { %v1068_v33 = vshll.u32 %v2971_v24, 16  ;;  %v1162_v24 = vsel %vm3387_vm9, %v3561_v20, %v3563_v58  ;;  %v3608_v37 = vrot.slane %v1764_v48, 7 }
 0x10f   : > { %v1063_v31 = vor.u32 %v1061_v16, %v1060_v15  ;;  %v1067_v32 = vrot.slane %v1065_v17, 7  ;;  %v2973_v23 = vpack.c.bf16 %v1040_v21, %v1040_v21  ;;  %v1072_v36 = vshrl.u32 %v2972_v29, 16 }
 0x110   : > { %v1075_v44 = vshll.u32 %v2972_v29, 16  ;;  %v3593_v17 = vrot.slane %v1761_v61, 2 }
 0x111   : > { %v1070_v38 = vor.u32 %v1068_v33, %v1067_v32  ;;  %v1094_v39 = vsel %vm3538_vm12, %v1063_v31, %v1093_v25  ;;  %v1079_v41 = vshrl.u32 %v2973_v23, 16  ;;  %v1074_v43 = vrot.slane %v1072_v36, 7 }
 0x112   : > { %1095 = vst [vmem:[#allocation2 + $0x4] sm:$0x7] %v1094_v39  ;;  %v1082_v28 = vshll.u32 %v2973_v23, 16 }
 0x113   : > { %v1097_v26 = vsel %vm3538_vm12, %v1070_v38, %v1096_v35  ;;  %v1081_v27 = vrot.slane %v1079_v41, 7  ;;  %v1077_v50 = vor.u32 %v1075_v44, %v1074_v43  ;;  %v3219_v43 = vld [vmem:[%s3951_s2 + $0x18] sm:$0xff]  }
 0x114   : > { %1098 = vst [vmem:[#allocation2 + $0x8] sm:$0x7] %v1097_v26 }
 0x115   : > { %v1084_v52 = vor.u32 %v1082_v28, %v1081_v27  ;;  %v1100_v55 = vsel %vm3538_vm12, %v1077_v50, %v1099_v47 }
 0x116   : > { %1101 = vst [vmem:[#allocation2 + $0xc] sm:$0x7] %v1100_v55 }
 0x117   : > { %v1103_v18 = vsel %vm3538_vm12, %v1084_v52, %v1102_v51 }
 0x118   : > { %1104 = vst [vmem:[#allocation2 + $0x10] sm:$0x7] %v1103_v18 }
 0x119   : > { %v1106_v19 = vld [vmem:[#allocation2 + $0x4] sm:$0x7] }
 0x11a   : > { %v3566_v59 = vrot.slane %v1106_v19, %v3312_v14  ;;  %v1276_v6 = vcombine.low %v3513_v63, %v1106_v19 }
 0x11b   : > { %v1107_v0 = vld [vmem:[#allocation2 + $0x8] sm:$0x7] }
 0x11c   : > { %v3574_v4 = vrot.slane %v1107_v0, %v3312_v14  ;;  %v3579_v40 = vcombine.high %v3566_v59, %v3566_v59  ;;  %v1164_v8 = vshrl.u32 %v3566_v59, 16  ;;  %v1167_v11 = vshll.u32 %v3566_v59, 16 }
 0x11d   : > { %v1108_v13 = vld [vmem:[#allocation2 + $0xc] sm:$0x7]  ;;  %v1284_v33 = vrot.slane %v1276_v6, %v3312_v14  ;;  %v1442_v44 = vcombine.low %v1106_v19, %v1107_v0  ;;  %v2891_v61 = vrot.slane %v3566_v59, 9 }
 0x11e   : > { %v1140_v63 = vcombine.high %v3574_v4, %v3574_v4  ;;  %v1173_v15 = vshll.u32 %v3579_v40, 16  ;;  %v1178_v16 = vshrl.u32 %v3574_v4, 16  ;;  %v3596_v21 = vrot.slane %v1108_v13, %v3312_v14 }
 0x11f   : > { %v1277_v25 = vcombine.low %v1107_v0, %v1108_v13  ;;  %v3598_v29 = vld [vmem:[#allocation2 + $0x10] sm:$0x7]  ;;  %v1166_v31 = vrot.slane %v1164_v8, 6  ;;  %v1169_v32 = vrot.slane %v1167_v11, 7  ;;  %v1181_v42 = vshll.u32 %v3574_v4, 16 }
 0x120   : > { %v1443_v23 = vcombine.low %v1108_v13, %v3598_v29  ;;  %v1180_v35 = vrot.slane %v1178_v16, 6  ;;  %v1148_v39 = vcombine.high %v3596_v21, %v3596_v21  ;;  %v1175_v45 = vrot.slane %v1173_v15, 7 }
 0x121   : > { %v3611_v38 = vrot.slane %v1277_v25, %v3312_v14  ;;  %v1170_v41 = vor.u32 %v1169_v32, %v1166_v31  ;;  %v1192_v46 = vshrl.u32 %v3596_v21, 16  ;;  %v1195_v26 = vshll.u32 %v3596_v21, 16 }
 0x122   : > { %v1183_v47 = vrot.slane %v1181_v42, 7  ;;  %v1187_v50 = vshll.u32 %v1140_v63, 16  ;;  %v1517_v51 = vrot.slane %v3598_v29, %v3312_v14  ;;  %v1201_v54 = vshll.u32 %v1148_v39, 16 }
 0x123   : > { %v1292_v27 = vcombine.low %v1284_v33, %v3611_v38  ;;  %v1171_v28 = vrot.slane %v1170_v41, 2  ;;  %v1194_v52 = vrot.slane %v1192_v46, 6  ;;  %v1197_v53 = vrot.slane %v1195_v26, 7 }
 0x124   : > { %v1457_v55 = vrot.slane %v1443_v23, %v3312_v14  ;;  %v1184_v57 = vor.u32 %v1183_v47, %v1180_v35  ;;  %v1356_v18 = vrot.slane %v3579_v40, 7  ;;  %v1450_v19 = vrot.slane %v1442_v44, %v3312_v14 }
 0x125   : > { %3091 = vmatmul.mubr.msk.bf16.vlgmr.msra.gmra.mxu0 %vm1231_vm13, %v1292_v27  ;;  %v3631_v56 = vsel %vm3387_vm9, %v1171_v28, %v1175_v45  ;;  %v1198_v20 = vor.u32 %v1197_v53, %v1194_v52  ;;  %v1360_v0 = vrot.slane %v1140_v63, 7  ;;  %v1189_v48 = vrot.slane %v1187_v50, 7  ;;  %v3222_v28 = vld [vmem:[%s3951_s2 + $0x10] sm:$0xff]  }
 0x126   : > { %3101 = vmatpush3.bf16.msra.mxu0 %v3219_v43  ;;  %3102 = vmatprep.mubr.msk.bf16.mxu0 %vm3255_vm1, %v3253_v3  ;;  %v1185_v6 = vrot.slane %v1184_v57, 2  ;;  %v1208_v8 = vcombine.low %v1162_v24, %v3631_v56  ;;  %v2892_v40 = vrot.slane %v3574_v4, 9  ;;  %v1203_v13 = vrot.slane %v1201_v54, 7  ;;  %v3223_v4 = vld [vmem:[%s3951_s2 + $0x28] sm:$0xff]  }
 0x127   : > { %3112 = vmatprep.subr.bf16.mxu0 %v3253_v3  ;;  %v1199_v11 = vrot.slane %v1198_v20, 2  ;;  %v1364_v15 = vrot.slane %v1148_v39, 7  ;;  %v1518_v16 = vcombine.high %v1517_v51, %v1517_v51  ;;  %v1458_v25 = vcombine.low %v1450_v19, %v1457_v55  ;;  %v3224_v20 = vld [vmem:[%s3951_s2 + $0x20] sm:$0xff]  }
 0x128   : > { %v1357_v31 = vsel %vm3638_vm5, %v2891_v61, %v1356_v18  ;;  %v1361_v59 = vsel %vm3638_vm5, %v2892_v40, %v1360_v0  ;;  %v2893_v63 = vrot.slane %v3596_v21, 9  ;;  %v1190_v24 = vsel %vm3387_vm9, %v1185_v6, %v1189_v48 }
 0x129   : > { %v1204_v32 = vsel %vm3387_vm9, %v1199_v11, %v1203_v13  ;;  %v2906_v33 = vrot.slane %v1517_v51, 9  ;;  %v1607_v23 = vrot.slane %v1518_v16, 7  ;;  %v1216_v36 = vrot.slane %v1208_v8, %v3312_v14  ;;  %v3226_v13 = vld [vmem:[%s3951_s2 + $0x30] sm:$0xff]  }
 0x12a   : > { %v1209_v35 = vcombine.low %v1190_v24, %v1204_v32  ;;  %v1520_v39 = vshrl.u32 %v1517_v51, 16  ;;  %v1523_v41 = vshll.u32 %v1517_v51, 16  ;;  %v1365_v21 = vsel %vm3638_vm5, %v2893_v63, %v1364_v15 }
 0x12b   : > { %v3663_v42 = vsel %vm3638_vm5, %v2906_v33, %v1607_v23  ;;  %v1612_v43 = vcombine.low %v1357_v31, %v1361_v59  ;;  %v1529_v44 = vshll.u32 %v1518_v16, 16  ;;  %v1353_v47 = vsel %vm3638_vm5, %v2890_v2, %v1352_v12  ;;  %v3225_v2 = vld [vmem:[%s3951_s2 + $0x38] sm:$0xff]  }
 0x12c   : > { %v1223_v45 = vrot.slane %v1209_v35, %v3312_v14  ;;  %v1613_v46 = vcombine.low %v1365_v21, %v3663_v42  ;;  %v1522_v26 = vrot.slane %v1520_v39, 6  ;;  %v1525_v27 = vrot.slane %v1523_v41, 7 }
 0x12d   : > { %3103 = vmatmul.mubr.msk.bf16.vlgmr.msra.gmra.mxu0 %vm1231_vm13, %v1458_v25  ;;  %v1370_v52 = vcombine.low %v1361_v59, %v1365_v21  ;;  %v1767_v54 = vsel %vm3387_vm9, %v3593_v17, %v3608_v37  ;;  %v1620_v49 = vrot.slane %v1612_v43, %v3312_v14  ;;  %v1369_v34 = vcombine.low %v1353_v47, %v1357_v31 }
 0x12e   : > { %3113 = vmatpush3.bf16.msra.mxu0 %v3223_v4  ;;  %3114 = vmatprep.mubr.msk.bf16.mxu0 %vm3255_vm1, %v3253_v3  ;;  %v1224_v50 = vcombine.low %v1216_v36, %v1223_v45  ;;  %v1627_v51 = vrot.slane %v1613_v46, %v3312_v14  ;;  %v1526_v53 = vor.u32 %v1525_v27, %v1522_v26  ;;  %v1531_v57 = vrot.slane %v1529_v44, 7 }
 0x12f   : > { %3124 = vmatprep.subr.bf16.mxu0 %v3253_v3  ;;  %v1384_v17 = vrot.slane %v1370_v52, %v3312_v14  ;;  %v1377_v19 = vrot.slane %v1369_v34, %v3312_v14  ;;  %v1536_v48 = vcombine.low %v3631_v56, %v1190_v24  ;;  %v1685_v15 = vcombine.low %v3598_v29, %v3531_v10  ;;  %v3228_v10 = vld [vmem:[%s3951_s2 + $0x40] sm:$0xff]   ;;  %v3232_v24 = vld [vmem:[%s3951_s2 + $0x50] sm:$0xff]  }
 0x130   : > { %3085 = vmatmul.mubr.msk.bf16.vlgmr.msra.gmra.mxu1 %vm1231_vm13, %v1224_v50  ;;  %v1527_v55 = vrot.slane %v1526_v53, 2  ;;  %v1628_v12 = vcombine.low %v1620_v49, %v1627_v51  ;;  %v2919_v16 = vrot.slane %v3544_v30, 9  ;;  %v1834_v25 = vrot.slane %v3570_v60, 7 }
 0x131   : > { %3095 = vmatpush3.bf16.msra.mxu1 %v3222_v28  ;;  %3096 = vmatprep.mubr.msk.bf16.mxu1 %vm3255_vm1, %v3253_v3  ;;  %v1385_v61 = vcombine.low %v1377_v19, %v1384_v17  ;;  %v1544_v11 = vrot.slane %v1536_v48, %v3312_v14  ;;  %v1692_v31 = vrot.slane %v1685_v15, %v3312_v14 }
 0x132   : > { %3106 = vmatprep.subr.bf16.mxu1 %v3253_v3  ;;  %v1532_v37 = vsel %vm3387_vm9, %v1527_v55, %v1531_v57  ;;  %v1835_v59 = vsel %vm3638_vm5, %v2919_v16, %v1834_v25 }
 0x133   : > { %v1771_v18 = vcombine.low %v1532_v37, %v1767_v54  ;;  %v1537_v6 = vcombine.low %v1204_v32, %v1532_v37  ;;  %v1693_v30 = vcombine.low %v3611_v38, %v1692_v31  ;;  %v1839_v60 = vcombine.low %v3663_v42, %v1835_v59  ;;  %v3229_v38 = vld [vmem:[%s3951_s2 + $0x48] sm:$0xff]  }
 0x135   : > { %3115 = vmatmul.mubr.msk.bf16.vlgmr.msra.gmra.mxu0 %vm1231_vm13, %v1628_v12  ;;  %v1778_v0 = vrot.slane %v1771_v18, %v3312_v14  ;;  %v1551_v40 = vrot.slane %v1537_v6, %v3312_v14  ;;  %v1846_v29 = vrot.slane %v1839_v60, %v3312_v14 }
 0x136   : > { %3125 = vmatpush3.bf16.msra.mxu0 %v3225_v2  ;;  %3126 = vmatprep.mubr.msk.bf16.mxu0 %vm3255_vm1, %v3253_v3 }
 0x137   : > { %3136 = vmatprep.subr.bf16.mxu0 %v3253_v3  ;;  %v1779_v8 = vcombine.low %v1223_v45, %v1778_v0  ;;  %v1552_v56 = vcombine.low %v1544_v11, %v1551_v40  ;;  %v1847_v63 = vcombine.low %v1384_v17, %v1846_v29 }
 0x138   : > { %3097 = vmatmul.mubr.msk.bf16.vlgmr.msra.gmra.mxu1 %vm1231_vm13, %v1385_v61 }
 0x139   : > { %3107 = vmatpush3.bf16.msra.mxu1 %v3224_v20  ;;  %3108 = vmatprep.mubr.msk.bf16.mxu1 %vm3255_vm1, %v3253_v3 }
 0x13a   : > { %3118 = vmatprep.subr.bf16.mxu1 %v3253_v3 }
 0x13d   : > { %3127 = vmatmul.mubr.msk.bf16.vlgmr.msra.gmra.mxu0 %vm1231_vm13, %v1779_v8 }
 0x13e   : > { %3138 = vmatprep.mubr.msk.bf16.mxu0 %vm3255_vm1, %v3253_v3  ;;  %3137 = vmatpush3.bf16.msra.mxu0 %v3232_v24 }
 0x13f   : > { %3148 = vmatprep.subr.bf16.mxu0 %v3253_v3 }
 0x140   : > { %3109 = vmatmul.mubr.msk.bf16.vlgmr.msra.gmra.mxu1 %vm1231_vm13, %v1552_v56 }
 0x141   : > { %3119 = vmatpush3.bf16.msra.mxu1 %v3226_v13  ;;  %3120 = vmatprep.mubr.msk.bf16.mxu1 %vm3255_vm1, %v3253_v3 }
 0x142   : > { %3130 = vmatprep.subr.bf16.mxu1 %v3253_v3 }
 0x148   : > { %3121 = vmatmul.mubr.msk.bf16.vlgmr.msra.gmra.mxu1 %vm1231_vm13, %v1693_v30 }
 0x149   : > { %3131 = vmatpush3.bf16.msra.mxu1 %v3228_v10  ;;  %3132 = vmatprep.mubr.msk.bf16.mxu1 %vm3255_vm1, %v3253_v3 }
 0x14a   : > { %3142 = vmatprep.subr.bf16.mxu1 %v3253_v3 }
 0x150   : > { %3133 = vmatmul.mubr.msk.bf16.vlgmr.msra.gmra.mxu1 %vm1231_vm13, %v1847_v63 }
 0x151   : > { %3144 = vmatprep.mubr.msk.bf16.mxu1 %vm3255_vm1, %v3253_v3  ;;  %3143 = vmatpush3.bf16.msra.mxu1 %v3229_v38 }
 0x152   : > { %3154 = vmatprep.subr.bf16.mxu1 %v3253_v3 }
 0x1e5   : > { %v1336_v32 = vpop.f32.mrf.mxu0 }
 0x1e7   : > { %v3092_v4 = vpop.f32.mrf.mxu0 }
 0x1e8   : > { %v3750_v4 = vld [vmem:[#allocation2] sm:$0x7] }
 0x1e9   : > { %v1339_v33 = vpop.f32.mrf.mxu0 }
 0x1eb   : > { %v3093_v23 = vpop.f32.mrf.mxu0 }
 0x1ed   : > { %v1502_v35 = vpop.f32.mrf.mxu0 }
 0x1ef   : > { %v3104_v36 = vpop.f32.mrf.mxu0 }
 0x1f0   : > { %v1269_v39 = vpop.f32.mrf.mxu1 }
 0x1f1   : > { %v1505_v41 = vpop.f32.mrf.mxu0  ;;  %v1337_v54 = vadd.f32 %v1336_v32, %v1269_v39 }
 0x1f2   : > { %v3086_v21 = vpop.f32.mrf.mxu1 }
 0x1f3   : > { %v3105_v42 = vpop.f32.mrf.mxu0 }
 0x1f4   : > { %v1272_v43 = vpop.f32.mrf.mxu1 }
 0x1f5   : > { %v1672_v44 = vpop.f32.mrf.mxu0  ;;  %v1340_v55 = vadd.f32 %v1339_v33, %v1272_v43 }
 0x1f6   : > { %v3087_v45 = vpop.f32.mrf.mxu1 }
 0x1f7   : > { %v3116_v46 = vpop.f32.mrf.mxu0 }
 0x1f8   : > { %v1429_v26 = vpop.f32.mrf.mxu1 }
 0x1f9   : > { %v1675_v27 = vpop.f32.mrf.mxu0  ;;  %v1436_v57 = vadd.f32 %v1429_v26, %v1337_v54 }
 0x1fa   : > { %v3098_v28 = vpop.f32.mrf.mxu1 }
 0x1fb   : > { %v3117_v47 = vpop.f32.mrf.mxu0  ;;  %v1509_v18 = vadd.f32 %v1502_v35, %v1436_v57  ;;  %v3756_v35 = vrot.slane %v3750_v4, %v3312_v14 }
 0x1fc   : > { %v1432_v50 = vpop.f32.mrf.mxu1 }
 0x1fd   : > { %v1823_v51 = vpop.f32.mrf.mxu0  ;;  %v1437_v17 = vadd.f32 %v1432_v50, %v1340_v55  ;;  %v2039_v46 = vshrl.u32 %v3756_v35, 16  ;;  %v3763_v50 = vld [vmem:[#allocation2 + $0x14] sm:$0x7]  ;;  %v2042_v54 = vshll.u32 %v3756_v35, 16 }
 0x1fe   : > { %v3099_v52 = vpop.f32.mrf.mxu1 }
 0x1ff   : > { %v3128_v53 = vpop.f32.mrf.mxu0  ;;  %v1510_v61 = vadd.f32 %v1505_v41, %v1437_v17  ;;  %v3768_v17 = vrot.slane %v3763_v50, %v3312_v14 }
 0x200   : > { %v1596_v49 = vpop.f32.mrf.mxu1 }
 0x201   : > { %v1826_v34 = vpop.f32.mrf.mxu0  ;;  %v1603_v20 = vadd.f32 %v1596_v49, %v1509_v18 }
 0x202   : > { %v3110_v2 = vpop.f32.mrf.mxu1 }
 0x203   : > { %v3129_v12 = vpop.f32.mrf.mxu0  ;;  %v1679_v8 = vadd.f32 %v1672_v44, %v1603_v20  ;;  %v1987_v20 = vld [vmem:[#allocation2 + $0xc] sm:$0x7] }
 0x204   : > { %v1599_v37 = vpop.f32.mrf.mxu1  ;;  %v1981_v12 = vld [vmem:[#allocation2 + $0x4] sm:$0x7] }
 0x205   : > { %v1604_v6 = vadd.f32 %v1599_v37, %v1510_v61  ;;  %v1984_v61 = vld [vmem:[#allocation2 + $0x8] sm:$0x7] }
 0x206   : > { %v3111_v19 = vpop.f32.mrf.mxu1 }
 0x207   : > { %v1680_v13 = vadd.f32 %v1675_v27, %v1604_v6  ;;  %v1990_v6 = vld [vmem:[#allocation2 + $0x10] sm:$0x7] }
 0x208   : > { %v1737_v0 = vpop.f32.mrf.mxu1 }
 0x209   : > { %v1744_v11 = vadd.f32 %v1737_v0, %v1679_v8 }
 0x20a   : > { %v3122_v48 = vpop.f32.mrf.mxu1 }
 0x20b   : > { %v1830_v25 = vadd.f32 %v1823_v51, %v1744_v11  ;;  %v2044_v11 = vrot.slane %v2042_v54, 7 }
 0x20c   : > { %v1740_v40 = vpop.f32.mrf.mxu1 }
 0x20d   : > { %v1745_v15 = vadd.f32 %v1740_v40, %v1680_v13  ;;  %v2041_v40 = vrot.slane %v2039_v46, 6  ;;  %v2636_v13 = vshrl.u32 %v3768_v17, 16 }
 0x20e   : > { %v3123_v56 = vpop.f32.mrf.mxu1 }
 0x20f   : > { %v1831_v10 = vadd.f32 %v1826_v34, %v1745_v15  ;;  %v2639_v56 = vshll.u32 %v3768_v17, 16  ;;  %v3782_v15 = vcombine.high %v3756_v35, %v3756_v35 }
 0x210   : > { %v1891_v16 = vpop.f32.mrf.mxu1 }
 0x211   : > { %v1898_v59 = vadd.f32 %v1891_v16, %v1830_v25  ;;  %v2045_v16 = vor.u32 %v2044_v11, %v2041_v40  ;;  %v2048_v25 = vshll.u32 %v3782_v15, 16 }
 0x212   : > { %v3134_v31 = vpop.f32.mrf.mxu1 }
 0x213   : > { %v1900_v63 = vmax.f32 %v1898_v59, 0.0  ;;  %v3785_v31 = vrot.slane %v2636_v13, 6  ;;  %v3787_v59 = vrot.slane %v2639_v56, 7 }
 0x214   : > { %v1894_v30 = vpop.f32.mrf.mxu1 }
 0x215   : > { %v1899_v60 = vadd.f32 %v1894_v30, %v1831_v10 }
 0x216   : > { %v3135_v29 = vpop.f32.mrf.mxu1 }
 0x217   : > { %v1901_v38 = vmax.f32 %v1899_v60, 0.0  ;;  %v2933_v29 = vrot.slane %v3756_v35, 9 }
 0x219   : > { %v1902_v24 = vpack.c.bf16 %v1901_v38, %v1900_v63  ;;  %v2924_v32 = vpack.c.bf16 %v1901_v38, %v1901_v38 }
 0x21b   : > { %v1911_v33 = vrot.slane %v1902_v24, %v3312_v14  ;;  %v1918_v23 = vrot.slane %v2924_v32, %v3312_v14  ;;  %v2046_v32 = vrot.slane %v2045_v16, 2 }
 0x21d   : > { %v1919_v36 = vcombine.high %v1911_v33, %v1911_v33  ;;  %v1920_v39 = vcombine.high %v1918_v23, %v1918_v23  ;;  %v1927_v41 = vrot.slane %v1911_v33, %v3312_v14  ;;  %v1941_v21 = vrot.slane %v1918_v23, %v3312_v14 }
 0x21e   : > { %v2050_v33 = vrot.slane %v2048_v25, 7  ;;  %v3801_v23 = vcombine.high %v3768_v17, %v3768_v17 }
 0x21f   : > { %v1934_v42 = vrot.slane %v1919_v36, %v3312_v14  ;;  %v1948_v43 = vrot.slane %v1920_v39, %v3312_v14  ;;  %v1950_v44 = vshrl.u32 %v1927_v41, 16  ;;  %v1964_v45 = vshrl.u32 %v1941_v21, 16 }
 0x220   : > { %v1953_v27 = vshll.u32 %v1927_v41, 16  ;;  %v1967_v53 = vshll.u32 %v1941_v21, 16 }
 0x221   : > { %v1952_v26 = vrot.slane %v1950_v44, 7  ;;  %v1957_v28 = vshrl.u32 %v1934_v42, 16  ;;  %v1971_v47 = vshrl.u32 %v1948_v43, 16  ;;  %v1960_v51 = vshll.u32 %v1934_v42, 16 }
 0x222   : > { %v1966_v52 = vrot.slane %v1964_v45, 7  ;;  %v1974_v57 = vshll.u32 %v1948_v43, 16 }
 0x223   : > { %v1955_v49 = vor.u32 %v1953_v27, %v1952_v26  ;;  %v1959_v34 = vrot.slane %v1957_v28, 7  ;;  %v1973_v55 = vrot.slane %v1971_v47, 7  ;;  %v3233_v28 = vld [vmem:[%s3951_s2 + $0x60] sm:$0xff]  }
 0x224   : > { %v1969_v2 = vor.u32 %v1967_v53, %v1966_v52 }
 0x225   : > { %v1962_v37 = vor.u32 %v1960_v51, %v1959_v34  ;;  %v1976_v18 = vor.u32 %v1974_v57, %v1973_v55  ;;  %v1982_v19 = vsel %vm3538_vm12, %v1955_v49, %v1981_v12  ;;  %v2645_v55 = vshll.u32 %v3801_v23, 16 }
 0x226   : > { %1983 = vst [vmem:[#allocation2 + $0x4] sm:$0x7] %v1982_v19  ;;  %v1988_v0 = vsel %vm3538_vm12, %v1969_v2, %v1987_v20  ;;  %v2051_v57 = vsel %vm3387_vm9, %v2046_v32, %v2050_v33 }
 0x227   : > { %v1985_v48 = vsel %vm3538_vm12, %v1962_v37, %v1984_v61  ;;  %1989 = vst [vmem:[#allocation2 + $0xc] sm:$0x7] %v1988_v0  ;;  %v1991_v8 = vsel %vm3538_vm12, %v1976_v18, %v1990_v6 }
 0x228   : > { %1986 = vst [vmem:[#allocation2 + $0x8] sm:$0x7] %v1985_v48  ;;  %1992 = vst [vmem:[#allocation2 + $0x10] sm:$0x7] %v1991_v8 }
 0x22d   : > { %v1994_v22 = vld [vmem:[#allocation2 + $0x4] sm:$0x7] }
 0x22e   : > { %v1996_v10 = vld [vmem:[#allocation2 + $0xc] sm:$0x7]  ;;  %v3790_v30 = vrot.slane %v1994_v22, %v3312_v14  ;;  %v2164_v60 = vcombine.low %v3750_v4, %v1994_v22  ;;  %v2642_v4 = vor.u32 %v3787_v59, %v3785_v31 }
 0x22f   : > { %v1995_v63 = vld [vmem:[#allocation2 + $0x8] sm:$0x7]  ;;  %v3795_v38 = vrot.slane %v1996_v10, %v3312_v14  ;;  %v3797_v24 = vld [vmem:[#allocation2 + $0x10] sm:$0x7] }
 0x230   : > { %v2028_v36 = vrot.slane %v1995_v63, %v3312_v14  ;;  %v2165_v39 = vcombine.low %v1995_v63, %v1996_v10  ;;  %v2323_v41 = vcombine.low %v1994_v22, %v1995_v63  ;;  %v2172_v21 = vrot.slane %v2164_v60, %v3312_v14 }
 0x231   : > { %v2324_v42 = vcombine.low %v1996_v10, %v3797_v24  ;;  %v2021_v43 = vcombine.high %v3790_v30, %v3790_v30  ;;  %v3812_v44 = vcombine.high %v3795_v38, %v3795_v38  ;;  %v2053_v27 = vshrl.u32 %v3790_v30, 16 }
 0x232   : > { %v3815_v45 = vrot.slane %v2165_v39, %v3312_v14  ;;  %v2331_v46 = vrot.slane %v2323_v41, %v3312_v14  ;;  %v2029_v26 = vcombine.high %v2028_v36, %v2028_v36  ;;  %v2056_v51 = vshll.u32 %v3790_v30, 16  ;;  %v3237_v41 = vld [vmem:[%s3951_s2 + $0x70] sm:$0xff]  }
 0x233   : > { %v2338_v47 = vrot.slane %v2324_v42, %v3312_v14  ;;  %v2062_v52 = vshll.u32 %v2021_v43, 16  ;;  %v2067_v53 = vshrl.u32 %v2028_v36, 16  ;;  %v2055_v49 = vrot.slane %v2053_v27, 6 }
 0x234   : > { %v2180_v54 = vcombine.low %v2172_v21, %v3815_v45  ;;  %v2070_v34 = vshll.u32 %v2028_v36, 16  ;;  %v2058_v2 = vrot.slane %v2056_v51, 7  ;;  %v2076_v37 = vshll.u32 %v2029_v26, 16 }
 0x235   : > { %v2069_v12 = vrot.slane %v2067_v53, 6  ;;  %v2398_v18 = vrot.slane %v3797_v24, %v3312_v14  ;;  %v2081_v20 = vshrl.u32 %v3795_v38, 16  ;;  %v2084_v61 = vshll.u32 %v3795_v38, 16 }
 0x236   : > { %3145 = vmatmul.mubr.msk.bf16.vlgmr.msra.gmra.mxu1 %vm1231_vm13, %v2180_v54  ;;  %v2072_v19 = vrot.slane %v2070_v34, 7  ;;  %v2339_v0 = vcombine.low %v2331_v46, %v2338_v47  ;;  %v2059_v6 = vor.u32 %v2058_v2, %v2055_v49  ;;  %v2064_v48 = vrot.slane %v2062_v52, 7 }
 0x237   : > { %3155 = vmatpush3.bf16.msra.mxu1 %v3233_v28  ;;  %3156 = vmatprep.mubr.msk.bf16.mxu1 %vm3255_vm1, %v3253_v3  ;;  %v2090_v8 = vshll.u32 %v3812_v44, 16  ;;  %v2083_v11 = vrot.slane %v2081_v20, 6  ;;  %v2086_v13 = vrot.slane %v2084_v61, 7  ;;  %v2237_v56 = vrot.slane %v2021_v43, 7 }
 0x238   : > { %v2073_v40 = vor.u32 %v2072_v19, %v2069_v12  ;;  %3166 = vmatprep.subr.bf16.mxu1 %v3253_v3  ;;  %v2060_v16 = vrot.slane %v2059_v6, 2  ;;  %v2078_v25 = vrot.slane %v2076_v37, 7  ;;  %v2935_v22 = vrot.slane %v2028_v36, 9 }
 0x239   : > { %v2241_v10 = vrot.slane %v2029_v26, 7  ;;  %v2087_v63 = vor.u32 %v2086_v13, %v2083_v11  ;;  %v2092_v32 = vrot.slane %v2090_v8, 7  ;;  %v2934_v33 = vrot.slane %v3790_v30, 9  ;;  %v3239_v8 = vld [vmem:[%s3951_s2 + $0x80] sm:$0xff]  }
 0x23a   : > { %v2074_v60 = vrot.slane %v2073_v40, 2  ;;  %v3840_v39 = vsel %vm3387_vm9, %v2060_v16, %v2064_v48  ;;  %v2245_v42 = vrot.slane %v3812_v44, 7  ;;  %v2399_v36 = vcombine.high %v2398_v18, %v2398_v18 }
 0x23b   : > { %v2242_v21 = vsel %vm3638_vm5, %v2935_v22, %v2241_v10  ;;  %v2088_v46 = vrot.slane %v2087_v63, 2  ;;  %v2238_v30 = vsel %vm3638_vm5, %v2934_v33, %v2237_v56  ;;  %v2936_v26 = vrot.slane %v3795_v38, 9  ;;  %v3238_v22 = vld [vmem:[%s3951_s2 + $0x68] sm:$0xff]  }
 0x23c   : > { %v3850_v43 = vsel %vm3387_vm9, %v2074_v60, %v2078_v25  ;;  %v2097_v27 = vcombine.low %v2051_v57, %v3840_v39  ;;  %v2949_v28 = vrot.slane %v2398_v18, 9  ;;  %v2488_v47 = vrot.slane %v2399_v36, 7 }
 0x23d   : > { %v2493_v51 = vcombine.low %v2238_v30, %v2242_v21  ;;  %v2093_v44 = vsel %vm3387_vm9, %v2088_v46, %v2092_v32  ;;  %v2233_v52 = vrot.slane %v3782_v15, 7  ;;  %v2401_v53 = vshrl.u32 %v2398_v18, 16 }
 0x23e   : > { %3157 = vmatmul.mubr.msk.bf16.vlgmr.msra.gmra.mxu1 %vm1231_vm13, %v2339_v0  ;;  %v2404_v54 = vshll.u32 %v2398_v18, 16  ;;  %v2098_v49 = vcombine.low %v3850_v43, %v2093_v44  ;;  %v2246_v38 = vsel %vm3638_vm5, %v2936_v26, %v2245_v42  ;;  %v3867_v34 = vsel %vm3638_vm5, %v2949_v28, %v2488_v47  ;;  %v3236_v0 = vld [vmem:[%s3951_s2 + $0x58] sm:$0xff]  }
 0x23f   : > { %3167 = vmatpush3.bf16.msra.mxu1 %v3237_v41  ;;  %3168 = vmatprep.mubr.msk.bf16.mxu1 %vm3255_vm1, %v3253_v3  ;;  %v2643_v57 = vrot.slane %v2642_v4, 2  ;;  %v2494_v15 = vcombine.low %v2246_v38, %v3867_v34  ;;  %v2501_v2 = vrot.slane %v2493_v51, %v3312_v14  ;;  %v2403_v12 = vrot.slane %v2401_v53, 6 }
 0x240   : > { %3178 = vmatprep.subr.bf16.mxu1 %v3253_v3  ;;  %v2647_v37 = vrot.slane %v2645_v55, 7  ;;  %v2105_v18 = vrot.slane %v2097_v27, %v3312_v14  ;;  %v2112_v19 = vrot.slane %v2098_v49, %v3312_v14  ;;  %v2406_v20 = vrot.slane %v2404_v54, 7 }
 0x241   : > { %v2410_v61 = vshll.u32 %v2399_v36, 16  ;;  %v2508_v31 = vrot.slane %v2494_v15, %v3312_v14  ;;  %v2234_v59 = vsel %vm3638_vm5, %v2933_v29, %v2233_v52  ;;  %v2251_v6 = vcombine.low %v2242_v21, %v2246_v38 }
 0x242   : > { %v2113_v4 = vcombine.low %v2105_v18, %v2112_v19  ;;  %v2407_v55 = vor.u32 %v2406_v20, %v2403_v12  ;;  %v2250_v40 = vcombine.low %v2234_v59, %v2238_v30  ;;  %v2648_v56 = vsel %vm3387_vm9, %v2643_v57, %v2647_v37 }
 0x243   : > { %v2509_v48 = vcombine.low %v2501_v2, %v2508_v31  ;;  %v2412_v13 = vrot.slane %v2410_v61, 7  ;;  %v2265_v35 = vrot.slane %v2251_v6, %v3312_v14  ;;  %v2417_v63 = vcombine.low %v3840_v39, %v3850_v43  ;;  %v3240_v39 = vld [vmem:[%s3951_s2 + $0x78] sm:$0xff]  }
 0x244   : > { %3139 = vmatmul.mubr.msk.bf16.vlgmr.msra.gmra.mxu0 %vm1231_vm13, %v2113_v4  ;;  %v2408_v11 = vrot.slane %v2407_v55, 2  ;;  %v2258_v25 = vrot.slane %v2250_v40, %v3312_v14  ;;  %v2566_v42 = vcombine.low %v3797_v24, %v3763_v50  ;;  %v2962_v36 = vrot.slane %v3768_v17, 9  ;;  %v3242_v50 = vld [vmem:[%s3951_s2 + $0x88] sm:$0xff]  }
 0x245   : > { %3149 = vmatpush3.bf16.msra.mxu0 %v3236_v0  ;;  %3150 = vmatprep.mubr.msk.bf16.mxu0 %vm3255_vm1, %v3253_v3  ;;  %v2425_v33 = vrot.slane %v2417_v63, %v3312_v14  ;;  %v2715_v43 = vrot.slane %v3801_v23, 7 }
 0x246   : > { %3169 = vmatmul.mubr.msk.bf16.vlgmr.msra.gmra.mxu1 %vm1231_vm13, %v2509_v48  ;;  %3160 = vmatprep.subr.bf16.mxu0 %v3253_v3  ;;  %v2413_v29 = vsel %vm3387_vm9, %v2408_v11, %v2412_v13  ;;  %v2266_v60 = vcombine.low %v2258_v25, %v2265_v35  ;;  %v2573_v46 = vrot.slane %v2566_v42, %v3312_v14 }
 0x247   : > { %3179 = vmatpush3.bf16.msra.mxu1 %v3239_v8  ;;  %3180 = vmatprep.mubr.msk.bf16.mxu1 %vm3255_vm1, %v3253_v3  ;;  %v2652_v16 = vcombine.low %v2413_v29, %v2648_v56  ;;  %v2418_v32 = vcombine.low %v2093_v44, %v2413_v29  ;;  %v2716_v30 = vsel %vm3638_vm5, %v2962_v36, %v2715_v43 }
 0x248   : > { %v2574_v17 = vcombine.low %v3815_v45, %v2573_v46  ;;  %v2720_v24 = vcombine.low %v3867_v34, %v2716_v30 }
 0x249   : > { %v2659_v10 = vrot.slane %v2652_v16, %v3312_v14  ;;  %v2432_v41 = vrot.slane %v2418_v32, %v3312_v14 }
 0x24a   : > { %v2727_v23 = vrot.slane %v2720_v24, %v3312_v14 }
 0x24b   : > { %v2660_v5 = vcombine.low %v2112_v19, %v2659_v10  ;;  %v2433_v21 = vcombine.low %v2425_v33, %v2432_v41 }
 0x24c   : > { %3151 = vmatmul.mubr.msk.bf16.vlgmr.msra.gmra.mxu0 %vm1231_vm13, %v2266_v60  ;;  %v2728_v26 = vcombine.low %v2265_v35, %v2727_v23 }
 0x24d   : > { %3161 = vmatpush3.bf16.msra.mxu0 %v3238_v22  ;;  %3162 = vmatprep.mubr.msk.bf16.mxu0 %vm3255_vm1, %v3253_v3 }
 0x24e   : > { %3181 = vmatmul.mubr.msk.bf16.vlgmr.msra.gmra.mxu1 %vm1231_vm13, %v2660_v5  ;;  %3172 = vmatprep.subr.bf16.mxu0 %v3253_v3 }
 0x254   : > { %3163 = vmatmul.mubr.msk.bf16.vlgmr.msra.gmra.mxu0 %vm1231_vm13, %v2433_v21 }
 0x255   : > { %3173 = vmatpush3.bf16.msra.mxu0 %v3240_v39  ;;  %3174 = vmatprep.mubr.msk.bf16.mxu0 %vm3255_vm1, %v3253_v3 }
 0x256   : > { %3184 = vmatprep.subr.bf16.mxu0 %v3253_v3 }
 0x25c   : > { %3175 = vmatmul.mubr.msk.bf16.vlgmr.msra.gmra.mxu0 %vm1231_vm13, %v2574_v17 }
 0x25d   : > { %3185 = vmatpush3.bf16.msra.mxu0 %v3242_v50  ;;  %3186 = vmatprep.mubr.msk.bf16.mxu0 %vm3255_vm1, %v3253_v3  ;;  %vm2795_vm1 = vcmask 123904  }
 0x264   : > { %3187 = vmatmul.mubr.msk.bf16.vlgmr.msra.gmra.mxu0 %vm1231_vm13, %v2728_v26 }
 0x2f6   : > { %v2224_v58 = vpop.f32.mrf.mxu1 }
 0x2f8   : > { %v3146_v27 = vpop.f32.mrf.mxu1 }
 0x2fa   : > { %v2227_v28 = vpop.f32.mrf.mxu1 }
 0x2fc   : > { %v3147_v47 = vpop.f32.mrf.mxu1 }
 0x2fe   : > { %v2383_v51 = vpop.f32.mrf.mxu1 }
 0x300   : > { %v3158_v44 = vpop.f32.mrf.mxu1 }
 0x302   : > { %v2386_v45 = vpop.f32.mrf.mxu1 }
 0x304   : > { %v3159_v52 = vpop.f32.mrf.mxu1  ;;  %v2157_v53 = vpop.f32.mrf.mxu0 }
 0x305   : > { %v2225_v19 = vadd.f32 %v2224_v58, %v2157_v53 }
 0x306   : > { %v2553_v54 = vpop.f32.mrf.mxu1  ;;  %v3140_v49 = vpop.f32.mrf.mxu0 }
 0x308   : > { %v3170_v38 = vpop.f32.mrf.mxu1  ;;  %v2160_v34 = vpop.f32.mrf.mxu0 }
 0x309   : > { %v2228_v4 = vadd.f32 %v2227_v28, %v2160_v34 }
 0x30a   : > { %v2556_v57 = vpop.f32.mrf.mxu1  ;;  %v3141_v3 = vpop.f32.mrf.mxu0 }
 0x30c   : > { %v3171_v15 = vpop.f32.mrf.mxu1  ;;  %v2310_v14 = vpop.f32.mrf.mxu0 }
 0x30d   : > { %v2317_v0 = vadd.f32 %v2310_v14, %v2225_v19 }
 0x30e   : > { %v2704_v2 = vpop.f32.mrf.mxu1  ;;  %v3152_v12 = vpop.f32.mrf.mxu0 }
 0x30f   : > { %v2390_v48 = vadd.f32 %v2383_v51, %v2317_v0 }
 0x310   : > { %v3182_v37 = vpop.f32.mrf.mxu1  ;;  %v2313_v18 = vpop.f32.mrf.mxu0 }
 0x311   : > { %v2318_v55 = vadd.f32 %v2313_v18, %v2228_v4 }
 0x312   : > { %v2707_v20 = vpop.f32.mrf.mxu1  ;;  %v3153_v61 = vpop.f32.mrf.mxu0 }
 0x313   : > { %v2391_v13 = vadd.f32 %v2386_v45, %v2318_v55 }
 0x314   : > { %v3183_v31 = vpop.f32.mrf.mxu1  ;;  %v2477_v59 = vpop.f32.mrf.mxu0 }
 0x315   : > { %v2484_v40 = vadd.f32 %v2477_v59, %v2390_v48 }
 0x316   : > { %v3164_v6 = vpop.f32.mrf.mxu0 }
 0x317   : > { %v2560_v29 = vadd.f32 %v2553_v54, %v2484_v40 }
 0x318   : > { %v2480_v8 = vpop.f32.mrf.mxu0 }
 0x319   : > { %v2485_v35 = vadd.f32 %v2480_v8, %v2391_v13 }
 0x31a   : > { %v3165_v11 = vpop.f32.mrf.mxu0 }
 0x31b   : > { %v2561_v10 = vadd.f32 %v2556_v57, %v2485_v35 }
 0x31c   : > { %v2618_v56 = vpop.f32.mrf.mxu0 }
 0x31d   : > { %v2625_v25 = vadd.f32 %v2618_v56, %v2560_v29 }
 0x31e   : > { %v3176_v16 = vpop.f32.mrf.mxu0 }
 0x31f   : > { %v2711_v32 = vadd.f32 %v2704_v2, %v2625_v25 }
 0x320   : > { %v2621_v22 = vpop.f32.mrf.mxu0 }
 0x321   : > { %v2626_v63 = vadd.f32 %v2621_v22, %v2561_v10 }
 0x322   : > { %v3177_v60 = vpop.f32.mrf.mxu0 }
 0x323   : > { %v2712_v42 = vadd.f32 %v2707_v20, %v2626_v63 }
 0x324   : > { %v2772_v5 = vpop.f32.mrf.mxu0 }
 0x325   : > { %v2779_v33 = vadd.f32 %v2772_v5, %v2711_v32 }
 0x326   : > { %v3188_v41 = vpop.f32.mrf.mxu0 }
 0x327   : > { %v2783_v39 = vcombine.high %v2779_v33, %v2779_v33  ;;  %v2787_v21 = vadd.f32 %v2779_v33, %v3511_v62 }
 0x328   : > { %v2775_v36 = vpop.f32.mrf.mxu0 }
 0x329   : > { %v2788_v43 = vadd.f32 %v2783_v39, %v3517_v1  ;;  %v2791_v46 = vpack.c.bf16 %v2787_v21, %v2787_v21  ;;  %v2780_v30 = vadd.f32 %v2775_v36, %v2712_v42 }
 0x32a   : > { %v3189_v50 = vpop.f32.mrf.mxu0 }
 0x32b   : > { %v2792_v17 = vpack.c.bf16 %v2788_v43, %v2788_v43  ;;  %2796 = vst.msk [vmem:[%s170_s25] sm:$0x3] %vm2795_vm1, %v2791_v46  ;;  %v2784_v24 = vcombine.high %v2780_v30, %v2780_v30  ;;  %v2789_v23 = vadd.f32 %v2780_v30, %v3525_v7 }
 0x32d   : > { %2797 = vst.msk [vmem:[%s170_s25 + $0x2] sm:$0x3] %vm2795_vm1, %v2792_v17  ;;  %v2790_v62 = vadd.f32 %v2784_v24, %v3529_v9  ;;  %v2793_v26 = vpack.c.bf16 %v2789_v23, %v2789_v23 }
 0x32f   : > { %v2794_v58 = vpack.c.bf16 %v2790_v62, %v2790_v62  ;;  %2798 = vst.msk [vmem:[%s170_s25 + $0x4] sm:$0x3] %vm2795_vm1, %v2793_v26 }
 0x331   : > { %2799 = vst.msk [vmem:[%s170_s25 + $0x6] sm:$0x3] %vm2795_vm1, %v2794_v58 }
 0x332 PF: > { %s13_s12 = sadd.s32 1, %s3251_s12  }
 0x333   : > { %p10_p4 = scmp.ge.s32.totalorder %s13_s12, 4  }
 0x335   :  { %12 = sbr.rel (!%p10_p4) target bundleno = 1 (0x1), region = 88 }

// kernel: forward.7
= control target key start
LH: loop header
LB: loop body
LE: loop exit
PB: predicated region body
PF: predicated region fallthrough
CT: control target
= control target key end

     0   :  { %s5457_s12 = smov 0   ;;  %s6247_s0 = inlined_call_operand.vmem [shape: bf16[2,4,3,3,16], index: 0, kind: input, shape index: {}]   ;;  %s6248_s1 = inlined_call_operand.vmem [shape: bf16[9,16,32], index: 1, kind: input, shape index: {}]   ;;  %s6249_s2 = inlined_call_operand.vmem [shape: bf16[4,9,32,32], index: 2, kind: input, shape index: {}]   ;;  %s6250_s3 = inlined_call_operand.vmem [shape: bf16[2,2,2,32], index: 3, kind: output, shape index: {}]  }
   0x1 LB: > { %s4519_s13 = sadd.s32 4294967295, %s5429_s12   ;;  %p4523_p0 = scmp.ge.s32.totalorder %s5429_s12, 1  ;;  %s5429_s12 = sphi %s5457_s12, %s13_s12  }
   0x2   : > { %p137_p1 = scmp.lt.s32.totalorder %s5429_s12, 3 }
   0x4   : > { %p138_p2 = pnand %p4523_p0, %p137_p1 }
   0x5   : > { %p160_p3 = scmp.lt.s32.totalorder (!%p138_p2), %s4519_s13, 1 }
   0x6   : > { %141 = sbr.rel (%p138_p2) target bundleno = 1263 (0x4ef), region = 32 }
   0xb   : > { %v5336_v0 = vld [vmem:[%s6248_s1 + $0x8] sm:$0xff]   ;;  %v198_v1 = vlaneseq  ;;  %v5431_v2 = vmov 0.0   ;;  %v5337_v3 = vld [vmem:[%s6248_s1] sm:$0xff]   ;;  %vm5432_vm0 = vmmov 0   ;;  %v5433_v5 = vmov 1966171168  }
   0xc   : > { %4979 = vmatprep.subr.bf16.mxu0 %v5431_v2  ;;  %4985 = vmatprep.subr.bf16.mxu1 %v5431_v2  ;;  %v196_v6 = vunpack.c.l.s4 %v5433_v5  ;;  %s6254_s13 = smov (!%p160_p3, %s4519_s13), 1  ;;  %vm341_vm1 = vsmask.f32 256  ;;  %vm342_vm2 = vsmask.f32 1284  ;;  %vm215_vm11 = vcmask 130048  }
   0xd   : > { %4980 = vmatpush3.bf16.msra.mxu0 %v5336_v0  ;;  %4981 = vmatprep.mubr.msk.bf16.mxu0 %vm5432_vm0, %v5431_v2  ;;  %v5475_v4 = vshrl.u32 %v198_v1, 7  ;;  %vm344_vm3 = vsmask.f32 2312  ;;  %vm346_vm4 = vsmask.f32 3340  ;;  %s5321_s18 = smul.u32 24, %s6254_s13  ;;  %vm343_vm5 = vmor %vm341_vm1, %vm342_vm2 }
   0xe   : > { %4986 = vmatpush3.bf16.msra.mxu1 %v5337_v3  ;;  %4987 = vmatprep.mubr.msk.bf16.mxu1 %vm5432_vm0, %v5431_v2  ;;  %v197_v7 = vunpack.c.0.s8 %v196_v6  ;;  %vm345_vm6 = vmor %vm343_vm5, %vm344_vm3  ;;  %vm348_vm7 = vsmask.f32 4368  ;;  %vm350_vm9 = vsmask.f32 5396  ;;  %vm352_vm10 = vsmask.f32 6424 }
   0xf   : > { %4991 = vmatprep.subr.bf16.mxu0 %v5431_v2  ;;  %4997 = vmatprep.subr.bf16.mxu1 %v5431_v2  ;;  %s5490_s21 = scalar_lea.vmem %s6247_s0, %s5321_s18  ;;  %vm347_vm8 = vmor %vm345_vm6, %vm346_vm4  ;;  %vm354_vm14 = vsmask.f32 7452  ;;  %v5338_v27 = vld [vmem:[%s6248_s1 + $0x10] sm:$0xff]   ;;  %v5339_v28 = vld [vmem:[%s6248_s1 + $0x18] sm:$0xff]   ;;  %vm170_vm2 = vcmask 256000   ;;  %vm934_vm3 = vcmask 254977  }
  0x10   : > { %v5485_v8 = vsub.s32 %v197_v7, %v5475_v4  ;;  %v180_v9 = vld [vmem:[%s5490_s21 + $0x6] sm:$0x3]  ;;  %v5494_v10 = vld [vmem:[%s5490_s21 + $0x8] sm:$0x3]  ;;  %v177_v12 = vld [vmem:[%s5490_s21] sm:$0x3] }
  0x11   : > { %v194_v11 = vcombine.low %v180_v9, %v5494_v10  ;;  %v5499_v13 = vld [vmem:[%s5490_s21 + $0x2] sm:$0x3]  ;;  %vm349_vm12 = vmor %vm347_vm8, %vm348_vm7  ;;  %v183_v17 = vld [vmem:[%s5490_s21 + $0xc] sm:$0x3]  ;;  %vm1041_vm4 = vcmask 261120   ;;  %s4525_s30 = sshll.u32 %s6254_s13, 1 }
  0x12   : > { %v261_v14 = vcombine.low %v177_v12, %v5499_v13  ;;  %v331_v15 = vrot.slane %v177_v12, %v5485_v8  ;;  %v339_v16 = vrot.slane %v5499_v13, %v5485_v8  ;;  %vm351_vm13 = vmor %vm349_vm12, %vm350_vm9  ;;  %v184_v18 = vld [vmem:[%s5490_s21 + $0xe] sm:$0x3]  ;;  %v588_v21 = vrot.slane %v183_v17, %v5485_v8  ;;  %v185_v37 = vld [vmem:[%s5490_s21 + $0x12] sm:$0x3]  ;;  %s168_s6 = scalar_lea.vmem %s6250_s3, %s4525_s30 }
  0x13   : > { %v201_v19 = vrot.slane %v194_v11, %v5485_v8  ;;  %vm353_vm15 = vmor %vm351_vm13, %vm352_vm10  ;;  %v447_v20 = vcombine.low %v183_v17, %v184_v18  ;;  %v596_v22 = vrot.slane %v184_v18, %v5485_v8  ;;  %v186_v38 = vld [vmem:[%s5490_s21 + $0x14] sm:$0x3]  ;;  %v179_v42 = vld [vmem:[%s5490_s21 + $0x4] sm:$0x3]  ;;  %v5434_v18 = vmov 0  }
  0x14   : > { %v268_v23 = vrot.slane %v261_v14, %v5485_v8  ;;  %v332_v24 = vcombine.high %v331_v15, %v331_v15  ;;  %v340_v25 = vcombine.high %v339_v16, %v339_v16  ;;  %v357_v26 = vshrl.u32 %v331_v15, 16  ;;  %vm5519_vm1 = vmor %vm353_vm15, %vm354_vm14  ;;  %v5340_v49 = vld [vmem:[%s6248_s1 + $0x20] sm:$0xff]   ;;  %v5341_v55 = vld [vmem:[%s6248_s1 + $0x28] sm:$0xff]   ;;  %171 = vst.msk [vmem:[#allocation2] sm:$0x7] %vm170_vm2, %v5434_v18 }
  0x15   : > { %v208_v29 = vrot.slane %v201_v19, %v5485_v8  ;;  %v366_v30 = vshrl.u32 %v339_v16, 16  ;;  %v589_v32 = vcombine.high %v588_v21, %v588_v21  ;;  %v597_v36 = vcombine.high %v596_v22, %v596_v22  ;;  %v182_v61 = vld [vmem:[%s5490_s21 + $0xa] sm:$0x3]  ;;  %v5342_v0 = vld [vmem:[%s6248_s1 + $0x30] sm:$0xff]   ;;  %v5343_v3 = vld [vmem:[%s6248_s1 + $0x38] sm:$0xff]  }
  0x16   : > { %v275_v33 = vrot.slane %v268_v23, %v5485_v8  ;;  %v362_v34 = vshll.u32 %v332_v24, 16  ;;  %v371_v35 = vshll.u32 %v340_v25, 16  ;;  %v599_v39 = vshrl.u32 %v588_v21, 16  ;;  %172 = vst.msk [vmem:[#allocation2 + $0x4] sm:$0x7] %vm170_vm2, %v5434_v18  ;;  %v5345_v19 = vld [vmem:[%s6249_s2 + $0x18] sm:$0xff]  }
  0x17   : > { %4982 = vmatmul.mubr.msk.bf16.vlgmr.msra.gmra.mxu0 %vm215_vm11, %v208_v29  ;;  %v604_v40 = vshll.u32 %v589_v32, 16  ;;  %v608_v41 = vshrl.u32 %v596_v22, 16  ;;  %v454_v45 = vrot.slane %v447_v20, %v5485_v8  ;;  %v613_v46 = vshll.u32 %v597_v36, 16  ;;  %173 = vst.msk [vmem:[#allocation2 + $0x8] sm:$0x7] %vm170_vm2, %v5434_v18  ;;  %v5347_v20 = vld [vmem:[%s6249_s2 + $0x8] sm:$0xff]  }
  0x18   : > { %4988 = vmatmul.mubr.msk.bf16.vlgmr.msra.gmra.mxu1 %vm215_vm11, %v275_v33  ;;  %4992 = vmatpush3.bf16.msra.mxu0 %v5338_v27  ;;  %v364_v43 = vsel %vm5519_vm1, %v357_v26, %v362_v34  ;;  %v373_v44 = vsel %vm5519_vm1, %v366_v30, %v371_v35  ;;  %v828_v51 = vrot.slane %v179_v42, %v5485_v8  ;;  %v5346_v21 = vld [vmem:[%s6249_s2 + $0x10] sm:$0xff]   ;;  %v5348_v22 = vld [vmem:[%s6249_s2] sm:$0xff]  }
  0x19   : > { %4998 = vmatpush3.bf16.msra.mxu1 %v5339_v28  ;;  %4993 = vmatprep.mubr.msk.bf16.mxu0 %vm5432_vm0, %v5431_v2  ;;  %v377_v47 = vcombine.low %v364_v43, %v373_v44  ;;  %v606_v48 = vsel %vm5519_vm1, %v599_v39, %v604_v40  ;;  %v615_v50 = vsel %vm5519_vm1, %v608_v41, %v613_v46 }
  0x1a   : > { %4999 = vmatprep.mubr.msk.bf16.mxu1 %vm5432_vm0, %v5431_v2  ;;  %5003 = vmatprep.subr.bf16.mxu0 %v5431_v2  ;;  %v517_v53 = vcombine.low %v185_v37, %v186_v38  ;;  %v461_v54 = vrot.slane %v454_v45, %v5485_v8  ;;  %v619_v56 = vcombine.low %v606_v48, %v615_v50  ;;  %v831_v59 = vshrl.u32 %v828_v51, 16 }
  0x1b   : > { %v384_v52 = vrot.slane %v377_v47, %v5485_v8  ;;  %5009 = vmatprep.subr.bf16.mxu1 %v5431_v2  ;;  %v829_v57 = vcombine.high %v828_v51, %v828_v51  ;;  %v688_v5 = vcombine.low %v5499_v13, %v179_v42  ;;  %v757_v6 = vcombine.low %v5494_v10, %v182_v61  ;;  %v5344_v10 = vld [vmem:[%s6248_s1 + $0x40] sm:$0xff]  }
  0x1c   : > { %v524_v62 = vrot.slane %v517_v53, %v5485_v8  ;;  %v626_v63 = vrot.slane %v619_v56, %v5485_v8  ;;  %174 = vst.msk [vmem:[#allocation2 + $0xc] sm:$0x7] %vm170_vm2, %v5434_v18  ;;  %175 = vst.msk [vmem:[#allocation2 + $0x10] sm:$0x7] %vm170_vm2, %v5434_v18 }
  0x1d   : > { %v391_v58 = vrot.slane %v384_v52, %v5485_v8  ;;  %v836_v60 = vshll.u32 %v829_v57, 16  ;;  %v695_v9 = vrot.slane %v688_v5, %v5485_v8  ;;  %v764_v11 = vrot.slane %v757_v6, %v5485_v8  ;;  %176 = vst.msk [vmem:[#allocation2 + $0x14] sm:$0x7] %vm170_vm2, %v5434_v18 }
  0x1e   : > { %v531_v1 = vrot.slane %v524_v62, %v5485_v8  ;;  %v633_v7 = vrot.slane %v626_v63, %v5485_v8 }
  0x1f   : > { %4994 = vmatmul.mubr.msk.bf16.vlgmr.msra.gmra.mxu0 %vm215_vm11, %v391_v58  ;;  %v838_v12 = vsel %vm5519_vm1, %v831_v59, %v836_v60  ;;  %v702_v13 = vrot.slane %v695_v9, %v5485_v8  ;;  %v771_v15 = vrot.slane %v764_v11, %v5485_v8 }
  0x20   : > { %5000 = vmatmul.mubr.msk.bf16.vlgmr.msra.gmra.mxu1 %vm215_vm11, %v461_v54  ;;  %5004 = vmatpush3.bf16.msra.mxu0 %v5340_v49  ;;  %v842_v14 = vcombine.low %v373_v44, %v838_v12 }
  0x21   : > { %5010 = vmatpush3.bf16.msra.mxu1 %v5341_v55  ;;  %5005 = vmatprep.mubr.msk.bf16.mxu0 %vm5432_vm0, %v5431_v2  ;;  %v5435_v55 = vmov 1983009808  }
  0x22   : > { %5011 = vmatprep.mubr.msk.bf16.mxu1 %vm5432_vm0, %v5431_v2  ;;  %5015 = vmatprep.subr.bf16.mxu0 %v5431_v2  ;;  %v849_v16 = vrot.slane %v842_v14, %v5485_v8  ;;  %v910_v56 = vunpack.c.l.s4 %v5435_v55 }
  0x23   : > { %5021 = vmatprep.subr.bf16.mxu1 %v5431_v2 }
  0x24   : > { %v856_v17 = vrot.slane %v849_v16, %v5485_v8  ;;  %v911_v62 = vunpack.c.0.s8 %v910_v56 }
  0x26   : > { %v5621_v6 = vsub.s32 %v911_v62, %v5475_v4  ;;  %v5350_v62 = vld [vmem:[%s6249_s2 + $0x20] sm:$0xff]  }
  0x27   : > { %5006 = vmatmul.mubr.msk.bf16.vlgmr.msra.gmra.mxu0 %vm215_vm11, %v531_v1 }
  0x28   : > { %5012 = vmatmul.mubr.msk.bf16.vlgmr.msra.gmra.mxu1 %vm215_vm11, %v633_v7  ;;  %5016 = vmatpush3.bf16.msra.mxu0 %v5342_v0 }
  0x29   : > { %5022 = vmatpush3.bf16.msra.mxu1 %v5343_v3  ;;  %5017 = vmatprep.mubr.msk.bf16.mxu0 %vm5432_vm0, %v5431_v2 }
  0x2a   : > { %5023 = vmatprep.mubr.msk.bf16.mxu1 %vm5432_vm0, %v5431_v2  ;;  %5027 = vmatprep.subr.bf16.mxu0 %v5431_v2 }
  0x2b   : > { %5033 = vmatprep.subr.bf16.mxu1 %v5431_v2 }
  0x2f   : > { %5018 = vmatmul.mubr.msk.bf16.vlgmr.msra.gmra.mxu0 %vm215_vm11, %v702_v13 }
  0x30   : > { %5024 = vmatmul.mubr.msk.bf16.vlgmr.msra.gmra.mxu1 %vm215_vm11, %v771_v15  ;;  %5028 = vmatpush3.bf16.msra.mxu0 %v5344_v10 }
  0x31   : > { %5029 = vmatprep.mubr.msk.bf16.mxu0 %vm5432_vm0, %v5431_v2  ;;  %5041 = vmatprep.subr.bf16.mxu0 %v5431_v2 }
  0x32   : > { %5037 = vmatprep.mubr.msk.bf16.mxu1 %vm5432_vm0, %v5431_v2  ;;  %5034 = vmatpush3.bf16.msra.mxu1 %v5345_v19 }
  0x33   : > { %5035 = vmatprep.subr.bf16.mxu1 %v5431_v2 }
  0x36   : > { %5036 = vmatpush3.bf16.msra.mxu1 %v5346_v21 }
  0x37   : > { %5030 = vmatmul.mubr.msk.bf16.vlgmr.msra.gmra.mxu0 %vm215_vm11, %v856_v17  ;;  %5049 = vmatprep.subr.bf16.mxu1 %v5431_v2  ;;  %v4567_v17 = vld.sshfl [vmem:[#allocation2 + $0x4] sm:$0x13 pattern:$0x75316420] }
  0x38   : > { %5045 = vmatprep.mubr.msk.bf16.mxu0 %vm5432_vm0, %v5431_v2  ;;  %5042 = vmatpush3.bf16.msra.mxu0 %v5347_v20  ;;  %v950_v20 = vcombine.high %v4567_v17, %v4567_v17 }
  0x39   : > { %5043 = vmatprep.subr.bf16.mxu0 %v5431_v2 }
  0x3c   : > { %5044 = vmatpush3.bf16.msra.mxu0 %v5348_v22  ;;  %v957_v22 = vrot.slane %v4567_v17, %v5485_v8 }
  0x3d   : > { %5057 = vmatprep.subr.bf16.mxu0 %v5431_v2 }
  0xd7   : > { %v253_v23 = vpop.f32.mrf.mxu0 }
  0xd8   : > { %v319_v24 = vpop.f32.mrf.mxu1 }
  0xd9   : > { %v4983_v25 = vpop.f32.mrf.mxu0  ;;  %v320_v37 = vadd.f32 %v319_v24, %v253_v23  ;;  %v5636_v23 = vrot.slane %v950_v20, %v5485_v8  ;;  %v1155_v24 = vcombine.high %v957_v22, %v957_v22 }
  0xda   : > { %v4989_v26 = vpop.f32.mrf.mxu1 }
  0xdb   : > { %v256_v27 = vpop.f32.mrf.mxu0  ;;  %v988_v26 = vshrl.u32 %v957_v22, 16 }
  0xdc   : > { %v322_v28 = vpop.f32.mrf.mxu1  ;;  %v993_v27 = vshll.u32 %v5636_v23, 16 }
  0xdd   : > { %v4984_v29 = vpop.f32.mrf.mxu0 }
  0xde   : > { %v4990_v30 = vpop.f32.mrf.mxu1 }
  0xdf   : > { %v435_v32 = vpop.f32.mrf.mxu0  ;;  %v1157_v30 = vshrl.u32 %v5636_v23, 16 }
  0xe0   : > { %v505_v33 = vpop.f32.mrf.mxu1  ;;  %v441_v40 = vadd.f32 %v435_v32, %v320_v37  ;;  %v1162_v32 = vshll.u32 %v1155_v24, 16  ;;  %v5646_v37 = vsel %vm5519_vm1, %v988_v26, %v993_v27  ;;  %v5356_v27 = vld [vmem:[%s6249_s2 + $0x50] sm:$0xff]  }
  0xe1   : > { %v4995_v34 = vpop.f32.mrf.mxu0 }
  0xe2   : > { %v5001_v35 = vpop.f32.mrf.mxu1  ;;  %v511_v45 = vadd.f32 %v505_v33, %v441_v40 }
  0xe3   : > { %v438_v36 = vpop.f32.mrf.mxu0 }
  0xe4   : > { %v508_v38 = vpop.f32.mrf.mxu1 }
  0xe5   : > { %v4996_v39 = vpop.f32.mrf.mxu0 }
  0xe6   : > { %v5002_v41 = vpop.f32.mrf.mxu1 }
  0xe7   : > { %v575_v42 = vpop.f32.mrf.mxu0 }
  0xe8   : > { %v677_v43 = vpop.f32.mrf.mxu1  ;;  %v581_v48 = vadd.f32 %v575_v42, %v511_v45 }
  0xe9   : > { %v5007_v44 = vpop.f32.mrf.mxu0 }
  0xea   : > { %v5013_v46 = vpop.f32.mrf.mxu1  ;;  %v683_v53 = vadd.f32 %v677_v43, %v581_v48  ;;  %v5655_v44 = vsel %vm5519_vm1, %v1157_v30, %v1162_v32 }
  0xeb   : > { %v578_v47 = vpop.f32.mrf.mxu0 }
  0xec   : > { %v680_v49 = vpop.f32.mrf.mxu1 }
  0xed   : > { %v5008_v50 = vpop.f32.mrf.mxu0  ;;  %v4614_v49 = vld.sshfl [vmem:[#allocation2 + $0x10] sm:$0x13 pattern:$0x75316420] }
  0xee   : > { %v5014_v51 = vpop.f32.mrf.mxu1  ;;  %v5349_v50 = vld [vmem:[%s6249_s2 + $0x28] sm:$0xff]  }
  0xef   : > { %v746_v52 = vpop.f32.mrf.mxu0 }
  0xf0   : > { %v815_v54 = vpop.f32.mrf.mxu1  ;;  %v752_v58 = vadd.f32 %v746_v52, %v683_v53 }
  0xf1   : > { %v5019_v57 = vpop.f32.mrf.mxu0 }
  0xf2   : > { %v5025_v59 = vpop.f32.mrf.mxu1  ;;  %v821_v0 = vadd.f32 %v815_v54, %v752_v58 }
  0xf3   : > { %v749_v60 = vpop.f32.mrf.mxu0  ;;  %v1526_v59 = vcombine.high %v4614_v49, %v4614_v49 }
  0xf4   : > { %v818_v61 = vpop.f32.mrf.mxu1  ;;  %v5351_v60 = vld [vmem:[%s6249_s2 + $0x38] sm:$0xff]  }
  0xf5   : > { %v5020_v63 = vpop.f32.mrf.mxu0 }
  0xf6   : > { %v5026_v1 = vpop.f32.mrf.mxu1 }
  0xf7   : > { %v900_v3 = vpop.f32.mrf.mxu0 }
  0xf8   : > { %v906_v5 = vadd.f32 %v900_v3, %v821_v0 }
  0xf9   : > { %v5031_v7 = vpop.f32.mrf.mxu0 }
  0xfa   : > { %v907_v9 = vmax.f32 %v906_v5, 0.0  ;;  %v5693_v5 = vrot.slane %v1526_v59, %v5485_v8  ;;  %v5352_v7 = vld [vmem:[%s6249_s2 + $0x30] sm:$0xff]  }
  0xfb   : > { %v903_v11 = vpop.f32.mrf.mxu0 }
  0xfc   : > { %v5624_v12 = vrot.slane %v907_v9, %v5621_v6  ;;  %v5353_v9 = vld [vmem:[%s6249_s2 + $0x48] sm:$0xff]  }
  0xfd   : > { %v5032_v10 = vpop.f32.mrf.mxu0 }
  0xfe   : > { %v5628_v13 = vcombine.high %v5624_v12, %v5624_v12  ;;  %v919_v14 = vmax.f32 %v5624_v12, 0.0  ;;  %v1533_v10 = vrot.slane %v4614_v49, %v5485_v8  ;;  %v5362_v49 = vld [vmem:[%s6249_s2 + $0x80] sm:$0xff]  }
 0x100   : > { %v920_v15 = vmax.f32 %v5628_v13, 0.0  ;;  %v4849_v16 = vpack.c.bf16 %v919_v14, %v919_v14  ;;  %v1542_v17 = vshrl.u32 %v1533_v10, 16  ;;  %v1702_v26 = vcombine.high %v1533_v10, %v1533_v10 }
 0x102   : > { %v4850_v18 = vpack.c.bf16 %v920_v15, %v920_v15  ;;  %v929_v19 = vrot.slane %v4849_v16, 7 }
 0x104   : > { %v930_v21 = vrot.slane %v4850_v18, 7  ;;  %935 = vst.msk [vmem:[#allocation2 + $0x8] sm:$0x2] %vm934_vm3, %v929_v19  ;;  %v1547_v18 = vshll.u32 %v5693_v5, 16  ;;  %v5355_v19 = vld [vmem:[%s6249_s2 + $0x58] sm:$0xff]  }
 0x106   : > { %936 = vst.msk [vmem:[#allocation2 + $0xc] sm:$0x2] %vm934_vm3, %v930_v21  ;;  %v5354_v21 = vld [vmem:[%s6249_s2 + $0x40] sm:$0xff]  }
 0x10b   : > { %v4568_v25 = vld.sshfl [vmem:[#allocation2 + $0x8] sm:$0x13 pattern:$0x75316420] }
 0x10c   : > { %v972_v28 = vcombine.high %v4568_v25, %v4568_v25  ;;  %v979_v29 = vrot.slane %v4568_v25, %v5485_v8  ;;  %v5729_v25 = vsel %vm5519_vm1, %v1542_v17, %v1547_v18 }
 0x10d   : > { %v4590_v33 = vld.sshfl [vmem:[#allocation2 + $0xc] sm:$0x13 pattern:$0x75316420] }
 0x10e   : > { %v5642_v34 = vrot.slane %v972_v28, %v5485_v8  ;;  %v1156_v35 = vcombine.high %v979_v29, %v979_v29  ;;  %v1257_v36 = vcombine.high %v4590_v33, %v4590_v33  ;;  %v997_v38 = vshrl.u32 %v979_v29, 16  ;;  %v5357_v28 = vld [vmem:[%s6249_s2 + $0x68] sm:$0xff]  }
 0x10f   : > { %v1264_v39 = vrot.slane %v4590_v33, %v5485_v8  ;;  %v1703_v33 = vshrl.u32 %v5693_v5, 16 }
 0x110   : > { %v1014_v40 = vcombine.low %v5636_v23, %v5642_v34  ;;  %v1002_v41 = vshll.u32 %v5642_v34, 16  ;;  %v1165_v42 = vshrl.u32 %v5642_v34, 16  ;;  %v1170_v43 = vshll.u32 %v1156_v35, 16  ;;  %v5359_v35 = vld [vmem:[%s6249_s2 + $0x78] sm:$0xff]  }
 0x111   : > { %v5658_v45 = vrot.slane %v1257_v36, %v5485_v8  ;;  %v1273_v52 = vshrl.u32 %v1264_v39, 16  ;;  %v1433_v56 = vcombine.high %v1264_v39, %v1264_v39 }
 0x112   : > { %v1021_v46 = vrot.slane %v1014_v40, %v5485_v8  ;;  %v1004_v47 = vsel %vm5519_vm1, %v997_v38, %v1002_v41  ;;  %v1172_v48 = vsel %vm5519_vm1, %v1165_v42, %v1170_v43  ;;  %v5358_v38 = vld [vmem:[%s6249_s2 + $0x60] sm:$0xff]   ;;  %v5360_v42 = vld [vmem:[%s6249_s2 + $0x70] sm:$0xff]   ;;  %v5361_v43 = vld [vmem:[%s6249_s2 + $0x88] sm:$0xff]  }
 0x113   : > { %v1085_v51 = vcombine.low %v5646_v37, %v1004_v47  ;;  %v1278_v53 = vshll.u32 %v5658_v45, 16  ;;  %v1178_v55 = vcombine.low %v5655_v44, %v1172_v48  ;;  %v1434_v1 = vshrl.u32 %v5658_v45, 16 }
 0x114   : > { %v1028_v54 = vrot.slane %v1021_v46, %v5485_v8  ;;  %v1439_v3 = vshll.u32 %v1433_v56, 16  ;;  %v1362_v15 = vcombine.low %v5642_v34, %v5658_v45  ;;  %v1708_v34 = vshll.u32 %v1702_v26, 16 }
 0x115   : > { %v1092_v57 = vrot.slane %v1085_v51, %v5485_v8  ;;  %v5675_v58 = vsel %vm5519_vm1, %v1273_v52, %v1278_v53  ;;  %v1185_v0 = vrot.slane %v1178_v55, %v5485_v8  ;;  %v1631_v39 = vcombine.low %v5658_v45, %v5693_v5  ;;  %v5363_v52 = vld [vmem:[%s6249_s2 + $0xa8] sm:$0xff]   ;;  %v5365_v53 = vld [vmem:[%s6249_s2 + $0x98] sm:$0xff]   ;;  %v5366_v55 = vld [vmem:[%s6249_s2 + $0x90] sm:$0xff]  }
 0x116   : > { %5038 = vmatmul.mubr.msk.bf16.vlgmr.msra.gmra.mxu1 %vm1041_vm4, %v1028_v54  ;;  %v1286_v63 = vcombine.low %v1004_v47, %v5675_v58  ;;  %v1441_v16 = vsel %vm5519_vm1, %v1434_v1, %v1439_v3  ;;  %v1369_v24 = vrot.slane %v1362_v15, %v5485_v8  ;;  %v1555_v32 = vcombine.low %v5675_v58, %v5729_v25  ;;  %v5364_v54 = vld [vmem:[%s6249_s2 + $0xa0] sm:$0xff]  }
 0x117   : > { %5050 = vmatpush3.bf16.msra.mxu1 %v5349_v50  ;;  %v1099_v61 = vrot.slane %v1092_v57, %v5485_v8  ;;  %5053 = vmatprep.mubr.msk.bf16.mxu1 %vm5432_vm0, %v5431_v2  ;;  %v1192_v14 = vrot.slane %v1185_v0, %v5485_v8  ;;  %v1447_v22 = vcombine.low %v1172_v48, %v1441_v16 }
 0x118   : > { %5051 = vmatprep.subr.bf16.mxu1 %v5431_v2  ;;  %v1293_v11 = vrot.slane %v1286_v63, %v5485_v8  ;;  %v1376_v30 = vrot.slane %v1369_v24, %v5485_v8  ;;  %v1562_v40 = vrot.slane %v1555_v32, %v5485_v8  ;;  %v5764_v41 = vsel %vm5519_vm1, %v1703_v33, %v1708_v34 }
 0x119   : > { %5046 = vmatmul.mubr.msk.bf16.vlgmr.msra.gmra.mxu0 %vm1041_vm4, %v1099_v61  ;;  %v1454_v29 = vrot.slane %v1447_v22, %v5485_v8  ;;  %v1638_v45 = vrot.slane %v1631_v39, %v5485_v8  ;;  %v1716_v47 = vcombine.low %v1441_v16, %v5764_v41 }
 0x11a   : > { %5058 = vmatpush3.bf16.msra.mxu0 %v5351_v60  ;;  %5061 = vmatprep.mubr.msk.bf16.mxu0 %vm5432_vm0, %v5431_v2  ;;  %v1300_v20 = vrot.slane %v1293_v11, %v5485_v8  ;;  %v1569_v46 = vrot.slane %v1562_v40, %v5485_v8 }
 0x11b   : > { %5052 = vmatpush3.bf16.msra.mxu1 %v5350_v62  ;;  %5059 = vmatprep.subr.bf16.mxu0 %v5431_v2  ;;  %v1461_v36 = vrot.slane %v1454_v29, %v5485_v8  ;;  %v1645_v48 = vrot.slane %v1638_v45, %v5485_v8  ;;  %v1723_v50 = vrot.slane %v1716_v47, %v5485_v8 }
 0x11c   : > { %5065 = vmatprep.subr.bf16.mxu1 %v5431_v2 }
 0x11d   : > { %v1730_v51 = vrot.slane %v1723_v50, %v5485_v8 }
 0x11e   : > { %5054 = vmatmul.mubr.msk.bf16.vlgmr.msra.gmra.mxu1 %vm1041_vm4, %v1192_v14  ;;  %5060 = vmatpush3.bf16.msra.mxu0 %v5352_v7 }
 0x11f   : > { %5066 = vmatpush3.bf16.msra.mxu1 %v5353_v9  ;;  %5073 = vmatprep.subr.bf16.mxu0 %v5431_v2 }
 0x120   : > { %5067 = vmatprep.subr.bf16.mxu1 %v5431_v2  ;;  %5069 = vmatprep.mubr.msk.bf16.mxu1 %vm5432_vm0, %v5431_v2 }
 0x121   : > { %5062 = vmatmul.mubr.msk.bf16.vlgmr.msra.gmra.mxu0 %vm1041_vm4, %v1300_v20 }
 0x122   : > { %5074 = vmatpush3.bf16.msra.mxu0 %v5355_v19  ;;  %5077 = vmatprep.mubr.msk.bf16.mxu0 %vm5432_vm0, %v5431_v2 }
 0x123   : > { %5068 = vmatpush3.bf16.msra.mxu1 %v5354_v21  ;;  %5075 = vmatprep.subr.bf16.mxu0 %v5431_v2 }
 0x124   : > { %5081 = vmatprep.subr.bf16.mxu1 %v5431_v2 }
 0x126   : > { %5070 = vmatmul.mubr.msk.bf16.vlgmr.msra.gmra.mxu1 %vm1041_vm4, %v1376_v30  ;;  %5076 = vmatpush3.bf16.msra.mxu0 %v5356_v27 }
 0x127   : > { %5082 = vmatpush3.bf16.msra.mxu1 %v5357_v28  ;;  %5089 = vmatprep.subr.bf16.mxu0 %v5431_v2 }
 0x128   : > { %5083 = vmatprep.subr.bf16.mxu1 %v5431_v2  ;;  %5085 = vmatprep.mubr.msk.bf16.mxu1 %vm5432_vm0, %v5431_v2 }
 0x129   : > { %5078 = vmatmul.mubr.msk.bf16.vlgmr.msra.gmra.mxu0 %vm1041_vm4, %v1461_v36 }
 0x12a   : > { %5090 = vmatpush3.bf16.msra.mxu0 %v5359_v35  ;;  %5093 = vmatprep.mubr.msk.bf16.mxu0 %vm5432_vm0, %v5431_v2 }
 0x12b   : > { %5084 = vmatpush3.bf16.msra.mxu1 %v5358_v38  ;;  %5091 = vmatprep.subr.bf16.mxu0 %v5431_v2 }
 0x12c   : > { %5097 = vmatprep.subr.bf16.mxu1 %v5431_v2 }
 0x12e   : > { %5086 = vmatmul.mubr.msk.bf16.vlgmr.msra.gmra.mxu1 %vm1041_vm4, %v1569_v46  ;;  %5092 = vmatpush3.bf16.msra.mxu0 %v5360_v42  ;;  %v5436_v42 = vmov 1935823168  }
 0x12f   : > { %5098 = vmatpush3.bf16.msra.mxu1 %v5361_v43  ;;  %5101 = vmatprep.mubr.msk.bf16.mxu1 %vm5432_vm0, %v5431_v2  ;;  %v1813_v43 = vunpack.c.l.s4 %v5436_v42  ;;  %v5370_v42 = vld [vmem:[%s6249_s2 + $0xc0] sm:$0xff]  }
 0x130   : > { %5099 = vmatprep.subr.bf16.mxu1 %v5431_v2  ;;  %5105 = vmatprep.subr.bf16.mxu0 %v5431_v2 }
 0x131   : > { %5094 = vmatmul.mubr.msk.bf16.vlgmr.msra.gmra.mxu0 %vm1041_vm4, %v1645_v48  ;;  %v1814_v50 = vunpack.c.0.s8 %v1813_v43  ;;  %v5371_v43 = vld [vmem:[%s6249_s2 + $0xd8] sm:$0xff]  }
 0x132   : > { %5109 = vmatprep.mubr.msk.bf16.mxu0 %vm5432_vm0, %v5431_v2  ;;  %5106 = vmatpush3.bf16.msra.mxu0 %v5363_v52 }
 0x133   : > { %5100 = vmatpush3.bf16.msra.mxu1 %v5362_v49  ;;  %5107 = vmatprep.subr.bf16.mxu0 %v5431_v2 }
 0x134   : > { %5113 = vmatprep.subr.bf16.mxu1 %v5431_v2 }
 0x136   : > { %5102 = vmatmul.mubr.msk.bf16.vlgmr.msra.gmra.mxu1 %vm1041_vm4, %v1730_v51  ;;  %5108 = vmatpush3.bf16.msra.mxu0 %v5364_v54 }
 0x137   : > { %5117 = vmatprep.mubr.msk.bf16.mxu1 %vm5432_vm0, %v5431_v2  ;;  %5114 = vmatpush3.bf16.msra.mxu1 %v5365_v53 }
 0x138   : > { %5115 = vmatprep.subr.bf16.mxu1 %v5431_v2  ;;  %5121 = vmatprep.subr.bf16.mxu0 %v5431_v2 }
 0x13b   : > { %5116 = vmatpush3.bf16.msra.mxu1 %v5366_v55  ;;  %v5815_v55 = vsub.s32 %v1814_v50, %v5475_v4 }
 0x13c   : > { %5129 = vmatprep.subr.bf16.mxu1 %v5431_v2 }
 0x1d6   : > { %v1079_v56 = vpop.f32.mrf.mxu1 }
 0x1d8   : > { %v5039_v57 = vpop.f32.mrf.mxu1 }
 0x1d9   : > { %v1149_v58 = vpop.f32.mrf.mxu0 }
 0x1da   : > { %v1082_v59 = vpop.f32.mrf.mxu1  ;;  %v1150_v9 = vadd.f32 %v1149_v58, %v1079_v56 }
 0x1db   : > { %v5047_v60 = vpop.f32.mrf.mxu0 }
 0x1dc   : > { %v5040_v61 = vpop.f32.mrf.mxu1 }
 0x1dd   : > { %v1152_v62 = vpop.f32.mrf.mxu0 }
 0x1de   : > { %v1242_v63 = vpop.f32.mrf.mxu1 }
 0x1df   : > { %v5048_v0 = vpop.f32.mrf.mxu0  ;;  %v1248_v14 = vadd.f32 %v1242_v63, %v1150_v9 }
 0x1e0   : > { %v5055_v1 = vpop.f32.mrf.mxu1 }
 0x1e1   : > { %v1350_v3 = vpop.f32.mrf.mxu0 }
 0x1e2   : > { %v1245_v7 = vpop.f32.mrf.mxu1  ;;  %v1356_v19 = vadd.f32 %v1350_v3, %v1248_v14 }
 0x1e3   : > { %v5063_v11 = vpop.f32.mrf.mxu0 }
 0x1e4   : > { %v5056_v10 = vpop.f32.mrf.mxu1 }
 0x1e5   : > { %v1353_v15 = vpop.f32.mrf.mxu0 }
 0x1e6   : > { %v1426_v16 = vpop.f32.mrf.mxu1 }
 0x1e7   : > { %v5064_v17 = vpop.f32.mrf.mxu0  ;;  %v1432_v22 = vadd.f32 %v1426_v16, %v1356_v19 }
 0x1e8   : > { %v5071_v18 = vpop.f32.mrf.mxu1 }
 0x1e9   : > { %v1511_v20 = vpop.f32.mrf.mxu0 }
 0x1ea   : > { %v1429_v21 = vpop.f32.mrf.mxu1  ;;  %v1517_v29 = vadd.f32 %v1511_v20, %v1432_v22 }
 0x1eb   : > { %v5079_v24 = vpop.f32.mrf.mxu0 }
 0x1ec   : > { %v5072_v26 = vpop.f32.mrf.mxu1 }
 0x1ed   : > { %v1514_v27 = vpop.f32.mrf.mxu0  ;;  %v5367_v26 = vld [vmem:[%s6249_s2 + $0xb8] sm:$0xff]  }
 0x1ee   : > { %v1619_v28 = vpop.f32.mrf.mxu1 }
 0x1ef   : > { %v5080_v30 = vpop.f32.mrf.mxu0  ;;  %v1625_v33 = vadd.f32 %v1619_v28, %v1517_v29 }
 0x1f0   : > { %v5087_v32 = vpop.f32.mrf.mxu1 }
 0x1f1   : > { %v1695_v34 = vpop.f32.mrf.mxu0 }
 0x1f2   : > { %v1622_v35 = vpop.f32.mrf.mxu1  ;;  %v1701_v39 = vadd.f32 %v1695_v34, %v1625_v33 }
 0x1f3   : > { %v5095_v36 = vpop.f32.mrf.mxu0  ;;  %v5369_v35 = vld [vmem:[%s6249_s2 + $0xc8] sm:$0xff]  }
 0x1f4   : > { %v5088_v38 = vpop.f32.mrf.mxu1  ;;  %v5368_v36 = vld [vmem:[%s6249_s2 + $0xb0] sm:$0xff]  }
 0x1f5   : > { %v1698_v40 = vpop.f32.mrf.mxu0 }
 0x1f6   : > { %v1780_v45 = vpop.f32.mrf.mxu1 }
 0x1f7   : > { %v1786_v46 = vadd.f32 %v1780_v45, %v1701_v39  ;;  %v5096_v47 = vpop.f32.mrf.mxu0 }
 0x1f8   : > { %v5103_v48 = vpop.f32.mrf.mxu1 }
 0x1f9   : > { %v1787_v49 = vmax.f32 %v1786_v46, 0.0 }
 0x1fa   : > { %v1783_v51 = vpop.f32.mrf.mxu1 }
 0x1fb   : > { %v1788_v52 = vpack.c.bf16 %v1787_v49, %v1787_v49  ;;  %v5373_v49 = vld [vmem:[%s6249_s2 + $0xe8] sm:$0xff]   ;;  %v5372_v51 = vld [vmem:[%s6249_s2 + $0xd0] sm:$0xff]  }
 0x1fc   : > { %v5104_v53 = vpop.f32.mrf.mxu1 }
 0x1fd   : > { %v1796_v54 = vrot.slane %v1788_v52, %v5485_v8  ;;  %v5374_v53 = vld [vmem:[%s6249_s2 + $0xe0] sm:$0xff]  }
 0x1ff   : > { %v1797_v56 = vcombine.high %v1796_v54, %v1796_v54  ;;  %v1804_v57 = vrot.slane %v1796_v54, %v5485_v8  ;;  %v5375_v54 = vld [vmem:[%s6249_s2 + $0xf8] sm:$0xff]  }
 0x201   : > { %v1811_v58 = vrot.slane %v1797_v56, %v5485_v8  ;;  %v1818_v59 = vrot.slane %v1804_v57, %v5815_v55 }
 0x203   : > { %v1819_v60 = vcombine.low %v1818_v59, %v1818_v59  ;;  %v1833_v61 = vrot.slane %v1811_v58, %v5815_v55  ;;  %v5377_v59 = vld [vmem:[%s6249_s2 + $0x108] sm:$0xff]  }
 0x205   : > { %v1826_v62 = vrot.slane %v1819_v60, %v5815_v55  ;;  %v1834_v63 = vcombine.low %v1833_v61, %v1833_v61  ;;  %v5376_v61 = vld [vmem:[%s6249_s2 + $0xf0] sm:$0xff]  }
 0x207   : > { %v1841_v0 = vrot.slane %v1834_v63, %v5815_v55  ;;  %1844 = vst.msk [vmem:[#allocation2 + $0x8] sm:$0x2] %vm934_vm3, %v1826_v62  ;;  %v5378_v63 = vld [vmem:[%s6249_s2 + $0x100] sm:$0xff]  }
 0x209   : > { %1845 = vst.msk [vmem:[#allocation2 + $0xc] sm:$0x2] %vm934_vm3, %v1841_v0 }
 0x20e   : > { %v4639_v4 = vld.sshfl [vmem:[#allocation2 + $0x8] sm:$0x13 pattern:$0x75316420] }
 0x20f   : > { %v1881_v1 = vcombine.high %v4639_v4, %v4639_v4  ;;  %v1888_v3 = vrot.slane %v4639_v4, %v5485_v8 }
 0x210   : > { %v4665_v7 = vld.sshfl [vmem:[#allocation2 + $0xc] sm:$0x13 pattern:$0x75316420] }
 0x211   : > { %v1895_v9 = vrot.slane %v1881_v1, %v5485_v8  ;;  %v2065_v11 = vcombine.high %v1888_v3, %v1888_v3  ;;  %v2166_v10 = vcombine.high %v4665_v7, %v4665_v7  ;;  %v1906_v14 = vshrl.u32 %v1888_v3, 16 }
 0x212   : > { %v2173_v15 = vrot.slane %v4665_v7, %v5485_v8  ;;  %v5380_v7 = vld [vmem:[%s6249_s2 + $0x110] sm:$0xff]  }
 0x213   : > { %v1924_v16 = vcombine.low %v5636_v23, %v1895_v9  ;;  %v1911_v17 = vshll.u32 %v1895_v9, 16  ;;  %v2074_v18 = vshrl.u32 %v1895_v9, 16  ;;  %v2079_v19 = vshll.u32 %v2065_v11, 16  ;;  %v2725_v11 = vld [vmem:[#allocation2] sm:$0x7] }
 0x214   : > { %v5830_v20 = vrot.slane %v2166_v10, %v5485_v8  ;;  %v2182_v27 = vshrl.u32 %v2173_v15, 16  ;;  %v2342_v32 = vcombine.high %v2173_v15, %v2173_v15  ;;  %v2726_v10 = vld [vmem:[#allocation2 + $0x4] sm:$0x7] }
 0x215   : > { %v1931_v21 = vrot.slane %v1924_v16, %v5485_v8  ;;  %v1913_v22 = vsel %vm5519_vm1, %v1906_v14, %v1911_v17  ;;  %v2081_v24 = vsel %vm5519_vm1, %v2074_v18, %v2079_v19  ;;  %v2744_v14 = vrot.slane %v2725_v11, %v5485_v8  ;;  %v5381_v18 = vld [vmem:[%s6249_s2 + $0x138] sm:$0xff]  }
 0x216   : > { %v1994_v23 = vcombine.low %v5646_v37, %v1913_v22  ;;  %v2187_v28 = vshll.u32 %v5830_v20, 16  ;;  %v2087_v30 = vcombine.low %v5655_v44, %v2081_v24  ;;  %v2343_v39 = vshrl.u32 %v5830_v20, 16 }
 0x217   : > { %v1938_v29 = vrot.slane %v1931_v21, %v5485_v8  ;;  %v2348_v40 = vshll.u32 %v2342_v32, 16  ;;  %v2271_v47 = vcombine.low %v1895_v9, %v5830_v20  ;;  %v2540_v62 = vcombine.low %v5830_v20, %v5693_v5  ;;  %v5379_v5 = vld [vmem:[%s6249_s2 + $0x118] sm:$0xff]   ;;  %v5385_v32 = vld [vmem:[%s6249_s2 + $0x120] sm:$0xff]  }
 0x218   : > { %v2001_v33 = vrot.slane %v1994_v23, %v5485_v8  ;;  %v2189_v34 = vsel %vm5519_vm1, %v2182_v27, %v2187_v28  ;;  %v2094_v38 = vrot.slane %v2087_v30, %v5485_v8  ;;  %v2766_v15 = vrot.slane %v2726_v10, %v5485_v8  ;;  %v5384_v27 = vld [vmem:[%s6249_s2 + $0x148] sm:$0xff]  }
 0x219   : > { %5110 = vmatmul.mubr.msk.bf16.vlgmr.msra.gmra.mxu0 %vm1041_vm4, %v1938_v29  ;;  %v2195_v44 = vcombine.low %v1913_v22, %v2189_v34  ;;  %v2350_v48 = vsel %vm5519_vm1, %v2343_v39, %v2348_v40  ;;  %v2278_v31 = vrot.slane %v2271_v47, %v5485_v8  ;;  %v2464_v58 = vcombine.low %v2189_v34, %v5729_v25  ;;  %v5382_v22 = vld [vmem:[%s6249_s2 + $0x130] sm:$0xff]   ;;  %v5390_v39 = vld [vmem:[%s6249_s2 + $0x168] sm:$0xff]  }
 0x21a   : > { %5122 = vmatpush3.bf16.msra.mxu0 %v5367_v26  ;;  %v2008_v37 = vrot.slane %v2001_v33, %v5485_v8  ;;  %5125 = vmatprep.mubr.msk.bf16.mxu0 %vm5432_vm0, %v5431_v2  ;;  %v2101_v46 = vrot.slane %v2094_v38, %v5485_v8  ;;  %v2356_v52 = vcombine.low %v2081_v24, %v2350_v48  ;;  %v5383_v26 = vld [vmem:[%s6249_s2 + $0x128] sm:$0xff]   ;;  %v5389_v40 = vld [vmem:[%s6249_s2 + $0x150] sm:$0xff]  }
 0x21b   : > { %5123 = vmatprep.subr.bf16.mxu0 %v5431_v2  ;;  %v2202_v45 = vrot.slane %v2195_v44, %v5485_v8  ;;  %v2285_v57 = vrot.slane %v2278_v31, %v5485_v8  ;;  %v2471_v25 = vrot.slane %v2464_v58, %v5485_v8  ;;  %v2547_v0 = vrot.slane %v2540_v62, %v5485_v8  ;;  %v5388_v44 = vld [vmem:[%s6249_s2 + $0x158] sm:$0xff]  }
 0x21c   : > { %5118 = vmatmul.mubr.msk.bf16.vlgmr.msra.gmra.mxu1 %vm1041_vm4, %v2008_v37  ;;  %v2363_v56 = vrot.slane %v2356_v52, %v5485_v8  ;;  %v2625_v1 = vcombine.low %v2350_v48, %v5764_v41  ;;  %v2745_v16 = vcombine.high %v2744_v14, %v2744_v14  ;;  %v2767_v17 = vcombine.high %v2766_v15, %v2766_v15 }
 0x21d   : > { %5130 = vmatpush3.bf16.msra.mxu1 %v5369_v35  ;;  %5133 = vmatprep.mubr.msk.bf16.mxu1 %vm5432_vm0, %v5431_v2  ;;  %v2209_v50 = vrot.slane %v2202_v45, %v5485_v8  ;;  %v2478_v4 = vrot.slane %v2471_v25, %v5485_v8  ;;  %v2554_v3 = vrot.slane %v2547_v0, %v5485_v8  ;;  %v5386_v35 = vld [vmem:[%s6249_s2 + $0x140] sm:$0xff]  }
 0x21e   : > { %5124 = vmatpush3.bf16.msra.mxu0 %v5368_v36  ;;  %5131 = vmatprep.subr.bf16.mxu1 %v5431_v2  ;;  %v2370_v60 = vrot.slane %v2363_v56, %v5485_v8  ;;  %v2632_v9 = vrot.slane %v2625_v1, %v5485_v8  ;;  %v2759_v19 = vrot.slane %v2745_v16, %v5485_v8 }
 0x21f   : > { %5137 = vmatprep.subr.bf16.mxu0 %v5431_v2  ;;  %v2781_v20 = vrot.slane %v2767_v17, %v5485_v8  ;;  %v2857_v28 = vcombine.low %v2725_v11, %v2726_v10  ;;  %v2752_v29 = vrot.slane %v2744_v14, %v5485_v8  ;;  %v2774_v30 = vrot.slane %v2766_v15, %v5485_v8 }
 0x220   : > { %v2639_v41 = vrot.slane %v2632_v9, %v5485_v8 }
 0x221   : > { %5126 = vmatmul.mubr.msk.bf16.vlgmr.msra.gmra.mxu0 %vm1041_vm4, %v2101_v46  ;;  %5132 = vmatpush3.bf16.msra.mxu1 %v5370_v42  ;;  %v2787_v21 = vcombine.low %v2759_v19, %v2781_v20  ;;  %v2864_v33 = vrot.slane %v2857_v28, %v5485_v8  ;;  %v4733_v34 = vcombine.high %v2752_v29, %v2774_v30  ;;  %v5393_v42 = vld [vmem:[%s6249_s2 + $0x160] sm:$0xff]  }
 0x222   : > { %5138 = vmatpush3.bf16.msra.mxu0 %v5371_v43  ;;  %5145 = vmatprep.subr.bf16.mxu1 %v5431_v2 }
 0x223   : > { %5139 = vmatprep.subr.bf16.mxu0 %v5431_v2  ;;  %5141 = vmatprep.mubr.msk.bf16.mxu0 %vm5432_vm0, %v5431_v2  ;;  %v2794_v24 = vrot.slane %v2787_v21, %v5485_v8  ;;  %v2871_v37 = vrot.slane %v2864_v33, %v5485_v8  ;;  %v2941_v36 = vrot.slane %v4733_v34, %v5485_v8 }
 0x224   : > { %5134 = vmatmul.mubr.msk.bf16.vlgmr.msra.gmra.mxu1 %vm1041_vm4, %v2209_v50 }
 0x225   : > { %5146 = vmatpush3.bf16.msra.mxu1 %v5373_v49  ;;  %5149 = vmatprep.mubr.msk.bf16.mxu1 %vm5432_vm0, %v5431_v2  ;;  %v2801_v23 = vrot.slane %v2794_v24, %v5485_v8  ;;  %v2948_v38 = vrot.slane %v2941_v36, %v5485_v8 }
 0x226   : > { %5140 = vmatpush3.bf16.msra.mxu0 %v5372_v51  ;;  %5147 = vmatprep.subr.bf16.mxu1 %v5431_v2 }
 0x227   : > { %5153 = vmatprep.subr.bf16.mxu0 %v5431_v2 }
 0x229   : > { %5142 = vmatmul.mubr.msk.bf16.vlgmr.msra.gmra.mxu0 %vm1041_vm4, %v2285_v57  ;;  %5148 = vmatpush3.bf16.msra.mxu1 %v5374_v53 }
 0x22a   : > { %5154 = vmatpush3.bf16.msra.mxu0 %v5375_v54  ;;  %5161 = vmatprep.subr.bf16.mxu1 %v5431_v2 }
 0x22b   : > { %5155 = vmatprep.subr.bf16.mxu0 %v5431_v2  ;;  %5157 = vmatprep.mubr.msk.bf16.mxu0 %vm5432_vm0, %v5431_v2 }
 0x22c   : > { %5150 = vmatmul.mubr.msk.bf16.vlgmr.msra.gmra.mxu1 %vm1041_vm4, %v2370_v60 }
 0x22d   : > { %5162 = vmatpush3.bf16.msra.mxu1 %v5377_v59  ;;  %5165 = vmatprep.mubr.msk.bf16.mxu1 %vm5432_vm0, %v5431_v2 }
 0x22e   : > { %5156 = vmatpush3.bf16.msra.mxu0 %v5376_v61  ;;  %5163 = vmatprep.subr.bf16.mxu1 %v5431_v2 }
 0x22f   : > { %5169 = vmatprep.subr.bf16.mxu0 %v5431_v2 }
 0x231   : > { %5158 = vmatmul.mubr.msk.bf16.vlgmr.msra.gmra.mxu0 %vm1041_vm4, %v2478_v4  ;;  %5164 = vmatpush3.bf16.msra.mxu1 %v5378_v63 }
 0x232   : > { %5170 = vmatpush3.bf16.msra.mxu0 %v5379_v5  ;;  %5173 = vmatprep.mubr.msk.bf16.mxu0 %vm5432_vm0, %v5431_v2 }
 0x233   : > { %5171 = vmatprep.subr.bf16.mxu0 %v5431_v2  ;;  %5177 = vmatprep.subr.bf16.mxu1 %v5431_v2 }
 0x234   : > { %5166 = vmatmul.mubr.msk.bf16.vlgmr.msra.gmra.mxu1 %vm1041_vm4, %v2554_v3 }
 0x235   : > { %5181 = vmatprep.mubr.msk.bf16.mxu1 %vm5432_vm0, %v5431_v2  ;;  %5178 = vmatpush3.bf16.msra.mxu1 %v5381_v18 }
 0x236   : > { %5172 = vmatpush3.bf16.msra.mxu0 %v5380_v7  ;;  %5179 = vmatprep.subr.bf16.mxu1 %v5431_v2 }
 0x237   : > { %5185 = vmatprep.subr.bf16.mxu0 %v5431_v2 }
 0x239   : > { %5174 = vmatmul.mubr.msk.bf16.vlgmr.msra.gmra.mxu0 %vm1041_vm4, %v2639_v41  ;;  %5180 = vmatpush3.bf16.msra.mxu1 %v5382_v22 }
 0x23a   : > { %5189 = vmatprep.mubr.msk.bf16.mxu0 %vm5432_vm0, %v5431_v2  ;;  %5193 = vmatprep.subr.bf16.mxu1 %v5431_v2 }
 0x23b   : > { %5186 = vmatpush3.bf16.msra.mxu0 %v5383_v26 }
 0x23c   : > { %5182 = vmatmul.mubr.msk.bf16.vlgmr.msra.gmra.mxu1 %vm1041_vm4, %v2801_v23  ;;  %5187 = vmatprep.subr.bf16.mxu0 %v5431_v2 }
 0x23d   : > { %5194 = vmatpush3.bf16.msra.mxu1 %v5384_v27  ;;  %5197 = vmatprep.mubr.msk.bf16.mxu1 %vm5432_vm0, %v5431_v2 }
 0x23e   : > { %5195 = vmatprep.subr.bf16.mxu1 %v5431_v2 }
 0x23f   : > { %5188 = vmatpush3.bf16.msra.mxu0 %v5385_v32 }
 0x240   : > { %5201 = vmatprep.subr.bf16.mxu0 %v5431_v2 }
 0x241   : > { %5196 = vmatpush3.bf16.msra.mxu1 %v5386_v35 }
 0x242   : > { %5190 = vmatmul.mubr.msk.bf16.vlgmr.msra.gmra.mxu0 %vm1041_vm4, %v2871_v37  ;;  %5209 = vmatprep.subr.bf16.mxu1 %v5431_v2 }
 0x243   : > { %5202 = vmatpush3.bf16.msra.mxu0 %v5388_v44  ;;  %5205 = vmatprep.mubr.msk.bf16.mxu0 %vm5432_vm0, %v5431_v2 }
 0x244   : > { %5198 = vmatmul.mubr.msk.bf16.vlgmr.msra.gmra.mxu1 %vm1041_vm4, %v2948_v38  ;;  %5203 = vmatprep.subr.bf16.mxu0 %v5431_v2  ;;  %v2729_v38 = vld [vmem:[#allocation2 + $0x10] sm:$0x7] }
 0x245   : > { %5210 = vmatpush3.bf16.msra.mxu1 %v5390_v39  ;;  %5213 = vmatprep.mubr.msk.bf16.mxu1 %vm5432_vm0, %v5431_v2  ;;  %v2730_v39 = vld [vmem:[#allocation2 + $0x14] sm:$0x7] }
 0x246   : > { %5211 = vmatprep.subr.bf16.mxu1 %v5431_v2 }
 0x247   : > { %5204 = vmatpush3.bf16.msra.mxu0 %v5389_v40  ;;  %v3365_v40 = vrot.slane %v2729_v38, %v5485_v8 }
 0x248   : > { %5217 = vmatprep.subr.bf16.mxu0 %v5431_v2 }
 0x249   : > { %5212 = vmatpush3.bf16.msra.mxu1 %v5393_v42 }
 0x24a   : > { %5225 = vmatprep.subr.bf16.mxu1 %v5431_v2 }
 0x2d9   : > { %v1988_v43 = vpop.f32.mrf.mxu0 }
 0x2db   : > { %v5111_v45 = vpop.f32.mrf.mxu0 }
 0x2dc   : > { %v2058_v46 = vpop.f32.mrf.mxu1 }
 0x2dd   : > { %v1991_v47 = vpop.f32.mrf.mxu0  ;;  %v2059_v56 = vadd.f32 %v2058_v46, %v1988_v43 }
 0x2de   : > { %v5119_v48 = vpop.f32.mrf.mxu1 }
 0x2df   : > { %v5112_v49 = vpop.f32.mrf.mxu0  ;;  %v3366_v48 = vcombine.high %v3365_v40, %v3365_v40 }
 0x2e0   : > { %v2061_v50 = vpop.f32.mrf.mxu1 }
 0x2e1   : > { %v2151_v51 = vpop.f32.mrf.mxu0 }
 0x2e2   : > { %v5120_v52 = vpop.f32.mrf.mxu1  ;;  %v2157_v59 = vadd.f32 %v2151_v51, %v2059_v56 }
 0x2e3   : > { %v5127_v31 = vpop.f32.mrf.mxu0 }
 0x2e4   : > { %v2259_v53 = vpop.f32.mrf.mxu1 }
 0x2e5   : > { %v2154_v54 = vpop.f32.mrf.mxu0  ;;  %v2265_v63 = vadd.f32 %v2259_v53, %v2157_v59  ;;  %v5392_v53 = vld [vmem:[%s6249_s2 + $0x178] sm:$0xff]  }
 0x2e6   : > { %v5135_v57 = vpop.f32.mrf.mxu1 }
 0x2e7   : > { %v5128_v58 = vpop.f32.mrf.mxu0 }
 0x2e8   : > { %v2262_v60 = vpop.f32.mrf.mxu1 }
 0x2e9   : > { %v2335_v61 = vpop.f32.mrf.mxu0  ;;  %v3380_v60 = vrot.slane %v3366_v48, %v5485_v8 }
 0x2ea   : > { %v5136_v62 = vpop.f32.mrf.mxu1  ;;  %v2341_v4 = vadd.f32 %v2335_v61, %v2265_v63 }
 0x2eb   : > { %v5143_v25 = vpop.f32.mrf.mxu0  ;;  %v5394_v62 = vld [vmem:[%s6249_s2 + $0x170] sm:$0xff]  }
 0x2ec   : > { %v2420_v5 = vpop.f32.mrf.mxu1  ;;  %v3288_v25 = vcombine.low %v2729_v38, %v2730_v39 }
 0x2ed   : > { %v2338_v0 = vpop.f32.mrf.mxu0  ;;  %v2426_v41 = vadd.f32 %v2420_v5, %v2341_v4 }
 0x2ee   : > { %v5151_v1 = vpop.f32.mrf.mxu1  ;;  %v5395_v0 = vld [vmem:[%s6249_s2 + $0x188] sm:$0xff]  }
 0x2ef   : > { %v5144_v3 = vpop.f32.mrf.mxu0 }
 0x2f0   : > { %v2423_v7 = vpop.f32.mrf.mxu1  ;;  %v5396_v3 = vld [vmem:[%s6249_s2 + $0x198] sm:$0xff]  }
 0x2f1   : > { %v2528_v9 = vpop.f32.mrf.mxu0  ;;  %v3295_v7 = vrot.slane %v3288_v25, %v5485_v8 }
 0x2f2   : > { %v5152_v11 = vpop.f32.mrf.mxu1  ;;  %v2534_v14 = vadd.f32 %v2528_v9, %v2426_v41  ;;  %v3373_v41 = vrot.slane %v3365_v40, %v5485_v8  ;;  %v3617_v40 = vld [vmem:[#allocation2 + $0x4] sm:$0x7] }
 0x2f3   : > { %v5159_v10 = vpop.f32.mrf.mxu0 }
 0x2f4   : > { %v2604_v15 = vpop.f32.mrf.mxu1  ;;  %v5397_v10 = vld [vmem:[%s6249_s2 + $0x180] sm:$0xff]  }
 0x2f5   : > { %v2531_v16 = vpop.f32.mrf.mxu0  ;;  %v2610_v19 = vadd.f32 %v2604_v15, %v2534_v14  ;;  %v5398_v15 = vld [vmem:[%s6249_s2 + $0x190] sm:$0xff]  }
 0x2f6   : > { %v5167_v17 = vpop.f32.mrf.mxu1  ;;  %v3302_v16 = vrot.slane %v3295_v7, %v5485_v8 }
 0x2f7   : > { %v5160_v18 = vpop.f32.mrf.mxu0 }
 0x2f8   : > { %v2607_v20 = vpop.f32.mrf.mxu1  ;;  %v5400_v18 = vld [vmem:[%s6249_s2 + $0x1a8] sm:$0xff]  }
 0x2f9   : > { %v2689_v21 = vpop.f32.mrf.mxu0 }
 0x2fa   : > { %v2695_v22 = vadd.f32 %v2689_v21, %v2610_v19  ;;  %v5168_v24 = vpop.f32.mrf.mxu1  ;;  %v5401_v21 = vld [vmem:[%s6249_s2 + $0x1a0] sm:$0xff]  }
 0x2fb   : > { %v5175_v26 = vpop.f32.mrf.mxu0 }
 0x2fc   : > { %v2703_v23 = vrot.slane %v2695_v22, %v5621_v6  ;;  %v2851_v24 = vpop.f32.mrf.mxu1 }
 0x2fd   : > { %v2692_v27 = vpop.f32.mrf.mxu0 }
 0x2fe   : > { %v2704_v28 = vcombine.high %v2703_v23, %v2703_v23  ;;  %v6013_v29 = vadd.f32 %v2703_v23, %v5624_v12  ;;  %v5183_v26 = vpop.f32.mrf.mxu1 }
 0x2ff   : > { %v5176_v30 = vpop.f32.mrf.mxu0 }
 0x300   : > { %v6016_v32 = vadd.f32 %v2704_v28, %v5628_v13  ;;  %v2709_v33 = vmax.f32 %v6013_v29, 0.0  ;;  %v3387_v13 = vrot.slane %v2730_v39, %v5485_v8  ;;  %v2854_v23 = vpop.f32.mrf.mxu1 }
 0x302   : > { %v2710_v34 = vmax.f32 %v6016_v32, 0.0  ;;  %v4851_v35 = vpack.c.bf16 %v2709_v33, %v2709_v33  ;;  %v3388_v49 = vcombine.high %v3387_v13, %v3387_v13  ;;  %v3395_v11 = vrot.slane %v3387_v13, %v5485_v8  ;;  %v5184_v27 = vpop.f32.mrf.mxu1  ;;  %v2921_v28 = vpop.f32.mrf.mxu0 }
 0x303   : > { %v2922_v30 = vadd.f32 %v2921_v28, %v2851_v24 }
 0x304   : > { %v4852_v37 = vpack.c.bf16 %v2710_v34, %v2710_v34  ;;  %v2719_v36 = vrot.slane %v4851_v35, 7  ;;  %v3402_v61 = vrot.slane %v3388_v49, %v5485_v8  ;;  %v4777_v17 = vcombine.high %v3373_v41, %v3395_v11  ;;  %v5191_v33 = vpop.f32.mrf.mxu0  ;;  %v2998_v34 = vpop.f32.mrf.mxu1 }
 0x305   : > { %v6096_v35 = vadd.f32 %v2998_v34, %v2922_v30 }
 0x306   : > { %v2720_v44 = vrot.slane %v4852_v37, 7  ;;  %2723 = vst.msk [vmem:[#allocation2 + $0x8] sm:$0x2] %vm934_vm3, %v2719_v36  ;;  %v3408_v1 = vcombine.low %v3380_v60, %v3402_v61  ;;  %v3493_v20 = vrot.slane %v4777_v17, %v5485_v8  ;;  %v2924_v37 = vpop.f32.mrf.mxu0  ;;  %v5199_v36 = vpop.f32.mrf.mxu1  ;;  %v5407_v61 = vld [vmem:[%s6249_s2 + $0x1d0] sm:$0xff]  }
 0x308   : > { %2724 = vst.msk [vmem:[#allocation2 + $0xc] sm:$0x2] %vm934_vm3, %v2720_v44  ;;  %v3415_v14 = vrot.slane %v3408_v1, %v5485_v8  ;;  %v3500_v22 = vrot.slane %v3493_v20, %v5485_v8  ;;  %v5192_v44 = vpop.f32.mrf.mxu0  ;;  %v3001_v38 = vpop.f32.mrf.mxu1  ;;  %v5414_v1 = vld [vmem:[%s6249_s2 + $0x1f0] sm:$0xff]  }
 0x30a   : > { %v3422_v19 = vrot.slane %v3415_v14, %v5485_v8  ;;  %v5200_v39 = vpop.f32.mrf.mxu1 }
 0x30d   : > { %v2727_v12 = vld [vmem:[#allocation2 + $0x8] sm:$0x7] }
 0x30e   : > { %v3089_v42 = vrot.slane %v2727_v12, %v5485_v8 }
 0x30f   : > { %v2728_v43 = vld [vmem:[#allocation2 + $0xc] sm:$0x7] }
 0x310   : > { %v3012_v45 = vcombine.low %v2727_v12, %v2728_v43  ;;  %v3111_v46 = vrot.slane %v2728_v43, %v5485_v8  ;;  %v3090_v47 = vcombine.high %v3089_v42, %v3089_v42  ;;  %v3097_v52 = vrot.slane %v3089_v42, %v5485_v8  ;;  %v3616_v12 = vld [vmem:[#allocation2] sm:$0x7] }
 0x311   : > { %v3635_v13 = vrot.slane %v3616_v12, %v5485_v8  ;;  %v3657_v42 = vrot.slane %v3617_v40, %v5485_v8 }
 0x312   : > { %v3019_v50 = vrot.slane %v3012_v45, %v5485_v8  ;;  %v3112_v51 = vcombine.high %v3111_v46, %v3111_v46  ;;  %v3119_v31 = vrot.slane %v3111_v46, %v5485_v8  ;;  %v3104_v56 = vrot.slane %v3090_v47, %v5485_v8  ;;  %v5402_v46 = vld [vmem:[%s6249_s2 + $0x1c8] sm:$0xff]  }
 0x313   : > { %v3636_v43 = vcombine.high %v3635_v13, %v3635_v13  ;;  %v3658_v45 = vcombine.high %v3657_v42, %v3657_v42 }
 0x314   : > { %v3026_v54 = vrot.slane %v3019_v50, %v5485_v8  ;;  %v3126_v57 = vrot.slane %v3112_v51, %v5485_v8  ;;  %v4755_v58 = vcombine.high %v3097_v52, %v3119_v31  ;;  %v5403_v50 = vld [vmem:[%s6249_s2 + $0x1c0] sm:$0xff]   ;;  %v5404_v52 = vld [vmem:[%s6249_s2 + $0x1b8] sm:$0xff]  }
 0x315   : > { %v3650_v47 = vrot.slane %v3636_v43, %v5485_v8  ;;  %v3672_v48 = vrot.slane %v3658_v45, %v5485_v8 }
 0x316   : > { %5206 = vmatmul.mubr.msk.bf16.vlgmr.msra.gmra.mxu0 %vm1041_vm4, %v3026_v54  ;;  %v3132_v59 = vcombine.low %v3104_v56, %v3126_v57  ;;  %v3217_v5 = vrot.slane %v4755_v58, %v5485_v8  ;;  %v3748_v54 = vcombine.low %v3616_v12, %v3617_v40  ;;  %v3643_v56 = vrot.slane %v3635_v13, %v5485_v8  ;;  %v5406_v58 = vld [vmem:[%s6249_s2 + $0x1b0] sm:$0xff]  }
 0x317   : > { %5218 = vmatpush3.bf16.msra.mxu0 %v5392_v53  ;;  %5221 = vmatprep.mubr.msk.bf16.mxu0 %vm5432_vm0, %v5431_v2  ;;  %v3678_v49 = vcombine.low %v3650_v47, %v3672_v48  ;;  %v5405_v53 = vld [vmem:[%s6249_s2 + $0x1d8] sm:$0xff]   ;;  %v3665_v57 = vrot.slane %v3657_v42, %v5485_v8 }
 0x318   : > { %5219 = vmatprep.subr.bf16.mxu0 %v5431_v2  ;;  %v3139_v63 = vrot.slane %v3132_v59, %v5485_v8  ;;  %v3224_v9 = vrot.slane %v3217_v5, %v5485_v8  ;;  %v3755_v59 = vrot.slane %v3748_v54, %v5485_v8 }
 0x319   : > { %v3685_v51 = vrot.slane %v3678_v49, %v5485_v8  ;;  %v4799_v60 = vcombine.high %v3643_v56, %v3665_v57 }
 0x31a   : > { %v3146_v4 = vrot.slane %v3139_v63, %v5485_v8  ;;  %v5409_v63 = vld [vmem:[%s6249_s2 + $0x1e8] sm:$0xff]  }
 0x31b   : > { %5220 = vmatpush3.bf16.msra.mxu0 %v5394_v62  ;;  %v3692_v31 = vrot.slane %v3685_v51, %v5485_v8  ;;  %v3762_v62 = vrot.slane %v3755_v59, %v5485_v8  ;;  %v3832_v25 = vrot.slane %v4799_v60, %v5485_v8 }
 0x31c   : > { %5214 = vmatmul.mubr.msk.bf16.vlgmr.msra.gmra.mxu1 %vm1041_vm4, %v3146_v4  ;;  %5233 = vmatprep.subr.bf16.mxu0 %v5431_v2  ;;  %v5410_v4 = vld [vmem:[%s6249_s2 + $0x1e0] sm:$0xff]  }
 0x31d   : > { %5226 = vmatpush3.bf16.msra.mxu1 %v5395_v0  ;;  %5229 = vmatprep.mubr.msk.bf16.mxu1 %vm5432_vm0, %v5431_v2  ;;  %v3839_v5 = vrot.slane %v3832_v25, %v5485_v8  ;;  %v5411_v0 = vld [vmem:[%s6249_s2 + $0x1f8] sm:$0xff]  }
 0x31e   : > { %5222 = vmatmul.mubr.msk.bf16.vlgmr.msra.gmra.mxu0 %vm1041_vm4, %v3224_v9  ;;  %5227 = vmatprep.subr.bf16.mxu1 %v5431_v2 }
 0x31f   : > { %5234 = vmatpush3.bf16.msra.mxu0 %v5396_v3  ;;  %5237 = vmatprep.mubr.msk.bf16.mxu0 %vm5432_vm0, %v5431_v2 }
 0x320   : > { %5235 = vmatprep.subr.bf16.mxu0 %v5431_v2 }
 0x321   : > { %5228 = vmatpush3.bf16.msra.mxu1 %v5397_v10 }
 0x322   : > { %5241 = vmatprep.subr.bf16.mxu1 %v5431_v2 }
 0x323   : > { %5236 = vmatpush3.bf16.msra.mxu0 %v5398_v15 }
 0x324   : > { %5230 = vmatmul.mubr.msk.bf16.vlgmr.msra.gmra.mxu1 %vm1041_vm4, %v3302_v16  ;;  %5249 = vmatprep.subr.bf16.mxu0 %v5431_v2 }
 0x325   : > { %5242 = vmatpush3.bf16.msra.mxu1 %v5400_v18  ;;  %5245 = vmatprep.mubr.msk.bf16.mxu1 %vm5432_vm0, %v5431_v2 }
 0x326   : > { %5238 = vmatmul.mubr.msk.bf16.vlgmr.msra.gmra.mxu0 %vm1041_vm4, %v3422_v19  ;;  %5243 = vmatprep.subr.bf16.mxu1 %v5431_v2 }
 0x327   : > { %5253 = vmatprep.mubr.msk.bf16.mxu0 %vm5432_vm0, %v5431_v2  ;;  %5250 = vmatpush3.bf16.msra.mxu0 %v5402_v46 }
 0x328   : > { %5251 = vmatprep.subr.bf16.mxu0 %v5431_v2 }
 0x329   : > { %5244 = vmatpush3.bf16.msra.mxu1 %v5401_v21 }
 0x32a   : > { %5257 = vmatprep.subr.bf16.mxu1 %v5431_v2 }
 0x32b   : > { %5252 = vmatpush3.bf16.msra.mxu0 %v5403_v50 }
 0x32c   : > { %5246 = vmatmul.mubr.msk.bf16.vlgmr.msra.gmra.mxu1 %vm1041_vm4, %v3500_v22  ;;  %5265 = vmatprep.subr.bf16.mxu0 %v5431_v2 }
 0x32d   : > { %5261 = vmatprep.mubr.msk.bf16.mxu1 %vm5432_vm0, %v5431_v2  ;;  %5258 = vmatpush3.bf16.msra.mxu1 %v5404_v52 }
 0x32e   : > { %5254 = vmatmul.mubr.msk.bf16.vlgmr.msra.gmra.mxu0 %vm1041_vm4, %v3692_v31  ;;  %5259 = vmatprep.subr.bf16.mxu1 %v5431_v2  ;;  %v3620_v31 = vld [vmem:[#allocation2 + $0x10] sm:$0x7] }
 0x32f   : > { %5266 = vmatpush3.bf16.msra.mxu0 %v5405_v53  ;;  %5269 = vmatprep.mubr.msk.bf16.mxu0 %vm5432_vm0, %v5431_v2  ;;  %v3621_v53 = vld [vmem:[#allocation2 + $0x14] sm:$0x7]  ;;  %v4256_v56 = vrot.slane %v3620_v31, %v5485_v8 }
 0x330   : > { %5267 = vmatprep.subr.bf16.mxu0 %v5431_v2  ;;  %v4278_v57 = vrot.slane %v3621_v53, %v5485_v8 }
 0x331   : > { %5260 = vmatpush3.bf16.msra.mxu1 %v5406_v58  ;;  %v4257_v25 = vcombine.high %v4256_v56, %v4256_v56 }
 0x332   : > { %5273 = vmatprep.subr.bf16.mxu1 %v5431_v2 }
 0x333   : > { %5268 = vmatpush3.bf16.msra.mxu0 %v5407_v61 }
 0x334   : > { %5262 = vmatmul.mubr.msk.bf16.vlgmr.msra.gmra.mxu1 %vm1041_vm4, %v3762_v62  ;;  %5281 = vmatprep.subr.bf16.mxu0 %v5431_v2 }
 0x335   : > { %5274 = vmatpush3.bf16.msra.mxu1 %v5409_v63  ;;  %5277 = vmatprep.mubr.msk.bf16.mxu1 %vm5432_vm0, %v5431_v2 }
 0x336   : > { %5270 = vmatmul.mubr.msk.bf16.vlgmr.msra.gmra.mxu0 %vm1041_vm4, %v3839_v5  ;;  %5275 = vmatprep.subr.bf16.mxu1 %v5431_v2 }
 0x337   : > { %5282 = vmatpush3.bf16.msra.mxu0 %v5411_v0  ;;  %5285 = vmatprep.mubr.msk.bf16.mxu0 %vm5432_vm0, %v5431_v2 }
 0x338   : > { %5283 = vmatprep.subr.bf16.mxu0 %v5431_v2 }
 0x339   : > { %5276 = vmatpush3.bf16.msra.mxu1 %v5410_v4 }
 0x33a   : > { %5289 = vmatprep.subr.bf16.mxu1 %v5431_v2 }
 0x33b   : > { %5284 = vmatpush3.bf16.msra.mxu0 %v5414_v1  ;;  %v5413_v1 = vld [vmem:[%s6249_s2 + $0x208] sm:$0xff]  }
 0x33c   : > { %5297 = vmatprep.subr.bf16.mxu0 %v5431_v2 }
 0x3d6   : > { %v3076_v3 = vpop.f32.mrf.mxu0 }
 0x3d7   : > { %v3082_v15 = vadd.f32 %v3076_v3, %v6096_v35 }
 0x3d8   : > { %v5207_v7 = vpop.f32.mrf.mxu0 }
 0x3da   : > { %v3079_v9 = vpop.f32.mrf.mxu0 }
 0x3dc   : > { %v5208_v41 = vpop.f32.mrf.mxu0  ;;  %v3196_v11 = vpop.f32.mrf.mxu1 }
 0x3dd   : > { %v3202_v18 = vadd.f32 %v3196_v11, %v3082_v15  ;;  %v5415_v15 = vld [vmem:[%s6249_s2 + $0x200] sm:$0xff]  }
 0x3de   : > { %v5215_v10 = vpop.f32.mrf.mxu1  ;;  %v3274_v14 = vpop.f32.mrf.mxu0 }
 0x3df   : > { %v3280_v24 = vadd.f32 %v3274_v14, %v3202_v18  ;;  %v4271_v10 = vrot.slane %v4257_v25, %v5485_v8 }
 0x3e0   : > { %v3199_v16 = vpop.f32.mrf.mxu1  ;;  %v5223_v17 = vpop.f32.mrf.mxu0 }
 0x3e1   : > { %v4179_v16 = vcombine.low %v3620_v31, %v3621_v53 }
 0x3e2   : > { %v5216_v19 = vpop.f32.mrf.mxu1  ;;  %v3277_v20 = vpop.f32.mrf.mxu0 }
 0x3e3   : > { %v5416_v19 = vld [vmem:[%s6249_s2 + $0x218] sm:$0xff]  }
 0x3e4   : > { %v5224_v21 = vpop.f32.mrf.mxu0  ;;  %v3352_v22 = vpop.f32.mrf.mxu1 }
 0x3e5   : > { %v3358_v27 = vadd.f32 %v3352_v22, %v3280_v24  ;;  %v5417_v22 = vld [vmem:[%s6249_s2 + $0x228] sm:$0xff]   ;;  %v4186_v24 = vrot.slane %v4179_v16, %v5485_v8 }
 0x3e6   : > { %v5231_v26 = vpop.f32.mrf.mxu1  ;;  %v3472_v23 = vpop.f32.mrf.mxu0 }
 0x3e7   : > { %v3478_v37 = vadd.f32 %v3472_v23, %v3358_v27  ;;  %v4264_v23 = vrot.slane %v4256_v56, %v5485_v8  ;;  %v4286_v27 = vrot.slane %v4278_v57, %v5485_v8 }
 0x3e8   : > { %v3355_v28 = vpop.f32.mrf.mxu1  ;;  %v5239_v30 = vpop.f32.mrf.mxu0 }
 0x3e9   : > { %v5418_v28 = vld [vmem:[%s6249_s2 + $0x210] sm:$0xff]  }
 0x3ea   : > { %v5232_v33 = vpop.f32.mrf.mxu1  ;;  %v3475_v34 = vpop.f32.mrf.mxu0 }
 0x3eb   : > { %v5419_v33 = vld [vmem:[%s6249_s2 + $0x220] sm:$0xff]   ;;  %v4193_v34 = vrot.slane %v4186_v24, %v5485_v8 }
 0x3ec   : > { %v5240_v36 = vpop.f32.mrf.mxu0  ;;  %v3550_v44 = vpop.f32.mrf.mxu1 }
 0x3ed   : > { %v3556_v38 = vadd.f32 %v3550_v44, %v3478_v37  ;;  %v4843_v37 = vcombine.high %v4264_v23, %v4286_v27  ;;  %v5421_v36 = vld [vmem:[%s6249_s2 + $0x238] sm:$0xff]  }
 0x3ee   : > { %v5247_v35 = vpop.f32.mrf.mxu1 }
 0x3ef   : > { %v3557_v39 = vmax.f32 %v3556_v38, 0.0  ;;  %v4384_v38 = vrot.slane %v4843_v37, %v5485_v8  ;;  %v5422_v35 = vld [vmem:[%s6249_s2 + $0x230] sm:$0xff]  }
 0x3f0   : > { %v3553_v12 = vpop.f32.mrf.mxu1 }
 0x3f1   : > { %v3558_v40 = vpack.c.bf16 %v3557_v39, %v3557_v39  ;;  %v4391_v39 = vrot.slane %v4384_v38, %v5485_v8  ;;  %v3742_v12 = vpop.f32.mrf.mxu0 }
 0x3f2   : > { %v5248_v13 = vpop.f32.mrf.mxu1 }
 0x3f3   : > { %v3566_v42 = vrot.slane %v3558_v40, %v5485_v8  ;;  %v5255_v40 = vpop.f32.mrf.mxu0 }
 0x3f5   : > { %v3567_v43 = vcombine.high %v3566_v42, %v3566_v42  ;;  %v3574_v45 = vrot.slane %v3566_v42, %v5485_v8  ;;  %v3745_v13 = vpop.f32.mrf.mxu0 }
 0x3f7   : > { %v3581_v46 = vrot.slane %v3567_v43, %v5485_v8  ;;  %v3588_v47 = vrot.slane %v3574_v45, %v5815_v55  ;;  %v5256_v42 = vpop.f32.mrf.mxu0  ;;  %v3812_v43 = vpop.f32.mrf.mxu1 }
 0x3f8   : > { %v3813_v45 = vadd.f32 %v3812_v43, %v3742_v12 }
 0x3f9   : > { %v3589_v48 = vcombine.low %v3588_v47, %v3588_v47  ;;  %v3603_v49 = vrot.slane %v3581_v46, %v5815_v55  ;;  %v5263_v46 = vpop.f32.mrf.mxu1  ;;  %v3889_v47 = vpop.f32.mrf.mxu0 }
 0x3fb   : > { %v3596_v50 = vrot.slane %v3589_v48, %v5815_v55  ;;  %v3604_v51 = vcombine.low %v3603_v49, %v3603_v49  ;;  %v3895_v48 = vadd.f32 %v3889_v47, %v3813_v45  ;;  %v3815_v49 = vpop.f32.mrf.mxu1 }
 0x3fd   : > { %v3611_v52 = vrot.slane %v3604_v51, %v5815_v55  ;;  %3614 = vst.msk [vmem:[#allocation2 + $0x8] sm:$0x2] %vm934_vm3, %v3596_v50  ;;  %v4279_v55 = vcombine.high %v4278_v57, %v4278_v57  ;;  %v5271_v50 = vpop.f32.mrf.mxu0  ;;  %v5264_v51 = vpop.f32.mrf.mxu1 }
 0x3ff   : > { %3615 = vst.msk [vmem:[#allocation2 + $0xc] sm:$0x2] %vm934_vm3, %v3611_v52  ;;  %v4293_v14 = vrot.slane %v4279_v55, %v5485_v8  ;;  %v3892_v52 = vpop.f32.mrf.mxu0 }
 0x401   : > { %v4299_v21 = vcombine.low %v4271_v10, %v4293_v14  ;;  %v5272_v31 = vpop.f32.mrf.mxu0 }
 0x403   : > { %v4306_v30 = vrot.slane %v4299_v21, %v5485_v8 }
 0x404   : > { %v3618_v54 = vld [vmem:[#allocation2 + $0x8] sm:$0x7] }
 0x405   : > { %v3980_v58 = vrot.slane %v3618_v54, %v5485_v8  ;;  %v4313_v44 = vrot.slane %v4306_v30, %v5485_v8 }
 0x406   : > { %v3619_v59 = vld [vmem:[#allocation2 + $0xc] sm:$0x7] }
 0x407   : > { %v3903_v60 = vcombine.low %v3618_v54, %v3619_v59  ;;  %v4002_v61 = vrot.slane %v3619_v59, %v5485_v8  ;;  %v3981_v62 = vcombine.high %v3980_v58, %v3980_v58  ;;  %v3988_v0 = vrot.slane %v3980_v58, %v5485_v8 }
 0x409   : > { %v3910_v63 = vrot.slane %v3903_v60, %v5485_v8  ;;  %v4003_v5 = vcombine.high %v4002_v61, %v4002_v61  ;;  %v4010_v4 = vrot.slane %v4002_v61, %v5485_v8  ;;  %v3995_v7 = vrot.slane %v3981_v62, %v5485_v8 }
 0x40b   : > { %v3917_v3 = vrot.slane %v3910_v63, %v5485_v8  ;;  %v4017_v9 = vrot.slane %v4003_v5, %v5485_v8  ;;  %v4821_v41 = vcombine.high %v3988_v0, %v4010_v4 }
 0x40d   : > { %5278 = vmatmul.mubr.msk.bf16.vlgmr.msra.gmra.mxu1 %vm1041_vm4, %v3917_v3  ;;  %v4023_v11 = vcombine.low %v3995_v7, %v4017_v9  ;;  %v4108_v18 = vrot.slane %v4821_v41, %v5485_v8 }
 0x40e   : > { %5290 = vmatpush3.bf16.msra.mxu1 %v5413_v1  ;;  %5293 = vmatprep.mubr.msk.bf16.mxu1 %vm5432_vm0, %v5431_v2 }
 0x40f   : > { %5291 = vmatprep.subr.bf16.mxu1 %v5431_v2  ;;  %v4030_v17 = vrot.slane %v4023_v11, %v5485_v8  ;;  %v4115_v26 = vrot.slane %v4108_v18, %v5485_v8 }
 0x411   : > { %v4037_v20 = vrot.slane %v4030_v17, %v5485_v8 }
 0x412   : > { %5292 = vmatpush3.bf16.msra.mxu1 %v5415_v15 }
 0x413   : > { %5286 = vmatmul.mubr.msk.bf16.vlgmr.msra.gmra.mxu0 %vm1041_vm4, %v4037_v20  ;;  %5305 = vmatprep.subr.bf16.mxu1 %v5431_v2 }
 0x414   : > { %5298 = vmatpush3.bf16.msra.mxu0 %v5416_v19  ;;  %5301 = vmatprep.mubr.msk.bf16.mxu0 %vm5432_vm0, %v5431_v2 }
 0x415   : > { %5294 = vmatmul.mubr.msk.bf16.vlgmr.msra.gmra.mxu1 %vm1041_vm4, %v4115_v26  ;;  %5299 = vmatprep.subr.bf16.mxu0 %v5431_v2 }
 0x416   : > { %5306 = vmatpush3.bf16.msra.mxu1 %v5417_v22  ;;  %5309 = vmatprep.mubr.msk.bf16.mxu1 %vm5432_vm0, %v5431_v2 }
 0x417   : > { %5307 = vmatprep.subr.bf16.mxu1 %v5431_v2 }
 0x418   : > { %5300 = vmatpush3.bf16.msra.mxu0 %v5418_v28 }
 0x419   : > { %5313 = vmatprep.subr.bf16.mxu0 %v5431_v2 }
 0x41a   : > { %5308 = vmatpush3.bf16.msra.mxu1 %v5419_v33 }
 0x41b   : > { %5302 = vmatmul.mubr.msk.bf16.vlgmr.msra.gmra.mxu0 %vm1041_vm4, %v4193_v34 }
 0x41c   : > { %5314 = vmatpush3.bf16.msra.mxu0 %v5421_v36  ;;  %5317 = vmatprep.mubr.msk.bf16.mxu0 %vm5432_vm0, %v5431_v2  ;;  %vm4463_vm0 = vcmask 253952  }
 0x41d   : > { %5310 = vmatmul.mubr.msk.bf16.vlgmr.msra.gmra.mxu1 %vm1041_vm4, %v4313_v44  ;;  %5315 = vmatprep.subr.bf16.mxu0 %v5431_v2 }
 0x420   : > { %5316 = vmatpush3.bf16.msra.mxu0 %v5422_v35 }
 0x423   : > { %5318 = vmatmul.mubr.msk.bf16.vlgmr.msra.gmra.mxu0 %vm1041_vm4, %v4391_v39 }
 0x4cd   : > { %v3967_v2 = vpop.f32.mrf.mxu1 }
 0x4ce   : > { %v3973_v59 = vadd.f32 %v3967_v2, %v3895_v48 }
 0x4cf   : > { %v5279_v53 = vpop.f32.mrf.mxu1 }
 0x4d1   : > { %v3970_v8 = vpop.f32.mrf.mxu1 }
 0x4d3   : > { %v5280_v54 = vpop.f32.mrf.mxu1  ;;  %v4087_v56 = vpop.f32.mrf.mxu0 }
 0x4d4   : > { %v4093_v62 = vadd.f32 %v4087_v56, %v3973_v59 }
 0x4d5   : > { %v5287_v57 = vpop.f32.mrf.mxu0  ;;  %v4165_v58 = vpop.f32.mrf.mxu1 }
 0x4d6   : > { %v4171_v0 = vadd.f32 %v4165_v58, %v4093_v62 }
 0x4d7   : > { %v4090_v60 = vpop.f32.mrf.mxu0  ;;  %v5295_v61 = vpop.f32.mrf.mxu1 }
 0x4d9   : > { %v5288_v25 = vpop.f32.mrf.mxu0  ;;  %v4168_v55 = vpop.f32.mrf.mxu1 }
 0x4db   : > { %v5296_v63 = vpop.f32.mrf.mxu1  ;;  %v4243_v5 = vpop.f32.mrf.mxu0 }
 0x4dc   : > { %v4249_v3 = vadd.f32 %v4243_v5, %v4171_v0 }
 0x4dd   : > { %v5303_v4 = vpop.f32.mrf.mxu0  ;;  %v4363_v1 = vpop.f32.mrf.mxu1 }
 0x4de   : > { %v4369_v10 = vadd.f32 %v4363_v1, %v4249_v3 }
 0x4df   : > { %v4246_v7 = vpop.f32.mrf.mxu0  ;;  %v5311_v9 = vpop.f32.mrf.mxu1 }
 0x4e1   : > { %v5304_v41 = vpop.f32.mrf.mxu0  ;;  %v4366_v11 = vpop.f32.mrf.mxu1 }
 0x4e3   : > { %v5312_v14 = vpop.f32.mrf.mxu1  ;;  %v4441_v15 = vpop.f32.mrf.mxu0 }
 0x4e4   : > { %v4447_v16 = vadd.f32 %v4441_v15, %v4369_v10 }
 0x4e5   : > { %v5319_v17 = vpop.f32.mrf.mxu0 }
 0x4e6   : > { %v4455_v18 = vrot.slane %v4447_v16, %v5621_v6 }
 0x4e7   : > { %v4444_v19 = vpop.f32.mrf.mxu0 }
 0x4e8   : > { %v4456_v20 = vcombine.high %v4455_v18, %v4455_v18  ;;  %v4459_v21 = vadd.f32 %v4455_v18, %v6013_v29 }
 0x4e9   : > { %v5320_v22 = vpop.f32.mrf.mxu0 }
 0x4ea   : > { %v4460_v24 = vadd.f32 %v4456_v20, %v6016_v32  ;;  %v4461_v26 = vpack.c.bf16 %v4459_v21, %v4459_v21 }
 0x4ec   : > { %v4462_v23 = vpack.c.bf16 %v4460_v24, %v4460_v24  ;;  %4464 = vst.msk [vmem:[%s168_s6] sm:$0x1] %vm4463_vm0, %v4461_v26 }
 0x4ee   : > { %4465 = vst.msk [vmem:[%s168_s6 + $0x1] sm:$0x1] %vm4463_vm0, %v4462_v23 }
 0x4ef PF: > { %s13_s12 = sadd.s32 1, %s5429_s12  }
 0x4f0   : > { %p10_p4 = scmp.ge.s32.totalorder %s13_s12, 4  }
 0x4f2   :  { %12 = sbr.rel (!%p10_p4) target bundleno = 1 (0x1), region = 106 }

</bundles_post_ra>
